<compile_context>
chip_gen: v7x
topology: tpu7x:2x2x1
jax: 0.10.0
libtpu: 0.0.40
codegen_flags: <defaults>
</compile_context>

<pallas_src>
import numpy as np

import jax
import jax.numpy as jnp
from jax import lax
from jax.experimental import pallas as pl
from jax.experimental.pallas import tpu as pltpu

LRELU_SLOPE = 0.2


def _lrelu(x):
    return jnp.where(x > 0.0, x, LRELU_SLOPE * x)


# ---------------------------------------------------------------------------
# Host-side (numpy) weight transforms: fold pooling / stride-2 / space-to-depth
# into equivalent 3x3-stride-1 "same" convolutions on the s2d grid.
# ---------------------------------------------------------------------------

def _pool_fold_np(w3):
    """conv3x3(s1,p1) followed by AvgPool2d(2)  ==  conv4x4(s2,p1)."""
    w4 = np.zeros((4, 4) + w3.shape[2:], np.float32)
    for a in range(4):
        for b in range(4):
            for i in range(max(0, a - 1), min(2, a) + 1):
                for j in range(max(0, b - 1), min(2, b) + 1):
                    w4[a, b] += w3[i, j]
    return 0.25 * w4


def _s2d_in_np(w4):
    """conv4x4(s2,p1) on x  ==  conv3x3(s1,p1) on space_to_depth(x) (std out)."""
    _, _, ci, co = w4.shape
    v = np.zeros((3, 3, 4 * ci, co), np.float32)
    for a in (-1, 0, 1):
        for b in (-1, 0, 1):
            for r in range(2):
                for s in range(2):
                    i = 2 * a + r + 1
                    j = 2 * b + s + 1
                    if 0 <= i < 4 and 0 <= j < 4:
                        k = (2 * r + s) * ci
                        v[a + 1, b + 1, k:k + ci, :] = w4[i, j]
    return v


def _s2d_inout_np(w3):
    """conv3x3(s1,p1), both input AND output in space_to_depth form."""
    _, _, ci, co = w3.shape
    v = np.zeros((3, 3, 4 * ci, 4 * co), np.float32)
    for a in (-1, 0, 1):
        for b in (-1, 0, 1):
            for ri in range(2):
                for si in range(2):
                    for r in range(2):
                        for s in range(2):
                            i = 2 * a + ri - r + 1
                            j = 2 * b + si - s + 1
                            if 0 <= i < 3 and 0 <= j < 3:
                                ki = (2 * ri + si) * ci
                                ko = (2 * r + s) * co
                                v[a + 1, b + 1, ki:ki + ci, ko:ko + co] = w3[i, j]
    return v


def _space_to_depth(x):
    """NHWC (B,H,W,C) -> (B,H/2,W/2,4C); channel index = (2r+s)*C + c."""
    B, H, W, C = x.shape
    x = x.reshape(B, H // 2, 2, W // 2, 2, C)
    x = jnp.transpose(x, (0, 1, 3, 2, 4, 5))
    return x.reshape(B, H // 2, W // 2, 4 * C)


# ---------------------------------------------------------------------------
# In-kernel building blocks
# ---------------------------------------------------------------------------

def _conv3x3_same(pad_ref, x, w_ref, b_ref):
    """3x3 stride-1 'same' conv of a VMEM-resident (G, G, cin) slab.

    pad_ref is a zero-bordered VMEM scratch (G+2, G+16, >=cin).  The interior
    is stored at rows [1, G+1) and sublane-aligned columns [8, 8+G); taps read
    windows at column offsets 7/8/9 so the zero border supplies the padding.
    Each tap is one (G*G, cin) x (cin, cout) MXU matmul accumulated in f32.
    """
    G, _, cin = x.shape
    cout = w_ref.shape[2]
    pad_ref[1:G + 1, 8:8 + G, 0:cin] = x
    acc = jnp.zeros((G * G, cout), jnp.float32)
    t = 0
    for i in range(3):
        for j in range(3):
            xs = pad_ref[i:i + G, 7 + j:7 + j + G, 0:cin].reshape(G * G, cin)
            acc = acc + jnp.dot(xs, w_ref[t], preferred_element_type=jnp.float32)
            t += 1
    acc = acc + b_ref[...]
    return acc.reshape(G, G, cout)


def _make_stage_kernel(has_stem, has_tail):
    """One fused stage = [optional stem conv] + BasicBlock (+ optional tail)."""

    def kernel(*refs):
        it = iter(refs)
        y_ref = next(it)
        if has_stem:
            sw, sb = next(it), next(it)
        w1, b1, w2, b2, ws, bs = (next(it) for _ in range(6))
        if has_tail:
            fw, fb = next(it), next(it)
        o_ref = next(it)
        pad_ref = next(it)

        # Zero the scratch; only the (never-written) border is read as padding
        # and every conv overwrites the interior before reading it.
        pad_ref[...] = jnp.zeros_like(pad_ref)

        y = y_ref[0]                        # (G, G, 4*Cin)  s2d-form stage input
        G = y.shape[0]

        # Stem: conv0(k4,s2,p1) double-recast onto this grid, output in s2d form.
        a0 = _conv3x3_same(pad_ref, y, sw, sb) if has_stem else y

        # BasicBlock (pre-activation), fully on the s2d grid:
        h = _conv3x3_same(pad_ref, _lrelu(a0), w1, b1)    # conv3x3(in, in)
        h = _conv3x3_same(pad_ref, _lrelu(h), w2, b2)     # convMeanpool(in, out)
        c4 = a0.shape[2]
        co = h.shape[2]
        sc = jnp.dot(a0.reshape(G * G, c4), ws[...],      # meanpoolConv shortcut
                     preferred_element_type=jnp.float32) + bs[...]
        out = h + sc.reshape(G, G, co)                    # fused residual add

        if has_tail:
            # LeakyReLU -> AvgPool2d(G) -> Linear(co, output_nc), in-epilogue.
            z = _lrelu(out).reshape(G * G, co)
            feat = jnp.sum(z, axis=0, keepdims=True) * (1.0 / (G * G))  # sublane reduce first
            res = jnp.dot(feat, fw[...], preferred_element_type=jnp.float32) + fb[...]
            o_ref[0] = res.astype(o_ref.dtype)            # (1, output_nc)
        else:
            o_ref[0] = out.astype(o_ref.dtype)            # (G, G, co)

    return kernel


def _run_stage(y, sp):
    """Run one fused stage over the batch; grid=(B,), one image per grid step."""
    B, G, _, c_in = y.shape
    has_stem = "stem_w" in sp
    has_tail = "fc_w" in sp
    c_out = sp["w2"].shape[2]
    pad_c = max(sp["w1"].shape[1], sp["stem_w"].shape[1] if has_stem else 0)
    if has_tail:
        assert G == 8, "Encoder_wae expects an 8x8 map before AvgPool2d(8)"

    inputs = [y]
    in_specs = [pl.BlockSpec((1, G, G, c_in), lambda b: (b, 0, 0, 0))]

    def _const(arr):                      # VMEM-resident weight/bias (no re-DMA)
        nd = arr.ndim
        return pl.BlockSpec(arr.shape, lambda b, _n=nd: (0,) * _n)

    names = (["stem_w", "stem_b"] if has_stem else []) + \
            ["w1", "b1", "w2", "b2", "ws", "bs"] + \
            (["fc_w", "fc_b"] if has_tail else [])
    for k in names:
        inputs.append(sp[k])
        in_specs.append(_const(sp[k]))

    if has_tail:
        nc_out = sp["fc_w"].shape[1]
        out_shape = jax.ShapeDtypeStruct((B, 1, nc_out), jnp.float32)
        out_specs = pl.BlockSpec((1, 1, nc_out), lambda b: (b, 0, 0))
    else:
        out_shape = jax.ShapeDtypeStruct((B, G, G, c_out), jnp.float32)
        out_specs = pl.BlockSpec((1, G, G, c_out), lambda b: (b, 0, 0, 0))

    out = pl.pallas_call(
        _make_stage_kernel(has_stem, has_tail),
        out_shape=out_shape,
        grid_spec=pltpu.PrefetchScalarGridSpec(
            num_scalar_prefetch=0,
            grid=(B,),                    # B>=2 -> both v7x TensorCores busy
            in_specs=in_specs,
            out_specs=out_specs,
            scratch_shapes=[pltpu.VMEM((G + 2, G + 16, pad_c), jnp.float32)],
        ),
        compiler_params=pltpu.CompilerParams(
            dimension_semantics=("parallel",)),
    )(*inputs)
    return out[:, 0, :] if has_tail else out


# ---------------------------------------------------------------------------
# Parameter preparation (one-time, host side) and forward pass
# ---------------------------------------------------------------------------

def prepare_params(params, *, ndf, n_blocks):
    """Fold pool/stride/s2d reindexing into the weights; group per fused stage."""
    assert n_blocks >= 2
    max_ndf = 4
    w0 = np.asarray(params["conv0_w"], np.float32)        # (4,4,input_nc,ndf)
    b0 = np.asarray(params["conv0_b"], np.float32)
    stem_w = _s2d_inout_np(_s2d_in_np(w0))                 # (3,3,16*in_nc,4*ndf)

    prepared = []
    for n in range(1, n_blocks):
        p = params["blocks"][n - 1]
        cin = ndf * min(max_ndf, n)
        cout = ndf * min(max_ndf, n + 1)
        w1 = _s2d_inout_np(np.asarray(p["w1"], np.float32))                # (3,3,4cin,4cin)
        w2 = _s2d_in_np(_pool_fold_np(np.asarray(p["w2"], np.float32)))    # (3,3,4cin,cout)
        ws = np.asarray(p["ws"], np.float32).reshape(cin, cout)
        sp = dict(
            w1=jnp.asarray(w1.reshape(9, 4 * cin, 4 * cin)),
            b1=jnp.asarray(np.tile(np.asarray(p["b1"], np.float32), 4).reshape(1, 4 * cin)),
            w2=jnp.asarray(w2.reshape(9, 4 * cin, cout)),
            b2=jnp.asarray(np.asarray(p["b2"], np.float32).reshape(1, cout)),
            ws=jnp.asarray(0.25 * np.tile(ws, (4, 1))),    # AvgPool2d(2)+conv1x1 on s2d
            bs=jnp.asarray(np.asarray(p["bs"], np.float32).reshape(1, cout)),
        )
        if n == 1:                                         # fold conv0 into stage 1
            sp["stem_w"] = jnp.asarray(stem_w.reshape(9, stem_w.shape[2], stem_w.shape[3]))
            sp["stem_b"] = jnp.asarray(np.tile(b0, 4).reshape(1, 4 * w0.shape[3]))
        if n == n_blocks - 1:                              # fold fc tail into last stage
            sp["fc_w"] = jnp.asarray(np.asarray(params["fc_w"], np.float32).reshape(cout, -1))
            sp["fc_b"] = jnp.asarray(np.asarray(params["fc_b"], np.float32).reshape(1, -1))
        prepared.append(sp)
    return prepared


def encoder_wae_forward(x_nchw, prepared):
    """x: (B, input_nc, H, W) float32 -> (B, output_nc) float32."""
    x = jnp.transpose(x_nchw, (0, 2, 3, 1))                # NCHW -> NHWC
    y = _space_to_depth(_space_to_depth(x))                # stem runs on s2d^2(x)
    for sp in prepared:
        y = _run_stage(y, sp)
        if "fc_w" not in sp:
            y = _space_to_depth(y)                         # next stage's s2d input
    return y


# ---------------------------------------------------------------------------
# Parameters + pure-JAX reference (original, un-transformed weights)
# ---------------------------------------------------------------------------

def init_params(key, *, input_nc=3, ndf=8, n_blocks=3, output_nc=1):
    """PyTorch-style uniform(+-1/sqrt(fan_in)) init; conv weights stored HWIO."""
    max_ndf = 4
    it = iter(jax.random.split(key, 8 * n_blocks + 8))

    def conv_init(kh, kw, cin, cout):
        bound = 1.0 / (cin * kh * kw) ** 0.5
        w = jax.random.uniform(next(it), (kh, kw, cin, cout), jnp.float32, -bound, bound)
        bb = jax.random.uniform(next(it), (cout,), jnp.float32, -bound, bound)
        return w, bb

    params = {}
    params["conv0_w"], params["conv0_b"] = conv_init(4, 4, input_nc, ndf)
    blocks = []
    out_ndf = ndf
    for n in range(1, n_blocks):
        in_ndf = ndf * min(max_ndf, n)
        out_ndf = ndf * min(max_ndf, n + 1)
        w1, b1 = conv_init(3, 3, in_ndf, in_ndf)
        w2, b2 = conv_init(3, 3, in_ndf, out_ndf)
        ws, bs = conv_init(1, 1, in_ndf, out_ndf)
        blocks.append(dict(w1=w1, b1=b1, w2=w2, b2=b2, ws=ws, bs=bs))
    params["blocks"] = blocks
    bound = 1.0 / out_ndf ** 0.5
    params["fc_w"] = jax.random.uniform(next(it), (out_ndf, output_nc), jnp.float32, -bound, bound)
    params["fc_b"] = jax.random.uniform(next(it), (output_nc,), jnp.float32, -bound, bound)
    return params


def _conv_ref(x, w_hwio, b, stride, pad):
    y = lax.conv_general_dilated(
        x, w_hwio,
        window_strides=(stride, stride),
        padding=((pad, pad), (pad, pad)),
        dimension_numbers=("NHWC", "HWIO", "NHWC"),
        precision=lax.Precision.HIGHEST)
    return y + b


def _avgpool2(x):
    B, H, W, C = x.shape
    return x.reshape(B, H // 2, 2, W // 2, 2, C).mean(axis=(2, 4))


def encoder_wae_reference(x_nchw, params):
    x = jnp.transpose(x_nchw, (0, 2, 3, 1))
    h = _conv_ref(x, params["conv0_w"], params["conv0_b"], 2, 1)
    for p in params["blocks"]:
        c = _conv_ref(_lrelu(h), p["w1"], p["b1"], 1, 1)
        c = _conv_ref(_lrelu(c), p["w2"], p["b2"], 1, 1)
        c = _avgpool2(c)
        s = _conv_ref(_avgpool2(h), p["ws"], p["bs"], 1, 0)
        h = c + s
    h = _lrelu(h)
    feat = h.mean(axis=(1, 2))            # AvgPool2d(8) over the 8x8 map -> flatten
    return feat @ params["fc_w"] + params["fc_b"]


if __name__ == "__main__":
    key = jax.random.PRNGKey(0)
    kx, kp = jax.random.split(key)

    # Small config: input_nc=3, ndf=8, n_blocks=3 -> 64x64 input reduces to 8x8
    # before AvgPool2d(8); out_ndf = 8*min(4,3) = 24, fc = Linear(24, 1).
    B, input_nc, H, W = 2, 3, 64, 64
    ndf, n_blocks, output_nc = 8, 3, 1
    x = jax.random.normal(kx, (B, input_nc, H, W), jnp.float32)   # NCHW, like PyTorch
    params = init_params(kp, input_nc=input_nc, ndf=ndf, n_blocks=n_blocks,
                         output_nc=output_nc)
    prepared = prepare_params(params, ndf=ndf, n_blocks=n_blocks)

    fwd = jax.jit(encoder_wae_forward)
    out = jax.block_until_ready(fwd(x, prepared))
    ref = encoder_wae_reference(x, params)

    assert out.shape == (B, output_nc), out.shape
    assert jnp.allclose(out, ref, atol=5e-4, rtol=5e-4), (out, ref)

    print("KERNEL_OK")
</pallas_src>

<mosaic_0001>
module attributes {stable_mosaic.version = 11 : i64} {
  func.func @kernel(%arg0: i32, %arg1: memref<1x16x16x48xf32, #tpu.memory_space<vmem>>, %arg2: memref<9x48x32xf32, #tpu.memory_space<vmem>>, %arg3: memref<1x32xf32, #tpu.memory_space<vmem>>, %arg4: memref<9x32x32xf32, #tpu.memory_space<vmem>>, %arg5: memref<1x32xf32, #tpu.memory_space<vmem>>, %arg6: memref<9x32x16xf32, #tpu.memory_space<vmem>>, %arg7: memref<1x16xf32, #tpu.memory_space<vmem>>, %arg8: memref<32x16xf32, #tpu.memory_space<vmem>>, %arg9: memref<1x16xf32, #tpu.memory_space<vmem>>, %arg10: memref<1x16x16x16xf32, #tpu.memory_space<vmem>>, %arg11: memref<18x32x48xf32, #tpu.memory_space<vmem>>) attributes {dimension_semantics = [#tpu.dimension_semantics<parallel>], iteration_bounds = array<i64: 2>, scalar_prefetch = 0 : i64, scratch_operands = 1 : i64, tpu.core_type = #tpu.core_type<tc>, window_params = [{transform_indices = @transform_0, window_bounds = array<i64: 1, 16, 16, 48>}, {pipeline_mode = #tpu.pipeline_mode<synchronous>, transform_indices = @transform_1, window_bounds = array<i64: 9, 48, 32>}, {pipeline_mode = #tpu.pipeline_mode<synchronous>, transform_indices = @transform_2, window_bounds = array<i64: 1, 32>}, {pipeline_mode = #tpu.pipeline_mode<synchronous>, transform_indices = @transform_3, window_bounds = array<i64: 9, 32, 32>}, {pipeline_mode = #tpu.pipeline_mode<synchronous>, transform_indices = @transform_4, window_bounds = array<i64: 1, 32>}, {pipeline_mode = #tpu.pipeline_mode<synchronous>, transform_indices = @transform_5, window_bounds = array<i64: 9, 32, 16>}, {pipeline_mode = #tpu.pipeline_mode<synchronous>, transform_indices = @transform_6, window_bounds = array<i64: 1, 16>}, {pipeline_mode = #tpu.pipeline_mode<synchronous>, transform_indices = @transform_7, window_bounds = array<i64: 32, 16>}, {pipeline_mode = #tpu.pipeline_mode<synchronous>, transform_indices = @transform_8, window_bounds = array<i64: 1, 16>}, {transform_indices = @transform_9, window_bounds = array<i64: 1, 16, 16, 16>}]} {
    %cst = arith.constant 0.000000e+00 : f32
    %0 = vector.broadcast %cst : f32 to vector<18x32x48xf32>
    %c0 = arith.constant 0 : index
    %c0_0 = arith.constant 0 : index
    %c0_1 = arith.constant 0 : index
    %1 = vector.load %arg11[%c0, %c0_0, %c0_1] : memref<18x32x48xf32, #tpu.memory_space<vmem>>, vector<18x32x48xf32>
    tpu.vector_store %arg11[%c0, %c0_0, %c0_1], %0 {strides = array<i32>} : memref<18x32x48xf32, #tpu.memory_space<vmem>>, vector<18x32x48xf32>,
    %c0_2 = arith.constant 0 : index
    %c0_3 = arith.constant 0 : index
    %c0_4 = arith.constant 0 : index
    %c0_5 = arith.constant 0 : index
    %2 = vector.load %arg1[%c0_2, %c0_3, %c0_4, %c0_5] : memref<1x16x16x48xf32, #tpu.memory_space<vmem>>, vector<1x16x16x48xf32>
    %3 = vector.shape_cast %2 : vector<1x16x16x48xf32> to vector<16x16x48xf32>
    %c1 = arith.constant 1 : index
    %c8 = arith.constant 8 : index
    %c0_6 = arith.constant 0 : index
    %4 = vector.load %arg11[%c1, %c8, %c0_6] : memref<18x32x48xf32, #tpu.memory_space<vmem>>, vector<16x16x48xf32>
    tpu.vector_store %arg11[%c1, %c8, %c0_6], %3 {strides = array<i32>} : memref<18x32x48xf32, #tpu.memory_space<vmem>>, vector<16x16x48xf32>,
    %cst_7 = arith.constant 0.000000e+00 : f32
    %5 = vector.broadcast %cst_7 : f32 to vector<256x32xf32>
    %c0_8 = arith.constant 0 : index
    %c7 = arith.constant 7 : index
    %c0_9 = arith.constant 0 : index
    %6 = vector.load %arg11[%c0_8, %c7, %c0_9] : memref<18x32x48xf32, #tpu.memory_space<vmem>>, vector<16x16x48xf32>
    %7 = vector.shape_cast %6 : vector<16x16x48xf32> to vector<256x48xf32>
    %c0_10 = arith.constant 0 : index
    %c0_11 = arith.constant 0 : index
    %c0_12 = arith.constant 0 : index
    %8 = vector.load %arg2[%c0_10, %c0_11, %c0_12] : memref<9x48x32xf32, #tpu.memory_space<vmem>>, vector<1x48x32xf32>
    %9 = vector.shape_cast %8 : vector<1x48x32xf32> to vector<48x32xf32>
    %cst_13 = arith.constant dense<0.000000e+00> : vector<256x32xf32>
    %10 = tpu.matmul %7, %9, %cst_13 {dimension_numbers = #tpu.dot_dimension_numbers<[1], [0], [0], [1], [0, 0, 1, 1], [], []>} : vector<256x48xf32>, vector<48x32xf32>, vector<256x32xf32> -> vector<256x32xf32>
    %11 = arith.addf %5, %10 : vector<256x32xf32>
    %c0_14 = arith.constant 0 : index
    %c8_15 = arith.constant 8 : index
    %c0_16 = arith.constant 0 : index
    %12 = vector.load %arg11[%c0_14, %c8_15, %c0_16] : memref<18x32x48xf32, #tpu.memory_space<vmem>>, vector<16x16x48xf32>
    %13 = vector.shape_cast %12 : vector<16x16x48xf32> to vector<256x48xf32>
    %c1_17 = arith.constant 1 : index
    %c0_18 = arith.constant 0 : index
    %c0_19 = arith.constant 0 : index
    %14 = vector.load %arg2[%c1_17, %c0_18, %c0_19] : memref<9x48x32xf32, #tpu.memory_space<vmem>>, vector<1x48x32xf32>
    %15 = vector.shape_cast %14 : vector<1x48x32xf32> to vector<48x32xf32>
    %cst_20 = arith.constant dense<0.000000e+00> : vector<256x32xf32>
    %16 = tpu.matmul %13, %15, %cst_20 {dimension_numbers = #tpu.dot_dimension_numbers<[1], [0], [0], [1], [0, 0, 1, 1], [], []>} : vector<256x48xf32>, vector<48x32xf32>, vector<256x32xf32> -> vector<256x32xf32>
    %17 = arith.addf %11, %16 : vector<256x32xf32>
    %c0_21 = arith.constant 0 : index
    %c9 = arith.constant 9 : index
    %c0_22 = arith.constant 0 : index
    %18 = vector.load %arg11[%c0_21, %c9, %c0_22] : memref<18x32x48xf32, #tpu.memory_space<vmem>>, vector<16x16x48xf32>
    %19 = vector.shape_cast %18 : vector<16x16x48xf32> to vector<256x48xf32>
    %c2 = arith.constant 2 : index
    %c0_23 = arith.constant 0 : index
    %c0_24 = arith.constant 0 : index
    %20 = vector.load %arg2[%c2, %c0_23, %c0_24] : memref<9x48x32xf32, #tpu.memory_space<vmem>>, vector<1x48x32xf32>
    %21 = vector.shape_cast %20 : vector<1x48x32xf32> to vector<48x32xf32>
    %cst_25 = arith.constant dense<0.000000e+00> : vector<256x32xf32>
    %22 = tpu.matmul %19, %21, %cst_25 {dimension_numbers = #tpu.dot_dimension_numbers<[1], [0], [0], [1], [0, 0, 1, 1], [], []>} : vector<256x48xf32>, vector<48x32xf32>, vector<256x32xf32> -> vector<256x32xf32>
    %23 = arith.addf %17, %22 : vector<256x32xf32>
    %c1_26 = arith.constant 1 : index
    %c7_27 = arith.constant 7 : index
    %c0_28 = arith.constant 0 : index
    %24 = vector.load %arg11[%c1_26, %c7_27, %c0_28] : memref<18x32x48xf32, #tpu.memory_space<vmem>>, vector<16x16x48xf32>
    %25 = vector.shape_cast %24 : vector<16x16x48xf32> to vector<256x48xf32>
    %c3 = arith.constant 3 : index
    %c0_29 = arith.constant 0 : index
    %c0_30 = arith.constant 0 : index
    %26 = vector.load %arg2[%c3, %c0_29, %c0_30] : memref<9x48x32xf32, #tpu.memory_space<vmem>>, vector<1x48x32xf32>
    %27 = vector.shape_cast %26 : vector<1x48x32xf32> to vector<48x32xf32>
    %cst_31 = arith.constant dense<0.000000e+00> : vector<256x32xf32>
    %28 = tpu.matmul %25, %27, %cst_31 {dimension_numbers = #tpu.dot_dimension_numbers<[1], [0], [0], [1], [0, 0, 1, 1], [], []>} : vector<256x48xf32>, vector<48x32xf32>, vector<256x32xf32> -> vector<256x32xf32>
    %29 = arith.addf %23, %28 : vector<256x32xf32>
    %c1_32 = arith.constant 1 : index
    %c8_33 = arith.constant 8 : index
    %c0_34 = arith.constant 0 : index
    %30 = vector.load %arg11[%c1_32, %c8_33, %c0_34] : memref<18x32x48xf32, #tpu.memory_space<vmem>>, vector<16x16x48xf32>
    %31 = vector.shape_cast %30 : vector<16x16x48xf32> to vector<256x48xf32>
    %c4 = arith.constant 4 : index
    %c0_35 = arith.constant 0 : index
    %c0_36 = arith.constant 0 : index
    %32 = vector.load %arg2[%c4, %c0_35, %c0_36] : memref<9x48x32xf32, #tpu.memory_space<vmem>>, vector<1x48x32xf32>
    %33 = vector.shape_cast %32 : vector<1x48x32xf32> to vector<48x32xf32>
    %cst_37 = arith.constant dense<0.000000e+00> : vector<256x32xf32>
    %34 = tpu.matmul %31, %33, %cst_37 {dimension_numbers = #tpu.dot_dimension_numbers<[1], [0], [0], [1], [0, 0, 1, 1], [], []>} : vector<256x48xf32>, vector<48x32xf32>, vector<256x32xf32> -> vector<256x32xf32>
    %35 = arith.addf %29, %34 : vector<256x32xf32>
    %c1_38 = arith.constant 1 : index
    %c9_39 = arith.constant 9 : index
    %c0_40 = arith.constant 0 : index
    %36 = vector.load %arg11[%c1_38, %c9_39, %c0_40] : memref<18x32x48xf32, #tpu.memory_space<vmem>>, vector<16x16x48xf32>
    %37 = vector.shape_cast %36 : vector<16x16x48xf32> to vector<256x48xf32>
    %c5 = arith.constant 5 : index
    %c0_41 = arith.constant 0 : index
    %c0_42 = arith.constant 0 : index
    %38 = vector.load %arg2[%c5, %c0_41, %c0_42] : memref<9x48x32xf32, #tpu.memory_space<vmem>>, vector<1x48x32xf32>
    %39 = vector.shape_cast %38 : vector<1x48x32xf32> to vector<48x32xf32>
    %cst_43 = arith.constant dense<0.000000e+00> : vector<256x32xf32>
    %40 = tpu.matmul %37, %39, %cst_43 {dimension_numbers = #tpu.dot_dimension_numbers<[1], [0], [0], [1], [0, 0, 1, 1], [], []>} : vector<256x48xf32>, vector<48x32xf32>, vector<256x32xf32> -> vector<256x32xf32>
    %41 = arith.addf %35, %40 : vector<256x32xf32>
    %c2_44 = arith.constant 2 : index
    %c7_45 = arith.constant 7 : index
    %c0_46 = arith.constant 0 : index
    %42 = vector.load %arg11[%c2_44, %c7_45, %c0_46] : memref<18x32x48xf32, #tpu.memory_space<vmem>>, vector<16x16x48xf32>
    %43 = vector.shape_cast %42 : vector<16x16x48xf32> to vector<256x48xf32>
    %c6 = arith.constant 6 : index
    %c0_47 = arith.constant 0 : index
    %c0_48 = arith.constant 0 : index
    %44 = vector.load %arg2[%c6, %c0_47, %c0_48] : memref<9x48x32xf32, #tpu.memory_space<vmem>>, vector<1x48x32xf32>
    %45 = vector.shape_cast %44 : vector<1x48x32xf32> to vector<48x32xf32>
    %cst_49 = arith.constant dense<0.000000e+00> : vector<256x32xf32>
    %46 = tpu.matmul %43, %45, %cst_49 {dimension_numbers = #tpu.dot_dimension_numbers<[1], [0], [0], [1], [0, 0, 1, 1], [], []>} : vector<256x48xf32>, vector<48x32xf32>, vector<256x32xf32> -> vector<256x32xf32>
    %47 = arith.addf %41, %46 : vector<256x32xf32>
    %c2_50 = arith.constant 2 : index
    %c8_51 = arith.constant 8 : index
    %c0_52 = arith.constant 0 : index
    %48 = vector.load %arg11[%c2_50, %c8_51, %c0_52] : memref<18x32x48xf32, #tpu.memory_space<vmem>>, vector<16x16x48xf32>
    %49 = vector.shape_cast %48 : vector<16x16x48xf32> to vector<256x48xf32>
    %c7_53 = arith.constant 7 : index
    %c0_54 = arith.constant 0 : index
    %c0_55 = arith.constant 0 : index
    %50 = vector.load %arg2[%c7_53, %c0_54, %c0_55] : memref<9x48x32xf32, #tpu.memory_space<vmem>>, vector<1x48x32xf32>
    %51 = vector.shape_cast %50 : vector<1x48x32xf32> to vector<48x32xf32>
    %cst_56 = arith.constant dense<0.000000e+00> : vector<256x32xf32>
    %52 = tpu.matmul %49, %51, %cst_56 {dimension_numbers = #tpu.dot_dimension_numbers<[1], [0], [0], [1], [0, 0, 1, 1], [], []>} : vector<256x48xf32>, vector<48x32xf32>, vector<256x32xf32> -> vector<256x32xf32>
    %53 = arith.addf %47, %52 : vector<256x32xf32>
    %c2_57 = arith.constant 2 : index
    %c9_58 = arith.constant 9 : index
    %c0_59 = arith.constant 0 : index
    %54 = vector.load %arg11[%c2_57, %c9_58, %c0_59] : memref<18x32x48xf32, #tpu.memory_space<vmem>>, vector<16x16x48xf32>
    %55 = vector.shape_cast %54 : vector<16x16x48xf32> to vector<256x48xf32>
    %c8_60 = arith.constant 8 : index
    %c0_61 = arith.constant 0 : index
    %c0_62 = arith.constant 0 : index
    %56 = vector.load %arg2[%c8_60, %c0_61, %c0_62] : memref<9x48x32xf32, #tpu.memory_space<vmem>>, vector<1x48x32xf32>
    %57 = vector.shape_cast %56 : vector<1x48x32xf32> to vector<48x32xf32>
    %cst_63 = arith.constant dense<0.000000e+00> : vector<256x32xf32>
    %58 = tpu.matmul %55, %57, %cst_63 {dimension_numbers = #tpu.dot_dimension_numbers<[1], [0], [0], [1], [0, 0, 1, 1], [], []>} : vector<256x48xf32>, vector<48x32xf32>, vector<256x32xf32> -> vector<256x32xf32>
    %59 = arith.addf %53, %58 : vector<256x32xf32>
    %c0_64 = arith.constant 0 : index
    %c0_65 = arith.constant 0 : index
    %60 = vector.load %arg3[%c0_64, %c0_65] : memref<1x32xf32, #tpu.memory_space<vmem>>, vector<1x32xf32>
    %61 = vector.broadcast %60 : vector<1x32xf32> to vector<256x32xf32>
    %62 = arith.addf %59, %61 : vector<256x32xf32>
    %63 = vector.shape_cast %62 : vector<256x32xf32> to vector<16x16x32xf32>
    %cst_66 = arith.constant 0.000000e+00 : f32
    %64 = vector.broadcast %cst_66 : f32 to vector<16x16x32xf32>
    %65 = arith.cmpf ogt, %63, %64 : vector<16x16x32xf32>
    %cst_67 = arith.constant 2.000000e-01 : f32
    %66 = vector.broadcast %cst_67 : f32 to vector<16x16x32xf32>
    %67 = arith.mulf %66, %63 : vector<16x16x32xf32>
    %68 = arith.select %65, %63, %67 : vector<16x16x32xi1>, vector<16x16x32xf32>
    %c1_68 = arith.constant 1 : index
    %c8_69 = arith.constant 8 : index
    %c0_70 = arith.constant 0 : index
    %69 = vector.load %arg11[%c1_68, %c8_69, %c0_70] : memref<18x32x48xf32, #tpu.memory_space<vmem>>, vector<16x16x32xf32>
    tpu.vector_store %arg11[%c1_68, %c8_69, %c0_70], %68 {strides = array<i32>} : memref<18x32x48xf32, #tpu.memory_space<vmem>>, vector<16x16x32xf32>,
    %cst_71 = arith.constant 0.000000e+00 : f32
    %70 = vector.broadcast %cst_71 : f32 to vector<256x32xf32>
    %c0_72 = arith.constant 0 : index
    %c7_73 = arith.constant 7 : index
    %c0_74 = arith.constant 0 : index
    %71 = vector.load %arg11[%c0_72, %c7_73, %c0_74] : memref<18x32x48xf32, #tpu.memory_space<vmem>>, vector<16x16x32xf32>
    %72 = vector.shape_cast %71 : vector<16x16x32xf32> to vector<256x32xf32>
    %c0_75 = arith.constant 0 : index
    %c0_76 = arith.constant 0 : index
    %c0_77 = arith.constant 0 : index
    %73 = vector.load %arg4[%c0_75, %c0_76, %c0_77] : memref<9x32x32xf32, #tpu.memory_space<vmem>>, vector<1x32x32xf32>
    %74 = vector.shape_cast %73 : vector<1x32x32xf32> to vector<32x32xf32>
    %cst_78 = arith.constant dense<0.000000e+00> : vector<256x32xf32>
    %75 = tpu.matmul %72, %74, %cst_78 {dimension_numbers = #tpu.dot_dimension_numbers<[1], [0], [0], [1], [0, 0, 1, 1], [], []>} : vector<256x32xf32>, vector<32x32xf32>, vector<256x32xf32> -> vector<256x32xf32>
    %76 = arith.addf %70, %75 : vector<256x32xf32>
    %c0_79 = arith.constant 0 : index
    %c8_80 = arith.constant 8 : index
    %c0_81 = arith.constant 0 : index
    %77 = vector.load %arg11[%c0_79, %c8_80, %c0_81] : memref<18x32x48xf32, #tpu.memory_space<vmem>>, vector<16x16x32xf32>
    %78 = vector.shape_cast %77 : vector<16x16x32xf32> to vector<256x32xf32>
    %c1_82 = arith.constant 1 : index
    %c0_83 = arith.constant 0 : index
    %c0_84 = arith.constant 0 : index
    %79 = vector.load %arg4[%c1_82, %c0_83, %c0_84] : memref<9x32x32xf32, #tpu.memory_space<vmem>>, vector<1x32x32xf32>
    %80 = vector.shape_cast %79 : vector<1x32x32xf32> to vector<32x32xf32>
    %cst_85 = arith.constant dense<0.000000e+00> : vector<256x32xf32>
    %81 = tpu.matmul %78, %80, %cst_85 {dimension_numbers = #tpu.dot_dimension_numbers<[1], [0], [0], [1], [0, 0, 1, 1], [], []>} : vector<256x32xf32>, vector<32x32xf32>, vector<256x32xf32> -> vector<256x32xf32>
    %82 = arith.addf %76, %81 : vector<256x32xf32>
    %c0_86 = arith.constant 0 : index
    %c9_87 = arith.constant 9 : index
    %c0_88 = arith.constant 0 : index
    %83 = vector.load %arg11[%c0_86, %c9_87, %c0_88] : memref<18x32x48xf32, #tpu.memory_space<vmem>>, vector<16x16x32xf32>
    %84 = vector.shape_cast %83 : vector<16x16x32xf32> to vector<256x32xf32>
    %c2_89 = arith.constant 2 : index
    %c0_90 = arith.constant 0 : index
    %c0_91 = arith.constant 0 : index
    %85 = vector.load %arg4[%c2_89, %c0_90, %c0_91] : memref<9x32x32xf32, #tpu.memory_space<vmem>>, vector<1x32x32xf32>
    %86 = vector.shape_cast %85 : vector<1x32x32xf32> to vector<32x32xf32>
    %cst_92 = arith.constant dense<0.000000e+00> : vector<256x32xf32>
    %87 = tpu.matmul %84, %86, %cst_92 {dimension_numbers = #tpu.dot_dimension_numbers<[1], [0], [0], [1], [0, 0, 1, 1], [], []>} : vector<256x32xf32>, vector<32x32xf32>, vector<256x32xf32> -> vector<256x32xf32>
    %88 = arith.addf %82, %87 : vector<256x32xf32>
    %c1_93 = arith.constant 1 : index
    %c7_94 = arith.constant 7 : index
    %c0_95 = arith.constant 0 : index
    %89 = vector.load %arg11[%c1_93, %c7_94, %c0_95] : memref<18x32x48xf32, #tpu.memory_space<vmem>>, vector<16x16x32xf32>
    %90 = vector.shape_cast %89 : vector<16x16x32xf32> to vector<256x32xf32>
    %c3_96 = arith.constant 3 : index
    %c0_97 = arith.constant 0 : index
    %c0_98 = arith.constant 0 : index
    %91 = vector.load %arg4[%c3_96, %c0_97, %c0_98] : memref<9x32x32xf32, #tpu.memory_space<vmem>>, vector<1x32x32xf32>
    %92 = vector.shape_cast %91 : vector<1x32x32xf32> to vector<32x32xf32>
    %cst_99 = arith.constant dense<0.000000e+00> : vector<256x32xf32>
    %93 = tpu.matmul %90, %92, %cst_99 {dimension_numbers = #tpu.dot_dimension_numbers<[1], [0], [0], [1], [0, 0, 1, 1], [], []>} : vector<256x32xf32>, vector<32x32xf32>, vector<256x32xf32> -> vector<256x32xf32>
    %94 = arith.addf %88, %93 : vector<256x32xf32>
    %c1_100 = arith.constant 1 : index
    %c8_101 = arith.constant 8 : index
    %c0_102 = arith.constant 0 : index
    %95 = vector.load %arg11[%c1_100, %c8_101, %c0_102] : memref<18x32x48xf32, #tpu.memory_space<vmem>>, vector<16x16x32xf32>
    %96 = vector.shape_cast %95 : vector<16x16x32xf32> to vector<256x32xf32>
    %c4_103 = arith.constant 4 : index
    %c0_104 = arith.constant 0 : index
    %c0_105 = arith.constant 0 : index
    %97 = vector.load %arg4[%c4_103, %c0_104, %c0_105] : memref<9x32x32xf32, #tpu.memory_space<vmem>>, vector<1x32x32xf32>
    %98 = vector.shape_cast %97 : vector<1x32x32xf32> to vector<32x32xf32>
    %cst_106 = arith.constant dense<0.000000e+00> : vector<256x32xf32>
    %99 = tpu.matmul %96, %98, %cst_106 {dimension_numbers = #tpu.dot_dimension_numbers<[1], [0], [0], [1], [0, 0, 1, 1], [], []>} : vector<256x32xf32>, vector<32x32xf32>, vector<256x32xf32> -> vector<256x32xf32>
    %100 = arith.addf %94, %99 : vector<256x32xf32>
    %c1_107 = arith.constant 1 : index
    %c9_108 = arith.constant 9 : index
    %c0_109 = arith.constant 0 : index
    %101 = vector.load %arg11[%c1_107, %c9_108, %c0_109] : memref<18x32x48xf32, #tpu.memory_space<vmem>>, vector<16x16x32xf32>
    %102 = vector.shape_cast %101 : vector<16x16x32xf32> to vector<256x32xf32>
    %c5_110 = arith.constant 5 : index
    %c0_111 = arith.constant 0 : index
    %c0_112 = arith.constant 0 : index
    %103 = vector.load %arg4[%c5_110, %c0_111, %c0_112] : memref<9x32x32xf32, #tpu.memory_space<vmem>>, vector<1x32x32xf32>
    %104 = vector.shape_cast %103 : vector<1x32x32xf32> to vector<32x32xf32>
    %cst_113 = arith.constant dense<0.000000e+00> : vector<256x32xf32>
    %105 = tpu.matmul %102, %104, %cst_113 {dimension_numbers = #tpu.dot_dimension_numbers<[1], [0], [0], [1], [0, 0, 1, 1], [], []>} : vector<256x32xf32>, vector<32x32xf32>, vector<256x32xf32> -> vector<256x32xf32>
    %106 = arith.addf %100, %105 : vector<256x32xf32>
    %c2_114 = arith.constant 2 : index
    %c7_115 = arith.constant 7 : index
    %c0_116 = arith.constant 0 : index
    %107 = vector.load %arg11[%c2_114, %c7_115, %c0_116] : memref<18x32x48xf32, #tpu.memory_space<vmem>>, vector<16x16x32xf32>
    %108 = vector.shape_cast %107 : vector<16x16x32xf32> to vector<256x32xf32>
    %c6_117 = arith.constant 6 : index
    %c0_118 = arith.constant 0 : index
    %c0_119 = arith.constant 0 : index
    %109 = vector.load %arg4[%c6_117, %c0_118, %c0_119] : memref<9x32x32xf32, #tpu.memory_space<vmem>>, vector<1x32x32xf32>
    %110 = vector.shape_cast %109 : vector<1x32x32xf32> to vector<32x32xf32>
    %cst_120 = arith.constant dense<0.000000e+00> : vector<256x32xf32>
    %111 = tpu.matmul %108, %110, %cst_120 {dimension_numbers = #tpu.dot_dimension_numbers<[1], [0], [0], [1], [0, 0, 1, 1], [], []>} : vector<256x32xf32>, vector<32x32xf32>, vector<256x32xf32> -> vector<256x32xf32>
    %112 = arith.addf %106, %111 : vector<256x32xf32>
    %c2_121 = arith.constant 2 : index
    %c8_122 = arith.constant 8 : index
    %c0_123 = arith.constant 0 : index
    %113 = vector.load %arg11[%c2_121, %c8_122, %c0_123] : memref<18x32x48xf32, #tpu.memory_space<vmem>>, vector<16x16x32xf32>
    %114 = vector.shape_cast %113 : vector<16x16x32xf32> to vector<256x32xf32>
    %c7_124 = arith.constant 7 : index
    %c0_125 = arith.constant 0 : index
    %c0_126 = arith.constant 0 : index
    %115 = vector.load %arg4[%c7_124, %c0_125, %c0_126] : memref<9x32x32xf32, #tpu.memory_space<vmem>>, vector<1x32x32xf32>
    %116 = vector.shape_cast %115 : vector<1x32x32xf32> to vector<32x32xf32>
    %cst_127 = arith.constant dense<0.000000e+00> : vector<256x32xf32>
    %117 = tpu.matmul %114, %116, %cst_127 {dimension_numbers = #tpu.dot_dimension_numbers<[1], [0], [0], [1], [0, 0, 1, 1], [], []>} : vector<256x32xf32>, vector<32x32xf32>, vector<256x32xf32> -> vector<256x32xf32>
    %118 = arith.addf %112, %117 : vector<256x32xf32>
    %c2_128 = arith.constant 2 : index
    %c9_129 = arith.constant 9 : index
    %c0_130 = arith.constant 0 : index
    %119 = vector.load %arg11[%c2_128, %c9_129, %c0_130] : memref<18x32x48xf32, #tpu.memory_space<vmem>>, vector<16x16x32xf32>
    %120 = vector.shape_cast %119 : vector<16x16x32xf32> to vector<256x32xf32>
    %c8_131 = arith.constant 8 : index
    %c0_132 = arith.constant 0 : index
    %c0_133 = arith.constant 0 : index
    %121 = vector.load %arg4[%c8_131, %c0_132, %c0_133] : memref<9x32x32xf32, #tpu.memory_space<vmem>>, vector<1x32x32xf32>
    %122 = vector.shape_cast %121 : vector<1x32x32xf32> to vector<32x32xf32>
    %cst_134 = arith.constant dense<0.000000e+00> : vector<256x32xf32>
    %123 = tpu.matmul %120, %122, %cst_134 {dimension_numbers = #tpu.dot_dimension_numbers<[1], [0], [0], [1], [0, 0, 1, 1], [], []>} : vector<256x32xf32>, vector<32x32xf32>, vector<256x32xf32> -> vector<256x32xf32>
    %124 = arith.addf %118, %123 : vector<256x32xf32>
    %c0_135 = arith.constant 0 : index
    %c0_136 = arith.constant 0 : index
    %125 = vector.load %arg5[%c0_135, %c0_136] : memref<1x32xf32, #tpu.memory_space<vmem>>, vector<1x32xf32>
    %126 = vector.broadcast %125 : vector<1x32xf32> to vector<256x32xf32>
    %127 = arith.addf %124, %126 : vector<256x32xf32>
    %128 = vector.shape_cast %127 : vector<256x32xf32> to vector<16x16x32xf32>
    %cst_137 = arith.constant 0.000000e+00 : f32
    %129 = vector.broadcast %cst_137 : f32 to vector<16x16x32xf32>
    %130 = arith.cmpf ogt, %128, %129 : vector<16x16x32xf32>
    %cst_138 = arith.constant 2.000000e-01 : f32
    %131 = vector.broadcast %cst_138 : f32 to vector<16x16x32xf32>
    %132 = arith.mulf %131, %128 : vector<16x16x32xf32>
    %133 = arith.select %130, %128, %132 : vector<16x16x32xi1>, vector<16x16x32xf32>
    %c1_139 = arith.constant 1 : index
    %c8_140 = arith.constant 8 : index
    %c0_141 = arith.constant 0 : index
    %134 = vector.load %arg11[%c1_139, %c8_140, %c0_141] : memref<18x32x48xf32, #tpu.memory_space<vmem>>, vector<16x16x32xf32>
    tpu.vector_store %arg11[%c1_139, %c8_140, %c0_141], %133 {strides = array<i32>} : memref<18x32x48xf32, #tpu.memory_space<vmem>>, vector<16x16x32xf32>,
    %cst_142 = arith.constant 0.000000e+00 : f32
    %135 = vector.broadcast %cst_142 : f32 to vector<256x16xf32>
    %c0_143 = arith.constant 0 : index
    %c7_144 = arith.constant 7 : index
    %c0_145 = arith.constant 0 : index
    %136 = vector.load %arg11[%c0_143, %c7_144, %c0_145] : memref<18x32x48xf32, #tpu.memory_space<vmem>>, vector<16x16x32xf32>
    %137 = vector.shape_cast %136 : vector<16x16x32xf32> to vector<256x32xf32>
    %c0_146 = arith.constant 0 : index
    %c0_147 = arith.constant 0 : index
    %c0_148 = arith.constant 0 : index
    %138 = vector.load %arg6[%c0_146, %c0_147, %c0_148] : memref<9x32x16xf32, #tpu.memory_space<vmem>>, vector<1x32x16xf32>
    %139 = vector.shape_cast %138 : vector<1x32x16xf32> to vector<32x16xf32>
    %cst_149 = arith.constant dense<0.000000e+00> : vector<256x16xf32>
    %140 = tpu.matmul %137, %139, %cst_149 {dimension_numbers = #tpu.dot_dimension_numbers<[1], [0], [0], [1], [0, 0, 1, 1], [], []>} : vector<256x32xf32>, vector<32x16xf32>, vector<256x16xf32> -> vector<256x16xf32>
    %141 = arith.addf %135, %140 : vector<256x16xf32>
    %c0_150 = arith.constant 0 : index
    %c8_151 = arith.constant 8 : index
    %c0_152 = arith.constant 0 : index
    %142 = vector.load %arg11[%c0_150, %c8_151, %c0_152] : memref<18x32x48xf32, #tpu.memory_space<vmem>>, vector<16x16x32xf32>
    %143 = vector.shape_cast %142 : vector<16x16x32xf32> to vector<256x32xf32>
    %c1_153 = arith.constant 1 : index
    %c0_154 = arith.constant 0 : index
    %c0_155 = arith.constant 0 : index
    %144 = vector.load %arg6[%c1_153, %c0_154, %c0_155] : memref<9x32x16xf32, #tpu.memory_space<vmem>>, vector<1x32x16xf32>
    %145 = vector.shape_cast %144 : vector<1x32x16xf32> to vector<32x16xf32>
    %cst_156 = arith.constant dense<0.000000e+00> : vector<256x16xf32>
    %146 = tpu.matmul %143, %145, %cst_156 {dimension_numbers = #tpu.dot_dimension_numbers<[1], [0], [0], [1], [0, 0, 1, 1], [], []>} : vector<256x32xf32>, vector<32x16xf32>, vector<256x16xf32> -> vector<256x16xf32>
    %147 = arith.addf %141, %146 : vector<256x16xf32>
    %c0_157 = arith.constant 0 : index
    %c9_158 = arith.constant 9 : index
    %c0_159 = arith.constant 0 : index
    %148 = vector.load %arg11[%c0_157, %c9_158, %c0_159] : memref<18x32x48xf32, #tpu.memory_space<vmem>>, vector<16x16x32xf32>
    %149 = vector.shape_cast %148 : vector<16x16x32xf32> to vector<256x32xf32>
    %c2_160 = arith.constant 2 : index
    %c0_161 = arith.constant 0 : index
    %c0_162 = arith.constant 0 : index
    %150 = vector.load %arg6[%c2_160, %c0_161, %c0_162] : memref<9x32x16xf32, #tpu.memory_space<vmem>>, vector<1x32x16xf32>
    %151 = vector.shape_cast %150 : vector<1x32x16xf32> to vector<32x16xf32>
    %cst_163 = arith.constant dense<0.000000e+00> : vector<256x16xf32>
    %152 = tpu.matmul %149, %151, %cst_163 {dimension_numbers = #tpu.dot_dimension_numbers<[1], [0], [0], [1], [0, 0, 1, 1], [], []>} : vector<256x32xf32>, vector<32x16xf32>, vector<256x16xf32> -> vector<256x16xf32>
    %153 = arith.addf %147, %152 : vector<256x16xf32>
    %c1_164 = arith.constant 1 : index
    %c7_165 = arith.constant 7 : index
    %c0_166 = arith.constant 0 : index
    %154 = vector.load %arg11[%c1_164, %c7_165, %c0_166] : memref<18x32x48xf32, #tpu.memory_space<vmem>>, vector<16x16x32xf32>
    %155 = vector.shape_cast %154 : vector<16x16x32xf32> to vector<256x32xf32>
    %c3_167 = arith.constant 3 : index
    %c0_168 = arith.constant 0 : index
    %c0_169 = arith.constant 0 : index
    %156 = vector.load %arg6[%c3_167, %c0_168, %c0_169] : memref<9x32x16xf32, #tpu.memory_space<vmem>>, vector<1x32x16xf32>
    %157 = vector.shape_cast %156 : vector<1x32x16xf32> to vector<32x16xf32>
    %cst_170 = arith.constant dense<0.000000e+00> : vector<256x16xf32>
    %158 = tpu.matmul %155, %157, %cst_170 {dimension_numbers = #tpu.dot_dimension_numbers<[1], [0], [0], [1], [0, 0, 1, 1], [], []>} : vector<256x32xf32>, vector<32x16xf32>, vector<256x16xf32> -> vector<256x16xf32>
    %159 = arith.addf %153, %158 : vector<256x16xf32>
    %c1_171 = arith.constant 1 : index
    %c8_172 = arith.constant 8 : index
    %c0_173 = arith.constant 0 : index
    %160 = vector.load %arg11[%c1_171, %c8_172, %c0_173] : memref<18x32x48xf32, #tpu.memory_space<vmem>>, vector<16x16x32xf32>
    %161 = vector.shape_cast %160 : vector<16x16x32xf32> to vector<256x32xf32>
    %c4_174 = arith.constant 4 : index
    %c0_175 = arith.constant 0 : index
    %c0_176 = arith.constant 0 : index
    %162 = vector.load %arg6[%c4_174, %c0_175, %c0_176] : memref<9x32x16xf32, #tpu.memory_space<vmem>>, vector<1x32x16xf32>
    %163 = vector.shape_cast %162 : vector<1x32x16xf32> to vector<32x16xf32>
    %cst_177 = arith.constant dense<0.000000e+00> : vector<256x16xf32>
    %164 = tpu.matmul %161, %163, %cst_177 {dimension_numbers = #tpu.dot_dimension_numbers<[1], [0], [0], [1], [0, 0, 1, 1], [], []>} : vector<256x32xf32>, vector<32x16xf32>, vector<256x16xf32> -> vector<256x16xf32>
    %165 = arith.addf %159, %164 : vector<256x16xf32>
    %c1_178 = arith.constant 1 : index
    %c9_179 = arith.constant 9 : index
    %c0_180 = arith.constant 0 : index
    %166 = vector.load %arg11[%c1_178, %c9_179, %c0_180] : memref<18x32x48xf32, #tpu.memory_space<vmem>>, vector<16x16x32xf32>
    %167 = vector.shape_cast %166 : vector<16x16x32xf32> to vector<256x32xf32>
    %c5_181 = arith.constant 5 : index
    %c0_182 = arith.constant 0 : index
    %c0_183 = arith.constant 0 : index
    %168 = vector.load %arg6[%c5_181, %c0_182, %c0_183] : memref<9x32x16xf32, #tpu.memory_space<vmem>>, vector<1x32x16xf32>
    %169 = vector.shape_cast %168 : vector<1x32x16xf32> to vector<32x16xf32>
    %cst_184 = arith.constant dense<0.000000e+00> : vector<256x16xf32>
    %170 = tpu.matmul %167, %169, %cst_184 {dimension_numbers = #tpu.dot_dimension_numbers<[1], [0], [0], [1], [0, 0, 1, 1], [], []>} : vector<256x32xf32>, vector<32x16xf32>, vector<256x16xf32> -> vector<256x16xf32>
    %171 = arith.addf %165, %170 : vector<256x16xf32>
    %c2_185 = arith.constant 2 : index
    %c7_186 = arith.constant 7 : index
    %c0_187 = arith.constant 0 : index
    %172 = vector.load %arg11[%c2_185, %c7_186, %c0_187] : memref<18x32x48xf32, #tpu.memory_space<vmem>>, vector<16x16x32xf32>
    %173 = vector.shape_cast %172 : vector<16x16x32xf32> to vector<256x32xf32>
    %c6_188 = arith.constant 6 : index
    %c0_189 = arith.constant 0 : index
    %c0_190 = arith.constant 0 : index
    %174 = vector.load %arg6[%c6_188, %c0_189, %c0_190] : memref<9x32x16xf32, #tpu.memory_space<vmem>>, vector<1x32x16xf32>
    %175 = vector.shape_cast %174 : vector<1x32x16xf32> to vector<32x16xf32>
    %cst_191 = arith.constant dense<0.000000e+00> : vector<256x16xf32>
    %176 = tpu.matmul %173, %175, %cst_191 {dimension_numbers = #tpu.dot_dimension_numbers<[1], [0], [0], [1], [0, 0, 1, 1], [], []>} : vector<256x32xf32>, vector<32x16xf32>, vector<256x16xf32> -> vector<256x16xf32>
    %177 = arith.addf %171, %176 : vector<256x16xf32>
    %c2_192 = arith.constant 2 : index
    %c8_193 = arith.constant 8 : index
    %c0_194 = arith.constant 0 : index
    %178 = vector.load %arg11[%c2_192, %c8_193, %c0_194] : memref<18x32x48xf32, #tpu.memory_space<vmem>>, vector<16x16x32xf32>
    %179 = vector.shape_cast %178 : vector<16x16x32xf32> to vector<256x32xf32>
    %c7_195 = arith.constant 7 : index
    %c0_196 = arith.constant 0 : index
    %c0_197 = arith.constant 0 : index
    %180 = vector.load %arg6[%c7_195, %c0_196, %c0_197] : memref<9x32x16xf32, #tpu.memory_space<vmem>>, vector<1x32x16xf32>
    %181 = vector.shape_cast %180 : vector<1x32x16xf32> to vector<32x16xf32>
    %cst_198 = arith.constant dense<0.000000e+00> : vector<256x16xf32>
    %182 = tpu.matmul %179, %181, %cst_198 {dimension_numbers = #tpu.dot_dimension_numbers<[1], [0], [0], [1], [0, 0, 1, 1], [], []>} : vector<256x32xf32>, vector<32x16xf32>, vector<256x16xf32> -> vector<256x16xf32>
    %183 = arith.addf %177, %182 : vector<256x16xf32>
    %c2_199 = arith.constant 2 : index
    %c9_200 = arith.constant 9 : index
    %c0_201 = arith.constant 0 : index
    %184 = vector.load %arg11[%c2_199, %c9_200, %c0_201] : memref<18x32x48xf32, #tpu.memory_space<vmem>>, vector<16x16x32xf32>
    %185 = vector.shape_cast %184 : vector<16x16x32xf32> to vector<256x32xf32>
    %c8_202 = arith.constant 8 : index
    %c0_203 = arith.constant 0 : index
    %c0_204 = arith.constant 0 : index
    %186 = vector.load %arg6[%c8_202, %c0_203, %c0_204] : memref<9x32x16xf32, #tpu.memory_space<vmem>>, vector<1x32x16xf32>
    %187 = vector.shape_cast %186 : vector<1x32x16xf32> to vector<32x16xf32>
    %cst_205 = arith.constant dense<0.000000e+00> : vector<256x16xf32>
    %188 = tpu.matmul %185, %187, %cst_205 {dimension_numbers = #tpu.dot_dimension_numbers<[1], [0], [0], [1], [0, 0, 1, 1], [], []>} : vector<256x32xf32>, vector<32x16xf32>, vector<256x16xf32> -> vector<256x16xf32>
    %189 = arith.addf %183, %188 : vector<256x16xf32>
    %c0_206 = arith.constant 0 : index
    %c0_207 = arith.constant 0 : index
    %190 = vector.load %arg7[%c0_206, %c0_207] : memref<1x16xf32, #tpu.memory_space<vmem>>, vector<1x16xf32>
    %191 = vector.broadcast %190 : vector<1x16xf32> to vector<256x16xf32>
    %192 = arith.addf %189, %191 : vector<256x16xf32>
    %193 = vector.shape_cast %192 : vector<256x16xf32> to vector<16x16x16xf32>
    %194 = vector.shape_cast %63 : vector<16x16x32xf32> to vector<256x32xf32>
    %c0_208 = arith.constant 0 : index
    %c0_209 = arith.constant 0 : index
    %195 = vector.load %arg8[%c0_208, %c0_209] : memref<32x16xf32, #tpu.memory_space<vmem>>, vector<32x16xf32>
    %cst_210 = arith.constant dense<0.000000e+00> : vector<256x16xf32>
    %196 = tpu.matmul %194, %195, %cst_210 {dimension_numbers = #tpu.dot_dimension_numbers<[1], [0], [0], [1], [0, 0, 1, 1], [], []>} : vector<256x32xf32>, vector<32x16xf32>, vector<256x16xf32> -> vector<256x16xf32>
    %c0_211 = arith.constant 0 : index
    %c0_212 = arith.constant 0 : index
    %197 = vector.load %arg9[%c0_211, %c0_212] : memref<1x16xf32, #tpu.memory_space<vmem>>, vector<1x16xf32>
    %198 = vector.broadcast %197 : vector<1x16xf32> to vector<256x16xf32>
    %199 = arith.addf %196, %198 : vector<256x16xf32>
    %200 = vector.shape_cast %199 : vector<256x16xf32> to vector<16x16x16xf32>
    %201 = arith.addf %193, %200 : vector<16x16x16xf32>
    %c0_213 = arith.constant 0 : index
    %c0_214 = arith.constant 0 : index
    %c0_215 = arith.constant 0 : index
    %c0_216 = arith.constant 0 : index
    %202 = vector.load %arg10[%c0_213, %c0_214, %c0_215, %c0_216] : memref<1x16x16x16xf32, #tpu.memory_space<vmem>>, vector<1x16x16x16xf32>
    %203 = vector.shape_cast %202 : vector<1x16x16x16xf32> to vector<16x16x16xf32>
    %204 = vector.shape_cast %201 : vector<16x16x16xf32> to vector<1x16x16x16xf32>
    tpu.vector_store %arg10[%c0_213, %c0_214, %c0_215, %c0_216], %204 {strides = array<i32>} : memref<1x16x16x16xf32, #tpu.memory_space<vmem>>, vector<1x16x16x16xf32>,
    return
  }
  func.func @transform_0(%arg0: i32) -> (i32, i32, i32, i32) {
    %c0_i32 = arith.constant 0 : i32
    %c0_i32_0 = arith.constant 0 : i32
    %c0_i32_1 = arith.constant 0 : i32
    %c0_i32_2 = arith.constant 0 : i32
    return %arg0, %c0_i32, %c0_i32_0, %c0_i32_1 : i32, i32, i32, i32
  }
  func.func @transform_1(%arg0: i32) -> (i32, i32, i32) {
    %c0_i32 = arith.constant 0 : i32
    %c0_i32_0 = arith.constant 0 : i32
    %c0_i32_1 = arith.constant 0 : i32
    %c0_i32_2 = arith.constant 0 : i32
    return %c0_i32, %c0_i32_0, %c0_i32_1 : i32, i32, i32
  }
  func.func @transform_2(%arg0: i32) -> (i32, i32) {
    %c0_i32 = arith.constant 0 : i32
    %c0_i32_0 = arith.constant 0 : i32
    %c0_i32_1 = arith.constant 0 : i32
    return %c0_i32, %c0_i32_0 : i32, i32
  }
  func.func @transform_3(%arg0: i32) -> (i32, i32, i32) {
    %c0_i32 = arith.constant 0 : i32
    %c0_i32_0 = arith.constant 0 : i32
    %c0_i32_1 = arith.constant 0 : i32
    %c0_i32_2 = arith.constant 0 : i32
    return %c0_i32, %c0_i32_0, %c0_i32_1 : i32, i32, i32
  }
  func.func @transform_4(%arg0: i32) -> (i32, i32) {
    %c0_i32 = arith.constant 0 : i32
    %c0_i32_0 = arith.constant 0 : i32
    %c0_i32_1 = arith.constant 0 : i32
    return %c0_i32, %c0_i32_0 : i32, i32
  }
  func.func @transform_5(%arg0: i32) -> (i32, i32, i32) {
    %c0_i32 = arith.constant 0 : i32
    %c0_i32_0 = arith.constant 0 : i32
    %c0_i32_1 = arith.constant 0 : i32
    %c0_i32_2 = arith.constant 0 : i32
    return %c0_i32, %c0_i32_0, %c0_i32_1 : i32, i32, i32
  }
  func.func @transform_6(%arg0: i32) -> (i32, i32) {
    %c0_i32 = arith.constant 0 : i32
    %c0_i32_0 = arith.constant 0 : i32
    %c0_i32_1 = arith.constant 0 : i32
    return %c0_i32, %c0_i32_0 : i32, i32
  }
  func.func @transform_7(%arg0: i32) -> (i32, i32) {
    %c0_i32 = arith.constant 0 : i32
    %c0_i32_0 = arith.constant 0 : i32
    %c0_i32_1 = arith.constant 0 : i32
    return %c0_i32, %c0_i32_0 : i32, i32
  }
  func.func @transform_8(%arg0: i32) -> (i32, i32) {
    %c0_i32 = arith.constant 0 : i32
    %c0_i32_0 = arith.constant 0 : i32
    %c0_i32_1 = arith.constant 0 : i32
    return %c0_i32, %c0_i32_0 : i32, i32
  }
  func.func @transform_9(%arg0: i32) -> (i32, i32, i32, i32) {
    %c0_i32 = arith.constant 0 : i32
    %c0_i32_0 = arith.constant 0 : i32
    %c0_i32_1 = arith.constant 0 : i32
    %c0_i32_2 = arith.constant 0 : i32
    return %arg0, %c0_i32, %c0_i32_0, %c0_i32_1 : i32, i32, i32, i32
  }
}

module attributes {stable_mosaic.version = 11 : i64} {
  func.func @kernel(%arg0: i32, %arg1: memref<1x8x8x64xf32, #tpu.memory_space<vmem>>, %arg2: memref<9x64x64xf32, #tpu.memory_space<vmem>>, %arg3: memref<1x64xf32, #tpu.memory_space<vmem>>, %arg4: memref<9x64x24xf32, #tpu.memory_space<vmem>>, %arg5: memref<1x24xf32, #tpu.memory_space<vmem>>, %arg6: memref<64x24xf32, #tpu.memory_space<vmem>>, %arg7: memref<1x24xf32, #tpu.memory_space<vmem>>, %arg8: memref<24x1xf32, #tpu.memory_space<vmem>>, %arg9: memref<1x1xf32, #tpu.memory_space<vmem>>, %arg10: memref<1x1x1xf32, #tpu.memory_space<vmem>>, %arg11: memref<10x24x64xf32, #tpu.memory_space<vmem>>) attributes {dimension_semantics = [#tpu.dimension_semantics<parallel>], iteration_bounds = array<i64: 2>, scalar_prefetch = 0 : i64, scratch_operands = 1 : i64, tpu.core_type = #tpu.core_type<tc>, window_params = [{transform_indices = @transform_0, window_bounds = array<i64: 1, 8, 8, 64>}, {pipeline_mode = #tpu.pipeline_mode<synchronous>, transform_indices = @transform_1, window_bounds = array<i64: 9, 64, 64>}, {pipeline_mode = #tpu.pipeline_mode<synchronous>, transform_indices = @transform_2, window_bounds = array<i64: 1, 64>}, {pipeline_mode = #tpu.pipeline_mode<synchronous>, transform_indices = @transform_3, window_bounds = array<i64: 9, 64, 24>}, {pipeline_mode = #tpu.pipeline_mode<synchronous>, transform_indices = @transform_4, window_bounds = array<i64: 1, 24>}, {pipeline_mode = #tpu.pipeline_mode<synchronous>, transform_indices = @transform_5, window_bounds = array<i64: 64, 24>}, {pipeline_mode = #tpu.pipeline_mode<synchronous>, transform_indices = @transform_6, window_bounds = array<i64: 1, 24>}, {pipeline_mode = #tpu.pipeline_mode<synchronous>, transform_indices = @transform_7, window_bounds = array<i64: 24, 1>}, {pipeline_mode = #tpu.pipeline_mode<synchronous>, transform_indices = @transform_8, window_bounds = array<i64: 1, 1>}, {transform_indices = @transform_9, window_bounds = array<i64: 1, 1, 1>}]} {
    %cst = arith.constant 0.000000e+00 : f32
    %0 = vector.broadcast %cst : f32 to vector<10x24x64xf32>
    %c0 = arith.constant 0 : index
    %c0_0 = arith.constant 0 : index
    %c0_1 = arith.constant 0 : index
    %1 = vector.load %arg11[%c0, %c0_0, %c0_1] : memref<10x24x64xf32, #tpu.memory_space<vmem>>, vector<10x24x64xf32>
    tpu.vector_store %arg11[%c0, %c0_0, %c0_1], %0 {strides = array<i32>} : memref<10x24x64xf32, #tpu.memory_space<vmem>>, vector<10x24x64xf32>,
    %c0_2 = arith.constant 0 : index
    %c0_3 = arith.constant 0 : index
    %c0_4 = arith.constant 0 : index
    %c0_5 = arith.constant 0 : index
    %2 = vector.load %arg1[%c0_2, %c0_3, %c0_4, %c0_5] : memref<1x8x8x64xf32, #tpu.memory_space<vmem>>, vector<1x8x8x64xf32>
    %3 = vector.shape_cast %2 : vector<1x8x8x64xf32> to vector<8x8x64xf32>
    %cst_6 = arith.constant 0.000000e+00 : f32
    %4 = vector.broadcast %cst_6 : f32 to vector<8x8x64xf32>
    %5 = arith.cmpf ogt, %3, %4 : vector<8x8x64xf32>
    %cst_7 = arith.constant 2.000000e-01 : f32
    %6 = vector.broadcast %cst_7 : f32 to vector<8x8x64xf32>
    %7 = arith.mulf %6, %3 : vector<8x8x64xf32>
    %8 = arith.select %5, %3, %7 : vector<8x8x64xi1>, vector<8x8x64xf32>
    %c1 = arith.constant 1 : index
    %c8 = arith.constant 8 : index
    %c0_8 = arith.constant 0 : index
    %9 = vector.load %arg11[%c1, %c8, %c0_8] : memref<10x24x64xf32, #tpu.memory_space<vmem>>, vector<8x8x64xf32>
    tpu.vector_store %arg11[%c1, %c8, %c0_8], %8 {strides = array<i32>} : memref<10x24x64xf32, #tpu.memory_space<vmem>>, vector<8x8x64xf32>,
    %cst_9 = arith.constant 0.000000e+00 : f32
    %10 = vector.broadcast %cst_9 : f32 to vector<64x64xf32>
    %c0_10 = arith.constant 0 : index
    %c7 = arith.constant 7 : index
    %c0_11 = arith.constant 0 : index
    %11 = vector.load %arg11[%c0_10, %c7, %c0_11] : memref<10x24x64xf32, #tpu.memory_space<vmem>>, vector<8x8x64xf32>
    %12 = vector.shape_cast %11 : vector<8x8x64xf32> to vector<64x64xf32>
    %c0_12 = arith.constant 0 : index
    %c0_13 = arith.constant 0 : index
    %c0_14 = arith.constant 0 : index
    %13 = vector.load %arg2[%c0_12, %c0_13, %c0_14] : memref<9x64x64xf32, #tpu.memory_space<vmem>>, vector<1x64x64xf32>
    %14 = vector.shape_cast %13 : vector<1x64x64xf32> to vector<64x64xf32>
    %cst_15 = arith.constant dense<0.000000e+00> : vector<64x64xf32>
    %15 = tpu.matmul %12, %14, %cst_15 {dimension_numbers = #tpu.dot_dimension_numbers<[1], [0], [0], [1], [0, 0, 1, 1], [], []>} : vector<64x64xf32>, vector<64x64xf32>, vector<64x64xf32> -> vector<64x64xf32>
    %16 = arith.addf %10, %15 : vector<64x64xf32>
    %c0_16 = arith.constant 0 : index
    %c8_17 = arith.constant 8 : index
    %c0_18 = arith.constant 0 : index
    %17 = vector.load %arg11[%c0_16, %c8_17, %c0_18] : memref<10x24x64xf32, #tpu.memory_space<vmem>>, vector<8x8x64xf32>
    %18 = vector.shape_cast %17 : vector<8x8x64xf32> to vector<64x64xf32>
    %c1_19 = arith.constant 1 : index
    %c0_20 = arith.constant 0 : index
    %c0_21 = arith.constant 0 : index
    %19 = vector.load %arg2[%c1_19, %c0_20, %c0_21] : memref<9x64x64xf32, #tpu.memory_space<vmem>>, vector<1x64x64xf32>
    %20 = vector.shape_cast %19 : vector<1x64x64xf32> to vector<64x64xf32>
    %cst_22 = arith.constant dense<0.000000e+00> : vector<64x64xf32>
    %21 = tpu.matmul %18, %20, %cst_22 {dimension_numbers = #tpu.dot_dimension_numbers<[1], [0], [0], [1], [0, 0, 1, 1], [], []>} : vector<64x64xf32>, vector<64x64xf32>, vector<64x64xf32> -> vector<64x64xf32>
    %22 = arith.addf %16, %21 : vector<64x64xf32>
    %c0_23 = arith.constant 0 : index
    %c9 = arith.constant 9 : index
    %c0_24 = arith.constant 0 : index
    %23 = vector.load %arg11[%c0_23, %c9, %c0_24] : memref<10x24x64xf32, #tpu.memory_space<vmem>>, vector<8x8x64xf32>
    %24 = vector.shape_cast %23 : vector<8x8x64xf32> to vector<64x64xf32>
    %c2 = arith.constant 2 : index
    %c0_25 = arith.constant 0 : index
    %c0_26 = arith.constant 0 : index
    %25 = vector.load %arg2[%c2, %c0_25, %c0_26] : memref<9x64x64xf32, #tpu.memory_space<vmem>>, vector<1x64x64xf32>
    %26 = vector.shape_cast %25 : vector<1x64x64xf32> to vector<64x64xf32>
    %cst_27 = arith.constant dense<0.000000e+00> : vector<64x64xf32>
    %27 = tpu.matmul %24, %26, %cst_27 {dimension_numbers = #tpu.dot_dimension_numbers<[1], [0], [0], [1], [0, 0, 1, 1], [], []>} : vector<64x64xf32>, vector<64x64xf32>, vector<64x64xf32> -> vector<64x64xf32>
    %28 = arith.addf %22, %27 : vector<64x64xf32>
    %c1_28 = arith.constant 1 : index
    %c7_29 = arith.constant 7 : index
    %c0_30 = arith.constant 0 : index
    %29 = vector.load %arg11[%c1_28, %c7_29, %c0_30] : memref<10x24x64xf32, #tpu.memory_space<vmem>>, vector<8x8x64xf32>
    %30 = vector.shape_cast %29 : vector<8x8x64xf32> to vector<64x64xf32>
    %c3 = arith.constant 3 : index
    %c0_31 = arith.constant 0 : index
    %c0_32 = arith.constant 0 : index
    %31 = vector.load %arg2[%c3, %c0_31, %c0_32] : memref<9x64x64xf32, #tpu.memory_space<vmem>>, vector<1x64x64xf32>
    %32 = vector.shape_cast %31 : vector<1x64x64xf32> to vector<64x64xf32>
    %cst_33 = arith.constant dense<0.000000e+00> : vector<64x64xf32>
    %33 = tpu.matmul %30, %32, %cst_33 {dimension_numbers = #tpu.dot_dimension_numbers<[1], [0], [0], [1], [0, 0, 1, 1], [], []>} : vector<64x64xf32>, vector<64x64xf32>, vector<64x64xf32> -> vector<64x64xf32>
    %34 = arith.addf %28, %33 : vector<64x64xf32>
    %c1_34 = arith.constant 1 : index
    %c8_35 = arith.constant 8 : index
    %c0_36 = arith.constant 0 : index
    %35 = vector.load %arg11[%c1_34, %c8_35, %c0_36] : memref<10x24x64xf32, #tpu.memory_space<vmem>>, vector<8x8x64xf32>
    %36 = vector.shape_cast %35 : vector<8x8x64xf32> to vector<64x64xf32>
    %c4 = arith.constant 4 : index
    %c0_37 = arith.constant 0 : index
    %c0_38 = arith.constant 0 : index
    %37 = vector.load %arg2[%c4, %c0_37, %c0_38] : memref<9x64x64xf32, #tpu.memory_space<vmem>>, vector<1x64x64xf32>
    %38 = vector.shape_cast %37 : vector<1x64x64xf32> to vector<64x64xf32>
    %cst_39 = arith.constant dense<0.000000e+00> : vector<64x64xf32>
    %39 = tpu.matmul %36, %38, %cst_39 {dimension_numbers = #tpu.dot_dimension_numbers<[1], [0], [0], [1], [0, 0, 1, 1], [], []>} : vector<64x64xf32>, vector<64x64xf32>, vector<64x64xf32> -> vector<64x64xf32>
    %40 = arith.addf %34, %39 : vector<64x64xf32>
    %c1_40 = arith.constant 1 : index
    %c9_41 = arith.constant 9 : index
    %c0_42 = arith.constant 0 : index
    %41 = vector.load %arg11[%c1_40, %c9_41, %c0_42] : memref<10x24x64xf32, #tpu.memory_space<vmem>>, vector<8x8x64xf32>
    %42 = vector.shape_cast %41 : vector<8x8x64xf32> to vector<64x64xf32>
    %c5 = arith.constant 5 : index
    %c0_43 = arith.constant 0 : index
    %c0_44 = arith.constant 0 : index
    %43 = vector.load %arg2[%c5, %c0_43, %c0_44] : memref<9x64x64xf32, #tpu.memory_space<vmem>>, vector<1x64x64xf32>
    %44 = vector.shape_cast %43 : vector<1x64x64xf32> to vector<64x64xf32>
    %cst_45 = arith.constant dense<0.000000e+00> : vector<64x64xf32>
    %45 = tpu.matmul %42, %44, %cst_45 {dimension_numbers = #tpu.dot_dimension_numbers<[1], [0], [0], [1], [0, 0, 1, 1], [], []>} : vector<64x64xf32>, vector<64x64xf32>, vector<64x64xf32> -> vector<64x64xf32>
    %46 = arith.addf %40, %45 : vector<64x64xf32>
    %c2_46 = arith.constant 2 : index
    %c7_47 = arith.constant 7 : index
    %c0_48 = arith.constant 0 : index
    %47 = vector.load %arg11[%c2_46, %c7_47, %c0_48] : memref<10x24x64xf32, #tpu.memory_space<vmem>>, vector<8x8x64xf32>
    %48 = vector.shape_cast %47 : vector<8x8x64xf32> to vector<64x64xf32>
    %c6 = arith.constant 6 : index
    %c0_49 = arith.constant 0 : index
    %c0_50 = arith.constant 0 : index
    %49 = vector.load %arg2[%c6, %c0_49, %c0_50] : memref<9x64x64xf32, #tpu.memory_space<vmem>>, vector<1x64x64xf32>
    %50 = vector.shape_cast %49 : vector<1x64x64xf32> to vector<64x64xf32>
    %cst_51 = arith.constant dense<0.000000e+00> : vector<64x64xf32>
    %51 = tpu.matmul %48, %50, %cst_51 {dimension_numbers = #tpu.dot_dimension_numbers<[1], [0], [0], [1], [0, 0, 1, 1], [], []>} : vector<64x64xf32>, vector<64x64xf32>, vector<64x64xf32> -> vector<64x64xf32>
    %52 = arith.addf %46, %51 : vector<64x64xf32>
    %c2_52 = arith.constant 2 : index
    %c8_53 = arith.constant 8 : index
    %c0_54 = arith.constant 0 : index
    %53 = vector.load %arg11[%c2_52, %c8_53, %c0_54] : memref<10x24x64xf32, #tpu.memory_space<vmem>>, vector<8x8x64xf32>
    %54 = vector.shape_cast %53 : vector<8x8x64xf32> to vector<64x64xf32>
    %c7_55 = arith.constant 7 : index
    %c0_56 = arith.constant 0 : index
    %c0_57 = arith.constant 0 : index
    %55 = vector.load %arg2[%c7_55, %c0_56, %c0_57] : memref<9x64x64xf32, #tpu.memory_space<vmem>>, vector<1x64x64xf32>
    %56 = vector.shape_cast %55 : vector<1x64x64xf32> to vector<64x64xf32>
    %cst_58 = arith.constant dense<0.000000e+00> : vector<64x64xf32>
    %57 = tpu.matmul %54, %56, %cst_58 {dimension_numbers = #tpu.dot_dimension_numbers<[1], [0], [0], [1], [0, 0, 1, 1], [], []>} : vector<64x64xf32>, vector<64x64xf32>, vector<64x64xf32> -> vector<64x64xf32>
    %58 = arith.addf %52, %57 : vector<64x64xf32>
    %c2_59 = arith.constant 2 : index
    %c9_60 = arith.constant 9 : index
    %c0_61 = arith.constant 0 : index
    %59 = vector.load %arg11[%c2_59, %c9_60, %c0_61] : memref<10x24x64xf32, #tpu.memory_space<vmem>>, vector<8x8x64xf32>
    %60 = vector.shape_cast %59 : vector<8x8x64xf32> to vector<64x64xf32>
    %c8_62 = arith.constant 8 : index
    %c0_63 = arith.constant 0 : index
    %c0_64 = arith.constant 0 : index
    %61 = vector.load %arg2[%c8_62, %c0_63, %c0_64] : memref<9x64x64xf32, #tpu.memory_space<vmem>>, vector<1x64x64xf32>
    %62 = vector.shape_cast %61 : vector<1x64x64xf32> to vector<64x64xf32>
    %cst_65 = arith.constant dense<0.000000e+00> : vector<64x64xf32>
    %63 = tpu.matmul %60, %62, %cst_65 {dimension_numbers = #tpu.dot_dimension_numbers<[1], [0], [0], [1], [0, 0, 1, 1], [], []>} : vector<64x64xf32>, vector<64x64xf32>, vector<64x64xf32> -> vector<64x64xf32>
    %64 = arith.addf %58, %63 : vector<64x64xf32>
    %c0_66 = arith.constant 0 : index
    %c0_67 = arith.constant 0 : index
    %65 = vector.load %arg3[%c0_66, %c0_67] : memref<1x64xf32, #tpu.memory_space<vmem>>, vector<1x64xf32>
    %66 = vector.broadcast %65 : vector<1x64xf32> to vector<64x64xf32>
    %67 = arith.addf %64, %66 : vector<64x64xf32>
    %68 = vector.shape_cast %67 : vector<64x64xf32> to vector<8x8x64xf32>
    %cst_68 = arith.constant 0.000000e+00 : f32
    %69 = vector.broadcast %cst_68 : f32 to vector<8x8x64xf32>
    %70 = arith.cmpf ogt, %68, %69 : vector<8x8x64xf32>
    %cst_69 = arith.constant 2.000000e-01 : f32
    %71 = vector.broadcast %cst_69 : f32 to vector<8x8x64xf32>
    %72 = arith.mulf %71, %68 : vector<8x8x64xf32>
    %73 = arith.select %70, %68, %72 : vector<8x8x64xi1>, vector<8x8x64xf32>
    %c1_70 = arith.constant 1 : index
    %c8_71 = arith.constant 8 : index
    %c0_72 = arith.constant 0 : index
    %74 = vector.load %arg11[%c1_70, %c8_71, %c0_72] : memref<10x24x64xf32, #tpu.memory_space<vmem>>, vector<8x8x64xf32>
    tpu.vector_store %arg11[%c1_70, %c8_71, %c0_72], %73 {strides = array<i32>} : memref<10x24x64xf32, #tpu.memory_space<vmem>>, vector<8x8x64xf32>,
    %cst_73 = arith.constant 0.000000e+00 : f32
    %75 = vector.broadcast %cst_73 : f32 to vector<64x24xf32>
    %c0_74 = arith.constant 0 : index
    %c7_75 = arith.constant 7 : index
    %c0_76 = arith.constant 0 : index
    %76 = vector.load %arg11[%c0_74, %c7_75, %c0_76] : memref<10x24x64xf32, #tpu.memory_space<vmem>>, vector<8x8x64xf32>
    %77 = vector.shape_cast %76 : vector<8x8x64xf32> to vector<64x64xf32>
    %c0_77 = arith.constant 0 : index
    %c0_78 = arith.constant 0 : index
    %c0_79 = arith.constant 0 : index
    %78 = vector.load %arg4[%c0_77, %c0_78, %c0_79] : memref<9x64x24xf32, #tpu.memory_space<vmem>>, vector<1x64x24xf32>
    %79 = vector.shape_cast %78 : vector<1x64x24xf32> to vector<64x24xf32>
    %cst_80 = arith.constant dense<0.000000e+00> : vector<64x24xf32>
    %80 = tpu.matmul %77, %79, %cst_80 {dimension_numbers = #tpu.dot_dimension_numbers<[1], [0], [0], [1], [0, 0, 1, 1], [], []>} : vector<64x64xf32>, vector<64x24xf32>, vector<64x24xf32> -> vector<64x24xf32>
    %81 = arith.addf %75, %80 : vector<64x24xf32>
    %c0_81 = arith.constant 0 : index
    %c8_82 = arith.constant 8 : index
    %c0_83 = arith.constant 0 : index
    %82 = vector.load %arg11[%c0_81, %c8_82, %c0_83] : memref<10x24x64xf32, #tpu.memory_space<vmem>>, vector<8x8x64xf32>
    %83 = vector.shape_cast %82 : vector<8x8x64xf32> to vector<64x64xf32>
    %c1_84 = arith.constant 1 : index
    %c0_85 = arith.constant 0 : index
    %c0_86 = arith.constant 0 : index
    %84 = vector.load %arg4[%c1_84, %c0_85, %c0_86] : memref<9x64x24xf32, #tpu.memory_space<vmem>>, vector<1x64x24xf32>
    %85 = vector.shape_cast %84 : vector<1x64x24xf32> to vector<64x24xf32>
    %cst_87 = arith.constant dense<0.000000e+00> : vector<64x24xf32>
    %86 = tpu.matmul %83, %85, %cst_87 {dimension_numbers = #tpu.dot_dimension_numbers<[1], [0], [0], [1], [0, 0, 1, 1], [], []>} : vector<64x64xf32>, vector<64x24xf32>, vector<64x24xf32> -> vector<64x24xf32>
    %87 = arith.addf %81, %86 : vector<64x24xf32>
    %c0_88 = arith.constant 0 : index
    %c9_89 = arith.constant 9 : index
    %c0_90 = arith.constant 0 : index
    %88 = vector.load %arg11[%c0_88, %c9_89, %c0_90] : memref<10x24x64xf32, #tpu.memory_space<vmem>>, vector<8x8x64xf32>
    %89 = vector.shape_cast %88 : vector<8x8x64xf32> to vector<64x64xf32>
    %c2_91 = arith.constant 2 : index
    %c0_92 = arith.constant 0 : index
    %c0_93 = arith.constant 0 : index
    %90 = vector.load %arg4[%c2_91, %c0_92, %c0_93] : memref<9x64x24xf32, #tpu.memory_space<vmem>>, vector<1x64x24xf32>
    %91 = vector.shape_cast %90 : vector<1x64x24xf32> to vector<64x24xf32>
    %cst_94 = arith.constant dense<0.000000e+00> : vector<64x24xf32>
    %92 = tpu.matmul %89, %91, %cst_94 {dimension_numbers = #tpu.dot_dimension_numbers<[1], [0], [0], [1], [0, 0, 1, 1], [], []>} : vector<64x64xf32>, vector<64x24xf32>, vector<64x24xf32> -> vector<64x24xf32>
    %93 = arith.addf %87, %92 : vector<64x24xf32>
    %c1_95 = arith.constant 1 : index
    %c7_96 = arith.constant 7 : index
    %c0_97 = arith.constant 0 : index
    %94 = vector.load %arg11[%c1_95, %c7_96, %c0_97] : memref<10x24x64xf32, #tpu.memory_space<vmem>>, vector<8x8x64xf32>
    %95 = vector.shape_cast %94 : vector<8x8x64xf32> to vector<64x64xf32>
    %c3_98 = arith.constant 3 : index
    %c0_99 = arith.constant 0 : index
    %c0_100 = arith.constant 0 : index
    %96 = vector.load %arg4[%c3_98, %c0_99, %c0_100] : memref<9x64x24xf32, #tpu.memory_space<vmem>>, vector<1x64x24xf32>
    %97 = vector.shape_cast %96 : vector<1x64x24xf32> to vector<64x24xf32>
    %cst_101 = arith.constant dense<0.000000e+00> : vector<64x24xf32>
    %98 = tpu.matmul %95, %97, %cst_101 {dimension_numbers = #tpu.dot_dimension_numbers<[1], [0], [0], [1], [0, 0, 1, 1], [], []>} : vector<64x64xf32>, vector<64x24xf32>, vector<64x24xf32> -> vector<64x24xf32>
    %99 = arith.addf %93, %98 : vector<64x24xf32>
    %c1_102 = arith.constant 1 : index
    %c8_103 = arith.constant 8 : index
    %c0_104 = arith.constant 0 : index
    %100 = vector.load %arg11[%c1_102, %c8_103, %c0_104] : memref<10x24x64xf32, #tpu.memory_space<vmem>>, vector<8x8x64xf32>
    %101 = vector.shape_cast %100 : vector<8x8x64xf32> to vector<64x64xf32>
    %c4_105 = arith.constant 4 : index
    %c0_106 = arith.constant 0 : index
    %c0_107 = arith.constant 0 : index
    %102 = vector.load %arg4[%c4_105, %c0_106, %c0_107] : memref<9x64x24xf32, #tpu.memory_space<vmem>>, vector<1x64x24xf32>
    %103 = vector.shape_cast %102 : vector<1x64x24xf32> to vector<64x24xf32>
    %cst_108 = arith.constant dense<0.000000e+00> : vector<64x24xf32>
    %104 = tpu.matmul %101, %103, %cst_108 {dimension_numbers = #tpu.dot_dimension_numbers<[1], [0], [0], [1], [0, 0, 1, 1], [], []>} : vector<64x64xf32>, vector<64x24xf32>, vector<64x24xf32> -> vector<64x24xf32>
    %105 = arith.addf %99, %104 : vector<64x24xf32>
    %c1_109 = arith.constant 1 : index
    %c9_110 = arith.constant 9 : index
    %c0_111 = arith.constant 0 : index
    %106 = vector.load %arg11[%c1_109, %c9_110, %c0_111] : memref<10x24x64xf32, #tpu.memory_space<vmem>>, vector<8x8x64xf32>
    %107 = vector.shape_cast %106 : vector<8x8x64xf32> to vector<64x64xf32>
    %c5_112 = arith.constant 5 : index
    %c0_113 = arith.constant 0 : index
    %c0_114 = arith.constant 0 : index
    %108 = vector.load %arg4[%c5_112, %c0_113, %c0_114] : memref<9x64x24xf32, #tpu.memory_space<vmem>>, vector<1x64x24xf32>
    %109 = vector.shape_cast %108 : vector<1x64x24xf32> to vector<64x24xf32>
    %cst_115 = arith.constant dense<0.000000e+00> : vector<64x24xf32>
    %110 = tpu.matmul %107, %109, %cst_115 {dimension_numbers = #tpu.dot_dimension_numbers<[1], [0], [0], [1], [0, 0, 1, 1], [], []>} : vector<64x64xf32>, vector<64x24xf32>, vector<64x24xf32> -> vector<64x24xf32>
    %111 = arith.addf %105, %110 : vector<64x24xf32>
    %c2_116 = arith.constant 2 : index
    %c7_117 = arith.constant 7 : index
    %c0_118 = arith.constant 0 : index
    %112 = vector.load %arg11[%c2_116, %c7_117, %c0_118] : memref<10x24x64xf32, #tpu.memory_space<vmem>>, vector<8x8x64xf32>
    %113 = vector.shape_cast %112 : vector<8x8x64xf32> to vector<64x64xf32>
    %c6_119 = arith.constant 6 : index
    %c0_120 = arith.constant 0 : index
    %c0_121 = arith.constant 0 : index
    %114 = vector.load %arg4[%c6_119, %c0_120, %c0_121] : memref<9x64x24xf32, #tpu.memory_space<vmem>>, vector<1x64x24xf32>
    %115 = vector.shape_cast %114 : vector<1x64x24xf32> to vector<64x24xf32>
    %cst_122 = arith.constant dense<0.000000e+00> : vector<64x24xf32>
    %116 = tpu.matmul %113, %115, %cst_122 {dimension_numbers = #tpu.dot_dimension_numbers<[1], [0], [0], [1], [0, 0, 1, 1], [], []>} : vector<64x64xf32>, vector<64x24xf32>, vector<64x24xf32> -> vector<64x24xf32>
    %117 = arith.addf %111, %116 : vector<64x24xf32>
    %c2_123 = arith.constant 2 : index
    %c8_124 = arith.constant 8 : index
    %c0_125 = arith.constant 0 : index
    %118 = vector.load %arg11[%c2_123, %c8_124, %c0_125] : memref<10x24x64xf32, #tpu.memory_space<vmem>>, vector<8x8x64xf32>
    %119 = vector.shape_cast %118 : vector<8x8x64xf32> to vector<64x64xf32>
    %c7_126 = arith.constant 7 : index
    %c0_127 = arith.constant 0 : index
    %c0_128 = arith.constant 0 : index
    %120 = vector.load %arg4[%c7_126, %c0_127, %c0_128] : memref<9x64x24xf32, #tpu.memory_space<vmem>>, vector<1x64x24xf32>
    %121 = vector.shape_cast %120 : vector<1x64x24xf32> to vector<64x24xf32>
    %cst_129 = arith.constant dense<0.000000e+00> : vector<64x24xf32>
    %122 = tpu.matmul %119, %121, %cst_129 {dimension_numbers = #tpu.dot_dimension_numbers<[1], [0], [0], [1], [0, 0, 1, 1], [], []>} : vector<64x64xf32>, vector<64x24xf32>, vector<64x24xf32> -> vector<64x24xf32>
    %123 = arith.addf %117, %122 : vector<64x24xf32>
    %c2_130 = arith.constant 2 : index
    %c9_131 = arith.constant 9 : index
    %c0_132 = arith.constant 0 : index
    %124 = vector.load %arg11[%c2_130, %c9_131, %c0_132] : memref<10x24x64xf32, #tpu.memory_space<vmem>>, vector<8x8x64xf32>
    %125 = vector.shape_cast %124 : vector<8x8x64xf32> to vector<64x64xf32>
    %c8_133 = arith.constant 8 : index
    %c0_134 = arith.constant 0 : index
    %c0_135 = arith.constant 0 : index
    %126 = vector.load %arg4[%c8_133, %c0_134, %c0_135] : memref<9x64x24xf32, #tpu.memory_space<vmem>>, vector<1x64x24xf32>
    %127 = vector.shape_cast %126 : vector<1x64x24xf32> to vector<64x24xf32>
    %cst_136 = arith.constant dense<0.000000e+00> : vector<64x24xf32>
    %128 = tpu.matmul %125, %127, %cst_136 {dimension_numbers = #tpu.dot_dimension_numbers<[1], [0], [0], [1], [0, 0, 1, 1], [], []>} : vector<64x64xf32>, vector<64x24xf32>, vector<64x24xf32> -> vector<64x24xf32>
    %129 = arith.addf %123, %128 : vector<64x24xf32>
    %c0_137 = arith.constant 0 : index
    %c0_138 = arith.constant 0 : index
    %130 = vector.load %arg5[%c0_137, %c0_138] : memref<1x24xf32, #tpu.memory_space<vmem>>, vector<1x24xf32>
    %131 = vector.broadcast %130 : vector<1x24xf32> to vector<64x24xf32>
    %132 = arith.addf %129, %131 : vector<64x24xf32>
    %133 = vector.shape_cast %132 : vector<64x24xf32> to vector<8x8x24xf32>
    %134 = vector.shape_cast %3 : vector<8x8x64xf32> to vector<64x64xf32>
    %c0_139 = arith.constant 0 : index
    %c0_140 = arith.constant 0 : index
    %135 = vector.load %arg6[%c0_139, %c0_140] : memref<64x24xf32, #tpu.memory_space<vmem>>, vector<64x24xf32>
    %cst_141 = arith.constant dense<0.000000e+00> : vector<64x24xf32>
    %136 = tpu.matmul %134, %135, %cst_141 {dimension_numbers = #tpu.dot_dimension_numbers<[1], [0], [0], [1], [0, 0, 1, 1], [], []>} : vector<64x64xf32>, vector<64x24xf32>, vector<64x24xf32> -> vector<64x24xf32>
    %c0_142 = arith.constant 0 : index
    %c0_143 = arith.constant 0 : index
    %137 = vector.load %arg7[%c0_142, %c0_143] : memref<1x24xf32, #tpu.memory_space<vmem>>, vector<1x24xf32>
    %138 = vector.broadcast %137 : vector<1x24xf32> to vector<64x24xf32>
    %139 = arith.addf %136, %138 : vector<64x24xf32>
    %140 = vector.shape_cast %139 : vector<64x24xf32> to vector<8x8x24xf32>
    %141 = arith.addf %133, %140 : vector<8x8x24xf32>
    %cst_144 = arith.constant 0.000000e+00 : f32
    %142 = vector.broadcast %cst_144 : f32 to vector<8x8x24xf32>
    %143 = arith.cmpf ogt, %141, %142 : vector<8x8x24xf32>
    %cst_145 = arith.constant 2.000000e-01 : f32
    %144 = vector.broadcast %cst_145 : f32 to vector<8x8x24xf32>
    %145 = arith.mulf %144, %141 : vector<8x8x24xf32>
    %146 = arith.select %143, %141, %145 : vector<8x8x24xi1>, vector<8x8x24xf32>
    %147 = vector.shape_cast %146 : vector<8x8x24xf32> to vector<64x24xf32>
    %cst_146 = arith.constant dense<0.000000e+00> : vector<24xf32>
    %148 = vector.multi_reduction <add>, %147, %cst_146 [0] : vector<64x24xf32> to vector<24xf32>
    %149 = vector.shape_cast %148 : vector<24xf32> to vector<1x24xf32>
    %cst_147 = arith.constant 1.562500e-02 : f32
    %150 = vector.broadcast %cst_147 : f32 to vector<1x24xf32>
    %151 = arith.mulf %149, %150 : vector<1x24xf32>
    %c0_148 = arith.constant 0 : index
    %c0_149 = arith.constant 0 : index
    %152 = vector.load %arg8[%c0_148, %c0_149] : memref<24x1xf32, #tpu.memory_space<vmem>>, vector<24x1xf32>
    %cst_150 = arith.constant dense<0.000000e+00> : vector<1x1xf32>
    %153 = tpu.matmul %151, %152, %cst_150 {dimension_numbers = #tpu.dot_dimension_numbers<[1], [0], [0], [1], [0, 0, 1, 1], [], []>} : vector<1x24xf32>, vector<24x1xf32>, vector<1x1xf32> -> vector<1x1xf32>
    %c0_151 = arith.constant 0 : index
    %c0_152 = arith.constant 0 : index
    %154 = vector.load %arg9[%c0_151, %c0_152] : memref<1x1xf32, #tpu.memory_space<vmem>>, vector<1x1xf32>
    %155 = arith.addf %153, %154 : vector<1x1xf32>
    %c0_153 = arith.constant 0 : index
    %c0_154 = arith.constant 0 : index
    %c0_155 = arith.constant 0 : index
    %156 = vector.load %arg10[%c0_153, %c0_154, %c0_155] : memref<1x1x1xf32, #tpu.memory_space<vmem>>, vector<1x1x1xf32>
    %157 = vector.shape_cast %156 : vector<1x1x1xf32> to vector<1x1xf32>
    %158 = vector.shape_cast %155 : vector<1x1xf32> to vector<1x1x1xf32>
    tpu.vector_store %arg10[%c0_153, %c0_154, %c0_155], %158 {strides = array<i32>} : memref<1x1x1xf32, #tpu.memory_space<vmem>>, vector<1x1x1xf32>,
    return
  }
  func.func @transform_0(%arg0: i32) -> (i32, i32, i32, i32) {
    %c0_i32 = arith.constant 0 : i32
    %c0_i32_0 = arith.constant 0 : i32
    %c0_i32_1 = arith.constant 0 : i32
    %c0_i32_2 = arith.constant 0 : i32
    return %arg0, %c0_i32, %c0_i32_0, %c0_i32_1 : i32, i32, i32, i32
  }
  func.func @transform_1(%arg0: i32) -> (i32, i32, i32) {
    %c0_i32 = arith.constant 0 : i32
    %c0_i32_0 = arith.constant 0 : i32
    %c0_i32_1 = arith.constant 0 : i32
    %c0_i32_2 = arith.constant 0 : i32
    return %c0_i32, %c0_i32_0, %c0_i32_1 : i32, i32, i32
  }
  func.func @transform_2(%arg0: i32) -> (i32, i32) {
    %c0_i32 = arith.constant 0 : i32
    %c0_i32_0 = arith.constant 0 : i32
    %c0_i32_1 = arith.constant 0 : i32
    return %c0_i32, %c0_i32_0 : i32, i32
  }
  func.func @transform_3(%arg0: i32) -> (i32, i32, i32) {
    %c0_i32 = arith.constant 0 : i32
    %c0_i32_0 = arith.constant 0 : i32
    %c0_i32_1 = arith.constant 0 : i32
    %c0_i32_2 = arith.constant 0 : i32
    return %c0_i32, %c0_i32_0, %c0_i32_1 : i32, i32, i32
  }
  func.func @transform_4(%arg0: i32) -> (i32, i32) {
    %c0_i32 = arith.constant 0 : i32
    %c0_i32_0 = arith.constant 0 : i32
    %c0_i32_1 = arith.constant 0 : i32
    return %c0_i32, %c0_i32_0 : i32, i32
  }
  func.func @transform_5(%arg0: i32) -> (i32, i32) {
    %c0_i32 = arith.constant 0 : i32
    %c0_i32_0 = arith.constant 0 : i32
    %c0_i32_1 = arith.constant 0 : i32
    return %c0_i32, %c0_i32_0 : i32, i32
  }
  func.func @transform_6(%arg0: i32) -> (i32, i32) {
    %c0_i32 = arith.constant 0 : i32
    %c0_i32_0 = arith.constant 0 : i32
    %c0_i32_1 = arith.constant 0 : i32
    return %c0_i32, %c0_i32_0 : i32, i32
  }
  func.func @transform_7(%arg0: i32) -> (i32, i32) {
    %c0_i32 = arith.constant 0 : i32
    %c0_i32_0 = arith.constant 0 : i32
    %c0_i32_1 = arith.constant 0 : i32
    return %c0_i32, %c0_i32_0 : i32, i32
  }
  func.func @transform_8(%arg0: i32) -> (i32, i32) {
    %c0_i32 = arith.constant 0 : i32
    %c0_i32_0 = arith.constant 0 : i32
    %c0_i32_1 = arith.constant 0 : i32
    return %c0_i32, %c0_i32_0 : i32, i32
  }
  func.func @transform_9(%arg0: i32) -> (i32, i32, i32) {
    %c0_i32 = arith.constant 0 : i32
    %c0_i32_0 = arith.constant 0 : i32
    %c0_i32_1 = arith.constant 0 : i32
    return %arg0, %c0_i32, %c0_i32_0 : i32, i32, i32
  }
}

</mosaic_0001>

<bundles_post_ra>
// kernel: encoder_wae_forward.2
= control target key start
LH: loop header
LB: loop body
LE: loop exit
PB: predicated region body
PF: predicated region fallthrough
CT: control target
= control target key end

     0   :  { %s16498_s30 = smov 0   ;;  %s19906_s0 = inlined_call_operand.vmem [shape: f32[2,16,16,48], index: 0, kind: input, shape index: {}]   ;;  %s19907_s1 = inlined_call_operand.vmem [shape: f32[9,48,32], index: 1, kind: input, shape index: {}]   ;;  %s19908_s2 = inlined_call_operand.vmem [shape: f32[1,32], index: 2, kind: input, shape index: {}]   ;;  %s19909_s3 = inlined_call_operand.vmem [shape: f32[9,32,32], index: 3, kind: input, shape index: {}]   ;;  %s19910_s4 = inlined_call_operand.vmem [shape: f32[1,32], index: 4, kind: input, shape index: {}]   ;;  %s19911_s5 = inlined_call_operand.vmem [shape: f32[9,32,16], index: 5, kind: input, shape index: {}]   ;;  %s19912_s6 = inlined_call_operand.vmem [shape: f32[1,16], index: 6, kind: input, shape index: {}]   ;;  %s19913_s7 = inlined_call_operand.vmem [shape: f32[32,16], index: 7, kind: input, shape index: {}]   ;;  %s19914_s8 = inlined_call_operand.vmem [shape: f32[1,16], index: 8, kind: input, shape index: {}]   ;;  %s19915_s9 = inlined_call_operand.vmem [shape: f32[2,16,16,16], index: 9, kind: output, shape index: {}]  }
   0x1 LB: > { %s11651_s10 = sadd.s32 4294967295, %s16445_s30   ;;  %p11655_p0 = scmp.ge.s32.totalorder %s16445_s30, 1  ;;  %s16445_s30 = sphi %s16498_s30, %s19_s30  }
   0x2   : > { %p287_p1 = scmp.lt.s32.totalorder %s16445_s30, 3 }
   0x4   : > { %p288_p2 = pnand %p11655_p0, %p287_p1 }
   0x6   : > { %291 = sbr.rel (%p288_p2) target bundleno = 2123 (0x84b), region = 56 }
   0xd   : > { %v11660_v0 = vld [vmem:[%s19907_s1 + $0x30] sm:$0xff]  ;;  %v11661_v1 = vld [vmem:[%s19907_s1 + $0x38] sm:$0xff]  ;;  %v16515_v2 = vld [vmem:[%s19907_s1 + $0x40] sm:$0xff]  ;;  %vm333_vm0 = vcmask 392192   ;;  %p16519_p3 = scmp.lt.s32.totalorder %s11651_s10, 1  ;;  %v16447_v5 = vmov 0.0  }
   0xe   : > { %v16523_v3 = vpack.c.bf16 %v11661_v1, %v11660_v0  ;;  %v16528_v4 = vld [vmem:[%s19907_s1 + $0x48] sm:$0xff]  ;;  %335 = vst.msk [vmem:[#allocation2 + $0x8] sm:$0xff] %vm333_vm0, %v16447_v5  ;;  %334 = vst.msk [vmem:[#allocation2] sm:$0xff] %vm333_vm0, %v16447_v5  ;;  %v11664_v7 = vld [vmem:[%s19907_s1 + $0x50] sm:$0xff]  ;;  %vm4070_vm1 = vcmask 261120  }
   0xf   : > { %336 = vst.msk [vmem:[#allocation2 + $0x10] sm:$0xff] %vm333_vm0, %v16447_v5  ;;  %337 = vst.msk [vmem:[#allocation2 + $0x18] sm:$0xff] %vm333_vm0, %v16447_v5  ;;  %v15310_v6 = vpack.c.bf16 %v16528_v4, %v16515_v2  ;;  %v11665_v8 = vld [vmem:[%s19907_s1 + $0x58] sm:$0xff]  ;;  %s20420_s10 = smov (!%p16519_p3, %s11651_s10), 1  ;;  %v503_v10 = vld [vmem:[%s19907_s1] sm:$0xff] }
  0x10   : > { %338 = vst.msk [vmem:[#allocation2 + $0x20] sm:$0xff] %vm333_vm0, %v16447_v5  ;;  %339 = vst.msk [vmem:[#allocation2 + $0x28] sm:$0xff] %vm333_vm0, %v16447_v5  ;;  %15307 = vmatprep.subr.bf16.mxu0 %v16523_v3  ;;  %s12674_s24 = sshll.u32 %s20420_s10, 8  ;;  %v15314_v9 = vpack.c.bf16 %v11665_v8, %v11664_v7  ;;  %v504_v11 = vld [vmem:[%s19907_s1 + $0x8] sm:$0xff]  ;;  %v505_v20 = vld [vmem:[%s19907_s1 + $0x10] sm:$0xff] }
  0x11   : > { %340 = vst.msk [vmem:[#allocation2 + $0x30] sm:$0xff] %vm333_vm0, %v16447_v5  ;;  %341 = vst.msk [vmem:[#allocation2 + $0x38] sm:$0xff] %vm333_vm0, %v16447_v5  ;;  %15309 = vmatpush3.bf16.msra.mxu0 %v16523_v3  ;;  %s16702_s12 = scalar_lea.vmem %s19906_s0, %s12674_s24  ;;  %v506_v21 = vld [vmem:[%s19907_s1 + $0x18] sm:$0xff]  ;;  %v15318_v22 = vpack.c.bf16 %v504_v11, %v503_v10  ;;  %v507_v41 = vld [vmem:[%s19907_s1 + $0x20] sm:$0xff]  ;;  %s19807_s16 = scalar_lea.vmem %s19915_s9, %s12674_s24 }
  0x12   : > { %342 = vst.msk [vmem:[#allocation2 + $0x40] sm:$0xff] %vm333_vm0, %v16447_v5  ;;  %343 = vst.msk [vmem:[#allocation2 + $0x48] sm:$0xff] %vm333_vm0, %v16447_v5  ;;  %15311 = vmatprep.subr.bf16.mxu0 %v15310_v6  ;;  %v406_v12 = vld [vmem:[%s16702_s12] sm:$0xff]  ;;  %v407_v13 = vld [vmem:[%s16702_s12 + $0x8] sm:$0xff]  ;;  %v15322_v36 = vpack.c.bf16 %v506_v21, %v505_v20 }
  0x13   : > { %344 = vst.msk [vmem:[#allocation2 + $0x50] sm:$0xff] %vm333_vm0, %v16447_v5  ;;  %345 = vst.msk [vmem:[#allocation2 + $0x58] sm:$0xff] %vm333_vm0, %v16447_v5  ;;  %v408_v14 = vld [vmem:[%s16702_s12 + $0x10] sm:$0xff]  ;;  %v409_v15 = vld [vmem:[%s16702_s12 + $0x18] sm:$0xff] }
  0x14   : > { %346 = vst.msk [vmem:[#allocation2 + $0x60] sm:$0xff] %vm333_vm0, %v16447_v5  ;;  %347 = vst.msk [vmem:[#allocation2 + $0x68] sm:$0xff] %vm333_vm0, %v16447_v5  ;;  %v410_v16 = vld [vmem:[%s16702_s12 + $0x20] sm:$0xff]  ;;  %v411_v17 = vld [vmem:[%s16702_s12 + $0x28] sm:$0xff] }
  0x15   : > { %348 = vst.msk [vmem:[#allocation2 + $0x70] sm:$0xff] %vm333_vm0, %v16447_v5  ;;  %349 = vst.msk [vmem:[#allocation2 + $0x78] sm:$0xff] %vm333_vm0, %v16447_v5  ;;  %15313 = vmatpush3.bf16.msra.mxu0 %v15310_v6  ;;  %v509_v18 = vld [vmem:[#allocation2 + $0x8] sm:$0xff]  ;;  %v412_v19 = vld [vmem:[%s16702_s12 + $0x30] sm:$0xff] }
  0x16   : > { %350 = vst.msk [vmem:[#allocation2 + $0x80] sm:$0xff] %vm333_vm0, %v16447_v5  ;;  %351 = vst.msk [vmem:[#allocation2 + $0x88] sm:$0xff] %vm333_vm0, %v16447_v5  ;;  %15315 = vmatprep.subr.bf16.mxu0 %v15314_v9  ;;  %13714 = vmatprep.mubr.msk.f32.mxu0 %vm333_vm0, %v509_v18  ;;  %v413_v23 = vld [vmem:[%s16702_s12 + $0x38] sm:$0xff]  ;;  %v414_v24 = vld [vmem:[%s16702_s12 + $0x40] sm:$0xff] }
  0x17   : > { %352 = vst.msk [vmem:[#allocation2 + $0x90] sm:$0xff] %vm333_vm0, %v16447_v5  ;;  %353 = vst.msk [vmem:[#allocation2 + $0x98] sm:$0xff] %vm333_vm0, %v16447_v5  ;;  %v415_v25 = vld [vmem:[%s16702_s12 + $0x48] sm:$0xff]  ;;  %v510_v26 = vld [vmem:[#allocation2 + $0x10] sm:$0xff] }
  0x18   : > { %354 = vst.msk [vmem:[#allocation2 + $0xa0] sm:$0xff] %vm333_vm0, %v16447_v5  ;;  %355 = vst.msk [vmem:[#allocation2 + $0xa8] sm:$0xff] %vm333_vm0, %v16447_v5  ;;  %v416_v27 = vld [vmem:[%s16702_s12 + $0x50] sm:$0xff]  ;;  %v417_v28 = vld [vmem:[%s16702_s12 + $0x58] sm:$0xff] }
  0x19   : > { %356 = vst.msk [vmem:[#allocation2 + $0xb0] sm:$0xff] %vm333_vm0, %v16447_v5  ;;  %357 = vst.msk [vmem:[#allocation2 + $0xb8] sm:$0xff] %vm333_vm0, %v16447_v5  ;;  %v418_v29 = vld [vmem:[%s16702_s12 + $0x60] sm:$0xff]  ;;  %v419_v30 = vld [vmem:[%s16702_s12 + $0x68] sm:$0xff]  ;;  %15317 = vmatpush3.bf16.msra.mxu0 %v15314_v9 }
  0x1a   : > { %358 = vst.msk [vmem:[#allocation2 + $0xc0] sm:$0xff] %vm333_vm0, %v16447_v5  ;;  %359 = vst.msk [vmem:[#allocation2 + $0xc8] sm:$0xff] %vm333_vm0, %v16447_v5  ;;  %v420_v31 = vld [vmem:[%s16702_s12 + $0x70] sm:$0xff]  ;;  %v421_v32 = vld [vmem:[%s16702_s12 + $0x78] sm:$0xff]  ;;  %15319 = vmatprep.subr.bf16.mxu0 %v15318_v22 }
  0x1b   : > { %360 = vst.msk [vmem:[#allocation2 + $0xd0] sm:$0xff] %vm333_vm0, %v16447_v5  ;;  %361 = vst.msk [vmem:[#allocation2 + $0xd8] sm:$0xff] %vm333_vm0, %v16447_v5  ;;  %v422_v33 = vld [vmem:[%s16702_s12 + $0x80] sm:$0xff]  ;;  %v423_v34 = vld [vmem:[%s16702_s12 + $0x88] sm:$0xff] }
  0x1c   : > { %362 = vst.msk [vmem:[#allocation2 + $0xe0] sm:$0xff] %vm333_vm0, %v16447_v5  ;;  %363 = vst.msk [vmem:[#allocation2 + $0xe8] sm:$0xff] %vm333_vm0, %v16447_v5  ;;  %v424_v35 = vld [vmem:[%s16702_s12 + $0x90] sm:$0xff]  ;;  %v425_v37 = vld [vmem:[%s16702_s12 + $0x98] sm:$0xff]  ;;  %13715 = vmatmul.mubr.msk.f32.vlgmr.msra.gmra.mrb[0].mxu0 %vm333_vm0, %v510_v26 }
  0x1d   : > { %364 = vst.msk [vmem:[#allocation2 + $0xf0] sm:$0xff] %vm333_vm0, %v16447_v5  ;;  %365 = vst.msk [vmem:[#allocation2 + $0xf8] sm:$0xff] %vm333_vm0, %v16447_v5  ;;  %v426_v38 = vld [vmem:[%s16702_s12 + $0xa0] sm:$0xff]  ;;  %v427_v39 = vld [vmem:[%s16702_s12 + $0xa8] sm:$0xff]  ;;  %15321 = vmatpush3.bf16.msra.mxu0 %v15318_v22 }
  0x1e   : > { %366 = vst.msk [vmem:[#allocation2 + $0x100] sm:$0xff] %vm333_vm0, %v16447_v5  ;;  %367 = vst.msk [vmem:[#allocation2 + $0x108] sm:$0xff] %vm333_vm0, %v16447_v5  ;;  %v508_v42 = vld [vmem:[%s19907_s1 + $0x28] sm:$0xff]  ;;  %v428_v44 = vld [vmem:[%s16702_s12 + $0xb0] sm:$0xff]  ;;  %15323 = vmatprep.subr.bf16.mxu0 %v15322_v36 }
  0x1f   : > { %368 = vst.msk [vmem:[#allocation2 + $0x110] sm:$0xff] %vm333_vm0, %v16447_v5  ;;  %369 = vst.msk [vmem:[#allocation2 + $0x118] sm:$0xff] %vm333_vm0, %v16447_v5  ;;  %v429_v45 = vld [vmem:[%s16702_s12 + $0xb8] sm:$0xff]  ;;  %v15326_v47 = vpack.c.bf16 %v508_v42, %v507_v41  ;;  %v11730_v48 = vld [vmem:[%s19907_s1 + $0x60] sm:$0xff] }
  0x20   : > { %370 = vst.msk [vmem:[#allocation2 + $0x120] sm:$0xff] %vm333_vm0, %v16447_v5  ;;  %371 = vst.msk [vmem:[#allocation2 + $0x128] sm:$0xff] %vm333_vm0, %v16447_v5  ;;  %v11731_v49 = vld [vmem:[%s19907_s1 + $0x68] sm:$0xff]  ;;  %v430_v53 = vld [vmem:[%s16702_s12 + $0xc0] sm:$0xff] }
  0x21   : > { %372 = vst.msk [vmem:[#allocation2 + $0x130] sm:$0xff] %vm333_vm0, %v16447_v5  ;;  %373 = vst.msk [vmem:[#allocation2 + $0x138] sm:$0xff] %vm333_vm0, %v16447_v5  ;;  %15325 = vmatpush3.bf16.msra.mxu0 %v15322_v36  ;;  %v16788_v52 = vpack.c.bf16 %v11731_v49, %v11730_v48  ;;  %v431_v54 = vld [vmem:[%s16702_s12 + $0xc8] sm:$0xff]  ;;  %v432_v55 = vld [vmem:[%s16702_s12 + $0xd0] sm:$0xff] }
  0x22   : > { %374 = vst.msk [vmem:[#allocation2 + $0x140] sm:$0xff] %vm333_vm0, %v16447_v5  ;;  %375 = vst.msk [vmem:[#allocation2 + $0x148] sm:$0xff] %vm333_vm0, %v16447_v5  ;;  %15327 = vmatprep.subr.bf16.mxu0 %v15326_v47  ;;  %v433_v56 = vld [vmem:[%s16702_s12 + $0xd8] sm:$0xff]  ;;  %v434_v57 = vld [vmem:[%s16702_s12 + $0xe0] sm:$0xff] }
  0x23   : > { %376 = vst.msk [vmem:[#allocation2 + $0x150] sm:$0xff] %vm333_vm0, %v16447_v5  ;;  %377 = vst.msk [vmem:[#allocation2 + $0x158] sm:$0xff] %vm333_vm0, %v16447_v5  ;;  %v435_v58 = vld [vmem:[%s16702_s12 + $0xe8] sm:$0xff]  ;;  %v11732_v21 = vld [vmem:[%s19907_s1 + $0x70] sm:$0xff] }
  0x24   : > { %378 = vst.msk [vmem:[#allocation2 + $0x160] sm:$0xff] %vm333_vm0, %v16447_v5  ;;  %379 = vst.msk [vmem:[#allocation2 + $0x168] sm:$0xff] %vm333_vm0, %v16447_v5  ;;  %v471_v20 = vld [vmem:[#allocation2 + $0x7] sm:$0xff]  ;;  %v11733_v22 = vld [vmem:[%s19907_s1 + $0x78] sm:$0xff] }
  0x25   : > { %380 = vst.msk [vmem:[#allocation2 + $0x170] sm:$0xff] %vm333_vm0, %v16447_v5  ;;  %381 = vst.msk [vmem:[#allocation2 + $0x178] sm:$0xff] %vm333_vm0, %v16447_v5  ;;  %15329 = vmatpush3.bf16.msra.mxu0 %v15326_v47  ;;  %v11734_v26 = vld [vmem:[%s19907_s1 + $0x80] sm:$0xff] }
  0x26   : > { %382 = vst.msk [vmem:[#allocation2 + $0x180] sm:$0xff] %vm333_vm0, %v16447_v5  ;;  %383 = vst.msk [vmem:[#allocation2 + $0x188] sm:$0xff] %vm333_vm0, %v16447_v5  ;;  %15331 = vmatprep.subr.bf16.mxu0 %v16788_v52 }
  0x27   : > { %384 = vst.msk [vmem:[#allocation2 + $0x190] sm:$0xff] %vm333_vm0, %v16447_v5  ;;  %385 = vst.msk [vmem:[#allocation2 + $0x198] sm:$0xff] %vm333_vm0, %v16447_v5 }
  0x28   : > { %386 = vst.msk [vmem:[#allocation2 + $0x1a0] sm:$0xff] %vm333_vm0, %v16447_v5  ;;  %387 = vst.msk [vmem:[#allocation2 + $0x1a8] sm:$0xff] %vm333_vm0, %v16447_v5 }
  0x29   : > { %388 = vst.msk [vmem:[#allocation2 + $0x1b0] sm:$0xff] %vm333_vm0, %v16447_v5  ;;  %389 = vst.msk [vmem:[#allocation2 + $0x1b8] sm:$0xff] %vm333_vm0, %v16447_v5 }
  0x2a   : > { %390 = vst.msk [vmem:[#allocation2 + $0x1c0] sm:$0xff] %vm333_vm0, %v16447_v5  ;;  %391 = vst.msk [vmem:[#allocation2 + $0x1c8] sm:$0xff] %vm333_vm0, %v16447_v5 }
  0x2b   : > { %392 = vst.msk [vmem:[#allocation2 + $0x1d0] sm:$0xff] %vm333_vm0, %v16447_v5  ;;  %393 = vst.msk [vmem:[#allocation2 + $0x1d8] sm:$0xff] %vm333_vm0, %v16447_v5 }
  0x2c   : > { %394 = vst.msk [vmem:[#allocation2 + $0x1e0] sm:$0xff] %vm333_vm0, %v16447_v5  ;;  %395 = vst.msk [vmem:[#allocation2 + $0x1e8] sm:$0xff] %vm333_vm0, %v16447_v5 }
  0x2d   : > { %396 = vst.msk [vmem:[#allocation2 + $0x1f0] sm:$0xff] %vm333_vm0, %v16447_v5  ;;  %397 = vst.msk [vmem:[#allocation2 + $0x1f8] sm:$0xff] %vm333_vm0, %v16447_v5 }
  0x2e   : > { %398 = vst.msk [vmem:[#allocation2 + $0x200] sm:$0xff] %vm333_vm0, %v16447_v5  ;;  %399 = vst.msk [vmem:[#allocation2 + $0x208] sm:$0xff] %vm333_vm0, %v16447_v5 }
  0x2f   : > { %400 = vst.msk [vmem:[#allocation2 + $0x210] sm:$0xff] %vm333_vm0, %v16447_v5  ;;  %401 = vst.msk [vmem:[#allocation2 + $0x218] sm:$0xff] %vm333_vm0, %v16447_v5 }
  0x30   : > { %402 = vst.msk [vmem:[#allocation2 + $0x220] sm:$0xff] %vm333_vm0, %v16447_v5  ;;  %403 = vst.msk [vmem:[#allocation2 + $0x228] sm:$0xff] %vm333_vm0, %v16447_v5 }
  0x31   : > { %404 = vst.msk [vmem:[#allocation2 + $0x230] sm:$0xff] %vm333_vm0, %v16447_v5  ;;  %405 = vst.msk [vmem:[#allocation2 + $0x238] sm:$0xff] %vm333_vm0, %v16447_v5 }
  0x32   : > { %439 = vst.msk [vmem:[#allocation2 + $0x28] sm:$0xff] %vm333_vm0, %v406_v12  ;;  %440 = vst.msk [vmem:[#allocation2 + $0x30] sm:$0xff] %vm333_vm0, %v407_v13 }
  0x33   : > { %441 = vst.msk [vmem:[#allocation2 + $0x48] sm:$0xff] %vm333_vm0, %v408_v14  ;;  %442 = vst.msk [vmem:[#allocation2 + $0x50] sm:$0xff] %vm333_vm0, %v409_v15 }
  0x34   : > { %443 = vst.msk [vmem:[#allocation2 + $0x68] sm:$0xff] %vm333_vm0, %v410_v16  ;;  %444 = vst.msk [vmem:[#allocation2 + $0x70] sm:$0xff] %vm333_vm0, %v411_v17 }
  0x35   : > { %445 = vst.msk [vmem:[#allocation2 + $0x88] sm:$0xff] %vm333_vm0, %v412_v19  ;;  %446 = vst.msk [vmem:[#allocation2 + $0x90] sm:$0xff] %vm333_vm0, %v413_v23  ;;  %v472_v23 = vld [vmem:[#allocation2 + $0xf] sm:$0xff] }
  0x36   : > { %447 = vst.msk [vmem:[#allocation2 + $0xa8] sm:$0xff] %vm333_vm0, %v414_v24  ;;  %448 = vst.msk [vmem:[#allocation2 + $0xb0] sm:$0xff] %vm333_vm0, %v415_v25  ;;  %v15334_v25 = vpack.c.bf16 %v11733_v22, %v11732_v21 }
  0x37   : > { %449 = vst.msk [vmem:[#allocation2 + $0xc8] sm:$0xff] %vm333_vm0, %v416_v27  ;;  %450 = vst.msk [vmem:[#allocation2 + $0xd0] sm:$0xff] %vm333_vm0, %v417_v28  ;;  %v11735_v27 = vld [vmem:[%s19907_s1 + $0x88] sm:$0xff] }
  0x38   : > { %451 = vst.msk [vmem:[#allocation2 + $0xe8] sm:$0xff] %vm333_vm0, %v418_v29  ;;  %452 = vst.msk [vmem:[#allocation2 + $0xf0] sm:$0xff] %vm333_vm0, %v419_v30  ;;  %v15338_v30 = vpack.c.bf16 %v11735_v27, %v11734_v26  ;;  %v437_v26 = vld [vmem:[%s16702_s12 + $0xf8] sm:$0xff] }
  0x39   : > { %453 = vst.msk [vmem:[#allocation2 + $0x108] sm:$0xff] %vm333_vm0, %v420_v31  ;;  %454 = vst.msk [vmem:[#allocation2 + $0x110] sm:$0xff] %vm333_vm0, %v421_v32  ;;  %v16752_v40 = vld [vmem:[#allocation2 + $0x28] sm:$0xff]  ;;  %v16766_v43 = vld [vmem:[#allocation2 + $0x30] sm:$0xff] }
  0x3a   : > { %455 = vst.msk [vmem:[#allocation2 + $0x128] sm:$0xff] %vm333_vm0, %v422_v33  ;;  %456 = vst.msk [vmem:[#allocation2 + $0x130] sm:$0xff] %vm333_vm0, %v423_v34  ;;  %13717 = vmatprep.mubr.msk.f32.mxu0 %vm333_vm0, %v16752_v40  ;;  %v16770_v46 = vld [vmem:[#allocation2 + $0x48] sm:$0xff]  ;;  %v16784_v50 = vld [vmem:[#allocation2 + $0x50] sm:$0xff] }
  0x3b   : > { %457 = vst.msk [vmem:[#allocation2 + $0x148] sm:$0xff] %vm333_vm0, %v424_v35  ;;  %458 = vst.msk [vmem:[#allocation2 + $0x150] sm:$0xff] %vm333_vm0, %v425_v37  ;;  %13718 = vmatmul.mubr.msk.f32.gmra.mrb[2].mxu0 %vm333_vm0, %v16766_v43  ;;  %v16786_v51 = vld [vmem:[#allocation2 + $0x68] sm:$0xff]  ;;  %v16803_v59 = vld [vmem:[#allocation2 + $0x70] sm:$0xff] }
  0x3c   : > { %459 = vst.msk [vmem:[#allocation2 + $0x168] sm:$0xff] %vm333_vm0, %v426_v38  ;;  %460 = vst.msk [vmem:[#allocation2 + $0x170] sm:$0xff] %vm333_vm0, %v427_v39  ;;  %13720 = vmatprep.mubr.msk.f32.mxu0 %vm333_vm0, %v16770_v46  ;;  %v16808_v60 = vld [vmem:[#allocation2 + $0x88] sm:$0xff]  ;;  %v16815_v61 = vld [vmem:[#allocation2 + $0x90] sm:$0xff] }
  0x3d   : > { %461 = vst.msk [vmem:[#allocation2 + $0x188] sm:$0xff] %vm333_vm0, %v428_v44  ;;  %462 = vst.msk [vmem:[#allocation2 + $0x190] sm:$0xff] %vm333_vm0, %v429_v45  ;;  %v16817_v62 = vld [vmem:[#allocation2 + $0xa8] sm:$0xff]  ;;  %v16823_v63 = vld [vmem:[#allocation2 + $0xb0] sm:$0xff] }
  0x3e   : > { %463 = vst.msk [vmem:[#allocation2 + $0x1a8] sm:$0xff] %vm333_vm0, %v430_v53  ;;  %464 = vst.msk [vmem:[#allocation2 + $0x1b0] sm:$0xff] %vm333_vm0, %v431_v54  ;;  %v16825_v0 = vld [vmem:[#allocation2 + $0xc8] sm:$0xff]  ;;  %v16831_v1 = vld [vmem:[#allocation2 + $0xd0] sm:$0xff] }
  0x3f   : > { %13721 = vmatmul.mubr.msk.f32.gmra.mrb[4].mxu0 %vm333_vm0, %v16784_v50  ;;  %465 = vst.msk [vmem:[#allocation2 + $0x1c8] sm:$0xff] %vm333_vm0, %v432_v55  ;;  %466 = vst.msk [vmem:[#allocation2 + $0x1d0] sm:$0xff] %vm333_vm0, %v433_v56  ;;  %v16833_v2 = vld [vmem:[#allocation2 + $0xe8] sm:$0xff]  ;;  %v16839_v3 = vld [vmem:[#allocation2 + $0xf0] sm:$0xff] }
  0x40   : > { %13723 = vmatprep.mubr.msk.f32.mxu0 %vm333_vm0, %v16786_v51  ;;  %467 = vst.msk [vmem:[#allocation2 + $0x1e8] sm:$0xff] %vm333_vm0, %v434_v57  ;;  %468 = vst.msk [vmem:[#allocation2 + $0x1f0] sm:$0xff] %vm333_vm0, %v435_v58  ;;  %v16841_v4 = vld [vmem:[#allocation2 + $0x108] sm:$0xff]  ;;  %v16847_v5 = vld [vmem:[#allocation2 + $0x110] sm:$0xff] }
  0x41   : > { %v16849_v6 = vld [vmem:[#allocation2 + $0x128] sm:$0xff]  ;;  %v16855_v7 = vld [vmem:[#allocation2 + $0x130] sm:$0xff]  ;;  %v11769_v32 = vld [vmem:[%s19907_s1 + $0x98] sm:$0xff]  ;;  %470 = vst.msk [vmem:[#allocation2 + $0x210] sm:$0xff] %vm333_vm0, %v437_v26 }
  0x42   : > { %v16857_v8 = vld [vmem:[#allocation2 + $0x148] sm:$0xff]  ;;  %v16863_v9 = vld [vmem:[#allocation2 + $0x150] sm:$0xff] }
  0x43   : > { %13724 = vmatmul.mubr.msk.f32.gmra.mrb[6].mxu0 %vm333_vm0, %v16803_v59  ;;  %v16865_v10 = vld [vmem:[#allocation2 + $0x168] sm:$0xff]  ;;  %v16871_v11 = vld [vmem:[#allocation2 + $0x170] sm:$0xff] }
  0x44   : > { %13726 = vmatprep.mubr.msk.f32.mxu0 %vm333_vm0, %v16808_v60  ;;  %v16873_v12 = vld [vmem:[#allocation2 + $0x188] sm:$0xff]  ;;  %v16879_v13 = vld [vmem:[#allocation2 + $0x190] sm:$0xff] }
  0x45   : > { %20123 = vst [vmem:[#allocation3_spill] sm:$0xff] %v16879_v13  ;;  %v16881_v14 = vld [vmem:[#allocation2 + $0x1a8] sm:$0xff]  ;;  %v16887_v15 = vld [vmem:[#allocation2 + $0x1b0] sm:$0xff] }
  0x46   : > { %20124 = vst [vmem:[#allocation4_spill] sm:$0xff] %v16881_v14  ;;  %20125 = vst [vmem:[#allocation5_spill] sm:$0xff] %v16887_v15  ;;  %v16889_v16 = vld [vmem:[#allocation2 + $0x1c8] sm:$0xff]  ;;  %v16895_v17 = vld [vmem:[#allocation2 + $0x1d0] sm:$0xff] }
  0x47   : > { %13727 = vmatmul.mubr.msk.f32.gmra.mrb[8].mxu0 %vm333_vm0, %v16815_v61  ;;  %20126 = vst [vmem:[#allocation6_spill] sm:$0xff] %v16889_v16  ;;  %20127 = vst [vmem:[#allocation7_spill] sm:$0xff] %v16895_v17  ;;  %v16897_v18 = vld [vmem:[#allocation2 + $0x1e8] sm:$0xff]  ;;  %v16903_v19 = vld [vmem:[#allocation2 + $0x1f0] sm:$0xff] }
  0x48   : > { %13729 = vmatprep.mubr.msk.f32.mxu0 %vm333_vm0, %v16817_v62  ;;  %20128 = vst [vmem:[#allocation8_spill] sm:$0xff] %v16897_v18  ;;  %20129 = vst [vmem:[#allocation9_spill] sm:$0xff] %v16903_v19  ;;  %v16914_v24 = vld [vmem:[#allocation2 + $0x27] sm:$0xff]  ;;  %v16926_v28 = vld [vmem:[#allocation2 + $0x2f] sm:$0xff] }
  0x49   : > { %v16928_v29 = vld [vmem:[#allocation2 + $0x47] sm:$0xff]  ;;  %v11768_v31 = vld [vmem:[%s19907_s1 + $0x90] sm:$0xff] }
  0x4a   : > { %v16940_v33 = vld [vmem:[#allocation2 + $0x4f] sm:$0xff]  ;;  %v16942_v34 = vld [vmem:[#allocation2 + $0x67] sm:$0xff]  ;;  %v16944_v35 = vpack.c.bf16 %v11769_v32, %v11768_v31 }
  0x4b   : > { %13730 = vmatmul.mubr.msk.f32.gmra.mrb[10].mxu0 %vm333_vm0, %v16823_v63  ;;  %v16950_v36 = vld [vmem:[#allocation2 + $0x6f] sm:$0xff]  ;;  %v16952_v37 = vld [vmem:[#allocation2 + $0x87] sm:$0xff] }
  0x4c   : > { %13732 = vmatprep.mubr.msk.f32.mxu0 %vm333_vm0, %v16825_v0  ;;  %v16959_v38 = vld [vmem:[#allocation2 + $0x8f] sm:$0xff]  ;;  %v16961_v39 = vld [vmem:[#allocation2 + $0xa7] sm:$0xff] }
  0x4d   : > { %v16967_v41 = vld [vmem:[#allocation2 + $0xaf] sm:$0xff]  ;;  %v16969_v42 = vld [vmem:[#allocation2 + $0xc7] sm:$0xff] }
  0x4e   : > { %v16975_v44 = vld [vmem:[#allocation2 + $0xcf] sm:$0xff]  ;;  %v16977_v45 = vld [vmem:[#allocation2 + $0xe7] sm:$0xff] }
  0x4f   : > { %13733 = vmatmul.mubr.msk.f32.gmra.mrb[12].mxu0 %vm333_vm0, %v16831_v1  ;;  %v16983_v47 = vld [vmem:[#allocation2 + $0xef] sm:$0xff]  ;;  %v16985_v48 = vld [vmem:[#allocation2 + $0x107] sm:$0xff] }
  0x50   : > { %13735 = vmatprep.mubr.msk.f32.mxu0 %vm333_vm0, %v16833_v2  ;;  %v16991_v49 = vld [vmem:[#allocation2 + $0x10f] sm:$0xff]  ;;  %v17001_v54 = vld [vmem:[#allocation2 + $0x147] sm:$0xff] }
  0x51   : > { %v16999_v53 = vld [vmem:[#allocation2 + $0x12f] sm:$0xff]  ;;  %v17009_v56 = vld [vmem:[#allocation2 + $0x167] sm:$0xff] }
  0x52   : > { %v17007_v55 = vld [vmem:[#allocation2 + $0x14f] sm:$0xff]  ;;  %v17017_v58 = vld [vmem:[#allocation2 + $0x187] sm:$0xff] }
  0x53   : > { %13736 = vmatmul.mubr.msk.f32.gmra.mrb[14].mxu0 %vm333_vm0, %v16839_v3  ;;  %v17015_v57 = vld [vmem:[#allocation2 + $0x16f] sm:$0xff]  ;;  %v17025_v21 = vld [vmem:[#allocation2 + $0x1a7] sm:$0xff] }
  0x54   : > { %13738 = vmatprep.mubr.msk.f32.mxu0 %vm333_vm0, %v16841_v4  ;;  %v17031_v22 = vld [vmem:[#allocation2 + $0x1af] sm:$0xff] }
  0x55   : > { %v17043_v27 = vld [vmem:[#allocation2 + $0x1cf] sm:$0xff] }
  0x56   : > { %v17051_v31 = vld [vmem:[#allocation2 + $0x1ef] sm:$0xff] }
  0x57   : > { %13739 = vmatmul.mubr.msk.f32.gmra.mrb[16].mxu0 %vm333_vm0, %v16847_v5  ;;  %v1190_v32 = vld [vmem:[#allocation2 + $0x9] sm:$0xff] }
  0x58   : > { %13741 = vmatprep.mubr.msk.f32.mxu0 %vm333_vm0, %v16849_v6  ;;  %v11771_v26 = vld [vmem:[%s19907_s1 + $0xa8] sm:$0xff] }
  0x5b   : > { %13742 = vmatmul.mubr.msk.f32.gmra.mrb[18].mxu0 %vm333_vm0, %v16855_v7 }
  0x5c   : > { %13744 = vmatprep.mubr.msk.f32.mxu0 %vm333_vm0, %v16857_v8 }
  0x5f   : > { %13745 = vmatmul.mubr.msk.f32.gmra.mrb[20].mxu0 %vm333_vm0, %v16863_v9 }
  0x60   : > { %13747 = vmatprep.mubr.msk.f32.mxu0 %vm333_vm0, %v16865_v10 }
  0x63   : > { %13748 = vmatmul.mubr.msk.f32.gmra.mrb[22].mxu0 %vm333_vm0, %v16871_v11 }
  0x64   : > { %13750 = vmatprep.mubr.msk.f32.mxu0 %vm333_vm0, %v16873_v12 }
  0x67   : > { %13751 = vmatmul.mubr.msk.f32.gmra.mrb[24].mxu0 %vm333_vm0, %v16879_v13  ;;  %v11807_v13 = vld [vmem:[%s19907_s1 + $0xc8] sm:$0xff] }
  0x68   : > { %13753 = vmatprep.mubr.msk.f32.mxu0 %vm333_vm0, %v16881_v14  ;;  %v17076_v14 = vld [vmem:[#allocation2 + $0x49] sm:$0xff] }
  0x6b   : > { %13754 = vmatmul.mubr.msk.f32.gmra.mrb[26].mxu0 %vm333_vm0, %v16887_v15  ;;  %v11773_v15 = vld [vmem:[%s19907_s1 + $0xb8] sm:$0xff] }
  0x6c   : > { %13756 = vmatprep.mubr.msk.f32.mxu0 %vm333_vm0, %v16889_v16  ;;  %v11772_v16 = vld [vmem:[%s19907_s1 + $0xb0] sm:$0xff] }
  0x6f   : > { %13757 = vmatmul.mubr.msk.f32.gmra.mrb[28].mxu0 %vm333_vm0, %v16895_v17 }
  0x70   : > { %13759 = vmatprep.mubr.msk.f32.mxu0 %vm333_vm0, %v16897_v18  ;;  %v17062_v18 = vld [vmem:[#allocation2 + $0x29] sm:$0xff] }
  0x73   : > { %13760 = vmatmul.mubr.msk.f32.gmra.mrb[30].mxu0 %vm333_vm0, %v16903_v19  ;;  %v1191_v19 = vld [vmem:[#allocation2 + $0x11] sm:$0xff] }
  0x74   : > { %13774 = vmatprep.mubr.msk.f32.mxu0 %vm333_vm0, %v471_v20  ;;  %v17023_v20 = vld [vmem:[#allocation2 + $0x18f] sm:$0xff] }
  0x77   : > { %13775 = vmatmul.mubr.msk.f32.vlgmr.msra.gmra.mrb[0].mxu0 %vm333_vm0, %v472_v23  ;;  %v17033_v23 = vld [vmem:[#allocation2 + $0x1c7] sm:$0xff] }
  0x78   : > { %15333 = vmatpush3.bf16.msra.mxu0 %v16788_v52  ;;  %13777 = vmatprep.mubr.msk.f32.mxu0 %vm333_vm0, %v16914_v24  ;;  %v16993_v52 = vld [vmem:[#allocation2 + $0x127] sm:$0xff] }
  0x79   : > { %15335 = vmatprep.subr.bf16.mxu0 %v15334_v25 }
  0x7b   : > { %13778 = vmatmul.mubr.msk.f32.gmra.mrb[2].mxu0 %vm333_vm0, %v16926_v28 }
  0x7c   : > { %13780 = vmatprep.mubr.msk.f32.mxu0 %vm333_vm0, %v16928_v29  ;;  %15337 = vmatpush3.bf16.msra.mxu0 %v15334_v25  ;;  %v436_v25 = vld [vmem:[%s16702_s12 + $0xf0] sm:$0xff] }
  0x7d   : > { %15339 = vmatprep.subr.bf16.mxu0 %v15338_v30  ;;  %469 = vst.msk [vmem:[#allocation2 + $0x208] sm:$0xff] %vm333_vm0, %v436_v25  ;;  %v11770_v25 = vld [vmem:[%s19907_s1 + $0xa0] sm:$0xff] }
  0x7e   : > { %v15346_v17 = vpack.c.bf16 %v11771_v26, %v11770_v25  ;;  %v15350_v25 = vpack.c.bf16 %v11773_v15, %v11772_v16  ;;  %v11806_v26 = vld [vmem:[%s19907_s1 + $0xc0] sm:$0xff]  ;;  %v17096_v16 = vld [vmem:[#allocation2 + $0x71] sm:$0xff] }
  0x7f   : > { %13781 = vmatmul.mubr.msk.f32.gmra.mrb[4].mxu0 %vm333_vm0, %v16940_v33  ;;  %v15354_v15 = vpack.c.bf16 %v11807_v13, %v11806_v26  ;;  %20131 = vst [vmem:[#allocation11_spill] sm:$0xff] %v17096_v16  ;;  %v17106_v13 = vld [vmem:[#allocation2 + $0xa9] sm:$0xff] }
  0x80   : > { %13783 = vmatprep.mubr.msk.f32.mxu0 %vm333_vm0, %v16942_v34  ;;  %15341 = vmatpush3.bf16.msra.mxu0 %v15338_v30  ;;  %v17045_v30 = vld [vmem:[#allocation2 + $0x1e7] sm:$0xff]  ;;  %20134 = vst [vmem:[#allocation14_spill] sm:$0xff] %v17106_v13 }
  0x81   : > { %15343 = vmatprep.subr.bf16.mxu0 %v16944_v35  ;;  %v17114_v26 = vld [vmem:[#allocation2 + $0xc9] sm:$0xff] }
  0x82   : > { %20136 = vst [vmem:[#allocation16_spill] sm:$0xff] %v17114_v26 }
  0x83   : > { %13784 = vmatmul.mubr.msk.f32.gmra.mrb[6].mxu0 %vm333_vm0, %v16950_v36 }
  0x84   : > { %13786 = vmatprep.mubr.msk.f32.mxu0 %vm333_vm0, %v16952_v37 }
  0x87   : > { %13787 = vmatmul.mubr.msk.f32.gmra.mrb[8].mxu0 %vm333_vm0, %v16959_v38 }
  0x88   : > { %13789 = vmatprep.mubr.msk.f32.mxu0 %vm333_vm0, %v16961_v39 }
  0x8b   : > { %13790 = vmatmul.mubr.msk.f32.gmra.mrb[10].mxu0 %vm333_vm0, %v16967_v41 }
  0x8c   : > { %13792 = vmatprep.mubr.msk.f32.mxu0 %vm333_vm0, %v16969_v42 }
  0x8f   : > { %13793 = vmatmul.mubr.msk.f32.gmra.mrb[12].mxu0 %vm333_vm0, %v16975_v44 }
  0x90   : > { %13795 = vmatprep.mubr.msk.f32.mxu0 %vm333_vm0, %v16977_v45 }
  0x93   : > { %13796 = vmatmul.mubr.msk.f32.gmra.mrb[14].mxu0 %vm333_vm0, %v16983_v47 }
  0x94   : > { %13798 = vmatprep.mubr.msk.f32.mxu0 %vm333_vm0, %v16985_v48 }
  0x97   : > { %13799 = vmatmul.mubr.msk.f32.gmra.mrb[16].mxu0 %vm333_vm0, %v16991_v49 }
  0x98   : > { %13801 = vmatprep.mubr.msk.f32.mxu0 %vm333_vm0, %v16993_v52 }
  0x9b   : > { %13802 = vmatmul.mubr.msk.f32.gmra.mrb[18].mxu0 %vm333_vm0, %v16999_v53 }
  0x9c   : > { %13804 = vmatprep.mubr.msk.f32.mxu0 %vm333_vm0, %v17001_v54 }
  0x9f   : > { %13805 = vmatmul.mubr.msk.f32.gmra.mrb[20].mxu0 %vm333_vm0, %v17007_v55 }
  0xa0   : > { %13807 = vmatprep.mubr.msk.f32.mxu0 %vm333_vm0, %v17009_v56 }
  0xa3   : > { %13808 = vmatmul.mubr.msk.f32.gmra.mrb[22].mxu0 %vm333_vm0, %v17015_v57 }
  0xa4   : > { %13810 = vmatprep.mubr.msk.f32.mxu0 %vm333_vm0, %v17017_v58 }
  0xa7   : > { %13811 = vmatmul.mubr.msk.f32.gmra.mrb[24].mxu0 %vm333_vm0, %v17023_v20 }
  0xa8   : > { %13813 = vmatprep.mubr.msk.f32.mxu0 %vm333_vm0, %v17025_v21 }
  0xab   : > { %13814 = vmatmul.mubr.msk.f32.gmra.mrb[26].mxu0 %vm333_vm0, %v17031_v22 }
  0xac   : > { %13816 = vmatprep.mubr.msk.f32.mxu0 %vm333_vm0, %v17033_v23 }
  0xaf   : > { %13817 = vmatmul.mubr.msk.f32.gmra.mrb[28].mxu0 %vm333_vm0, %v17043_v27 }
  0xb0   : > { %13819 = vmatprep.mubr.msk.f32.mxu0 %vm333_vm0, %v17045_v30 }
  0xb3   : > { %13820 = vmatmul.mubr.msk.f32.gmra.mrb[30].mxu0 %vm333_vm0, %v17051_v31 }
  0xb4   : > { %13834 = vmatprep.mubr.msk.f32.mxu0 %vm333_vm0, %v1190_v32  ;;  %v17074_v32 = vld [vmem:[#allocation2 + $0x31] sm:$0xff] }
  0xb5   : > { %20130 = vst [vmem:[#allocation10_spill] sm:$0xff] %v17074_v32 }
  0xb7   : > { %13835 = vmatmul.mubr.msk.f32.vlgmr.msra.gmra.mrb[0].mxu0 %vm333_vm0, %v1191_v19  ;;  %v17088_v19 = vld [vmem:[#allocation2 + $0x51] sm:$0xff] }
  0xb8   : > { %15345 = vmatpush3.bf16.msra.mxu0 %v16944_v35  ;;  %13837 = vmatprep.mubr.msk.f32.mxu0 %vm333_vm0, %v17062_v18  ;;  %v17090_v35 = vld [vmem:[#allocation2 + $0x69] sm:$0xff] }
  0xb9   : > { %15347 = vmatprep.subr.bf16.mxu0 %v15346_v17 }
  0xbb   : > { %13838 = vmatmul.mubr.msk.f32.gmra.mrb[2].mxu0 %vm333_vm0, %v17074_v32  ;;  %v17098_v32 = vld [vmem:[#allocation2 + $0x89] sm:$0xff] }
  0xbc   : > { %13840 = vmatprep.mubr.msk.f32.mxu0 %vm333_vm0, %v17076_v14  ;;  %15349 = vmatpush3.bf16.msra.mxu0 %v15346_v17  ;;  %20132 = vst [vmem:[#allocation12_spill] sm:$0xff] %v17098_v32  ;;  %v17104_v17 = vld [vmem:[#allocation2 + $0x91] sm:$0xff] }
  0xbd   : > { %15351 = vmatprep.subr.bf16.mxu0 %v15350_v25  ;;  %20133 = vst [vmem:[#allocation13_spill] sm:$0xff] %v17104_v17 }
  0xbf   : > { %13841 = vmatmul.mubr.msk.f32.gmra.mrb[4].mxu0 %vm333_vm0, %v17088_v19 }
  0xc0   : > { %13843 = vmatprep.mubr.msk.f32.mxu0 %vm333_vm0, %v17090_v35  ;;  %15353 = vmatpush3.bf16.msra.mxu0 %v15350_v25  ;;  %v17112_v25 = vld [vmem:[#allocation2 + $0xb1] sm:$0xff] }
  0xc1   : > { %15355 = vmatprep.subr.bf16.mxu0 %v15354_v15  ;;  %20135 = vst [vmem:[#allocation15_spill] sm:$0xff] %v17112_v25 }
  0xc3   : > { %13844 = vmatmul.mubr.msk.f32.gmra.mrb[6].mxu0 %vm333_vm0, %v17096_v16  ;;  %v17122_v16 = vld [vmem:[#allocation2 + $0xe9] sm:$0xff] }
  0xc4   : > { %13846 = vmatprep.mubr.msk.f32.mxu0 %vm333_vm0, %v17098_v32  ;;  %v17120_v32 = vld [vmem:[#allocation2 + $0xd1] sm:$0xff]  ;;  %20138 = vst [vmem:[#allocation18_spill] sm:$0xff] %v17122_v16 }
  0xc5   : > { %20137 = vst [vmem:[#allocation17_spill] sm:$0xff] %v17120_v32 }
  0xc7   : > { %13847 = vmatmul.mubr.msk.f32.gmra.mrb[8].mxu0 %vm333_vm0, %v17104_v17  ;;  %v17130_v17 = vld [vmem:[#allocation2 + $0x109] sm:$0xff] }
  0xc8   : > { %13849 = vmatprep.mubr.msk.f32.mxu0 %vm333_vm0, %v17106_v13  ;;  %v17128_v13 = vld [vmem:[#allocation2 + $0xf1] sm:$0xff]  ;;  %20140 = vst [vmem:[#allocation20_spill] sm:$0xff] %v17130_v17 }
  0xc9   : > { %20139 = vst [vmem:[#allocation19_spill] sm:$0xff] %v17128_v13 }
  0xcb   : > { %13850 = vmatmul.mubr.msk.f32.gmra.mrb[10].mxu0 %vm333_vm0, %v17112_v25  ;;  %v17138_v25 = vld [vmem:[#allocation2 + $0x129] sm:$0xff] }
  0xcc   : > { %13852 = vmatprep.mubr.msk.f32.mxu0 %vm333_vm0, %v17114_v26  ;;  %v17136_v26 = vld [vmem:[#allocation2 + $0x111] sm:$0xff]  ;;  %20142 = vst [vmem:[#allocation22_spill] sm:$0xff] %v17138_v25 }
  0xcd   : > { %20141 = vst [vmem:[#allocation21_spill] sm:$0xff] %v17136_v26 }
  0xcf   : > { %13853 = vmatmul.mubr.msk.f32.gmra.mrb[12].mxu0 %vm333_vm0, %v17120_v32  ;;  %v17146_v32 = vld [vmem:[#allocation2 + $0x149] sm:$0xff] }
  0xd0   : > { %13855 = vmatprep.mubr.msk.f32.mxu0 %vm333_vm0, %v17122_v16  ;;  %v17144_v16 = vld [vmem:[#allocation2 + $0x131] sm:$0xff]  ;;  %20144 = vst [vmem:[#allocation24_spill] sm:$0xff] %v17146_v32 }
  0xd1   : > { %20143 = vst [vmem:[#allocation23_spill] sm:$0xff] %v17144_v16 }
  0xd3   : > { %13856 = vmatmul.mubr.msk.f32.gmra.mrb[14].mxu0 %vm333_vm0, %v17128_v13  ;;  %v17154_v13 = vld [vmem:[#allocation2 + $0x169] sm:$0xff] }
  0xd4   : > { %13858 = vmatprep.mubr.msk.f32.mxu0 %vm333_vm0, %v17130_v17  ;;  %v17152_v17 = vld [vmem:[#allocation2 + $0x151] sm:$0xff]  ;;  %20146 = vst [vmem:[#allocation26_spill] sm:$0xff] %v17154_v13 }
  0xd5   : > { %20145 = vst [vmem:[#allocation25_spill] sm:$0xff] %v17152_v17 }
  0xd7   : > { %13859 = vmatmul.mubr.msk.f32.gmra.mrb[16].mxu0 %vm333_vm0, %v17136_v26  ;;  %v17162_v26 = vld [vmem:[#allocation2 + $0x189] sm:$0xff] }
  0xd8   : > { %13861 = vmatprep.mubr.msk.f32.mxu0 %vm333_vm0, %v17138_v25  ;;  %v17160_v25 = vld [vmem:[#allocation2 + $0x171] sm:$0xff]  ;;  %20148 = vst [vmem:[#allocation28_spill] sm:$0xff] %v17162_v26 }
  0xd9   : > { %20147 = vst [vmem:[#allocation27_spill] sm:$0xff] %v17160_v25 }
  0xdb   : > { %13862 = vmatmul.mubr.msk.f32.gmra.mrb[18].mxu0 %vm333_vm0, %v17144_v16  ;;  %v17170_v16 = vld [vmem:[#allocation2 + $0x1a9] sm:$0xff] }
  0xdc   : > { %13864 = vmatprep.mubr.msk.f32.mxu0 %vm333_vm0, %v17146_v32  ;;  %v17168_v32 = vld [vmem:[#allocation2 + $0x191] sm:$0xff]  ;;  %20150 = vst [vmem:[#allocation30_spill] sm:$0xff] %v17170_v16 }
  0xdd   : > { %20149 = vst [vmem:[#allocation29_spill] sm:$0xff] %v17168_v32 }
  0xdf   : > { %13865 = vmatmul.mubr.msk.f32.gmra.mrb[20].mxu0 %vm333_vm0, %v17152_v17  ;;  %v17178_v17 = vld [vmem:[#allocation2 + $0x1c9] sm:$0xff] }
  0xe0   : > { %13867 = vmatprep.mubr.msk.f32.mxu0 %vm333_vm0, %v17154_v13  ;;  %v17176_v13 = vld [vmem:[#allocation2 + $0x1b1] sm:$0xff]  ;;  %20152 = vst [vmem:[#allocation32_spill] sm:$0xff] %v17178_v17 }
  0xe1   : > { %20151 = vst [vmem:[#allocation31_spill] sm:$0xff] %v17176_v13 }
  0xe3   : > { %13868 = vmatmul.mubr.msk.f32.gmra.mrb[22].mxu0 %vm333_vm0, %v17160_v25  ;;  %v17186_v25 = vld [vmem:[#allocation2 + $0x1e9] sm:$0xff] }
  0xe4   : > { %13870 = vmatprep.mubr.msk.f32.mxu0 %vm333_vm0, %v17162_v26  ;;  %v17184_v26 = vld [vmem:[#allocation2 + $0x1d1] sm:$0xff]  ;;  %20154 = vst [vmem:[#allocation34_spill] sm:$0xff] %v17186_v25 }
  0xe5   : > { %20153 = vst [vmem:[#allocation33_spill] sm:$0xff] %v17184_v26 }
  0xe7   : > { %13871 = vmatmul.mubr.msk.f32.gmra.mrb[24].mxu0 %vm333_vm0, %v17168_v32  ;;  %v11808_v32 = vld [vmem:[%s19907_s1 + $0xd0] sm:$0xff] }
  0xe8   : > { %13873 = vmatprep.mubr.msk.f32.mxu0 %vm333_vm0, %v17170_v16  ;;  %v17192_v16 = vld [vmem:[#allocation2 + $0x1f1] sm:$0xff] }
  0xe9   : > { %20155 = vst [vmem:[#allocation35_spill] sm:$0xff] %v17192_v16 }
  0xeb   : > { %13874 = vmatmul.mubr.msk.f32.gmra.mrb[26].mxu0 %vm333_vm0, %v17176_v13  ;;  %v11811_v13 = vld [vmem:[%s19907_s1 + $0xe8] sm:$0xff] }
  0xec   : > { %13876 = vmatprep.mubr.msk.f32.mxu0 %vm333_vm0, %v17178_v17  ;;  %v11809_v17 = vld [vmem:[%s19907_s1 + $0xd8] sm:$0xff] }
  0xef   : > { %13877 = vmatmul.mubr.msk.f32.gmra.mrb[28].mxu0 %vm333_vm0, %v17184_v26  ;;  %v15358_v26 = vpack.c.bf16 %v11809_v17, %v11808_v32  ;;  %v11845_v32 = vld [vmem:[%s19907_s1 + $0xf8] sm:$0xff]  ;;  %v11846_v17 = vld [vmem:[%s19907_s1 + $0x100] sm:$0xff] }
  0xf0   : > { %13879 = vmatprep.mubr.msk.f32.mxu0 %vm333_vm0, %v17186_v25  ;;  %v11810_v25 = vld [vmem:[%s19907_s1 + $0xe0] sm:$0xff] }
  0xf3   : > { %13880 = vmatmul.mubr.msk.f32.gmra.mrb[30].mxu0 %vm333_vm0, %v17192_v16  ;;  %v15362_v16 = vpack.c.bf16 %v11811_v13, %v11810_v25  ;;  %v11847_v13 = vld [vmem:[%s19907_s1 + $0x108] sm:$0xff] }
  0xf4   : > { %13894 = vmatprep.mubr.msk.f32.mxu0 %vm333_vm0, %v16914_v24  ;;  %v11844_v24 = vld [vmem:[%s19907_s1 + $0xf0] sm:$0xff]  ;;  %v15370_v25 = vpack.c.bf16 %v11847_v13, %v11846_v17  ;;  %v11883_v17 = vld [vmem:[%s19907_s1 + $0x128] sm:$0xff]  ;;  %v20168_v13 = vld [vmem:[#allocation15_spill] sm:$0xff] }
  0xf7   : > { %13895 = vmatmul.mubr.msk.f32.vlgmr.msra.gmra.mrb[0].mxu0 %vm333_vm0, %v16926_v28  ;;  %v15366_v28 = vpack.c.bf16 %v11845_v32, %v11844_v24  ;;  %v11849_v24 = vld [vmem:[%s19907_s1 + $0x118] sm:$0xff] }
  0xf8   : > { %15357 = vmatpush3.bf16.msra.mxu0 %v15354_v15  ;;  %13897 = vmatprep.mubr.msk.f32.mxu0 %vm333_vm0, %v16928_v29  ;;  %v17272_v15 = vld [vmem:[#allocation2 + $0x207] sm:$0xff] }
  0xf9   : > { %15359 = vmatprep.subr.bf16.mxu0 %v15358_v26 }
  0xfb   : > { %13898 = vmatmul.mubr.msk.f32.gmra.mrb[2].mxu0 %vm333_vm0, %v16940_v33 }
  0xfc   : > { %13900 = vmatprep.mubr.msk.f32.mxu0 %vm333_vm0, %v16942_v34  ;;  %15361 = vmatpush3.bf16.msra.mxu0 %v15358_v26  ;;  %v11848_v26 = vld [vmem:[%s19907_s1 + $0x110] sm:$0xff] }
  0xfd   : > { %15363 = vmatprep.subr.bf16.mxu0 %v15362_v16  ;;  %v15374_v32 = vpack.c.bf16 %v11849_v24, %v11848_v26  ;;  %v20170_v26 = vld [vmem:[#allocation17_spill] sm:$0xff]  ;;  %v20171_v24 = vld [vmem:[#allocation18_spill] sm:$0xff] }
  0xff   : > { %13901 = vmatmul.mubr.msk.f32.gmra.mrb[4].mxu0 %vm333_vm0, %v16950_v36 }
 0x100   : > { %13903 = vmatprep.mubr.msk.f32.mxu0 %vm333_vm0, %v16952_v37  ;;  %15365 = vmatpush3.bf16.msra.mxu0 %v15362_v16  ;;  %v17278_v16 = vld [vmem:[#allocation2 + $0x20f] sm:$0xff] }
 0x101   : > { %15367 = vmatprep.subr.bf16.mxu0 %v15366_v28 }
 0x103   : > { %13904 = vmatmul.mubr.msk.f32.gmra.mrb[6].mxu0 %vm333_vm0, %v16959_v38 }
 0x104   : > { %13906 = vmatprep.mubr.msk.f32.mxu0 %vm333_vm0, %v16961_v39 }
 0x107   : > { %13907 = vmatmul.mubr.msk.f32.gmra.mrb[8].mxu0 %vm333_vm0, %v16967_v41 }
 0x108   : > { %13909 = vmatprep.mubr.msk.f32.mxu0 %vm333_vm0, %v16969_v42 }
 0x10b   : > { %13910 = vmatmul.mubr.msk.f32.gmra.mrb[10].mxu0 %vm333_vm0, %v16975_v44 }
 0x10c   : > { %13912 = vmatprep.mubr.msk.f32.mxu0 %vm333_vm0, %v16977_v45 }
 0x10f   : > { %13913 = vmatmul.mubr.msk.f32.gmra.mrb[12].mxu0 %vm333_vm0, %v16983_v47 }
 0x110   : > { %13915 = vmatprep.mubr.msk.f32.mxu0 %vm333_vm0, %v16985_v48 }
 0x113   : > { %13916 = vmatmul.mubr.msk.f32.gmra.mrb[14].mxu0 %vm333_vm0, %v16991_v49 }
 0x114   : > { %13918 = vmatprep.mubr.msk.f32.mxu0 %vm333_vm0, %v16993_v52 }
 0x117   : > { %13919 = vmatmul.mubr.msk.f32.gmra.mrb[16].mxu0 %vm333_vm0, %v16999_v53 }
 0x118   : > { %13921 = vmatprep.mubr.msk.f32.mxu0 %vm333_vm0, %v17001_v54 }
 0x11b   : > { %13922 = vmatmul.mubr.msk.f32.gmra.mrb[18].mxu0 %vm333_vm0, %v17007_v55 }
 0x11c   : > { %13924 = vmatprep.mubr.msk.f32.mxu0 %vm333_vm0, %v17009_v56 }
 0x11f   : > { %13925 = vmatmul.mubr.msk.f32.gmra.mrb[20].mxu0 %vm333_vm0, %v17015_v57 }
 0x120   : > { %13927 = vmatprep.mubr.msk.f32.mxu0 %vm333_vm0, %v17017_v58 }
 0x123   : > { %13928 = vmatmul.mubr.msk.f32.gmra.mrb[22].mxu0 %vm333_vm0, %v17023_v20 }
 0x124   : > { %13930 = vmatprep.mubr.msk.f32.mxu0 %vm333_vm0, %v17025_v21 }
 0x127   : > { %13931 = vmatmul.mubr.msk.f32.gmra.mrb[24].mxu0 %vm333_vm0, %v17031_v22 }
 0x128   : > { %13933 = vmatprep.mubr.msk.f32.mxu0 %vm333_vm0, %v17033_v23 }
 0x12b   : > { %13934 = vmatmul.mubr.msk.f32.gmra.mrb[26].mxu0 %vm333_vm0, %v17043_v27 }
 0x12c   : > { %13936 = vmatprep.mubr.msk.f32.mxu0 %vm333_vm0, %v17045_v30 }
 0x12f   : > { %13937 = vmatmul.mubr.msk.f32.gmra.mrb[28].mxu0 %vm333_vm0, %v17051_v31 }
 0x130   : > { %13939 = vmatprep.mubr.msk.f32.mxu0 %vm333_vm0, %v17272_v15 }
 0x133   : > { %13940 = vmatmul.mubr.msk.f32.gmra.mrb[30].mxu0 %vm333_vm0, %v17278_v16 }
 0x134   : > { %13954 = vmatprep.mubr.msk.f32.mxu0 %vm333_vm0, %v16752_v40  ;;  %v11882_v40 = vld [vmem:[%s19907_s1 + $0x120] sm:$0xff] }
 0x137   : > { %13955 = vmatmul.mubr.msk.f32.vlgmr.msra.gmra.mrb[0].mxu0 %vm333_vm0, %v16766_v43  ;;  %v15378_v43 = vpack.c.bf16 %v11883_v17, %v11882_v40  ;;  %v20173_v40 = vld [vmem:[#allocation20_spill] sm:$0xff]  ;;  %v20174_v17 = vld [vmem:[#allocation21_spill] sm:$0xff] }
 0x138   : > { %15369 = vmatpush3.bf16.msra.mxu0 %v15366_v28  ;;  %13957 = vmatprep.mubr.msk.f32.mxu0 %vm333_vm0, %v16770_v46  ;;  %v20156_v46 = vld [vmem:[#allocation3_spill] sm:$0xff]  ;;  %v20167_v28 = vld [vmem:[#allocation14_spill] sm:$0xff] }
 0x139   : > { %15371 = vmatprep.subr.bf16.mxu0 %v15370_v25 }
 0x13b   : > { %13958 = vmatmul.mubr.msk.f32.gmra.mrb[2].mxu0 %vm333_vm0, %v16784_v50  ;;  %v20157_v50 = vld [vmem:[#allocation4_spill] sm:$0xff] }
 0x13c   : > { %13960 = vmatprep.mubr.msk.f32.mxu0 %vm333_vm0, %v16786_v51  ;;  %15373 = vmatpush3.bf16.msra.mxu0 %v15370_v25  ;;  %v20158_v51 = vld [vmem:[#allocation5_spill] sm:$0xff]  ;;  %v20169_v25 = vld [vmem:[#allocation16_spill] sm:$0xff] }
 0x13d   : > { %15375 = vmatprep.subr.bf16.mxu0 %v15374_v32 }
 0x13f   : > { %13961 = vmatmul.mubr.msk.f32.gmra.mrb[4].mxu0 %vm333_vm0, %v16803_v59  ;;  %v20159_v59 = vld [vmem:[#allocation6_spill] sm:$0xff] }
 0x140   : > { %13963 = vmatprep.mubr.msk.f32.mxu0 %vm333_vm0, %v16808_v60  ;;  %15377 = vmatpush3.bf16.msra.mxu0 %v15374_v32  ;;  %v20160_v60 = vld [vmem:[#allocation7_spill] sm:$0xff] }
 0x141   : > { %15379 = vmatprep.subr.bf16.mxu0 %v15378_v43  ;;  %v20172_v32 = vld [vmem:[#allocation19_spill] sm:$0xff] }
 0x143   : > { %13964 = vmatmul.mubr.msk.f32.gmra.mrb[6].mxu0 %vm333_vm0, %v16815_v61  ;;  %v20161_v61 = vld [vmem:[#allocation8_spill] sm:$0xff] }
 0x144   : > { %13966 = vmatprep.mubr.msk.f32.mxu0 %vm333_vm0, %v16817_v62  ;;  %v17358_v62 = vld [vmem:[#allocation2 + $0x208] sm:$0xff] }
 0x147   : > { %13967 = vmatmul.mubr.msk.f32.gmra.mrb[8].mxu0 %vm333_vm0, %v16823_v63  ;;  %v20162_v63 = vld [vmem:[#allocation9_spill] sm:$0xff] }
 0x148   : > { %13969 = vmatprep.mubr.msk.f32.mxu0 %vm333_vm0, %v16825_v0  ;;  %v17364_v0 = vld [vmem:[#allocation2 + $0x210] sm:$0xff] }
 0x14b   : > { %13970 = vmatmul.mubr.msk.f32.gmra.mrb[10].mxu0 %vm333_vm0, %v16831_v1  ;;  %v11884_v1 = vld [vmem:[%s19907_s1 + $0x130] sm:$0xff] }
 0x14c   : > { %13972 = vmatprep.mubr.msk.f32.mxu0 %vm333_vm0, %v16833_v2  ;;  %v11885_v2 = vld [vmem:[%s19907_s1 + $0x138] sm:$0xff] }
 0x14f   : > { %13973 = vmatmul.mubr.msk.f32.gmra.mrb[12].mxu0 %vm333_vm0, %v16839_v3  ;;  %v15382_v3 = vpack.c.bf16 %v11885_v2, %v11884_v1  ;;  %v20183_v1 = vld [vmem:[#allocation30_spill] sm:$0xff]  ;;  %v20184_v2 = vld [vmem:[#allocation31_spill] sm:$0xff] }
 0x150   : > { %13975 = vmatprep.mubr.msk.f32.mxu0 %vm333_vm0, %v16841_v4  ;;  %v11886_v4 = vld [vmem:[%s19907_s1 + $0x140] sm:$0xff] }
 0x153   : > { %13976 = vmatmul.mubr.msk.f32.gmra.mrb[14].mxu0 %vm333_vm0, %v16847_v5  ;;  %v11887_v5 = vld [vmem:[%s19907_s1 + $0x148] sm:$0xff] }
 0x154   : > { %13978 = vmatprep.mubr.msk.f32.mxu0 %vm333_vm0, %v16849_v6  ;;  %v20163_v6 = vld [vmem:[#allocation10_spill] sm:$0xff] }
 0x157   : > { %13979 = vmatmul.mubr.msk.f32.gmra.mrb[16].mxu0 %vm333_vm0, %v16855_v7  ;;  %v15386_v7 = vpack.c.bf16 %v11887_v5, %v11886_v4  ;;  %v20186_v4 = vld [vmem:[#allocation33_spill] sm:$0xff]  ;;  %v20187_v5 = vld [vmem:[#allocation34_spill] sm:$0xff] }
 0x158   : > { %13981 = vmatprep.mubr.msk.f32.mxu0 %vm333_vm0, %v16857_v8  ;;  %v11920_v8 = vld [vmem:[%s19907_s1 + $0x150] sm:$0xff] }
 0x15b   : > { %13982 = vmatmul.mubr.msk.f32.gmra.mrb[18].mxu0 %vm333_vm0, %v16863_v9  ;;  %v11921_v9 = vld [vmem:[%s19907_s1 + $0x158] sm:$0xff] }
 0x15c   : > { %13984 = vmatprep.mubr.msk.f32.mxu0 %vm333_vm0, %v16865_v10  ;;  %v15390_v10 = vpack.c.bf16 %v11921_v9, %v11920_v8  ;;  %v17450_v8 = vld [vmem:[#allocation2 + $0x211] sm:$0xff]  ;;  %v11922_v9 = vld [vmem:[%s19907_s1 + $0x160] sm:$0xff] }
 0x15d   : > { %20190 = vst [vmem:[#allocation4_spill] sm:$0xff] %v17450_v8 }
 0x15f   : > { %13985 = vmatmul.mubr.msk.f32.gmra.mrb[20].mxu0 %vm333_vm0, %v16871_v11  ;;  %v20164_v11 = vld [vmem:[#allocation11_spill] sm:$0xff] }
 0x160   : > { %13987 = vmatprep.mubr.msk.f32.mxu0 %vm333_vm0, %v16873_v12  ;;  %v20165_v12 = vld [vmem:[#allocation12_spill] sm:$0xff] }
 0x163   : > { %13988 = vmatmul.mubr.msk.f32.gmra.mrb[22].mxu0 %vm333_vm0, %v20156_v46  ;;  %v20176_v46 = vld [vmem:[#allocation23_spill] sm:$0xff] }
 0x164   : > { %13990 = vmatprep.mubr.msk.f32.mxu0 %vm333_vm0, %v20157_v50  ;;  %v20177_v50 = vld [vmem:[#allocation24_spill] sm:$0xff] }
 0x167   : > { %13991 = vmatmul.mubr.msk.f32.gmra.mrb[24].mxu0 %vm333_vm0, %v20158_v51  ;;  %v20178_v51 = vld [vmem:[#allocation25_spill] sm:$0xff] }
 0x168   : > { %13993 = vmatprep.mubr.msk.f32.mxu0 %vm333_vm0, %v20159_v59  ;;  %v20179_v59 = vld [vmem:[#allocation26_spill] sm:$0xff] }
 0x16b   : > { %13994 = vmatmul.mubr.msk.f32.gmra.mrb[26].mxu0 %vm333_vm0, %v20160_v60  ;;  %v20180_v60 = vld [vmem:[#allocation27_spill] sm:$0xff] }
 0x16c   : > { %13996 = vmatprep.mubr.msk.f32.mxu0 %vm333_vm0, %v20161_v61  ;;  %v20181_v61 = vld [vmem:[#allocation28_spill] sm:$0xff] }
 0x16f   : > { %13997 = vmatmul.mubr.msk.f32.gmra.mrb[28].mxu0 %vm333_vm0, %v20162_v63  ;;  %v20182_v63 = vld [vmem:[#allocation29_spill] sm:$0xff] }
 0x170   : > { %13999 = vmatprep.mubr.msk.f32.mxu0 %vm333_vm0, %v17358_v62 }
 0x173   : > { %14000 = vmatmul.mubr.msk.f32.gmra.mrb[30].mxu0 %vm333_vm0, %v17364_v0 }
 0x174   : > { %14014 = vmatprep.mubr.msk.f32.mxu0 %vm333_vm0, %v17062_v18  ;;  %v20166_v18 = vld [vmem:[#allocation13_spill] sm:$0xff] }
 0x177   : > { %14015 = vmatmul.mubr.msk.f32.vlgmr.msra.gmra.mrb[0].mxu0 %vm333_vm0, %v20163_v6  ;;  %v17444_v6 = vld [vmem:[#allocation2 + $0x209] sm:$0xff] }
 0x178   : > { %15381 = vmatpush3.bf16.msra.mxu0 %v15378_v43  ;;  %14017 = vmatprep.mubr.msk.f32.mxu0 %vm333_vm0, %v17076_v14  ;;  %v20175_v43 = vld [vmem:[#allocation22_spill] sm:$0xff]  ;;  %20188 = vst [vmem:[#allocation3_spill] sm:$0xff] %v17444_v6 }
 0x179   : > { %15383 = vmatprep.subr.bf16.mxu0 %v15382_v3 }
 0x17b   : > { %14018 = vmatmul.mubr.msk.f32.gmra.mrb[2].mxu0 %vm333_vm0, %v17088_v19 }
 0x17c   : > { %14020 = vmatprep.mubr.msk.f32.mxu0 %vm333_vm0, %v17090_v35  ;;  %15385 = vmatpush3.bf16.msra.mxu0 %v15382_v3  ;;  %v20185_v3 = vld [vmem:[#allocation32_spill] sm:$0xff] }
 0x17d   : > { %15387 = vmatprep.subr.bf16.mxu0 %v15386_v7 }
 0x17f   : > { %14021 = vmatmul.mubr.msk.f32.gmra.mrb[4].mxu0 %vm333_vm0, %v20164_v11 }
 0x180   : > { %14023 = vmatprep.mubr.msk.f32.mxu0 %vm333_vm0, %v20165_v12  ;;  %15389 = vmatpush3.bf16.msra.mxu0 %v15386_v7  ;;  %v20189_v7 = vld [vmem:[#allocation35_spill] sm:$0xff] }
 0x181   : > { %15391 = vmatprep.subr.bf16.mxu0 %v15390_v10 }
 0x183   : > { %14024 = vmatmul.mubr.msk.f32.gmra.mrb[6].mxu0 %vm333_vm0, %v20166_v18 }
 0x184   : > { %14026 = vmatprep.mubr.msk.f32.mxu0 %vm333_vm0, %v20167_v28 }
 0x187   : > { %14027 = vmatmul.mubr.msk.f32.gmra.mrb[8].mxu0 %vm333_vm0, %v20168_v13 }
 0x188   : > { %14029 = vmatprep.mubr.msk.f32.mxu0 %vm333_vm0, %v20169_v25 }
 0x18b   : > { %14030 = vmatmul.mubr.msk.f32.gmra.mrb[10].mxu0 %vm333_vm0, %v20170_v26 }
 0x18c   : > { %14032 = vmatprep.mubr.msk.f32.mxu0 %vm333_vm0, %v20171_v24 }
 0x18f   : > { %14033 = vmatmul.mubr.msk.f32.gmra.mrb[12].mxu0 %vm333_vm0, %v20172_v32 }
 0x190   : > { %14035 = vmatprep.mubr.msk.f32.mxu0 %vm333_vm0, %v20173_v40 }
 0x193   : > { %14036 = vmatmul.mubr.msk.f32.gmra.mrb[14].mxu0 %vm333_vm0, %v20174_v17 }
 0x194   : > { %14038 = vmatprep.mubr.msk.f32.mxu0 %vm333_vm0, %v20175_v43 }
 0x197   : > { %14039 = vmatmul.mubr.msk.f32.gmra.mrb[16].mxu0 %vm333_vm0, %v20176_v46 }
 0x198   : > { %14041 = vmatprep.mubr.msk.f32.mxu0 %vm333_vm0, %v20177_v50 }
 0x19b   : > { %14042 = vmatmul.mubr.msk.f32.gmra.mrb[18].mxu0 %vm333_vm0, %v20178_v51 }
 0x19c   : > { %14044 = vmatprep.mubr.msk.f32.mxu0 %vm333_vm0, %v20179_v59 }
 0x19f   : > { %14045 = vmatmul.mubr.msk.f32.gmra.mrb[20].mxu0 %vm333_vm0, %v20180_v60 }
 0x1a0   : > { %14047 = vmatprep.mubr.msk.f32.mxu0 %vm333_vm0, %v20181_v61 }
 0x1a3   : > { %14048 = vmatmul.mubr.msk.f32.gmra.mrb[22].mxu0 %vm333_vm0, %v20182_v63 }
 0x1a4   : > { %14050 = vmatprep.mubr.msk.f32.mxu0 %vm333_vm0, %v20183_v1 }
 0x1a7   : > { %14051 = vmatmul.mubr.msk.f32.gmra.mrb[24].mxu0 %vm333_vm0, %v20184_v2 }
 0x1a8   : > { %14053 = vmatprep.mubr.msk.f32.mxu0 %vm333_vm0, %v20185_v3 }
 0x1ab   : > { %14054 = vmatmul.mubr.msk.f32.gmra.mrb[26].mxu0 %vm333_vm0, %v20186_v4  ;;  %v11923_v4 = vld [vmem:[%s19907_s1 + $0x168] sm:$0xff] }
 0x1ac   : > { %14056 = vmatprep.mubr.msk.f32.mxu0 %vm333_vm0, %v20187_v5  ;;  %v11925_v5 = vld [vmem:[%s19907_s1 + $0x178] sm:$0xff] }
 0x1af   : > { %14057 = vmatmul.mubr.msk.f32.gmra.mrb[28].mxu0 %vm333_vm0, %v20189_v7  ;;  %v15394_v7 = vpack.c.bf16 %v11923_v4, %v11922_v9  ;;  %v11959_v4 = vld [vmem:[%s19907_s1 + $0x188] sm:$0xff] }
 0x1b0   : > { %14059 = vmatprep.mubr.msk.f32.mxu0 %vm333_vm0, %v17444_v6  ;;  %v11924_v6 = vld [vmem:[%s19907_s1 + $0x170] sm:$0xff]  ;;  %v3173_v9 = vld [vmem:[#allocation2 + $0x1a8] sm:$0xff] }
 0x1b3   : > { %14060 = vmatmul.mubr.msk.f32.gmra.mrb[30].mxu0 %vm333_vm0, %v17450_v8  ;;  %v15398_v8 = vpack.c.bf16 %v11925_v5, %v11924_v6  ;;  %v3169_v5 = vld [vmem:[#allocation2 + $0x168] sm:$0xff]  ;;  %v3170_v6 = vld [vmem:[#allocation2 + $0x170] sm:$0xff] }
 0x1b4   : > { %14074 = vmatprep.mubr.msk.f32.mxu0 %vm333_vm0, %v16928_v29  ;;  %v11958_v29 = vld [vmem:[%s19907_s1 + $0x180] sm:$0xff] }
 0x1b7   : > { %14075 = vmatmul.mubr.msk.f32.vlgmr.msra.gmra.mrb[0].mxu0 %vm333_vm0, %v16940_v33  ;;  %v15402_v33 = vpack.c.bf16 %v11959_v4, %v11958_v29  ;;  %v3174_v29 = vld [vmem:[#allocation2 + $0x1b0] sm:$0xff]  ;;  %v3175_v4 = vld [vmem:[#allocation2 + $0x1c8] sm:$0xff] }
 0x1b8   : > { %15393 = vmatpush3.bf16.msra.mxu0 %v15390_v10  ;;  %14077 = vmatprep.mubr.msk.f32.mxu0 %vm333_vm0, %v16942_v34  ;;  %v2789_v34 = vld [vmem:[#allocation2 + $0x227] sm:$0xff]  ;;  %v3168_v10 = vld [vmem:[#allocation2 + $0x150] sm:$0xff] }
 0x1b9   : > { %15395 = vmatprep.subr.bf16.mxu0 %v15394_v7 }
 0x1bb   : > { %14078 = vmatmul.mubr.msk.f32.gmra.mrb[2].mxu0 %vm333_vm0, %v16950_v36  ;;  %v2790_v36 = vld [vmem:[#allocation2 + $0x22f] sm:$0xff] }
 0x1bc   : > { %14080 = vmatprep.mubr.msk.f32.mxu0 %vm333_vm0, %v16952_v37  ;;  %15397 = vmatpush3.bf16.msra.mxu0 %v15394_v7  ;;  %v3151_v37 = vld [vmem:[#allocation2 + $0x48] sm:$0xff] }
 0x1bd   : > { %15399 = vmatprep.subr.bf16.mxu0 %v15398_v8  ;;  %v3171_v7 = vld [vmem:[#allocation2 + $0x188] sm:$0xff] }
 0x1bf   : > { %14081 = vmatmul.mubr.msk.f32.gmra.mrb[4].mxu0 %vm333_vm0, %v16959_v38  ;;  %v11960_v38 = vld [vmem:[%s19907_s1 + $0x190] sm:$0xff] }
 0x1c0   : > { %14083 = vmatprep.mubr.msk.f32.mxu0 %vm333_vm0, %v16961_v39  ;;  %15401 = vmatpush3.bf16.msra.mxu0 %v15398_v8  ;;  %v11961_v39 = vld [vmem:[%s19907_s1 + $0x198] sm:$0xff]  ;;  %v3172_v8 = vld [vmem:[#allocation2 + $0x190] sm:$0xff] }
 0x1c1   : > { %15403 = vmatprep.subr.bf16.mxu0 %v15402_v33 }
 0x1c3   : > { %14084 = vmatmul.mubr.msk.f32.gmra.mrb[6].mxu0 %vm333_vm0, %v16967_v41  ;;  %v3152_v41 = vld [vmem:[#allocation2 + $0x50] sm:$0xff] }
 0x1c4   : > { %14086 = vmatprep.mubr.msk.f32.mxu0 %vm333_vm0, %v16969_v42  ;;  %v3153_v42 = vld [vmem:[#allocation2 + $0x68] sm:$0xff] }
 0x1c7   : > { %14087 = vmatmul.mubr.msk.f32.gmra.mrb[8].mxu0 %vm333_vm0, %v16975_v44  ;;  %v15406_v44 = vpack.c.bf16 %v11961_v39, %v11960_v38  ;;  %v3182_v38 = vld [vmem:[#allocation2 + $0x230] sm:$0xff] }
 0x1c8   : > { %14089 = vmatprep.mubr.msk.f32.mxu0 %vm333_vm0, %v16977_v45  ;;  %v11962_v45 = vld [vmem:[%s19907_s1 + $0x1a0] sm:$0xff]  ;;  %v11999_v39 = vld [vmem:[%s19909_s3 + $0x30] sm:$0xff] }
 0x1cb   : > { %14090 = vmatmul.mubr.msk.f32.gmra.mrb[10].mxu0 %vm333_vm0, %v16983_v47  ;;  %v11963_v47 = vld [vmem:[%s19907_s1 + $0x1a8] sm:$0xff] }
 0x1cc   : > { %14092 = vmatprep.mubr.msk.f32.mxu0 %vm333_vm0, %v16985_v48  ;;  %v3154_v48 = vld [vmem:[#allocation2 + $0x70] sm:$0xff] }
 0x1cf   : > { %14093 = vmatmul.mubr.msk.f32.gmra.mrb[12].mxu0 %vm333_vm0, %v16991_v49  ;;  %v3155_v49 = vld [vmem:[#allocation2 + $0x88] sm:$0xff] }
 0x1d0   : > { %14095 = vmatprep.mubr.msk.f32.mxu0 %vm333_vm0, %v16993_v52  ;;  %v15410_v52 = vpack.c.bf16 %v11963_v47, %v11962_v45 }
 0x1d3   : > { %14096 = vmatmul.mubr.msk.f32.gmra.mrb[14].mxu0 %vm333_vm0, %v16999_v53  ;;  %v11997_v53 = vld [vmem:[%s19909_s3 + $0x20] sm:$0xff] }
 0x1d4   : > { %14098 = vmatprep.mubr.msk.f32.mxu0 %vm333_vm0, %v17001_v54  ;;  %v11998_v54 = vld [vmem:[%s19909_s3 + $0x28] sm:$0xff] }
 0x1d7   : > { %14099 = vmatmul.mubr.msk.f32.gmra.mrb[16].mxu0 %vm333_vm0, %v17007_v55  ;;  %v3156_v55 = vld [vmem:[#allocation2 + $0x90] sm:$0xff] }
 0x1d8   : > { %14101 = vmatprep.mubr.msk.f32.mxu0 %vm333_vm0, %v17009_v56  ;;  %v3157_v56 = vld [vmem:[#allocation2 + $0xa8] sm:$0xff] }
 0x1db   : > { %14102 = vmatmul.mubr.msk.f32.gmra.mrb[18].mxu0 %vm333_vm0, %v17015_v57  ;;  %v15414_v57 = vpack.c.bf16 %v11998_v54, %v11997_v53 }
 0x1dc   : > { %14104 = vmatprep.mubr.msk.f32.mxu0 %vm333_vm0, %v17017_v58  ;;  %v3158_v58 = vld [vmem:[#allocation2 + $0xb0] sm:$0xff] }
 0x1df   : > { %14105 = vmatmul.mubr.msk.f32.gmra.mrb[20].mxu0 %vm333_vm0, %v17023_v20  ;;  %v3159_v20 = vld [vmem:[#allocation2 + $0xc8] sm:$0xff] }
 0x1e0   : > { %14107 = vmatprep.mubr.msk.f32.mxu0 %vm333_vm0, %v17025_v21  ;;  %v3160_v21 = vld [vmem:[#allocation2 + $0xd0] sm:$0xff] }
 0x1e3   : > { %14108 = vmatmul.mubr.msk.f32.gmra.mrb[22].mxu0 %vm333_vm0, %v17031_v22  ;;  %v3161_v22 = vld [vmem:[#allocation2 + $0xe8] sm:$0xff] }
 0x1e4   : > { %14110 = vmatprep.mubr.msk.f32.mxu0 %vm333_vm0, %v17033_v23  ;;  %v3162_v23 = vld [vmem:[#allocation2 + $0xf0] sm:$0xff] }
 0x1e7   : > { %14111 = vmatmul.mubr.msk.f32.gmra.mrb[24].mxu0 %vm333_vm0, %v17043_v27  ;;  %v3163_v27 = vld [vmem:[#allocation2 + $0x108] sm:$0xff] }
 0x1e8   : > { %14113 = vmatprep.mubr.msk.f32.mxu0 %vm333_vm0, %v17045_v30  ;;  %v3164_v30 = vld [vmem:[#allocation2 + $0x110] sm:$0xff] }
 0x1eb   : > { %14114 = vmatmul.mubr.msk.f32.gmra.mrb[26].mxu0 %vm333_vm0, %v17051_v31  ;;  %v3165_v31 = vld [vmem:[#allocation2 + $0x128] sm:$0xff] }
 0x1ec   : > { %14116 = vmatprep.mubr.msk.f32.mxu0 %vm333_vm0, %v17272_v15  ;;  %v3166_v15 = vld [vmem:[#allocation2 + $0x130] sm:$0xff] }
 0x1ef   : > { %14117 = vmatmul.mubr.msk.f32.gmra.mrb[28].mxu0 %vm333_vm0, %v17278_v16  ;;  %v3167_v16 = vld [vmem:[#allocation2 + $0x148] sm:$0xff] }
 0x1f0   : > { %14119 = vmatprep.mubr.msk.f32.mxu0 %vm333_vm0, %v2789_v34  ;;  %v3177_v34 = vld [vmem:[#allocation2 + $0x1e8] sm:$0xff] }
 0x1f3   : > { %14120 = vmatmul.mubr.msk.f32.gmra.mrb[30].mxu0 %vm333_vm0, %v2790_v36  ;;  %v3178_v36 = vld [vmem:[#allocation2 + $0x1f0] sm:$0xff] }
 0x1f4   : > { %14134 = vmatprep.mubr.msk.f32.mxu0 %vm333_vm0, %v3151_v37  ;;  %v3181_v37 = vld [vmem:[#allocation2 + $0x228] sm:$0xff] }
 0x1f7   : > { %14135 = vmatmul.mubr.msk.f32.vlgmr.msra.gmra.mrb[0].mxu0 %vm333_vm0, %v3152_v41  ;;  %v12000_v41 = vld [vmem:[%s19909_s3 + $0x38] sm:$0xff] }
 0x1f8   : > { %15405 = vmatpush3.bf16.msra.mxu0 %v15402_v33  ;;  %14137 = vmatprep.mubr.msk.f32.mxu0 %vm333_vm0, %v3153_v42  ;;  %v3176_v33 = vld [vmem:[#allocation2 + $0x1d0] sm:$0xff] }
 0x1f9   : > { %15407 = vmatprep.subr.bf16.mxu0 %v15406_v44 }
 0x1fb   : > { %14138 = vmatmul.mubr.msk.f32.gmra.mrb[2].mxu0 %vm333_vm0, %v3154_v48 }
 0x1fc   : > { %14140 = vmatprep.mubr.msk.f32.mxu0 %vm333_vm0, %v3155_v49  ;;  %15409 = vmatpush3.bf16.msra.mxu0 %v15406_v44  ;;  %v17701_v44 = vld [vmem:[%s19908_s2] ss:$0 sm:$0xff] }
 0x1fd   : > { %15411 = vmatprep.subr.bf16.mxu0 %v15410_v52 }
 0x1ff   : > { %14141 = vmatmul.mubr.msk.f32.gmra.mrb[4].mxu0 %vm333_vm0, %v3156_v55 }
 0x200   : > { %14143 = vmatprep.mubr.msk.f32.mxu0 %vm333_vm0, %v3157_v56  ;;  %15413 = vmatpush3.bf16.msra.mxu0 %v15410_v52 }
 0x201   : > { %15415 = vmatprep.subr.bf16.mxu0 %v15414_v57 }
 0x203   : > { %14144 = vmatmul.mubr.msk.f32.gmra.mrb[6].mxu0 %vm333_vm0, %v3158_v58 }
 0x204   : > { %14146 = vmatprep.mubr.msk.f32.mxu0 %vm333_vm0, %v3159_v20 }
 0x207   : > { %14147 = vmatmul.mubr.msk.f32.gmra.mrb[8].mxu0 %vm333_vm0, %v3160_v21 }
 0x208   : > { %14149 = vmatprep.mubr.msk.f32.mxu0 %vm333_vm0, %v3161_v22 }
 0x20b   : > { %14150 = vmatmul.mubr.msk.f32.gmra.mrb[10].mxu0 %vm333_vm0, %v3162_v23 }
 0x20c   : > { %14152 = vmatprep.mubr.msk.f32.mxu0 %vm333_vm0, %v3163_v27 }
 0x20f   : > { %14153 = vmatmul.mubr.msk.f32.gmra.mrb[12].mxu0 %vm333_vm0, %v3164_v30 }
 0x210   : > { %14155 = vmatprep.mubr.msk.f32.mxu0 %vm333_vm0, %v3165_v31 }
 0x213   : > { %14156 = vmatmul.mubr.msk.f32.gmra.mrb[14].mxu0 %vm333_vm0, %v3166_v15 }
 0x214   : > { %14158 = vmatprep.mubr.msk.f32.mxu0 %vm333_vm0, %v3167_v16 }
 0x217   : > { %14159 = vmatmul.mubr.msk.f32.gmra.mrb[16].mxu0 %vm333_vm0, %v3168_v10 }
 0x218   : > { %14161 = vmatprep.mubr.msk.f32.mxu0 %vm333_vm0, %v3169_v5  ;;  %v12211_v5 = vld [vmem:[%s19909_s3 + $0xd0] sm:$0xff] }
 0x21b   : > { %14162 = vmatmul.mubr.msk.f32.gmra.mrb[18].mxu0 %vm333_vm0, %v3170_v6  ;;  %v12212_v6 = vld [vmem:[%s19909_s3 + $0xd8] sm:$0xff] }
 0x21c   : > { %14164 = vmatprep.mubr.msk.f32.mxu0 %vm333_vm0, %v3171_v7 }
 0x21f   : > { %14165 = vmatmul.mubr.msk.f32.gmra.mrb[20].mxu0 %vm333_vm0, %v3172_v8 }
 0x220   : > { %14167 = vmatprep.mubr.msk.f32.mxu0 %vm333_vm0, %v3173_v9 }
 0x223   : > { %14168 = vmatmul.mubr.msk.f32.gmra.mrb[22].mxu0 %vm333_vm0, %v3174_v29 }
 0x224   : > { %14170 = vmatprep.mubr.msk.f32.mxu0 %vm333_vm0, %v3175_v4 }
 0x227   : > { %14171 = vmatmul.mubr.msk.f32.gmra.mrb[24].mxu0 %vm333_vm0, %v3176_v33 }
 0x228   : > { %14173 = vmatprep.mubr.msk.f32.mxu0 %vm333_vm0, %v3177_v34 }
 0x22b   : > { %14174 = vmatmul.mubr.msk.f32.gmra.mrb[26].mxu0 %vm333_vm0, %v3178_v36 }
 0x22c   : > { %14176 = vmatprep.mubr.msk.f32.mxu0 %vm333_vm0, %v17358_v62  ;;  %v15418_v62 = vpack.c.bf16 %v12000_v41, %v11999_v39  ;;  %v12245_v39 = vld [vmem:[%s19909_s3 + $0xe0] sm:$0xff] }
 0x22f   : > { %14177 = vmatmul.mubr.msk.f32.gmra.mrb[28].mxu0 %vm333_vm0, %v17364_v0  ;;  %v20194_v0 = vld [vmem:[#allocation3_spill] sm:$0xff] }
 0x230   : > { %14179 = vmatprep.mubr.msk.f32.mxu0 %vm333_vm0, %v3181_v37 }
 0x233   : > { %14180 = vmatmul.mubr.msk.f32.gmra.mrb[30].mxu0 %vm333_vm0, %v3182_v38  ;;  %v15466_v38 = vpack.c.bf16 %v12212_v6, %v12211_v5 }
 0x234   : > { %14194 = vmatprep.mubr.msk.f32.mxu0 %vm333_vm0, %v17076_v14  ;;  %v20191_v14 = vld [vmem:[#allocation33_spill] sm:$0xff] }
 0x237   : > { %14195 = vmatmul.mubr.msk.f32.vlgmr.msra.gmra.mrb[0].mxu0 %vm333_vm0, %v17088_v19  ;;  %v20192_v19 = vld [vmem:[#allocation34_spill] sm:$0xff] }
 0x238   : > { %14197 = vmatprep.mubr.msk.f32.mxu0 %vm333_vm0, %v17090_v35  ;;  %15417 = vmatpush3.bf16.msra.mxu0 %v15414_v57  ;;  %v20193_v35 = vld [vmem:[#allocation35_spill] sm:$0xff] }
 0x239   : > { %15419 = vmatprep.subr.bf16.mxu0 %v15418_v62 }
 0x23b   : > { %14198 = vmatmul.mubr.msk.f32.gmra.mrb[2].mxu0 %vm333_vm0, %v20164_v11  ;;  %v3573_v11 = vld [vmem:[#allocation2 + $0x229] sm:$0xff] }
 0x23c   : > { %14200 = vmatprep.mubr.msk.f32.mxu0 %vm333_vm0, %v20165_v12  ;;  %15421 = vmatpush3.bf16.msra.mxu0 %v15418_v62  ;;  %v20195_v12 = vld [vmem:[#allocation4_spill] sm:$0xff] }
 0x23f   : > { %14201 = vmatmul.mubr.msk.f32.gmra.mrb[4].mxu0 %vm333_vm0, %v20166_v18  ;;  %v3574_v18 = vld [vmem:[#allocation2 + $0x231] sm:$0xff] }
 0x240   : > { %14203 = vmatprep.mubr.msk.f32.mxu0 %vm333_vm0, %v20167_v28  ;;  %v12173_v28 = vld [vmem:[%s19909_s3 + $0xa0] sm:$0xff] }
 0x243   : > { %14204 = vmatmul.mubr.msk.f32.gmra.mrb[6].mxu0 %vm333_vm0, %v20168_v13  ;;  %v12174_v13 = vld [vmem:[%s19909_s3 + $0xa8] sm:$0xff] }
 0x244   : > { %14206 = vmatprep.mubr.msk.f32.mxu0 %vm333_vm0, %v20169_v25  ;;  %v15454_v25 = vpack.c.bf16 %v12174_v13, %v12173_v28 }
 0x246   : > { %15455 = vmatprep.subr.bf16.mxu1 %v15454_v25 }
 0x247   : > { %14207 = vmatmul.mubr.msk.f32.gmra.mrb[8].mxu0 %vm333_vm0, %v20170_v26  ;;  %15457 = vmatpush3.bf16.msra.mxu1 %v15454_v25  ;;  %v12175_v26 = vld [vmem:[%s19909_s3 + $0xb0] sm:$0xff] }
 0x248   : > { %14209 = vmatprep.mubr.msk.f32.mxu0 %vm333_vm0, %v20171_v24  ;;  %v12176_v24 = vld [vmem:[%s19909_s3 + $0xb8] sm:$0xff] }
 0x24b   : > { %14210 = vmatmul.mubr.msk.f32.gmra.mrb[10].mxu0 %vm333_vm0, %v20172_v32  ;;  %v4139_v32 = vld [vmem:[#allocation2 + $0x8] sm:$0xff] }
 0x24c   : > { %14212 = vmatprep.mubr.msk.f32.mxu0 %vm333_vm0, %v20173_v40  ;;  %v15458_v40 = vpack.c.bf16 %v12176_v24, %v12175_v26 }
 0x24e   : > { %15459 = vmatprep.subr.bf16.mxu1 %v15458_v40 }
 0x24f   : > { %14213 = vmatmul.mubr.msk.f32.gmra.mrb[12].mxu0 %vm333_vm0, %v20174_v17  ;;  %v4140_v17 = vld [vmem:[#allocation2 + $0x10] sm:$0xff]  ;;  %15461 = vmatpush3.bf16.msra.mxu1 %v15458_v40 }
 0x250   : > { %14215 = vmatprep.mubr.msk.f32.mxu0 %vm333_vm0, %v20175_v43  ;;  %v4135_v43 = vld [vmem:[%s19909_s3] sm:$0xff] }
 0x253   : > { %14216 = vmatmul.mubr.msk.f32.gmra.mrb[14].mxu0 %vm333_vm0, %v20176_v46  ;;  %v4136_v46 = vld [vmem:[%s19909_s3 + $0x8] sm:$0xff] }
 0x254   : > { %14218 = vmatprep.mubr.msk.f32.mxu0 %vm333_vm0, %v20177_v50  ;;  %v15422_v50 = vpack.c.bf16 %v4136_v46, %v4135_v43 }
 0x256   : > { %15423 = vmatprep.subr.bf16.mxu0 %v15422_v50 }
 0x257   : > { %14219 = vmatmul.mubr.msk.f32.gmra.mrb[16].mxu0 %vm333_vm0, %v20178_v51  ;;  %v4137_v51 = vld [vmem:[%s19909_s3 + $0x10] sm:$0xff] }
 0x258   : > { %14221 = vmatprep.mubr.msk.f32.mxu0 %vm333_vm0, %v20179_v59  ;;  %v4138_v59 = vld [vmem:[%s19909_s3 + $0x18] sm:$0xff] }
 0x25b   : > { %14222 = vmatmul.mubr.msk.f32.gmra.mrb[18].mxu0 %vm333_vm0, %v20180_v60  ;;  %v15426_v60 = vpack.c.bf16 %v4138_v59, %v4137_v51 }
 0x25c   : > { %14224 = vmatprep.mubr.msk.f32.mxu0 %vm333_vm0, %v20181_v61  ;;  %v12209_v61 = vld [vmem:[%s19909_s3 + $0xc0] sm:$0xff] }
 0x25f   : > { %14225 = vmatmul.mubr.msk.f32.gmra.mrb[20].mxu0 %vm333_vm0, %v20182_v63  ;;  %v12210_v63 = vld [vmem:[%s19909_s3 + $0xc8] sm:$0xff] }
 0x260   : > { %14227 = vmatprep.mubr.msk.f32.mxu0 %vm333_vm0, %v20183_v1  ;;  %v17686_v1 = vpack.c.bf16 %v12210_v63, %v12209_v61 }
 0x262   : > { %15463 = vmatprep.subr.bf16.mxu1 %v17686_v1 }
 0x263   : > { %14228 = vmatmul.mubr.msk.f32.gmra.mrb[22].mxu0 %vm333_vm0, %v20184_v2  ;;  %v12065_v2 = vld [vmem:[%s19909_s3 + $0x40] sm:$0xff] }
 0x264   : > { %14230 = vmatprep.mubr.msk.f32.mxu0 %vm333_vm0, %v20185_v3  ;;  %v12066_v3 = vld [vmem:[%s19909_s3 + $0x48] sm:$0xff] }
 0x265   : > { %v17695_v42 = vpack.c.bf16 %v12066_v3, %v12065_v2 }
 0x267   : > { %14231 = vmatmul.mubr.msk.f32.gmra.mrb[24].mxu0 %vm333_vm0, %v20191_v14 }
 0x268   : > { %14233 = vmatprep.mubr.msk.f32.mxu0 %vm333_vm0, %v20192_v19  ;;  %v12246_v19 = vld [vmem:[%s19909_s3 + $0xe8] sm:$0xff] }
 0x269   : > { %v17791_v24 = vpack.c.bf16 %v12246_v19, %v12245_v39 }
 0x26b   : > { %14234 = vmatmul.mubr.msk.f32.gmra.mrb[26].mxu0 %vm333_vm0, %v20193_v35 }
 0x26c   : > { %14236 = vmatprep.mubr.msk.f32.mxu0 %vm333_vm0, %v20194_v0 }
 0x26f   : > { %14237 = vmatmul.mubr.msk.f32.gmra.mrb[28].mxu0 %vm333_vm0, %v20195_v12 }
 0x270   : > { %14239 = vmatprep.mubr.msk.f32.mxu0 %vm333_vm0, %v3573_v11 }
 0x273   : > { %14240 = vmatmul.mubr.msk.f32.gmra.mrb[30].mxu0 %vm333_vm0, %v3574_v18 }
 0x274   : > { %14250 = vmatprep.mubr.msk.f32.mxu0 %vm4070_vm1, %v4139_v32 }
 0x277   : > { %14251 = vmatmul.mubr.msk.f32.vlgmr.msra.gmra.mrb[32].mxu0 %vm4070_vm1, %v4140_v17 }
 0x278   : > { %15425 = vmatpush3.bf16.msra.mxu0 %v15422_v50 }
 0x279   : > { %15427 = vmatprep.subr.bf16.mxu0 %v15426_v60 }
 0x27c   : > { %15429 = vmatpush3.bf16.msra.mxu0 %v15426_v60 }
 0x27d   : > { %15431 = vmatprep.subr.bf16.mxu0 %v17695_v42 }
 0x30a   : > { %v14196_v45 = vpop.f32.mrb[0].mxu0 }
 0x30b   : > { %v17704_v47 = vadd.f32 %v14196_v45, %v17701_v44  ;;  %v3744_v48 = vpop.f32.mrb[1].mxu0 }
 0x30c   : > { %v17707_v49 = vadd.f32 %v17701_v44, %v3744_v48 }
 0x30d   : > { %20196 = vst [vmem:[#allocation5_spill] sm:$0xff] %v17704_v47  ;;  %vm3975_vm2 = vcmp.gt.f32.partialorder %v17704_v47, 0.0  ;;  %v4007_v52 = vmul.f32 0.2, %v17704_v47 }
 0x30e   : > { %20197 = vst [vmem:[#allocation6_spill] sm:$0xff] %v17707_v49  ;;  %vm3974_vm3 = vcmp.gt.f32.partialorder %v17707_v49, 0.0  ;;  %v4006_v53 = vmul.f32 0.2, %v17707_v49  ;;  %v14199_v54 = vpop.f32.mrb[2].mxu0 }
 0x30f   : > { %v4039_v55 = vsel %vm3975_vm2, %v17704_v47, %v4007_v52  ;;  %v17715_v56 = vadd.f32 %v14199_v54, %v17701_v44  ;;  %v3754_v57 = vpop.f32.mrb[3].mxu0  ;;  %v12068_v47 = vld [vmem:[%s19909_s3 + $0x58] sm:$0xff] }
 0x310   : > { %v4038_v58 = vsel %vm3974_vm3, %v17707_v49, %v4006_v53  ;;  %v17719_v20 = vadd.f32 %v17701_v44, %v3754_v57  ;;  %4072 = vst.msk [vmem:[#allocation2 + $0x30] sm:$0xff] %vm4070_vm1, %v4039_v55  ;;  %v4104_v49 = vld [vmem:[#allocation2 + $0xf] sm:$0xff] }
 0x311   : > { %20198 = vst [vmem:[#allocation7_spill] sm:$0xff] %v17715_v56  ;;  %vm3977_vm4 = vcmp.gt.f32.partialorder %v17715_v56, 0.0  ;;  %v4009_v21 = vmul.f32 0.2, %v17715_v56  ;;  %4071 = vst.msk [vmem:[#allocation2 + $0x28] sm:$0xff] %vm4070_vm1, %v4038_v58 }
 0x312   : > { %20199 = vst [vmem:[#allocation8_spill] sm:$0xff] %v17719_v20  ;;  %vm3976_vm5 = vcmp.gt.f32.partialorder %v17719_v20, 0.0  ;;  %v4008_v22 = vmul.f32 0.2, %v17719_v20  ;;  %v14202_v23 = vpop.f32.mrb[4].mxu0 }
 0x313   : > { %v4041_v27 = vsel %vm3977_vm4, %v17715_v56, %v4009_v21  ;;  %v17729_v30 = vadd.f32 %v14202_v23, %v17701_v44  ;;  %v3764_v31 = vpop.f32.mrb[5].mxu0 }
 0x314   : > { %v4040_v15 = vsel %vm3976_vm5, %v17719_v20, %v4008_v22  ;;  %v17733_v16 = vadd.f32 %v17701_v44, %v3764_v31  ;;  %4074 = vst.msk [vmem:[#allocation2 + $0x50] sm:$0xff] %vm4070_vm1, %v4041_v27 }
 0x315   : > { %20200 = vst [vmem:[#allocation9_spill] sm:$0xff] %v17729_v30  ;;  %vm3979_vm6 = vcmp.gt.f32.partialorder %v17729_v30, 0.0  ;;  %v4011_v10 = vmul.f32 0.2, %v17729_v30  ;;  %4073 = vst.msk [vmem:[#allocation2 + $0x48] sm:$0xff] %vm4070_vm1, %v4040_v15 }
 0x316   : > { %20201 = vst [vmem:[#allocation10_spill] sm:$0xff] %v17733_v16  ;;  %vm3978_vm7 = vcmp.gt.f32.partialorder %v17733_v16, 0.0  ;;  %v4010_v7 = vmul.f32 0.2, %v17733_v16  ;;  %v14205_v8 = vpop.f32.mrb[6].mxu0 }
 0x317   : > { %v4043_v9 = vsel %vm3979_vm6, %v17729_v30, %v4011_v10  ;;  %v17749_v29 = vadd.f32 %v14205_v8, %v17701_v44  ;;  %v3774_v4 = vpop.f32.mrb[7].mxu0  ;;  %v4142_v62 = vld [vmem:[#allocation2 + $0x30] sm:$0xff] }
 0x318   : > { %v4042_v33 = vsel %vm3978_vm7, %v17733_v16, %v4010_v7  ;;  %4076 = vst.msk [vmem:[#allocation2 + $0x70] sm:$0xff] %vm4070_vm1, %v4043_v9  ;;  %v17754_v34 = vadd.f32 %v17701_v44, %v3774_v4  ;;  %v4141_v36 = vld [vmem:[#allocation2 + $0x28] sm:$0xff]  ;;  %v17767_v14 = vld [vmem:[#allocation2 + $0x31] sm:$0xff] }
 0x319   : > { %20202 = vst [vmem:[#allocation11_spill] sm:$0xff] %v17749_v29  ;;  %v17756_v37 = vld [vmem:[#allocation2 + $0x29] sm:$0xff]  ;;  %4075 = vst.msk [vmem:[#allocation2 + $0x68] sm:$0xff] %vm4070_vm1, %v4042_v33  ;;  %vm3981_vm8 = vcmp.gt.f32.partialorder %v17749_v29, 0.0  ;;  %v4013_v41 = vmul.f32 0.2, %v17749_v29  ;;  %14253 = vmatprep.mubr.msk.f32.mxu0 %vm4070_vm1, %v4141_v36 }
 0x31a   : > { %20203 = vst [vmem:[#allocation12_spill] sm:$0xff] %v17754_v34  ;;  %14530 = vmatprep.mubr.msk.f32.mxu1 %vm4070_vm1, %v17756_v37  ;;  %vm3980_vm9 = vcmp.gt.f32.partialorder %v17754_v34, 0.0  ;;  %v4012_v35 = vmul.f32 0.2, %v17754_v34  ;;  %v14208_v0 = vpop.f32.mrb[8].mxu0  ;;  %14254 = vmatmul.mubr.msk.f32.gmra.mrb[34].mxu0 %vm4070_vm1, %v4142_v62 }
 0x31b   : > { %14531 = vmatmul.mubr.msk.f32.vlgmr.msra.gmra.mrb[0].mxu1 %vm4070_vm1, %v17767_v14  ;;  %v4045_v11 = vsel %vm3981_vm8, %v17749_v29, %v4013_v41  ;;  %v17779_v12 = vadd.f32 %v14208_v0, %v17701_v44  ;;  %v3784_v18 = vpop.f32.mrb[9].mxu0  ;;  %v17800_v40 = vld [vmem:[#allocation2 + $0x50] sm:$0xff] }
 0x31c   : > { %15465 = vmatpush3.bf16.msra.mxu1 %v17686_v1  ;;  %4078 = vst.msk [vmem:[#allocation2 + $0x90] sm:$0xff] %vm4070_vm1, %v4045_v11  ;;  %v4044_v28 = vsel %vm3980_vm9, %v17754_v34, %v4012_v35  ;;  %v17785_v13 = vadd.f32 %v17701_v44, %v3784_v18  ;;  %v17787_v25 = vld [vmem:[#allocation2 + $0x48] sm:$0xff]  ;;  %v17802_v17 = vld [vmem:[#allocation2 + $0x51] sm:$0xff] }
 0x31d   : > { %20204 = vst [vmem:[#allocation13_spill] sm:$0xff] %v17779_v12  ;;  %v17789_v26 = vld [vmem:[#allocation2 + $0x49] sm:$0xff]  ;;  %15467 = vmatprep.subr.bf16.mxu1 %v15466_v38  ;;  %4077 = vst.msk [vmem:[#allocation2 + $0x88] sm:$0xff] %vm4070_vm1, %v4044_v28  ;;  %vm3983_vm10 = vcmp.gt.f32.partialorder %v17779_v12, 0.0  ;;  %v4015_v32 = vmul.f32 0.2, %v17779_v12  ;;  %14256 = vmatprep.mubr.msk.f32.mxu0 %vm4070_vm1, %v17787_v25 }
 0x31e   : > { %20205 = vst [vmem:[#allocation14_spill] sm:$0xff] %v17785_v13  ;;  %14533 = vmatprep.mubr.msk.f32.mxu1 %vm4070_vm1, %v17789_v26  ;;  %vm3982_vm11 = vcmp.gt.f32.partialorder %v17785_v13, 0.0  ;;  %v4014_v43 = vmul.f32 0.2, %v17785_v13  ;;  %v14211_v46 = vpop.f32.mrb[10].mxu0  ;;  %14257 = vmatmul.mubr.msk.f32.gmra.mrb[36].mxu0 %vm4070_vm1, %v17800_v40 }
 0x31f   : > { %14534 = vmatmul.mubr.msk.f32.gmra.mrb[2].mxu1 %vm4070_vm1, %v17802_v17  ;;  %v4047_v50 = vsel %vm3983_vm10, %v17779_v12, %v4015_v32  ;;  %v17812_v51 = vadd.f32 %v14211_v46, %v17701_v44  ;;  %v3794_v59 = vpop.f32.mrb[11].mxu0  ;;  %v17831_v3 = vld [vmem:[#allocation2 + $0x70] sm:$0xff] }
 0x320   : > { %15469 = vmatpush3.bf16.msra.mxu1 %v15466_v38  ;;  %4080 = vst.msk [vmem:[#allocation2 + $0xb0] sm:$0xff] %vm4070_vm1, %v4047_v50  ;;  %v4046_v60 = vsel %vm3982_vm11, %v17785_v13, %v4014_v43  ;;  %v17817_v61 = vadd.f32 %v17701_v44, %v3794_v59  ;;  %v17819_v63 = vld [vmem:[#allocation2 + $0x68] sm:$0xff]  ;;  %v17833_v45 = vld [vmem:[#allocation2 + $0x71] sm:$0xff] }
 0x321   : > { %20206 = vst [vmem:[#allocation15_spill] sm:$0xff] %v17812_v51  ;;  %v17821_v1 = vld [vmem:[#allocation2 + $0x69] sm:$0xff]  ;;  %15471 = vmatprep.subr.bf16.mxu1 %v17791_v24  ;;  %4079 = vst.msk [vmem:[#allocation2 + $0xa8] sm:$0xff] %vm4070_vm1, %v4046_v60  ;;  %vm3985_vm12 = vcmp.gt.f32.partialorder %v17812_v51, 0.0  ;;  %v4017_v2 = vmul.f32 0.2, %v17812_v51  ;;  %14259 = vmatprep.mubr.msk.f32.mxu0 %vm4070_vm1, %v17819_v63 }
 0x322   : > { %20207 = vst [vmem:[#allocation16_spill] sm:$0xff] %v17817_v61  ;;  %14536 = vmatprep.mubr.msk.f32.mxu1 %vm4070_vm1, %v17821_v1  ;;  %vm3984_vm13 = vcmp.gt.f32.partialorder %v17817_v61, 0.0  ;;  %v4016_v48 = vmul.f32 0.2, %v17817_v61  ;;  %v14214_v52 = vpop.f32.mrb[12].mxu0  ;;  %14260 = vmatmul.mubr.msk.f32.gmra.mrb[38].mxu0 %vm4070_vm1, %v17831_v3 }
 0x323   : > { %14537 = vmatmul.mubr.msk.f32.gmra.mrb[4].mxu1 %vm4070_vm1, %v17833_v45  ;;  %v4049_v53 = vsel %vm3985_vm12, %v17812_v51, %v4017_v2  ;;  %v17843_v54 = vadd.f32 %v14214_v52, %v17701_v44  ;;  %v3804_v55 = vpop.f32.mrb[13].mxu0  ;;  %v17861_v27 = vld [vmem:[#allocation2 + $0x90] sm:$0xff] }
 0x324   : > { %4082 = vst.msk [vmem:[#allocation2 + $0xd0] sm:$0xff] %vm4070_vm1, %v4049_v53  ;;  %v4048_v57 = vsel %vm3984_vm13, %v17817_v61, %v4016_v48  ;;  %v17848_v58 = vadd.f32 %v17701_v44, %v3804_v55  ;;  %v17850_v21 = vld [vmem:[#allocation2 + $0x88] sm:$0xff]  ;;  %v17863_v31 = vld [vmem:[#allocation2 + $0x91] sm:$0xff] }
 0x325   : > { %20208 = vst [vmem:[#allocation17_spill] sm:$0xff] %v17843_v54  ;;  %v17852_v22 = vld [vmem:[#allocation2 + $0x89] sm:$0xff]  ;;  %4081 = vst.msk [vmem:[#allocation2 + $0xc8] sm:$0xff] %vm4070_vm1, %v4048_v57  ;;  %vm3987_vm14 = vcmp.gt.f32.partialorder %v17843_v54, 0.0  ;;  %v4019_v23 = vmul.f32 0.2, %v17843_v54  ;;  %14262 = vmatprep.mubr.msk.f32.mxu0 %vm4070_vm1, %v17850_v21 }
 0x326   : > { %20209 = vst [vmem:[#allocation18_spill] sm:$0xff] %v17848_v58  ;;  %14539 = vmatprep.mubr.msk.f32.mxu1 %vm4070_vm1, %v17852_v22  ;;  %vm3986_vm15 = vcmp.gt.f32.partialorder %v17848_v58, 0.0  ;;  %v4018_v15 = vmul.f32 0.2, %v17848_v58  ;;  %v14217_v10 = vpop.f32.mrb[14].mxu0  ;;  %14263 = vmatmul.mubr.msk.f32.gmra.mrb[40].mxu0 %vm4070_vm1, %v17861_v27 }
 0x327   : > { %14540 = vmatmul.mubr.msk.f32.gmra.mrb[6].mxu1 %vm4070_vm1, %v17863_v31  ;;  %v4051_v5 = vsel %vm3987_vm14, %v17843_v54, %v4019_v23  ;;  %v17873_v6 = vadd.f32 %v14217_v10, %v17701_v44  ;;  %v3814_v7 = vpop.f32.mrb[15].mxu0  ;;  %v17891_v38 = vld [vmem:[#allocation2 + $0xb0] sm:$0xff] }
 0x328   : > { %4084 = vst.msk [vmem:[#allocation2 + $0xf0] sm:$0xff] %vm4070_vm1, %v4051_v5  ;;  %v4050_v8 = vsel %vm3986_vm15, %v17848_v58, %v4018_v15  ;;  %v17878_v9 = vadd.f32 %v17701_v44, %v3814_v7  ;;  %v17880_v4 = vld [vmem:[#allocation2 + $0xa8] sm:$0xff]  ;;  %v17893_v39 = vld [vmem:[#allocation2 + $0xb1] sm:$0xff] }
 0x329   : > { %20210 = vst [vmem:[#allocation19_spill] sm:$0xff] %v17873_v6  ;;  %v17882_v33 = vld [vmem:[#allocation2 + $0xa9] sm:$0xff]  ;;  %4083 = vst.msk [vmem:[#allocation2 + $0xe8] sm:$0xff] %vm4070_vm1, %v4050_v8  ;;  %vm3989_vm0 = vcmp.gt.f32.partialorder %v17873_v6, 0.0  ;;  %v4021_v36 = vmul.f32 0.2, %v17873_v6  ;;  %14265 = vmatprep.mubr.msk.f32.mxu0 %vm4070_vm1, %v17880_v4 }
 0x32a   : > { %20211 = vst [vmem:[#allocation20_spill] sm:$0xff] %v17878_v9  ;;  %14542 = vmatprep.mubr.msk.f32.mxu1 %vm4070_vm1, %v17882_v33  ;;  %vm3988_vm2 = vcmp.gt.f32.partialorder %v17878_v9, 0.0  ;;  %v4020_v41 = vmul.f32 0.2, %v17878_v9  ;;  %v14220_v62 = vpop.f32.mrb[16].mxu0  ;;  %14266 = vmatmul.mubr.msk.f32.gmra.mrb[42].mxu0 %vm4070_vm1, %v17891_v38 }
 0x32b   : > { %14543 = vmatmul.mubr.msk.f32.gmra.mrb[8].mxu1 %vm4070_vm1, %v17893_v39  ;;  %v4053_v19 = vsel %vm3989_vm0, %v17873_v6, %v4021_v36  ;;  %v17903_v35 = vadd.f32 %v14220_v62, %v17701_v44  ;;  %v3824_v0 = vpop.f32.mrb[17].mxu0  ;;  %v17921_v46 = vld [vmem:[#allocation2 + $0xd0] sm:$0xff] }
 0x32c   : > { %4086 = vst.msk [vmem:[#allocation2 + $0x110] sm:$0xff] %vm4070_vm1, %v4053_v19  ;;  %v4052_v11 = vsel %vm3988_vm2, %v17878_v9, %v4020_v41  ;;  %v17908_v18 = vadd.f32 %v17701_v44, %v3824_v0  ;;  %v17910_v28 = vld [vmem:[#allocation2 + $0xc8] sm:$0xff]  ;;  %v17923_v50 = vld [vmem:[#allocation2 + $0xd1] sm:$0xff] }
 0x32d   : > { %20212 = vst [vmem:[#allocation21_spill] sm:$0xff] %v17903_v35  ;;  %v17912_v32 = vld [vmem:[#allocation2 + $0xc9] sm:$0xff]  ;;  %4085 = vst.msk [vmem:[#allocation2 + $0x108] sm:$0xff] %vm4070_vm1, %v4052_v11  ;;  %vm3991_vm3 = vcmp.gt.f32.partialorder %v17903_v35, 0.0  ;;  %v4023_v43 = vmul.f32 0.2, %v17903_v35  ;;  %14268 = vmatprep.mubr.msk.f32.mxu0 %vm4070_vm1, %v17910_v28 }
 0x32e   : > { %20213 = vst [vmem:[#allocation22_spill] sm:$0xff] %v17908_v18  ;;  %14545 = vmatprep.mubr.msk.f32.mxu1 %vm4070_vm1, %v17912_v32  ;;  %vm3990_vm4 = vcmp.gt.f32.partialorder %v17908_v18, 0.0  ;;  %v4022_v59 = vmul.f32 0.2, %v17908_v18  ;;  %v14223_v60 = vpop.f32.mrb[18].mxu0  ;;  %14269 = vmatmul.mubr.msk.f32.gmra.mrb[44].mxu0 %vm4070_vm1, %v17921_v46 }
 0x32f   : > { %14546 = vmatmul.mubr.msk.f32.gmra.mrb[10].mxu1 %vm4070_vm1, %v17923_v50  ;;  %v4055_v2 = vsel %vm3991_vm3, %v17903_v35, %v4023_v43  ;;  %v17933_v48 = vadd.f32 %v14223_v60, %v17701_v44  ;;  %v3834_v52 = vpop.f32.mrb[19].mxu0  ;;  %v17951_v10 = vld [vmem:[#allocation2 + $0xf0] sm:$0xff] }
 0x330   : > { %4088 = vst.msk [vmem:[#allocation2 + $0x130] sm:$0xff] %vm4070_vm1, %v4055_v2  ;;  %v4054_v53 = vsel %vm3990_vm4, %v17908_v18, %v4022_v59  ;;  %v17938_v55 = vadd.f32 %v17701_v44, %v3834_v52  ;;  %v17940_v57 = vld [vmem:[#allocation2 + $0xe8] sm:$0xff]  ;;  %v17953_v5 = vld [vmem:[#allocation2 + $0xf1] sm:$0xff] }
 0x331   : > { %20214 = vst [vmem:[#allocation23_spill] sm:$0xff] %v17933_v48  ;;  %v17942_v23 = vld [vmem:[#allocation2 + $0xe9] sm:$0xff]  ;;  %4087 = vst.msk [vmem:[#allocation2 + $0x128] sm:$0xff] %vm4070_vm1, %v4054_v53  ;;  %vm3993_vm5 = vcmp.gt.f32.partialorder %v17933_v48, 0.0  ;;  %v4025_v15 = vmul.f32 0.2, %v17933_v48  ;;  %14271 = vmatprep.mubr.msk.f32.mxu0 %vm4070_vm1, %v17940_v57 }
 0x332   : > { %20215 = vst [vmem:[#allocation24_spill] sm:$0xff] %v17938_v55  ;;  %14548 = vmatprep.mubr.msk.f32.mxu1 %vm4070_vm1, %v17942_v23  ;;  %vm3992_vm6 = vcmp.gt.f32.partialorder %v17938_v55, 0.0  ;;  %v4024_v7 = vmul.f32 0.2, %v17938_v55  ;;  %v14226_v8 = vpop.f32.mrb[20].mxu0  ;;  %14272 = vmatmul.mubr.msk.f32.gmra.mrb[46].mxu0 %vm4070_vm1, %v17951_v10 }
 0x333   : > { %14549 = vmatmul.mubr.msk.f32.gmra.mrb[12].mxu1 %vm4070_vm1, %v17953_v5  ;;  %v4057_v36 = vsel %vm3993_vm5, %v17933_v48, %v4025_v15  ;;  %v17963_v41 = vadd.f32 %v14226_v8, %v17701_v44  ;;  %v3844_v62 = vpop.f32.mrb[21].mxu0  ;;  %v17981_v60 = vld [vmem:[#allocation2 + $0x110] sm:$0xff] }
 0x334   : > { %4090 = vst.msk [vmem:[#allocation2 + $0x150] sm:$0xff] %vm4070_vm1, %v4057_v36  ;;  %v4056_v19 = vsel %vm3992_vm6, %v17938_v55, %v4024_v7  ;;  %v17968_v0 = vadd.f32 %v17701_v44, %v3844_v62  ;;  %v17970_v11 = vld [vmem:[#allocation2 + $0x108] sm:$0xff]  ;;  %v17983_v2 = vld [vmem:[#allocation2 + $0x111] sm:$0xff] }
 0x335   : > { %20216 = vst [vmem:[#allocation25_spill] sm:$0xff] %v17963_v41  ;;  %v17972_v43 = vld [vmem:[#allocation2 + $0x109] sm:$0xff]  ;;  %4089 = vst.msk [vmem:[#allocation2 + $0x148] sm:$0xff] %vm4070_vm1, %v4056_v19  ;;  %vm3995_vm7 = vcmp.gt.f32.partialorder %v17963_v41, 0.0  ;;  %v4027_v59 = vmul.f32 0.2, %v17963_v41  ;;  %14274 = vmatprep.mubr.msk.f32.mxu0 %vm4070_vm1, %v17970_v11 }
 0x336   : > { %20217 = vst [vmem:[#allocation26_spill] sm:$0xff] %v17968_v0  ;;  %14551 = vmatprep.mubr.msk.f32.mxu1 %vm4070_vm1, %v17972_v43  ;;  %vm3994_vm8 = vcmp.gt.f32.partialorder %v17968_v0, 0.0  ;;  %v4026_v52 = vmul.f32 0.2, %v17968_v0  ;;  %v14229_v53 = vpop.f32.mrb[22].mxu0  ;;  %14275 = vmatmul.mubr.msk.f32.gmra.mrb[48].mxu0 %vm4070_vm1, %v17981_v60 }
 0x337   : > { %14552 = vmatmul.mubr.msk.f32.gmra.mrb[14].mxu1 %vm4070_vm1, %v17983_v2  ;;  %v4059_v15 = vsel %vm3995_vm7, %v17963_v41, %v4027_v59  ;;  %v17993_v7 = vadd.f32 %v14229_v53, %v17701_v44  ;;  %v3854_v8 = vpop.f32.mrb[23].mxu0  ;;  %v18013_v53 = vld [vmem:[#allocation2 + $0x131] sm:$0xff] }
 0x338   : > { %4092 = vst.msk [vmem:[#allocation2 + $0x170] sm:$0xff] %vm4070_vm1, %v4059_v15  ;;  %v4058_v36 = vsel %vm3994_vm8, %v17968_v0, %v4026_v52  ;;  %v17998_v62 = vadd.f32 %v17701_v44, %v3854_v8  ;;  %v18000_v19 = vld [vmem:[#allocation2 + $0x128] sm:$0xff]  ;;  %v18011_v52 = vld [vmem:[#allocation2 + $0x130] sm:$0xff] }
 0x339   : > { %20218 = vst [vmem:[#allocation27_spill] sm:$0xff] %v17993_v7  ;;  %v18002_v48 = vld [vmem:[#allocation2 + $0x129] sm:$0xff]  ;;  %4091 = vst.msk [vmem:[#allocation2 + $0x168] sm:$0xff] %vm4070_vm1, %v4058_v36  ;;  %vm3997_vm9 = vcmp.gt.f32.partialorder %v17993_v7, 0.0  ;;  %v4029_v59 = vmul.f32 0.2, %v17993_v7  ;;  %14277 = vmatprep.mubr.msk.f32.mxu0 %vm4070_vm1, %v18000_v19 }
 0x33a   : > { %20219 = vst [vmem:[#allocation28_spill] sm:$0xff] %v17998_v62  ;;  %14554 = vmatprep.mubr.msk.f32.mxu1 %vm4070_vm1, %v18002_v48  ;;  %vm3996_vm10 = vcmp.gt.f32.partialorder %v17998_v62, 0.0  ;;  %v4028_v15 = vmul.f32 0.2, %v17998_v62  ;;  %v14232_v8 = vpop.f32.mrb[24].mxu0  ;;  %14278 = vmatmul.mubr.msk.f32.gmra.mrb[50].mxu0 %vm4070_vm1, %v18011_v52 }
 0x33b   : > { %14555 = vmatmul.mubr.msk.f32.gmra.mrb[16].mxu1 %vm4070_vm1, %v18013_v53  ;;  %v4061_v36 = vsel %vm3997_vm9, %v17993_v7, %v4029_v59  ;;  %v18023_v41 = vadd.f32 %v14232_v8, %v17701_v44  ;;  %v3864_v0 = vpop.f32.mrb[25].mxu0 }
 0x33c   : > { %4094 = vst.msk [vmem:[#allocation2 + $0x190] sm:$0xff] %vm4070_vm1, %v4061_v36  ;;  %v4060_v55 = vsel %vm3996_vm10, %v17998_v62, %v4028_v15  ;;  %v18028_v35 = vadd.f32 %v17701_v44, %v3864_v0  ;;  %v18030_v18 = vld [vmem:[#allocation2 + $0x148] sm:$0xff]  ;;  %v18041_v15 = vld [vmem:[#allocation2 + $0x150] sm:$0xff] }
 0x33d   : > { %20220 = vst [vmem:[#allocation29_spill] sm:$0xff] %v18023_v41  ;;  %v18032_v6 = vld [vmem:[#allocation2 + $0x149] sm:$0xff]  ;;  %4093 = vst.msk [vmem:[#allocation2 + $0x188] sm:$0xff] %vm4070_vm1, %v4060_v55  ;;  %vm3999_vm11 = vcmp.gt.f32.partialorder %v18023_v41, 0.0  ;;  %v4031_v59 = vmul.f32 0.2, %v18023_v41  ;;  %14280 = vmatprep.mubr.msk.f32.mxu0 %vm4070_vm1, %v18030_v18 }
 0x33e   : > { %20221 = vst [vmem:[#allocation30_spill] sm:$0xff] %v18028_v35  ;;  %14557 = vmatprep.mubr.msk.f32.mxu1 %vm4070_vm1, %v18032_v6  ;;  %v18043_v0 = vld [vmem:[#allocation2 + $0x151] sm:$0xff]  ;;  %vm3998_vm12 = vcmp.gt.f32.partialorder %v18028_v35, 0.0  ;;  %v4030_v8 = vmul.f32 0.2, %v18028_v35  ;;  %v14235_v36 = vpop.f32.mrb[26].mxu0  ;;  %14281 = vmatmul.mubr.msk.f32.gmra.mrb[52].mxu0 %vm4070_vm1, %v18041_v15 }
 0x33f   : > { %14558 = vmatmul.mubr.msk.f32.gmra.mrb[18].mxu1 %vm4070_vm1, %v18043_v0  ;;  %v4063_v55 = vsel %vm3999_vm11, %v18023_v41, %v4031_v59  ;;  %v18053_v7 = vadd.f32 %v14235_v36, %v17701_v44  ;;  %v3874_v62 = vpop.f32.mrb[27].mxu0 }
 0x340   : > { %4096 = vst.msk [vmem:[#allocation2 + $0x1b0] sm:$0xff] %vm4070_vm1, %v4063_v55  ;;  %v4062_v9 = vsel %vm3998_vm12, %v18028_v35, %v4030_v8  ;;  %v18058_v54 = vadd.f32 %v17701_v44, %v3874_v62  ;;  %v18060_v58 = vld [vmem:[#allocation2 + $0x168] sm:$0xff]  ;;  %v18071_v8 = vld [vmem:[#allocation2 + $0x170] sm:$0xff] }
 0x341   : > { %20222 = vst [vmem:[#allocation31_spill] sm:$0xff] %v18053_v7  ;;  %v18062_v51 = vld [vmem:[#allocation2 + $0x169] sm:$0xff]  ;;  %4095 = vst.msk [vmem:[#allocation2 + $0x1a8] sm:$0xff] %vm4070_vm1, %v4062_v9  ;;  %vm4001_vm13 = vcmp.gt.f32.partialorder %v18053_v7, 0.0  ;;  %v4033_v59 = vmul.f32 0.2, %v18053_v7  ;;  %14283 = vmatprep.mubr.msk.f32.mxu0 %vm4070_vm1, %v18060_v58 }
 0x342   : > { %20223 = vst [vmem:[#allocation32_spill] sm:$0xff] %v18058_v54  ;;  %14560 = vmatprep.mubr.msk.f32.mxu1 %vm4070_vm1, %v18062_v51  ;;  %v18073_v62 = vld [vmem:[#allocation2 + $0x171] sm:$0xff]  ;;  %vm4000_vm14 = vcmp.gt.f32.partialorder %v18058_v54, 0.0  ;;  %v4032_v36 = vmul.f32 0.2, %v18058_v54  ;;  %v14238_v55 = vpop.f32.mrb[28].mxu0  ;;  %14284 = vmatmul.mubr.msk.f32.gmra.mrb[54].mxu0 %vm4070_vm1, %v18071_v8 }
 0x343   : > { %14561 = vmatmul.mubr.msk.f32.gmra.mrb[20].mxu1 %vm4070_vm1, %v18073_v62  ;;  %v4065_v9 = vsel %vm4001_vm13, %v18053_v7, %v4033_v59  ;;  %v18083_v41 = vadd.f32 %v14238_v55, %v17701_v44  ;;  %v3884_v35 = vpop.f32.mrb[29].mxu0 }
 0x344   : > { %4098 = vst.msk [vmem:[#allocation2 + $0x1d0] sm:$0xff] %vm4070_vm1, %v4065_v9  ;;  %v4064_v61 = vsel %vm4000_vm14, %v18058_v54, %v4032_v36  ;;  %v18088_v12 = vadd.f32 %v17701_v44, %v3884_v35  ;;  %v18090_v13 = vld [vmem:[#allocation2 + $0x188] sm:$0xff]  ;;  %v18101_v36 = vld [vmem:[#allocation2 + $0x190] sm:$0xff] }
 0x345   : > { %20224 = vst [vmem:[#allocation33_spill] sm:$0xff] %v18083_v41  ;;  %v18092_v29 = vld [vmem:[#allocation2 + $0x189] sm:$0xff]  ;;  %4097 = vst.msk [vmem:[#allocation2 + $0x1c8] sm:$0xff] %vm4070_vm1, %v4064_v61  ;;  %vm4003_vm15 = vcmp.gt.f32.partialorder %v18083_v41, 0.0  ;;  %v4035_v59 = vmul.f32 0.2, %v18083_v41  ;;  %14286 = vmatprep.mubr.msk.f32.mxu0 %vm4070_vm1, %v18090_v13 }
 0x346   : > { %20225 = vst [vmem:[#allocation34_spill] sm:$0xff] %v18088_v12  ;;  %14563 = vmatprep.mubr.msk.f32.mxu1 %vm4070_vm1, %v18092_v29  ;;  %v18103_v35 = vld [vmem:[#allocation2 + $0x191] sm:$0xff]  ;;  %vm4002_vm0 = vcmp.gt.f32.partialorder %v18088_v12, 0.0  ;;  %v4034_v55 = vmul.f32 0.2, %v18088_v12  ;;  %v14241_v9 = vpop.f32.mrb[30].mxu0  ;;  %14287 = vmatmul.mubr.msk.f32.gmra.mrb[56].mxu0 %vm4070_vm1, %v18101_v36 }
 0x347   : > { %14564 = vmatmul.mubr.msk.f32.gmra.mrb[22].mxu1 %vm4070_vm1, %v18103_v35  ;;  %v4067_v61 = vsel %vm4003_vm15, %v18083_v41, %v4035_v59  ;;  %v18113_v7 = vadd.f32 %v14241_v9, %v17701_v44  ;;  %v3894_v54 = vpop.f32.mrb[31].mxu0 }
 0x348   : > { %4100 = vst.msk [vmem:[#allocation2 + $0x1f0] sm:$0xff] %vm4070_vm1, %v4067_v61  ;;  %v4066_v34 = vsel %vm4002_vm0, %v18088_v12, %v4034_v55  ;;  %v18118_v30 = vadd.f32 %v17701_v44, %v3894_v54  ;;  %v18120_v16 = vld [vmem:[#allocation2 + $0x1a8] sm:$0xff]  ;;  %v18131_v55 = vld [vmem:[#allocation2 + $0x1b0] sm:$0xff] }
 0x349   : > { %20226 = vst [vmem:[#allocation35_spill] sm:$0xff] %v18113_v7  ;;  %v18122_v56 = vld [vmem:[#allocation2 + $0x1a9] sm:$0xff]  ;;  %4099 = vst.msk [vmem:[#allocation2 + $0x1e8] sm:$0xff] %vm4070_vm1, %v4066_v34  ;;  %vm4005_vm2 = vcmp.gt.f32.partialorder %v18113_v7, 0.0  ;;  %v4037_v59 = vmul.f32 0.2, %v18113_v7  ;;  %14289 = vmatprep.mubr.msk.f32.mxu0 %vm4070_vm1, %v18120_v16 }
 0x34a   : > { %20227 = vst [vmem:[#allocation3_spill] sm:$0xff] %v18118_v30  ;;  %14566 = vmatprep.mubr.msk.f32.mxu1 %vm4070_vm1, %v18122_v56  ;;  %v18133_v44 = vld [vmem:[#allocation2 + $0x1b1] sm:$0xff]  ;;  %vm4004_vm3 = vcmp.gt.f32.partialorder %v18118_v30, 0.0  ;;  %v4036_v54 = vmul.f32 0.2, %v18118_v30  ;;  %14290 = vmatmul.mubr.msk.f32.gmra.mrb[58].mxu0 %vm4070_vm1, %v18131_v55 }
 0x34b   : > { %20228 = vst [vmem:[#allocation4_spill] sm:$0xff] %v18133_v44  ;;  %14567 = vmatmul.mubr.msk.f32.gmra.mrb[24].mxu1 %vm4070_vm1, %v18133_v44  ;;  %v4069_v34 = vsel %vm4005_vm2, %v18113_v7, %v4037_v59  ;;  %v18153_v12 = vld [vmem:[#allocation2 + $0x1d0] sm:$0xff]  ;;  %v4103_v59 = vld [vmem:[#allocation2 + $0x7] sm:$0xff] }
 0x34c   : > { %4102 = vst.msk [vmem:[#allocation2 + $0x210] sm:$0xff] %vm4070_vm1, %v4069_v34  ;;  %v4068_v9 = vsel %vm4004_vm3, %v18118_v30, %v4036_v54  ;;  %v18144_v61 = vld [vmem:[#allocation2 + $0x1c8] sm:$0xff]  ;;  %20230 = vst [vmem:[#allocation37_spill] sm:$0xff] %v18153_v12  ;;  %v18155_v20 = vld [vmem:[#allocation2 + $0x1d1] sm:$0xff] }
 0x34d   : > { %v18146_v41 = vld [vmem:[#allocation2 + $0x1c9] sm:$0xff]  ;;  %4101 = vst.msk [vmem:[#allocation2 + $0x208] sm:$0xff] %vm4070_vm1, %v4068_v9  ;;  %14292 = vmatprep.mubr.msk.f32.mxu0 %vm4070_vm1, %v18144_v61  ;;  %20231 = vst [vmem:[#allocation38_spill] sm:$0xff] %v18155_v20 }
 0x34e   : > { %20229 = vst [vmem:[#allocation36_spill] sm:$0xff] %v18146_v41  ;;  %14569 = vmatprep.mubr.msk.f32.mxu1 %vm4070_vm1, %v18146_v41  ;;  %14293 = vmatmul.mubr.msk.f32.gmra.mrb[60].mxu0 %vm4070_vm1, %v18153_v12  ;;  %v12067_v9 = vld [vmem:[%s19909_s3 + $0x50] sm:$0xff]  ;;  %v12282_v44 = vld [vmem:[%s19909_s3 + $0x108] sm:$0xff] }
 0x34f   : > { %14570 = vmatmul.mubr.msk.f32.gmra.mrb[26].mxu1 %vm4070_vm1, %v18155_v20  ;;  %v18172_v7 = vld [vmem:[#allocation2 + $0x1f0] sm:$0xff] }
 0x350   : > { %v18161_v54 = vld [vmem:[#allocation2 + $0x1e8] sm:$0xff]  ;;  %20234 = vst [vmem:[#allocation41_spill] sm:$0xff] %v18172_v7  ;;  %v18174_v30 = vld [vmem:[#allocation2 + $0x1f1] sm:$0xff] }
 0x351   : > { %20232 = vst [vmem:[#allocation39_spill] sm:$0xff] %v18161_v54  ;;  %v18163_v34 = vld [vmem:[#allocation2 + $0x1e9] sm:$0xff]  ;;  %14295 = vmatprep.mubr.msk.f32.mxu0 %vm4070_vm1, %v18161_v54  ;;  %20235 = vst [vmem:[#allocation42_spill] sm:$0xff] %v18174_v30 }
 0x352   : > { %20233 = vst [vmem:[#allocation40_spill] sm:$0xff] %v18163_v34  ;;  %14572 = vmatprep.mubr.msk.f32.mxu1 %vm4070_vm1, %v18163_v34  ;;  %14296 = vmatmul.mubr.msk.f32.gmra.mrb[62].mxu0 %vm4070_vm1, %v18172_v7  ;;  %v15434_v34 = vpack.c.bf16 %v12068_v47, %v12067_v9  ;;  %v12247_v41 = vld [vmem:[%s19909_s3 + $0xf0] sm:$0xff]  ;;  %v12248_v7 = vld [vmem:[%s19909_s3 + $0xf8] sm:$0xff]  ;;  %v12101_v47 = vld [vmem:[%s19909_s3 + $0x60] sm:$0xff] }
 0x353   : > { %14573 = vmatmul.mubr.msk.f32.gmra.mrb[28].mxu1 %vm4070_vm1, %v18174_v30  ;;  %14306 = vmatprep.mubr.msk.f32.mxu0 %vm4070_vm1, %v4103_v59  ;;  %v18188_v54 = vld [vmem:[#allocation2 + $0x211] sm:$0xff]  ;;  %v18199_v59 = vld [vmem:[#allocation2 + $0x27] sm:$0xff]  ;;  %v15474_v12 = vpack.c.bf16 %v12248_v7, %v12247_v41 }
 0x354   : > { %v18184_v20 = vld [vmem:[#allocation2 + $0x209] sm:$0xff]  ;;  %20237 = vst [vmem:[#allocation44_spill] sm:$0xff] %v18188_v54  ;;  %20238 = vst [vmem:[#allocation45_spill] sm:$0xff] %v18199_v59 }
 0x355   : > { %20236 = vst [vmem:[#allocation43_spill] sm:$0xff] %v18184_v20  ;;  %14575 = vmatprep.mubr.msk.f32.mxu1 %vm4070_vm1, %v18184_v20  ;;  %v12102_v9 = vld [vmem:[%s19909_s3 + $0x68] sm:$0xff] }
 0x356   : > { %14307 = vmatmul.mubr.msk.f32.vlgmr.msra.gmra.mrb[32].mxu0 %vm4070_vm1, %v4104_v49  ;;  %v18210_v20 = vld [vmem:[#allocation2 + $0x47] sm:$0xff]  ;;  %v18214_v49 = vld [vmem:[#allocation2 + $0x2f] sm:$0xff]  ;;  %v18218_v30 = vpack.c.bf16 %v12102_v9, %v12101_v47 }
 0x357   : > { %14576 = vmatmul.mubr.msk.f32.gmra.mrb[30].mxu1 %vm4070_vm1, %v18188_v54  ;;  %14309 = vmatprep.mubr.msk.f32.mxu0 %vm4070_vm1, %v18199_v59  ;;  %v18216_v54 = vld [vmem:[#allocation2 + $0x4f] sm:$0xff]  ;;  %v12281_v59 = vld [vmem:[%s19909_s3 + $0x100] sm:$0xff] }
 0x358   : > { %15433 = vmatpush3.bf16.msra.mxu0 %v17695_v42  ;;  %14586 = vmatprep.mubr.msk.f32.mxu1 %vm4070_vm1, %v18210_v20  ;;  %20239 = vst [vmem:[#allocation46_spill] sm:$0xff] %v18216_v54  ;;  %v18224_v42 = vld [vmem:[#allocation2 + $0x67] sm:$0xff]  ;;  %v18237_v41 = vld [vmem:[#allocation2 + $0x6f] sm:$0xff]  ;;  %v18240_v7 = vpack.c.bf16 %v12282_v44, %v12281_v59 }
 0x359   : > { %15435 = vmatprep.subr.bf16.mxu0 %v15434_v34  ;;  %20240 = vst [vmem:[#allocation47_spill] sm:$0xff] %v18224_v42  ;;  %20241 = vst [vmem:[#allocation48_spill] sm:$0xff] %v18237_v41  ;;  %v18246_v47 = vld [vmem:[#allocation2 + $0x87] sm:$0xff]  ;;  %v18277_v59 = vld [vmem:[#allocation2 + $0xcf] sm:$0xff] }
 0x35a   : > { %14310 = vmatmul.mubr.msk.f32.gmra.mrb[34].mxu0 %vm4070_vm1, %v18214_v49  ;;  %20242 = vst [vmem:[#allocation49_spill] sm:$0xff] %v18246_v47  ;;  %v18259_v44 = vld [vmem:[#allocation2 + $0xa7] sm:$0xff]  ;;  %20247 = vst [vmem:[#allocation54_spill] sm:$0xff] %v18277_v59 }
 0x35b   : > { %14587 = vmatmul.mubr.msk.f32.vlgmr.msra.gmra.mrb[0].mxu1 %vm4070_vm1, %v18216_v54  ;;  %14312 = vmatprep.mubr.msk.f32.mxu0 %vm4070_vm1, %v18210_v20  ;;  %20244 = vst [vmem:[#allocation51_spill] sm:$0xff] %v18259_v44  ;;  %v18283_v9 = vld [vmem:[#allocation2 + $0xe7] sm:$0xff] }
 0x35c   : > { %14589 = vmatprep.mubr.msk.f32.mxu1 %vm4070_vm1, %v18224_v42  ;;  %15437 = vmatpush3.bf16.msra.mxu0 %v15434_v34  ;;  %v18265_v34 = vld [vmem:[#allocation2 + $0xaf] sm:$0xff]  ;;  %20248 = vst [vmem:[#allocation55_spill] sm:$0xff] %v18283_v9 }
 0x35d   : > { %15473 = vmatpush3.bf16.msra.mxu1 %v17791_v24  ;;  %15439 = vmatprep.subr.bf16.mxu0 %v18218_v30  ;;  %v18252_v24 = vld [vmem:[#allocation2 + $0x8f] sm:$0xff]  ;;  %20245 = vst [vmem:[#allocation52_spill] sm:$0xff] %v18265_v34 }
 0x35e   : > { %15475 = vmatprep.subr.bf16.mxu1 %v15474_v12  ;;  %14313 = vmatmul.mubr.msk.f32.gmra.mrb[36].mxu0 %vm4070_vm1, %v18216_v54  ;;  %20243 = vst [vmem:[#allocation50_spill] sm:$0xff] %v18252_v24  ;;  %v12283_v54 = vld [vmem:[%s19909_s3 + $0x110] sm:$0xff] }
 0x35f   : > { %14590 = vmatmul.mubr.msk.f32.gmra.mrb[2].mxu1 %vm4070_vm1, %v18237_v41  ;;  %14315 = vmatprep.mubr.msk.f32.mxu0 %vm4070_vm1, %v18224_v42 }
 0x360   : > { %14592 = vmatprep.mubr.msk.f32.mxu1 %vm4070_vm1, %v18246_v47 }
 0x361   : > { %15477 = vmatpush3.bf16.msra.mxu1 %v15474_v12  ;;  %v18271_v12 = vld [vmem:[#allocation2 + $0xc7] sm:$0xff] }
 0x362   : > { %15479 = vmatprep.subr.bf16.mxu1 %v18240_v7  ;;  %14316 = vmatmul.mubr.msk.f32.gmra.mrb[38].mxu0 %vm4070_vm1, %v18237_v41  ;;  %20246 = vst [vmem:[#allocation53_spill] sm:$0xff] %v18271_v12  ;;  %v12103_v41 = vld [vmem:[%s19909_s3 + $0x70] sm:$0xff] }
 0x363   : > { %14593 = vmatmul.mubr.msk.f32.gmra.mrb[4].mxu1 %vm4070_vm1, %v18252_v24  ;;  %14318 = vmatprep.mubr.msk.f32.mxu0 %vm4070_vm1, %v18246_v47  ;;  %v18397_v47 = vld [vmem:[#allocation2 + $0x20f] sm:$0xff] }
 0x364   : > { %14595 = vmatprep.mubr.msk.f32.mxu1 %vm4070_vm1, %v18259_v44 }
 0x366   : > { %14319 = vmatmul.mubr.msk.f32.gmra.mrb[40].mxu0 %vm4070_vm1, %v18252_v24  ;;  %v6408_v24 = vld [vmem:[#allocation2 + $0x227] sm:$0xff] }
 0x367   : > { %14596 = vmatmul.mubr.msk.f32.gmra.mrb[6].mxu1 %vm4070_vm1, %v18265_v34  ;;  %14321 = vmatprep.mubr.msk.f32.mxu0 %vm4070_vm1, %v18259_v44  ;;  %v18289_v44 = vld [vmem:[#allocation2 + $0xef] sm:$0xff] }
 0x368   : > { %14598 = vmatprep.mubr.msk.f32.mxu1 %vm4070_vm1, %v18271_v12  ;;  %20249 = vst [vmem:[#allocation56_spill] sm:$0xff] %v18289_v44 }
 0x36a   : > { %14322 = vmatmul.mubr.msk.f32.gmra.mrb[42].mxu0 %vm4070_vm1, %v18265_v34  ;;  %v18295_v34 = vld [vmem:[#allocation2 + $0x107] sm:$0xff] }
 0x36b   : > { %14599 = vmatmul.mubr.msk.f32.gmra.mrb[8].mxu1 %vm4070_vm1, %v18277_v59  ;;  %14324 = vmatprep.mubr.msk.f32.mxu0 %vm4070_vm1, %v18271_v12  ;;  %20250 = vst [vmem:[#allocation57_spill] sm:$0xff] %v18295_v34  ;;  %v18301_v12 = vld [vmem:[#allocation2 + $0x10f] sm:$0xff] }
 0x36c   : > { %14601 = vmatprep.mubr.msk.f32.mxu1 %vm4070_vm1, %v18283_v9  ;;  %20251 = vst [vmem:[#allocation58_spill] sm:$0xff] %v18301_v12 }
 0x36e   : > { %14325 = vmatmul.mubr.msk.f32.gmra.mrb[44].mxu0 %vm4070_vm1, %v18277_v59  ;;  %v18307_v59 = vld [vmem:[#allocation2 + $0x127] sm:$0xff] }
 0x36f   : > { %14602 = vmatmul.mubr.msk.f32.gmra.mrb[10].mxu1 %vm4070_vm1, %v18289_v44  ;;  %14327 = vmatprep.mubr.msk.f32.mxu0 %vm4070_vm1, %v18283_v9  ;;  %20252 = vst [vmem:[#allocation59_spill] sm:$0xff] %v18307_v59  ;;  %v18313_v9 = vld [vmem:[#allocation2 + $0x12f] sm:$0xff] }
 0x370   : > { %14604 = vmatprep.mubr.msk.f32.mxu1 %vm4070_vm1, %v18295_v34  ;;  %20253 = vst [vmem:[#allocation60_spill] sm:$0xff] %v18313_v9 }
 0x372   : > { %14328 = vmatmul.mubr.msk.f32.gmra.mrb[46].mxu0 %vm4070_vm1, %v18289_v44  ;;  %v18319_v44 = vld [vmem:[#allocation2 + $0x147] sm:$0xff] }
 0x373   : > { %14605 = vmatmul.mubr.msk.f32.gmra.mrb[12].mxu1 %vm4070_vm1, %v18301_v12  ;;  %14330 = vmatprep.mubr.msk.f32.mxu0 %vm4070_vm1, %v18295_v34  ;;  %20254 = vst [vmem:[#allocation61_spill] sm:$0xff] %v18319_v44  ;;  %v18325_v34 = vld [vmem:[#allocation2 + $0x14f] sm:$0xff] }
 0x374   : > { %14607 = vmatprep.mubr.msk.f32.mxu1 %vm4070_vm1, %v18307_v59  ;;  %20255 = vst [vmem:[#allocation62_spill] sm:$0xff] %v18325_v34 }
 0x376   : > { %14331 = vmatmul.mubr.msk.f32.gmra.mrb[48].mxu0 %vm4070_vm1, %v18301_v12  ;;  %v18331_v12 = vld [vmem:[#allocation2 + $0x167] sm:$0xff] }
 0x377   : > { %14608 = vmatmul.mubr.msk.f32.gmra.mrb[14].mxu1 %vm4070_vm1, %v18313_v9  ;;  %14333 = vmatprep.mubr.msk.f32.mxu0 %vm4070_vm1, %v18307_v59  ;;  %20256 = vst [vmem:[#allocation63_spill] sm:$0xff] %v18331_v12  ;;  %v18337_v59 = vld [vmem:[#allocation2 + $0x16f] sm:$0xff] }
 0x378   : > { %14610 = vmatprep.mubr.msk.f32.mxu1 %vm4070_vm1, %v18319_v44  ;;  %20257 = vst [vmem:[#allocation64_spill] sm:$0xff] %v18337_v59 }
 0x37a   : > { %14334 = vmatmul.mubr.msk.f32.gmra.mrb[50].mxu0 %vm4070_vm1, %v18313_v9  ;;  %v18343_v9 = vld [vmem:[#allocation2 + $0x187] sm:$0xff] }
 0x37b   : > { %14611 = vmatmul.mubr.msk.f32.gmra.mrb[16].mxu1 %vm4070_vm1, %v18325_v34  ;;  %14336 = vmatprep.mubr.msk.f32.mxu0 %vm4070_vm1, %v18319_v44  ;;  %20258 = vst [vmem:[#allocation65_spill] sm:$0xff] %v18343_v9  ;;  %v18349_v44 = vld [vmem:[#allocation2 + $0x18f] sm:$0xff] }
 0x37c   : > { %14613 = vmatprep.mubr.msk.f32.mxu1 %vm4070_vm1, %v18331_v12  ;;  %20259 = vst [vmem:[#allocation66_spill] sm:$0xff] %v18349_v44 }
 0x37e   : > { %14337 = vmatmul.mubr.msk.f32.gmra.mrb[52].mxu0 %vm4070_vm1, %v18325_v34  ;;  %v18355_v34 = vld [vmem:[#allocation2 + $0x1a7] sm:$0xff] }
 0x37f   : > { %14614 = vmatmul.mubr.msk.f32.gmra.mrb[18].mxu1 %vm4070_vm1, %v18337_v59  ;;  %14339 = vmatprep.mubr.msk.f32.mxu0 %vm4070_vm1, %v18331_v12  ;;  %20260 = vst [vmem:[#allocation67_spill] sm:$0xff] %v18355_v34  ;;  %v18361_v12 = vld [vmem:[#allocation2 + $0x1af] sm:$0xff] }
 0x380   : > { %14616 = vmatprep.mubr.msk.f32.mxu1 %vm4070_vm1, %v18343_v9  ;;  %20261 = vst [vmem:[#allocation68_spill] sm:$0xff] %v18361_v12 }
 0x382   : > { %14340 = vmatmul.mubr.msk.f32.gmra.mrb[54].mxu0 %vm4070_vm1, %v18337_v59  ;;  %v18367_v59 = vld [vmem:[#allocation2 + $0x1c7] sm:$0xff] }
 0x383   : > { %14617 = vmatmul.mubr.msk.f32.gmra.mrb[20].mxu1 %vm4070_vm1, %v18349_v44  ;;  %14342 = vmatprep.mubr.msk.f32.mxu0 %vm4070_vm1, %v18343_v9  ;;  %20262 = vst [vmem:[#allocation69_spill] sm:$0xff] %v18367_v59  ;;  %v18373_v9 = vld [vmem:[#allocation2 + $0x1cf] sm:$0xff] }
 0x384   : > { %14619 = vmatprep.mubr.msk.f32.mxu1 %vm4070_vm1, %v18355_v34  ;;  %20263 = vst [vmem:[#allocation70_spill] sm:$0xff] %v18373_v9 }
 0x386   : > { %14343 = vmatmul.mubr.msk.f32.gmra.mrb[56].mxu0 %vm4070_vm1, %v18349_v44  ;;  %v18379_v44 = vld [vmem:[#allocation2 + $0x1e7] sm:$0xff] }
 0x387   : > { %14620 = vmatmul.mubr.msk.f32.gmra.mrb[22].mxu1 %vm4070_vm1, %v18361_v12  ;;  %14345 = vmatprep.mubr.msk.f32.mxu0 %vm4070_vm1, %v18355_v34  ;;  %20264 = vst [vmem:[#allocation71_spill] sm:$0xff] %v18379_v44  ;;  %v18385_v34 = vld [vmem:[#allocation2 + $0x1ef] sm:$0xff] }
 0x388   : > { %14622 = vmatprep.mubr.msk.f32.mxu1 %vm4070_vm1, %v18367_v59  ;;  %20265 = vst [vmem:[#allocation72_spill] sm:$0xff] %v18385_v34 }
 0x38a   : > { %14346 = vmatmul.mubr.msk.f32.gmra.mrb[58].mxu0 %vm4070_vm1, %v18361_v12  ;;  %v18391_v12 = vld [vmem:[#allocation2 + $0x207] sm:$0xff] }
 0x38b   : > { %14623 = vmatmul.mubr.msk.f32.gmra.mrb[24].mxu1 %vm4070_vm1, %v18373_v9  ;;  %14348 = vmatprep.mubr.msk.f32.mxu0 %vm4070_vm1, %v18367_v59  ;;  %20266 = vst [vmem:[#allocation73_spill] sm:$0xff] %v18391_v12  ;;  %v4818_v59 = vld [vmem:[#allocation2 + $0x9] sm:$0xff] }
 0x38c   : > { %14625 = vmatprep.mubr.msk.f32.mxu1 %vm4070_vm1, %v18379_v44 }
 0x38e   : > { %14349 = vmatmul.mubr.msk.f32.gmra.mrb[60].mxu0 %vm4070_vm1, %v18373_v9  ;;  %v12104_v9 = vld [vmem:[%s19909_s3 + $0x78] sm:$0xff] }
 0x38f   : > { %14626 = vmatmul.mubr.msk.f32.gmra.mrb[26].mxu1 %vm4070_vm1, %v18385_v34  ;;  %14351 = vmatprep.mubr.msk.f32.mxu0 %vm4070_vm1, %v18379_v44  ;;  %v6409_v44 = vld [vmem:[#allocation2 + $0x22f] sm:$0xff]  ;;  %v15442_v42 = vpack.c.bf16 %v12104_v9, %v12103_v41  ;;  %v12284_v41 = vld [vmem:[%s19909_s3 + $0x118] sm:$0xff] }
 0x390   : > { %14628 = vmatprep.mubr.msk.f32.mxu1 %vm4070_vm1, %v18391_v12  ;;  %v4819_v12 = vld [vmem:[#allocation2 + $0x11] sm:$0xff] }
 0x391   : > { %v7189_v9 = vld [vmem:[#allocation2 + $0x231] sm:$0xff] }
 0x392   : > { %14352 = vmatmul.mubr.msk.f32.gmra.mrb[62].mxu0 %vm4070_vm1, %v18385_v34  ;;  %v12137_v34 = vld [vmem:[%s19909_s3 + $0x80] sm:$0xff] }
 0x393   : > { %14629 = vmatmul.mubr.msk.f32.gmra.mrb[28].mxu1 %vm4070_vm1, %v18397_v47  ;;  %14362 = vmatprep.mubr.msk.f32.mxu0 %vm4070_vm1, %v4818_v59  ;;  %v12138_v59 = vld [vmem:[%s19909_s3 + $0x88] sm:$0xff] }
 0x394   : > { %14631 = vmatprep.mubr.msk.f32.mxu1 %vm4070_vm1, %v6408_v24  ;;  %v18430_v24 = vpack.c.bf16 %v12138_v59, %v12137_v34  ;;  %v20305_v34 = vld [vmem:[#allocation44_spill] sm:$0xff]  ;;  %v5599_v59 = vld [vmem:[#allocation2 + $0x30] sm:$0xff] }
 0x396   : > { %14363 = vmatmul.mubr.msk.f32.vlgmr.msra.gmra.mrb[32].mxu0 %vm4070_vm1, %v4819_v12  ;;  %v5598_v12 = vld [vmem:[#allocation2 + $0x28] sm:$0xff] }
 0x397   : > { %14632 = vmatmul.mubr.msk.f32.gmra.mrb[30].mxu1 %vm4070_vm1, %v6409_v44  ;;  %14365 = vmatprep.mubr.msk.f32.mxu0 %vm4070_vm1, %v17756_v37  ;;  %v15482_v44 = vpack.c.bf16 %v12284_v41, %v12283_v54  ;;  %v20268_v37 = vld [vmem:[#allocation37_spill] sm:$0xff]  ;;  %v20289_v54 = vld [vmem:[#allocation59_spill] sm:$0xff]  ;;  %v5600_v41 = vld [vmem:[#allocation2 + $0x48] sm:$0xff] }
 0x398   : > { %15441 = vmatpush3.bf16.msra.mxu0 %v18218_v30  ;;  %14642 = vmatprep.mubr.msk.f32.mxu1 %vm4070_vm1, %v17787_v25  ;;  %v20267_v30 = vld [vmem:[#allocation4_spill] sm:$0xff]  ;;  %v20272_v25 = vld [vmem:[#allocation41_spill] sm:$0xff] }
 0x399   : > { %15443 = vmatprep.subr.bf16.mxu0 %v15442_v42 }
 0x39a   : > { %14366 = vmatmul.mubr.msk.f32.gmra.mrb[34].mxu0 %vm4070_vm1, %v17767_v14  ;;  %v20269_v14 = vld [vmem:[#allocation36_spill] sm:$0xff] }
 0x39b   : > { %14643 = vmatmul.mubr.msk.f32.vlgmr.msra.gmra.mrb[0].mxu1 %vm4070_vm1, %v17800_v40  ;;  %14368 = vmatprep.mubr.msk.f32.mxu0 %vm4070_vm1, %v17789_v26  ;;  %v18542_v26 = vld [vmem:[#allocation2 + $0x208] sm:$0xff] }
 0x39c   : > { %14645 = vmatprep.mubr.msk.f32.mxu1 %vm4070_vm1, %v17819_v63  ;;  %15445 = vmatpush3.bf16.msra.mxu0 %v15442_v42  ;;  %v20273_v40 = vld [vmem:[#allocation40_spill] sm:$0xff]  ;;  %v18548_v63 = vld [vmem:[#allocation2 + $0x210] sm:$0xff]  ;;  %v20304_v42 = vld [vmem:[#allocation43_spill] sm:$0xff] }
 0x39d   : > { %15481 = vmatpush3.bf16.msra.mxu1 %v18240_v7  ;;  %15447 = vmatprep.subr.bf16.mxu0 %v18430_v24  ;;  %v7188_v7 = vld [vmem:[#allocation2 + $0x229] sm:$0xff] }
 0x39e   : > { %15483 = vmatprep.subr.bf16.mxu1 %v15482_v44  ;;  %14369 = vmatmul.mubr.msk.f32.gmra.mrb[36].mxu0 %vm4070_vm1, %v17802_v17  ;;  %v6798_v17 = vld [vmem:[#allocation2 + $0x228] sm:$0xff] }
 0x39f   : > { %14646 = vmatmul.mubr.msk.f32.gmra.mrb[2].mxu1 %vm4070_vm1, %v17831_v3  ;;  %14371 = vmatprep.mubr.msk.f32.mxu0 %vm4070_vm1, %v17821_v1  ;;  %v12139_v1 = vld [vmem:[%s19909_s3 + $0x90] sm:$0xff]  ;;  %v12140_v3 = vld [vmem:[%s19909_s3 + $0x98] sm:$0xff] }
 0x3a0   : > { %14648 = vmatprep.mubr.msk.f32.mxu1 %vm4070_vm1, %v17850_v21  ;;  %v6799_v21 = vld [vmem:[#allocation2 + $0x230] sm:$0xff] }
 0x3a1   : > { %15485 = vmatpush3.bf16.msra.mxu1 %v15482_v44  ;;  %v5603_v44 = vld [vmem:[#allocation2 + $0x70] sm:$0xff] }
 0x3a2   : > { %14372 = vmatmul.mubr.msk.f32.gmra.mrb[38].mxu0 %vm4070_vm1, %v17833_v45  ;;  %v20274_v45 = vld [vmem:[#allocation42_spill] sm:$0xff] }
 0x3a3   : > { %14649 = vmatmul.mubr.msk.f32.gmra.mrb[4].mxu1 %vm4070_vm1, %v17861_v27  ;;  %14374 = vmatprep.mubr.msk.f32.mxu0 %vm4070_vm1, %v17852_v22  ;;  %v15450_v22 = vpack.c.bf16 %v12140_v3, %v12139_v1  ;;  %v7158_v27 = vld [vmem:[#allocation2 + $0x49] sm:$0xff] }
 0x3a4   : > { %14651 = vmatprep.mubr.msk.f32.mxu1 %vm4070_vm1, %v17880_v4  ;;  %v20276_v4 = vld [vmem:[#allocation46_spill] sm:$0xff]  ;;  %v5610_v1 = vld [vmem:[#allocation2 + $0xe8] sm:$0xff]  ;;  %v5611_v3 = vld [vmem:[#allocation2 + $0xf0] sm:$0xff] }
 0x3a6   : > { %14375 = vmatmul.mubr.msk.f32.gmra.mrb[40].mxu0 %vm4070_vm1, %v17863_v31  ;;  %v7159_v31 = vld [vmem:[#allocation2 + $0x51] sm:$0xff] }
 0x3a7   : > { %14652 = vmatmul.mubr.msk.f32.gmra.mrb[6].mxu1 %vm4070_vm1, %v17891_v38  ;;  %14377 = vmatprep.mubr.msk.f32.mxu0 %vm4070_vm1, %v17882_v33  ;;  %v7160_v33 = vld [vmem:[#allocation2 + $0x69] sm:$0xff]  ;;  %v20277_v38 = vld [vmem:[#allocation47_spill] sm:$0xff] }
 0x3a8   : > { %14654 = vmatprep.mubr.msk.f32.mxu1 %vm4070_vm1, %v17910_v28  ;;  %v20279_v28 = vld [vmem:[#allocation49_spill] sm:$0xff] }
 0x3aa   : > { %14378 = vmatmul.mubr.msk.f32.gmra.mrb[42].mxu0 %vm4070_vm1, %v17893_v39  ;;  %v20278_v39 = vld [vmem:[#allocation48_spill] sm:$0xff] }
 0x3ab   : > { %14655 = vmatmul.mubr.msk.f32.gmra.mrb[8].mxu1 %vm4070_vm1, %v17921_v46  ;;  %14380 = vmatprep.mubr.msk.f32.mxu0 %vm4070_vm1, %v17912_v32  ;;  %v7163_v32 = vld [vmem:[#allocation2 + $0x91] sm:$0xff] }
 0x3ac   : > { %14657 = vmatprep.mubr.msk.f32.mxu1 %vm4070_vm1, %v17940_v57  ;;  %v20280_v46 = vld [vmem:[#allocation50_spill] sm:$0xff]  ;;  %v20281_v57 = vld [vmem:[#allocation51_spill] sm:$0xff] }
 0x3ae   : > { %14381 = vmatmul.mubr.msk.f32.gmra.mrb[44].mxu0 %vm4070_vm1, %v17923_v50  ;;  %v7164_v50 = vld [vmem:[#allocation2 + $0xa9] sm:$0xff] }
 0x3af   : > { %14658 = vmatmul.mubr.msk.f32.gmra.mrb[10].mxu1 %vm4070_vm1, %v17951_v10  ;;  %14383 = vmatprep.mubr.msk.f32.mxu0 %vm4070_vm1, %v17942_v23  ;;  %v7165_v10 = vld [vmem:[#allocation2 + $0xb1] sm:$0xff] }
 0x3b0   : > { %14660 = vmatprep.mubr.msk.f32.mxu1 %vm4070_vm1, %v17970_v11  ;;  %v20282_v11 = vld [vmem:[#allocation52_spill] sm:$0xff] }
 0x3b2   : > { %14384 = vmatmul.mubr.msk.f32.gmra.mrb[46].mxu0 %vm4070_vm1, %v17953_v5 }
 0x3b3   : > { %14661 = vmatmul.mubr.msk.f32.gmra.mrb[12].mxu1 %vm4070_vm1, %v17981_v60  ;;  %14386 = vmatprep.mubr.msk.f32.mxu0 %vm4070_vm1, %v17972_v43  ;;  %v7166_v60 = vld [vmem:[#allocation2 + $0xc9] sm:$0xff] }
 0x3b4   : > { %14663 = vmatprep.mubr.msk.f32.mxu1 %vm4070_vm1, %v18000_v19  ;;  %v20283_v19 = vld [vmem:[#allocation53_spill] sm:$0xff] }
 0x3b6   : > { %14387 = vmatmul.mubr.msk.f32.gmra.mrb[48].mxu0 %vm4070_vm1, %v17983_v2 }
 0x3b7   : > { %14664 = vmatmul.mubr.msk.f32.gmra.mrb[14].mxu1 %vm4070_vm1, %v18011_v52  ;;  %14389 = vmatprep.mubr.msk.f32.mxu0 %vm4070_vm1, %v18002_v48  ;;  %v7167_v52 = vld [vmem:[#allocation2 + $0xd1] sm:$0xff] }
 0x3b8   : > { %14666 = vmatprep.mubr.msk.f32.mxu1 %vm4070_vm1, %v18030_v18  ;;  %v7162_v18 = vld [vmem:[#allocation2 + $0x89] sm:$0xff] }
 0x3ba   : > { %14390 = vmatmul.mubr.msk.f32.gmra.mrb[50].mxu0 %vm4070_vm1, %v18013_v53 }
 0x3bb   : > { %14667 = vmatmul.mubr.msk.f32.gmra.mrb[16].mxu1 %vm4070_vm1, %v18041_v15  ;;  %14392 = vmatprep.mubr.msk.f32.mxu0 %vm4070_vm1, %v18032_v6  ;;  %v20284_v15 = vld [vmem:[#allocation54_spill] sm:$0xff] }
 0x3bc   : > { %14669 = vmatprep.mubr.msk.f32.mxu1 %vm4070_vm1, %v18060_v58  ;;  %v20275_v58 = vld [vmem:[#allocation45_spill] sm:$0xff] }
 0x3be   : > { %14393 = vmatmul.mubr.msk.f32.gmra.mrb[52].mxu0 %vm4070_vm1, %v18043_v0 }
 0x3bf   : > { %14670 = vmatmul.mubr.msk.f32.gmra.mrb[18].mxu1 %vm4070_vm1, %v18071_v8  ;;  %14395 = vmatprep.mubr.msk.f32.mxu0 %vm4070_vm1, %v18062_v51  ;;  %v20285_v8 = vld [vmem:[#allocation55_spill] sm:$0xff] }
 0x3c0   : > { %14672 = vmatprep.mubr.msk.f32.mxu1 %vm4070_vm1, %v18090_v13  ;;  %v20271_v13 = vld [vmem:[#allocation38_spill] sm:$0xff] }
 0x3c2   : > { %14396 = vmatmul.mubr.msk.f32.gmra.mrb[54].mxu0 %vm4070_vm1, %v18073_v62 }
 0x3c3   : > { %14673 = vmatmul.mubr.msk.f32.gmra.mrb[20].mxu1 %vm4070_vm1, %v18101_v36  ;;  %14398 = vmatprep.mubr.msk.f32.mxu0 %vm4070_vm1, %v18092_v29  ;;  %v20286_v36 = vld [vmem:[#allocation56_spill] sm:$0xff] }
 0x3c4   : > { %14675 = vmatprep.mubr.msk.f32.mxu1 %vm4070_vm1, %v18120_v16  ;;  %v20270_v16 = vld [vmem:[#allocation39_spill] sm:$0xff] }
 0x3c6   : > { %14399 = vmatmul.mubr.msk.f32.gmra.mrb[56].mxu0 %vm4070_vm1, %v18103_v35 }
 0x3c7   : > { %14676 = vmatmul.mubr.msk.f32.gmra.mrb[22].mxu1 %vm4070_vm1, %v18131_v55  ;;  %14401 = vmatprep.mubr.msk.f32.mxu0 %vm4070_vm1, %v18122_v56  ;;  %v20287_v55 = vld [vmem:[#allocation57_spill] sm:$0xff] }
 0x3c8   : > { %14678 = vmatprep.mubr.msk.f32.mxu1 %vm4070_vm1, %v18144_v61  ;;  %v20288_v61 = vld [vmem:[#allocation58_spill] sm:$0xff] }
 0x3ca   : > { %14402 = vmatmul.mubr.msk.f32.gmra.mrb[58].mxu0 %vm4070_vm1, %v20267_v30 }
 0x3cb   : > { %14679 = vmatmul.mubr.msk.f32.gmra.mrb[24].mxu1 %vm4070_vm1, %v20268_v37  ;;  %14404 = vmatprep.mubr.msk.f32.mxu0 %vm4070_vm1, %v20269_v14  ;;  %v5605_v37 = vld [vmem:[#allocation2 + $0x90] sm:$0xff] }
 0x3cc   : > { %14681 = vmatprep.mubr.msk.f32.mxu1 %vm4070_vm1, %v20270_v16 }
 0x3ce   : > { %14405 = vmatmul.mubr.msk.f32.gmra.mrb[60].mxu0 %vm4070_vm1, %v20271_v13 }
 0x3cf   : > { %14682 = vmatmul.mubr.msk.f32.gmra.mrb[26].mxu1 %vm4070_vm1, %v20272_v25  ;;  %14407 = vmatprep.mubr.msk.f32.mxu0 %vm4070_vm1, %v20273_v40 }
 0x3d0   : > { %14684 = vmatprep.mubr.msk.f32.mxu1 %vm4070_vm1, %v18542_v26 }
 0x3d2   : > { %14408 = vmatmul.mubr.msk.f32.gmra.mrb[62].mxu0 %vm4070_vm1, %v20274_v45 }
 0x3d3   : > { %14685 = vmatmul.mubr.msk.f32.gmra.mrb[28].mxu1 %vm4070_vm1, %v18548_v63  ;;  %14418 = vmatprep.mubr.msk.f32.mxu0 %vm4070_vm1, %v20275_v58  ;;  %v5613_v58 = vld [vmem:[#allocation2 + $0x110] sm:$0xff] }
 0x3d4   : > { %14687 = vmatprep.mubr.msk.f32.mxu1 %vm4070_vm1, %v6798_v17  ;;  %v5609_v17 = vld [vmem:[#allocation2 + $0xd0] sm:$0xff] }
 0x3d6   : > { %14419 = vmatmul.mubr.msk.f32.vlgmr.msra.gmra.mrb[32].mxu0 %vm4070_vm1, %v18214_v49  ;;  %v20303_v49 = vld [vmem:[#allocation73_spill] sm:$0xff] }
 0x3d7   : > { %14688 = vmatmul.mubr.msk.f32.gmra.mrb[30].mxu1 %vm4070_vm1, %v6799_v21  ;;  %14421 = vmatprep.mubr.msk.f32.mxu0 %vm4070_vm1, %v18210_v20  ;;  %v7161_v20 = vld [vmem:[#allocation2 + $0x71] sm:$0xff]  ;;  %v5614_v21 = vld [vmem:[#allocation2 + $0x128] sm:$0xff] }
 0x3d8   : > { %15449 = vmatpush3.bf16.msra.mxu0 %v18430_v24  ;;  %14698 = vmatprep.mubr.msk.f32.mxu1 %vm4070_vm1, %v7158_v27  ;;  %v5601_v24 = vld [vmem:[#allocation2 + $0x50] sm:$0xff]  ;;  %v5616_v27 = vld [vmem:[#allocation2 + $0x148] sm:$0xff] }
 0x3d9   : > { %15451 = vmatprep.subr.bf16.mxu0 %v15450_v22 }
 0x3da   : > { %14422 = vmatmul.mubr.msk.f32.gmra.mrb[34].mxu0 %vm4070_vm1, %v20276_v4  ;;  %v12319_v4 = vld [vmem:[%s19911_s5 + $0x28] sm:$0xff] }
 0x3db   : > { %14699 = vmatmul.mubr.msk.f32.vlgmr.msra.gmra.mrb[0].mxu1 %vm4070_vm1, %v7159_v31  ;;  %14424 = vmatprep.mubr.msk.f32.mxu0 %vm4070_vm1, %v20277_v38  ;;  %v12318_v31 = vld [vmem:[%s19911_s5 + $0x20] sm:$0xff]  ;;  %v5617_v38 = vld [vmem:[#allocation2 + $0x150] sm:$0xff] }
 0x3dc   : > { %14701 = vmatprep.mubr.msk.f32.mxu1 %vm4070_vm1, %v7160_v33  ;;  %15453 = vmatpush3.bf16.msra.mxu0 %v15450_v22  ;;  %v5615_v22 = vld [vmem:[#allocation2 + $0x130] sm:$0xff]  ;;  %v15486_v33 = vpack.c.bf16 %v12319_v4, %v12318_v31 }
 0x3de   : > { %14425 = vmatmul.mubr.msk.f32.gmra.mrb[36].mxu0 %vm4070_vm1, %v20278_v39  ;;  %15487 = vmatprep.subr.bf16.mxu1 %v15486_v33  ;;  %v5619_v39 = vld [vmem:[#allocation2 + $0x170] sm:$0xff] }
 0x3df   : > { %14702 = vmatmul.mubr.msk.f32.gmra.mrb[2].mxu1 %vm4070_vm1, %v7161_v20  ;;  %14427 = vmatprep.mubr.msk.f32.mxu0 %vm4070_vm1, %v20279_v28  ;;  %v5618_v20 = vld [vmem:[#allocation2 + $0x168] sm:$0xff]  ;;  %v5621_v28 = vld [vmem:[#allocation2 + $0x190] sm:$0xff] }
 0x3e0   : > { %14704 = vmatprep.mubr.msk.f32.mxu1 %vm4070_vm1, %v7162_v18  ;;  %15489 = vmatpush3.bf16.msra.mxu1 %v15486_v33  ;;  %v5620_v18 = vld [vmem:[#allocation2 + $0x188] sm:$0xff] }
 0x3e2   : > { %14428 = vmatmul.mubr.msk.f32.gmra.mrb[38].mxu0 %vm4070_vm1, %v20280_v46  ;;  %v5623_v46 = vld [vmem:[#allocation2 + $0x1b0] sm:$0xff] }
 0x3e3   : > { %14705 = vmatmul.mubr.msk.f32.gmra.mrb[4].mxu1 %vm4070_vm1, %v7163_v32  ;;  %14430 = vmatprep.mubr.msk.f32.mxu0 %vm4070_vm1, %v20281_v57  ;;  %v5622_v32 = vld [vmem:[#allocation2 + $0x1a8] sm:$0xff]  ;;  %v5625_v57 = vld [vmem:[#allocation2 + $0x1d0] sm:$0xff] }
 0x3e4   : > { %14707 = vmatprep.mubr.msk.f32.mxu1 %vm4070_vm1, %v7164_v50  ;;  %v5624_v50 = vld [vmem:[#allocation2 + $0x1c8] sm:$0xff] }
 0x3e6   : > { %14431 = vmatmul.mubr.msk.f32.gmra.mrb[40].mxu0 %vm4070_vm1, %v20282_v11  ;;  %v12321_v11 = vld [vmem:[%s19911_s5 + $0x38] sm:$0xff] }
 0x3e7   : > { %14708 = vmatmul.mubr.msk.f32.gmra.mrb[6].mxu1 %vm4070_vm1, %v7165_v10  ;;  %14433 = vmatprep.mubr.msk.f32.mxu0 %vm4070_vm1, %v20283_v19  ;;  %v12320_v10 = vld [vmem:[%s19911_s5 + $0x30] sm:$0xff] }
 0x3e8   : > { %14710 = vmatprep.mubr.msk.f32.mxu1 %vm4070_vm1, %v7166_v60  ;;  %v15490_v60 = vpack.c.bf16 %v12321_v11, %v12320_v10 }
 0x3ea   : > { %14434 = vmatmul.mubr.msk.f32.gmra.mrb[42].mxu0 %vm4070_vm1, %v20284_v15  ;;  %15491 = vmatprep.subr.bf16.mxu1 %v15490_v60  ;;  %v7750_v15 = vld [vmem:[%s19911_s5 + $0x18] sm:$0xff] }
 0x3eb   : > { %14711 = vmatmul.mubr.msk.f32.gmra.mrb[8].mxu1 %vm4070_vm1, %v7167_v52  ;;  %14436 = vmatprep.mubr.msk.f32.mxu0 %vm4070_vm1, %v20285_v8  ;;  %v7749_v52 = vld [vmem:[%s19911_s5 + $0x10] sm:$0xff] }
 0x3ec   : > { %14713 = vmatprep.mubr.msk.f32.mxu1 %vm4070_vm1, %v17942_v23  ;;  %v20290_v23 = vld [vmem:[#allocation60_spill] sm:$0xff]  ;;  %15493 = vmatpush3.bf16.msra.mxu1 %v15490_v60  ;;  %v15498_v8 = vpack.c.bf16 %v7750_v15, %v7749_v52 }
 0x3ee   : > { %14437 = vmatmul.mubr.msk.f32.gmra.mrb[44].mxu0 %vm4070_vm1, %v20286_v36 }
 0x3ef   : > { %14714 = vmatmul.mubr.msk.f32.gmra.mrb[10].mxu1 %vm4070_vm1, %v17953_v5  ;;  %14439 = vmatprep.mubr.msk.f32.mxu0 %vm4070_vm1, %v20287_v55  ;;  %v20291_v5 = vld [vmem:[#allocation61_spill] sm:$0xff] }
 0x3f0   : > { %14716 = vmatprep.mubr.msk.f32.mxu1 %vm4070_vm1, %v17972_v43  ;;  %v20292_v43 = vld [vmem:[#allocation62_spill] sm:$0xff] }
 0x3f2   : > { %14440 = vmatmul.mubr.msk.f32.gmra.mrb[46].mxu0 %vm4070_vm1, %v20288_v61 }
 0x3f3   : > { %14717 = vmatmul.mubr.msk.f32.gmra.mrb[12].mxu1 %vm4070_vm1, %v17983_v2  ;;  %14442 = vmatprep.mubr.msk.f32.mxu0 %vm4070_vm1, %v20289_v54  ;;  %v20293_v2 = vld [vmem:[#allocation63_spill] sm:$0xff] }
 0x3f4   : > { %14719 = vmatprep.mubr.msk.f32.mxu1 %vm4070_vm1, %v18002_v48  ;;  %v20294_v48 = vld [vmem:[#allocation64_spill] sm:$0xff] }
 0x3f6   : > { %14443 = vmatmul.mubr.msk.f32.gmra.mrb[48].mxu0 %vm4070_vm1, %v20290_v23 }
 0x3f7   : > { %14720 = vmatmul.mubr.msk.f32.gmra.mrb[14].mxu1 %vm4070_vm1, %v18013_v53  ;;  %14445 = vmatprep.mubr.msk.f32.mxu0 %vm4070_vm1, %v20291_v5  ;;  %v20295_v53 = vld [vmem:[#allocation65_spill] sm:$0xff] }
 0x3f8   : > { %14722 = vmatprep.mubr.msk.f32.mxu1 %vm4070_vm1, %v18032_v6  ;;  %v20296_v6 = vld [vmem:[#allocation66_spill] sm:$0xff] }
 0x3fa   : > { %14446 = vmatmul.mubr.msk.f32.gmra.mrb[50].mxu0 %vm4070_vm1, %v20292_v43  ;;  %v12386_v43 = vld [vmem:[%s19911_s5 + $0x40] sm:$0xff] }
 0x3fb   : > { %14723 = vmatmul.mubr.msk.f32.gmra.mrb[16].mxu1 %vm4070_vm1, %v18043_v0  ;;  %14448 = vmatprep.mubr.msk.f32.mxu0 %vm4070_vm1, %v20293_v2  ;;  %v20297_v0 = vld [vmem:[#allocation67_spill] sm:$0xff]  ;;  %v12387_v2 = vld [vmem:[%s19911_s5 + $0x48] sm:$0xff] }
 0x3fc   : > { %14725 = vmatprep.mubr.msk.f32.mxu1 %vm4070_vm1, %v18062_v51  ;;  %v20298_v51 = vld [vmem:[#allocation68_spill] sm:$0xff] }
 0x3fe   : > { %14449 = vmatmul.mubr.msk.f32.gmra.mrb[52].mxu0 %vm4070_vm1, %v20294_v48  ;;  %v18747_v48 = vpack.c.bf16 %v12387_v2, %v12386_v43 }
 0x3ff   : > { %14726 = vmatmul.mubr.msk.f32.gmra.mrb[18].mxu1 %vm4070_vm1, %v18073_v62  ;;  %14451 = vmatprep.mubr.msk.f32.mxu0 %vm4070_vm1, %v20295_v53  ;;  %v20299_v62 = vld [vmem:[#allocation69_spill] sm:$0xff] }
 0x400   : > { %14728 = vmatprep.mubr.msk.f32.mxu1 %vm4070_vm1, %v18092_v29  ;;  %v20300_v29 = vld [vmem:[#allocation70_spill] sm:$0xff] }
 0x402   : > { %14452 = vmatmul.mubr.msk.f32.gmra.mrb[54].mxu0 %vm4070_vm1, %v20296_v6 }
 0x403   : > { %14729 = vmatmul.mubr.msk.f32.gmra.mrb[20].mxu1 %vm4070_vm1, %v18103_v35  ;;  %14454 = vmatprep.mubr.msk.f32.mxu0 %vm4070_vm1, %v20297_v0  ;;  %v20301_v35 = vld [vmem:[#allocation71_spill] sm:$0xff] }
 0x404   : > { %14731 = vmatprep.mubr.msk.f32.mxu1 %vm4070_vm1, %v18122_v56  ;;  %v20302_v56 = vld [vmem:[#allocation72_spill] sm:$0xff] }
 0x406   : > { %14455 = vmatmul.mubr.msk.f32.gmra.mrb[56].mxu0 %vm4070_vm1, %v20298_v51 }
 0x407   : > { %14732 = vmatmul.mubr.msk.f32.gmra.mrb[22].mxu1 %vm4070_vm1, %v20267_v30  ;;  %14457 = vmatprep.mubr.msk.f32.mxu0 %vm4070_vm1, %v20299_v62  ;;  %v5604_v30 = vld [vmem:[#allocation2 + $0x88] sm:$0xff] }
 0x408   : > { %14734 = vmatprep.mubr.msk.f32.mxu1 %vm4070_vm1, %v20269_v14  ;;  %v5606_v14 = vld [vmem:[#allocation2 + $0xa8] sm:$0xff] }
 0x40a   : > { %14458 = vmatmul.mubr.msk.f32.gmra.mrb[58].mxu0 %vm4070_vm1, %v20300_v29 }
 0x40b   : > { %14735 = vmatmul.mubr.msk.f32.gmra.mrb[24].mxu1 %vm4070_vm1, %v20271_v13  ;;  %14460 = vmatprep.mubr.msk.f32.mxu0 %vm4070_vm1, %v20301_v35  ;;  %v5607_v13 = vld [vmem:[#allocation2 + $0xb0] sm:$0xff] }
 0x40c   : > { %14737 = vmatprep.mubr.msk.f32.mxu1 %vm4070_vm1, %v20273_v40  ;;  %v5608_v40 = vld [vmem:[#allocation2 + $0xc8] sm:$0xff] }
 0x40e   : > { %14461 = vmatmul.mubr.msk.f32.gmra.mrb[60].mxu0 %vm4070_vm1, %v20302_v56 }
 0x40f   : > { %14738 = vmatmul.mubr.msk.f32.gmra.mrb[26].mxu1 %vm4070_vm1, %v20274_v45  ;;  %14463 = vmatprep.mubr.msk.f32.mxu0 %vm4070_vm1, %v20303_v49  ;;  %v5612_v45 = vld [vmem:[#allocation2 + $0x108] sm:$0xff] }
 0x410   : > { %14740 = vmatprep.mubr.msk.f32.mxu1 %vm4070_vm1, %v20304_v42 }
 0x412   : > { %14464 = vmatmul.mubr.msk.f32.gmra.mrb[62].mxu0 %vm4070_vm1, %v18397_v47  ;;  %v5602_v47 = vld [vmem:[#allocation2 + $0x68] sm:$0xff] }
 0x413   : > { %14741 = vmatmul.mubr.msk.f32.gmra.mrb[28].mxu1 %vm4070_vm1, %v20305_v34  ;;  %14474 = vmatprep.mubr.msk.f32.mxu0 %vm4070_vm1, %v5598_v12 }
 0x414   : > { %14743 = vmatprep.mubr.msk.f32.mxu1 %vm4070_vm1, %v7188_v7 }
 0x416   : > { %14475 = vmatmul.mubr.msk.f32.vlgmr.msra.gmra.mrb[32].mxu0 %vm4070_vm1, %v5599_v59 }
 0x417   : > { %14744 = vmatmul.mubr.msk.f32.gmra.mrb[30].mxu1 %vm4070_vm1, %v7189_v9  ;;  %14477 = vmatprep.mubr.msk.f32.mxu0 %vm4070_vm1, %v5600_v41 }
 0x41a   : > { %14478 = vmatmul.mubr.msk.f32.gmra.mrb[34].mxu0 %vm4070_vm1, %v5601_v24 }
 0x41b   : > { %14480 = vmatprep.mubr.msk.f32.mxu0 %vm4070_vm1, %v5602_v47 }
 0x41e   : > { %14481 = vmatmul.mubr.msk.f32.gmra.mrb[36].mxu0 %vm4070_vm1, %v5603_v44 }
 0x41f   : > { %14483 = vmatprep.mubr.msk.f32.mxu0 %vm4070_vm1, %v5604_v30 }
 0x422   : > { %14484 = vmatmul.mubr.msk.f32.gmra.mrb[38].mxu0 %vm4070_vm1, %v5605_v37 }
 0x423   : > { %14486 = vmatprep.mubr.msk.f32.mxu0 %vm4070_vm1, %v5606_v14 }
 0x426   : > { %14487 = vmatmul.mubr.msk.f32.gmra.mrb[40].mxu0 %vm4070_vm1, %v5607_v13 }
 0x427   : > { %14489 = vmatprep.mubr.msk.f32.mxu0 %vm4070_vm1, %v5608_v40 }
 0x42a   : > { %14490 = vmatmul.mubr.msk.f32.gmra.mrb[42].mxu0 %vm4070_vm1, %v5609_v17 }
 0x42b   : > { %14492 = vmatprep.mubr.msk.f32.mxu0 %vm4070_vm1, %v5610_v1  ;;  %v18801_v1 = vld [vmem:[%s19910_s4] ss:$0 sm:$0xff] }
 0x42e   : > { %14493 = vmatmul.mubr.msk.f32.gmra.mrb[44].mxu0 %vm4070_vm1, %v5611_v3 }
 0x42f   : > { %14495 = vmatprep.mubr.msk.f32.mxu0 %vm4070_vm1, %v5612_v45 }
 0x432   : > { %14496 = vmatmul.mubr.msk.f32.gmra.mrb[46].mxu0 %vm4070_vm1, %v5613_v58 }
 0x433   : > { %14498 = vmatprep.mubr.msk.f32.mxu0 %vm4070_vm1, %v5614_v21 }
 0x436   : > { %14499 = vmatmul.mubr.msk.f32.gmra.mrb[48].mxu0 %vm4070_vm1, %v5615_v22 }
 0x437   : > { %14501 = vmatprep.mubr.msk.f32.mxu0 %vm4070_vm1, %v5616_v27 }
 0x43a   : > { %14502 = vmatmul.mubr.msk.f32.gmra.mrb[50].mxu0 %vm4070_vm1, %v5617_v38 }
 0x43b   : > { %14504 = vmatprep.mubr.msk.f32.mxu0 %vm4070_vm1, %v5618_v20 }
 0x43e   : > { %14505 = vmatmul.mubr.msk.f32.gmra.mrb[52].mxu0 %vm4070_vm1, %v5619_v39 }
 0x43f   : > { %14507 = vmatprep.mubr.msk.f32.mxu0 %vm4070_vm1, %v5620_v18 }
 0x442   : > { %14508 = vmatmul.mubr.msk.f32.gmra.mrb[54].mxu0 %vm4070_vm1, %v5621_v28 }
 0x443   : > { %14510 = vmatprep.mubr.msk.f32.mxu0 %vm4070_vm1, %v5622_v32 }
 0x446   : > { %14511 = vmatmul.mubr.msk.f32.gmra.mrb[56].mxu0 %vm4070_vm1, %v5623_v46 }
 0x447   : > { %14513 = vmatprep.mubr.msk.f32.mxu0 %vm4070_vm1, %v5624_v50 }
 0x44a   : > { %14514 = vmatmul.mubr.msk.f32.gmra.mrb[58].mxu0 %vm4070_vm1, %v5625_v57 }
 0x44b   : > { %14516 = vmatprep.mubr.msk.f32.mxu0 %vm4070_vm1, %v20270_v16  ;;  %v7751_v16 = vld [vmem:[#allocation2 + $0x8] sm:$0xff] }
 0x44c   : > { %14754 = vmatprep.mubr.msk.f32.mxu1 %vm4070_vm1, %v7751_v16 }
 0x44e   : > { %14517 = vmatmul.mubr.msk.f32.gmra.mrb[60].mxu0 %vm4070_vm1, %v20272_v25  ;;  %v7752_v25 = vld [vmem:[#allocation2 + $0x10] sm:$0xff] }
 0x44f   : > { %14519 = vmatprep.mubr.msk.f32.mxu0 %vm4070_vm1, %v18542_v26  ;;  %14755 = vmatmul.mubr.msk.f32.vlgmr.msra.gmra.mrb[32].mxu1 %vm4070_vm1, %v7752_v25  ;;  %v7747_v26 = vld [vmem:[%s19911_s5] sm:$0xff] }
 0x452   : > { %14520 = vmatmul.mubr.msk.f32.gmra.mrb[62].mxu0 %vm4070_vm1, %v18548_v63  ;;  %v7748_v63 = vld [vmem:[%s19911_s5 + $0x8] sm:$0xff] }
 0x453   : > { %v15494_v19 = vpack.c.bf16 %v7748_v63, %v7747_v26 }
 0x455   : > { %15495 = vmatprep.subr.bf16.mxu1 %v15494_v19 }
 0x456   : > { %15497 = vmatpush3.bf16.msra.mxu1 %v15494_v19 }
 0x457   : > { %15499 = vmatprep.subr.bf16.mxu1 %v15498_v8 }
 0x45a   : > { %15501 = vmatpush3.bf16.msra.mxu1 %v15498_v8 }
 0x45b   : > { %15503 = vmatprep.subr.bf16.mxu1 %v18747_v48 }
 0x4ae   : > { %v14700_v36 = vpop.f32.mrb[0].mxu1 }
 0x4af   : > { %v7357_v55 = vpop.f32.mrb[1].mxu1 }
 0x4b2   : > { %v14703_v61 = vpop.f32.mrb[2].mxu1 }
 0x4b3   : > { %v7367_v54 = vpop.f32.mrb[3].mxu1 }
 0x4b6   : > { %v14706_v23 = vpop.f32.mrb[4].mxu1 }
 0x4b7   : > { %v7377_v5 = vpop.f32.mrb[5].mxu1 }
 0x4ba   : > { %v18749_v53 = vpop.f32.mrb[6].mxu1 }
 0x4bb   : > { %v18751_v6 = vpop.f32.mrb[7].mxu1 }
 0x4be   : > { %v18754_v0 = vpop.f32.mrb[8].mxu1 }
 0x4bf   : > { %v18756_v51 = vpop.f32.mrb[9].mxu1 }
 0x4c2   : > { %v18758_v62 = vpop.f32.mrb[10].mxu1 }
 0x4c3   : > { %v18760_v29 = vpop.f32.mrb[11].mxu1 }
 0x4c6   : > { %v18762_v35 = vpop.f32.mrb[12].mxu1 }
 0x4c7   : > { %v18764_v56 = vpop.f32.mrb[13].mxu1 }
 0x4ca   : > { %v18766_v49 = vpop.f32.mrb[14].mxu1 }
 0x4cb   : > { %v18768_v42 = vpop.f32.mrb[15].mxu1 }
 0x4ce   : > { %v18770_v7 = vpop.f32.mrb[16].mxu1 }
 0x4cf   : > { %v18772_v34 = vpop.f32.mrb[17].mxu1 }
 0x4d2   : > { %v18774_v12 = vpop.f32.mrb[18].mxu1 }
 0x4d3   : > { %v18776_v9 = vpop.f32.mrb[19].mxu1 }
 0x4d6   : > { %v18778_v59 = vpop.f32.mrb[20].mxu1 }
 0x4d7   : > { %v18780_v41 = vpop.f32.mrb[21].mxu1 }
 0x4da   : > { %v18782_v24 = vpop.f32.mrb[22].mxu1 }
 0x4db   : > { %v18784_v47 = vpop.f32.mrb[23].mxu1 }
 0x4de   : > { %v18786_v44 = vpop.f32.mrb[24].mxu1 }
 0x4df   : > { %v18788_v30 = vpop.f32.mrb[25].mxu1 }
 0x4e2   : > { %v18790_v37 = vpop.f32.mrb[26].mxu1 }
 0x4e3   : > { %v18792_v14 = vpop.f32.mrb[27].mxu1 }
 0x4e6   : > { %v18794_v13 = vpop.f32.mrb[28].mxu1 }
 0x4e7   : > { %v18796_v40 = vpop.f32.mrb[29].mxu1 }
 0x4e9   : > { %v14476_v17 = vpop.f32.mrb[32].mxu0 }
 0x4ea   : > { %v18803_v3 = vpop.f32.mrb[30].mxu1  ;;  %v15566_v45 = vadd.f32 %v14700_v36, %v14476_v17  ;;  %v5797_v58 = vpop.f32.mrb[33].mxu0 }
 0x4eb   : > { %v18805_v21 = vpop.f32.mrb[31].mxu1  ;;  %v15567_v22 = vadd.f32 %v7357_v55, %v5797_v58 }
 0x4ec   : > { %v7556_v27 = vadd.f32 %v15566_v45, %v18801_v1 }
 0x4ed   : > { %v7555_v31 = vadd.f32 %v15567_v22, %v18801_v1  ;;  %v14479_v4 = vpop.f32.mrb[34].mxu0 }
 0x4ee   : > { %vm7588_vm4 = vcmp.gt.f32.partialorder %v7556_v27, 0.0  ;;  %v7620_v33 = vmul.f32 0.2, %v7556_v27  ;;  %v15568_v38 = vadd.f32 %v14703_v61, %v14479_v4  ;;  %v5807_v20 = vpop.f32.mrb[35].mxu0 }
 0x4ef   : > { %vm7587_vm5 = vcmp.gt.f32.partialorder %v7555_v31, 0.0  ;;  %v7619_v39 = vmul.f32 0.2, %v7555_v31  ;;  %v15569_v18 = vadd.f32 %v7367_v54, %v5807_v20 }
 0x4f0   : > { %v7652_v28 = vsel %vm7588_vm4, %v7556_v27, %v7620_v33  ;;  %v7558_v32 = vadd.f32 %v15568_v38, %v18801_v1 }
 0x4f1   : > { %7684 = vst.msk [vmem:[#allocation2 + $0x30] sm:$0xff] %vm4070_vm1, %v7652_v28  ;;  %v7651_v46 = vsel %vm7587_vm5, %v7555_v31, %v7619_v39  ;;  %v7557_v50 = vadd.f32 %v15569_v18, %v18801_v1  ;;  %v14482_v57 = vpop.f32.mrb[36].mxu0 }
 0x4f2   : > { %7683 = vst.msk [vmem:[#allocation2 + $0x28] sm:$0xff] %vm4070_vm1, %v7651_v46  ;;  %vm7590_vm6 = vcmp.gt.f32.partialorder %v7558_v32, 0.0  ;;  %v7622_v10 = vmul.f32 0.2, %v7558_v32  ;;  %v15570_v11 = vadd.f32 %v14706_v23, %v14482_v57  ;;  %v5817_v60 = vpop.f32.mrb[37].mxu0 }
 0x4f3   : > { %vm7589_vm7 = vcmp.gt.f32.partialorder %v7557_v50, 0.0  ;;  %v7621_v16 = vmul.f32 0.2, %v7557_v50  ;;  %v15571_v25 = vadd.f32 %v7377_v5, %v5817_v60 }
 0x4f4   : > { %v7654_v26 = vsel %vm7590_vm6, %v7558_v32, %v7622_v10  ;;  %v7560_v63 = vadd.f32 %v15570_v11, %v18801_v1 }
 0x4f5   : > { %7686 = vst.msk [vmem:[#allocation2 + $0x50] sm:$0xff] %vm4070_vm1, %v7654_v26  ;;  %v7653_v19 = vsel %vm7589_vm7, %v7557_v50, %v7621_v16  ;;  %v7559_v52 = vadd.f32 %v15571_v25, %v18801_v1  ;;  %v14485_v15 = vpop.f32.mrb[38].mxu0 }
 0x4f6   : > { %7685 = vst.msk [vmem:[#allocation2 + $0x48] sm:$0xff] %vm4070_vm1, %v7653_v19  ;;  %vm7592_vm8 = vcmp.gt.f32.partialorder %v7560_v63, 0.0  ;;  %v7624_v8 = vmul.f32 0.2, %v7560_v63  ;;  %v15572_v36 = vadd.f32 %v18749_v53, %v14485_v15  ;;  %v5827_v55 = vpop.f32.mrb[39].mxu0 }
 0x4f7   : > { %vm7591_vm9 = vcmp.gt.f32.partialorder %v7559_v52, 0.0  ;;  %v7623_v61 = vmul.f32 0.2, %v7559_v52  ;;  %v15573_v54 = vadd.f32 %v18751_v6, %v5827_v55 }
 0x4f8   : > { %v7656_v23 = vsel %vm7592_vm8, %v7560_v63, %v7624_v8  ;;  %v7562_v5 = vadd.f32 %v15572_v36, %v18801_v1  ;;  %v18828_v6 = vld [vmem:[#allocation2 + $0x30] sm:$0xff] }
 0x4f9   : > { %7688 = vst.msk [vmem:[#allocation2 + $0x70] sm:$0xff] %vm4070_vm1, %v7656_v23  ;;  %v7655_v43 = vsel %vm7591_vm9, %v7559_v52, %v7623_v61  ;;  %v7561_v2 = vadd.f32 %v15573_v54, %v18801_v1  ;;  %v14488_v17 = vpop.f32.mrb[40].mxu0  ;;  %v18822_v45 = vld [vmem:[#allocation2 + $0x28] sm:$0xff] }
 0x4fa   : > { %7687 = vst.msk [vmem:[#allocation2 + $0x68] sm:$0xff] %vm4070_vm1, %v7655_v43  ;;  %vm7594_vm10 = vcmp.gt.f32.partialorder %v7562_v5, 0.0  ;;  %v7626_v53 = vmul.f32 0.2, %v7562_v5  ;;  %v15574_v58 = vadd.f32 %v18754_v0, %v14488_v17  ;;  %v5837_v22 = vpop.f32.mrb[41].mxu0  ;;  %14757 = vmatprep.mubr.msk.f32.mxu1 %vm4070_vm1, %v18822_v45 }
 0x4fb   : > { %vm7593_vm11 = vcmp.gt.f32.partialorder %v7561_v2, 0.0  ;;  %v7625_v27 = vmul.f32 0.2, %v7561_v2  ;;  %v15575_v31 = vadd.f32 %v18756_v51, %v5837_v22  ;;  %14758 = vmatmul.mubr.msk.f32.gmra.mrb[34].mxu1 %vm4070_vm1, %v18828_v6 }
 0x4fc   : > { %v7658_v4 = vsel %vm7594_vm10, %v7562_v5, %v7626_v53  ;;  %v7564_v33 = vadd.f32 %v15574_v58, %v18801_v1  ;;  %v18842_v32 = vld [vmem:[#allocation2 + $0x50] sm:$0xff] }
 0x4fd   : > { %7690 = vst.msk [vmem:[#allocation2 + $0x90] sm:$0xff] %vm4070_vm1, %v7658_v4  ;;  %v7657_v38 = vsel %vm7593_vm11, %v7561_v2, %v7625_v27  ;;  %v7563_v0 = vadd.f32 %v15575_v31, %v18801_v1  ;;  %v14491_v20 = vpop.f32.mrb[42].mxu0  ;;  %v18836_v39 = vld [vmem:[#allocation2 + $0x48] sm:$0xff] }
 0x4fe   : > { %7689 = vst.msk [vmem:[#allocation2 + $0x88] sm:$0xff] %vm4070_vm1, %v7657_v38  ;;  %vm7596_vm12 = vcmp.gt.f32.partialorder %v7564_v33, 0.0  ;;  %v7628_v18 = vmul.f32 0.2, %v7564_v33  ;;  %v15576_v51 = vadd.f32 %v18758_v62, %v14491_v20  ;;  %v5847_v28 = vpop.f32.mrb[43].mxu0  ;;  %14760 = vmatprep.mubr.msk.f32.mxu1 %vm4070_vm1, %v18836_v39 }
 0x4ff   : > { %vm7595_vm13 = vcmp.gt.f32.partialorder %v7563_v0, 0.0  ;;  %v7627_v46 = vmul.f32 0.2, %v7563_v0  ;;  %v15577_v50 = vadd.f32 %v18760_v29, %v5847_v28  ;;  %14761 = vmatmul.mubr.msk.f32.gmra.mrb[36].mxu1 %vm4070_vm1, %v18842_v32 }
 0x500   : > { %v7660_v57 = vsel %vm7596_vm12, %v7564_v33, %v7628_v18  ;;  %v7566_v10 = vadd.f32 %v15576_v51, %v18801_v1  ;;  %v18856_v63 = vld [vmem:[#allocation2 + $0x70] sm:$0xff] }
 0x501   : > { %7692 = vst.msk [vmem:[#allocation2 + $0xb0] sm:$0xff] %vm4070_vm1, %v7660_v57  ;;  %v7659_v11 = vsel %vm7595_vm13, %v7563_v0, %v7627_v46  ;;  %v7565_v62 = vadd.f32 %v15577_v50, %v18801_v1  ;;  %v14494_v60 = vpop.f32.mrb[44].mxu0  ;;  %v18850_v16 = vld [vmem:[#allocation2 + $0x68] sm:$0xff] }
 0x502   : > { %7691 = vst.msk [vmem:[#allocation2 + $0xa8] sm:$0xff] %vm4070_vm1, %v7659_v11  ;;  %vm7598_vm14 = vcmp.gt.f32.partialorder %v7566_v10, 0.0  ;;  %v7630_v25 = vmul.f32 0.2, %v7566_v10  ;;  %v15578_v29 = vadd.f32 %v18762_v35, %v14494_v60  ;;  %v5857_v26 = vpop.f32.mrb[45].mxu0  ;;  %14763 = vmatprep.mubr.msk.f32.mxu1 %vm4070_vm1, %v18850_v16 }
 0x503   : > { %vm7597_vm15 = vcmp.gt.f32.partialorder %v7565_v62, 0.0  ;;  %v7629_v19 = vmul.f32 0.2, %v7565_v62  ;;  %v15579_v52 = vadd.f32 %v18764_v56, %v5857_v26  ;;  %14764 = vmatmul.mubr.msk.f32.gmra.mrb[38].mxu1 %vm4070_vm1, %v18856_v63 }
 0x504   : > { %v7662_v15 = vsel %vm7598_vm14, %v7566_v10, %v7630_v25  ;;  %v7568_v8 = vadd.f32 %v15578_v29, %v18801_v1  ;;  %v18870_v5 = vld [vmem:[#allocation2 + $0x90] sm:$0xff] }
 0x505   : > { %7694 = vst.msk [vmem:[#allocation2 + $0xd0] sm:$0xff] %vm4070_vm1, %v7662_v15  ;;  %v7661_v36 = vsel %vm7597_vm15, %v7565_v62, %v7629_v19  ;;  %v7567_v35 = vadd.f32 %v15579_v52, %v18801_v1  ;;  %v14497_v55 = vpop.f32.mrb[46].mxu0  ;;  %v18864_v61 = vld [vmem:[#allocation2 + $0x88] sm:$0xff] }
 0x506   : > { %7693 = vst.msk [vmem:[#allocation2 + $0xc8] sm:$0xff] %vm4070_vm1, %v7661_v36  ;;  %vm7600_vm0 = vcmp.gt.f32.partialorder %v7568_v8, 0.0  ;;  %v7632_v54 = vmul.f32 0.2, %v7568_v8  ;;  %v15580_v56 = vadd.f32 %v18766_v49, %v14497_v55  ;;  %v5867_v23 = vpop.f32.mrb[47].mxu0  ;;  %14766 = vmatprep.mubr.msk.f32.mxu1 %vm4070_vm1, %v18864_v61 }
 0x507   : > { %vm7599_vm2 = vcmp.gt.f32.partialorder %v7567_v35, 0.0  ;;  %v7631_v43 = vmul.f32 0.2, %v7567_v35  ;;  %v15581_v2 = vadd.f32 %v18768_v42, %v5867_v23  ;;  %14767 = vmatmul.mubr.msk.f32.gmra.mrb[40].mxu1 %vm4070_vm1, %v18870_v5 }
 0x508   : > { %v7664_v17 = vsel %vm7600_vm0, %v7568_v8, %v7632_v54  ;;  %v7570_v53 = vadd.f32 %v15580_v56, %v18801_v1  ;;  %v18884_v33 = vld [vmem:[#allocation2 + $0xb0] sm:$0xff] }
 0x509   : > { %7696 = vst.msk [vmem:[#allocation2 + $0xf0] sm:$0xff] %vm4070_vm1, %v7664_v17  ;;  %v7663_v58 = vsel %vm7599_vm2, %v7567_v35, %v7631_v43  ;;  %v7569_v49 = vadd.f32 %v15581_v2, %v18801_v1  ;;  %v14500_v22 = vpop.f32.mrb[48].mxu0  ;;  %v18878_v27 = vld [vmem:[#allocation2 + $0xa8] sm:$0xff] }
 0x50a   : > { %7695 = vst.msk [vmem:[#allocation2 + $0xe8] sm:$0xff] %vm4070_vm1, %v7663_v58  ;;  %vm7602_vm3 = vcmp.gt.f32.partialorder %v7570_v53, 0.0  ;;  %v7634_v31 = vmul.f32 0.2, %v7570_v53  ;;  %v15582_v42 = vadd.f32 %v18770_v7, %v14500_v22  ;;  %v5877_v4 = vpop.f32.mrb[49].mxu0  ;;  %14769 = vmatprep.mubr.msk.f32.mxu1 %vm4070_vm1, %v18878_v27 }
 0x50b   : > { %vm7601_vm4 = vcmp.gt.f32.partialorder %v7569_v49, 0.0  ;;  %v7633_v38 = vmul.f32 0.2, %v7569_v49  ;;  %v15583_v0 = vadd.f32 %v18772_v34, %v5877_v4  ;;  %14770 = vmatmul.mubr.msk.f32.gmra.mrb[42].mxu1 %vm4070_vm1, %v18884_v33 }
 0x50c   : > { %v7666_v20 = vsel %vm7602_vm3, %v7570_v53, %v7634_v31  ;;  %v7572_v18 = vadd.f32 %v15582_v42, %v18801_v1  ;;  %v18898_v10 = vld [vmem:[#allocation2 + $0xd0] sm:$0xff] }
 0x50d   : > { %7698 = vst.msk [vmem:[#allocation2 + $0x110] sm:$0xff] %vm4070_vm1, %v7666_v20  ;;  %v7665_v51 = vsel %vm7601_vm4, %v7569_v49, %v7633_v38  ;;  %v7571_v7 = vadd.f32 %v15583_v0, %v18801_v1  ;;  %v14503_v28 = vpop.f32.mrb[50].mxu0  ;;  %v18892_v46 = vld [vmem:[#allocation2 + $0xc8] sm:$0xff] }
 0x50e   : > { %7697 = vst.msk [vmem:[#allocation2 + $0x108] sm:$0xff] %vm4070_vm1, %v7665_v51  ;;  %vm7604_vm5 = vcmp.gt.f32.partialorder %v7572_v18, 0.0  ;;  %v7636_v50 = vmul.f32 0.2, %v7572_v18  ;;  %v15584_v34 = vadd.f32 %v18774_v12, %v14503_v28  ;;  %v5887_v57 = vpop.f32.mrb[51].mxu0  ;;  %14772 = vmatprep.mubr.msk.f32.mxu1 %vm4070_vm1, %v18892_v46 }
 0x50f   : > { %vm7603_vm6 = vcmp.gt.f32.partialorder %v7571_v7, 0.0  ;;  %v7635_v11 = vmul.f32 0.2, %v7571_v7  ;;  %v15585_v62 = vadd.f32 %v18776_v9, %v5887_v57  ;;  %14773 = vmatmul.mubr.msk.f32.gmra.mrb[44].mxu1 %vm4070_vm1, %v18898_v10 }
 0x510   : > { %v7668_v60 = vsel %vm7604_vm5, %v7572_v18, %v7636_v50  ;;  %v7574_v25 = vadd.f32 %v15584_v34, %v18801_v1  ;;  %v18912_v8 = vld [vmem:[#allocation2 + $0xf0] sm:$0xff] }
 0x511   : > { %7700 = vst.msk [vmem:[#allocation2 + $0x130] sm:$0xff] %vm4070_vm1, %v7668_v60  ;;  %v7667_v29 = vsel %vm7603_vm6, %v7571_v7, %v7635_v11  ;;  %v7573_v12 = vadd.f32 %v15585_v62, %v18801_v1  ;;  %v14506_v26 = vpop.f32.mrb[52].mxu0  ;;  %v18906_v19 = vld [vmem:[#allocation2 + $0xe8] sm:$0xff] }
 0x512   : > { %7699 = vst.msk [vmem:[#allocation2 + $0x128] sm:$0xff] %vm4070_vm1, %v7667_v29  ;;  %vm7606_vm7 = vcmp.gt.f32.partialorder %v7574_v25, 0.0  ;;  %v7638_v52 = vmul.f32 0.2, %v7574_v25  ;;  %v15586_v9 = vadd.f32 %v18778_v59, %v14506_v26  ;;  %v5897_v15 = vpop.f32.mrb[53].mxu0  ;;  %14775 = vmatprep.mubr.msk.f32.mxu1 %vm4070_vm1, %v18906_v19 }
 0x513   : > { %vm7605_vm8 = vcmp.gt.f32.partialorder %v7573_v12, 0.0  ;;  %v7637_v36 = vmul.f32 0.2, %v7573_v12  ;;  %v15587_v35 = vadd.f32 %v18780_v41, %v5897_v15  ;;  %14776 = vmatmul.mubr.msk.f32.gmra.mrb[46].mxu1 %vm4070_vm1, %v18912_v8 }
 0x514   : > { %v7670_v55 = vsel %vm7606_vm7, %v7574_v25, %v7638_v52  ;;  %v7576_v54 = vadd.f32 %v15586_v9, %v18801_v1  ;;  %v18926_v53 = vld [vmem:[#allocation2 + $0x110] sm:$0xff] }
 0x515   : > { %7702 = vst.msk [vmem:[#allocation2 + $0x150] sm:$0xff] %vm4070_vm1, %v7670_v55  ;;  %v7669_v56 = vsel %vm7605_vm8, %v7573_v12, %v7637_v36  ;;  %v7575_v59 = vadd.f32 %v15587_v35, %v18801_v1  ;;  %v14509_v23 = vpop.f32.mrb[54].mxu0  ;;  %v18920_v43 = vld [vmem:[#allocation2 + $0x108] sm:$0xff] }
 0x516   : > { %7701 = vst.msk [vmem:[#allocation2 + $0x148] sm:$0xff] %vm4070_vm1, %v7669_v56  ;;  %vm7608_vm9 = vcmp.gt.f32.partialorder %v7576_v54, 0.0  ;;  %v7640_v2 = vmul.f32 0.2, %v7576_v54  ;;  %v15588_v41 = vadd.f32 %v18782_v24, %v14509_v23  ;;  %v5907_v17 = vpop.f32.mrb[55].mxu0  ;;  %14778 = vmatprep.mubr.msk.f32.mxu1 %vm4070_vm1, %v18920_v43 }
 0x517   : > { %vm7607_vm10 = vcmp.gt.f32.partialorder %v7575_v59, 0.0  ;;  %v7639_v58 = vmul.f32 0.2, %v7575_v59  ;;  %v15589_v49 = vadd.f32 %v18784_v47, %v5907_v17  ;;  %14779 = vmatmul.mubr.msk.f32.gmra.mrb[48].mxu1 %vm4070_vm1, %v18926_v53 }
 0x518   : > { %v7672_v22 = vsel %vm7608_vm9, %v7576_v54, %v7640_v2  ;;  %v7578_v31 = vadd.f32 %v15588_v41, %v18801_v1  ;;  %v18940_v18 = vld [vmem:[#allocation2 + $0x130] sm:$0xff] }
 0x519   : > { %7704 = vst.msk [vmem:[#allocation2 + $0x170] sm:$0xff] %vm4070_vm1, %v7672_v22  ;;  %v7671_v42 = vsel %vm7607_vm10, %v7575_v59, %v7639_v58  ;;  %v7577_v24 = vadd.f32 %v15589_v49, %v18801_v1  ;;  %v14512_v4 = vpop.f32.mrb[56].mxu0  ;;  %v18934_v38 = vld [vmem:[#allocation2 + $0x128] sm:$0xff] }
 0x51a   : > { %7703 = vst.msk [vmem:[#allocation2 + $0x168] sm:$0xff] %vm4070_vm1, %v7671_v42  ;;  %vm7610_vm11 = vcmp.gt.f32.partialorder %v7578_v31, 0.0  ;;  %v7642_v0 = vmul.f32 0.2, %v7578_v31  ;;  %v15590_v47 = vadd.f32 %v18786_v44, %v14512_v4  ;;  %v5917_v20 = vpop.f32.mrb[57].mxu0  ;;  %14781 = vmatprep.mubr.msk.f32.mxu1 %vm4070_vm1, %v18934_v38 }
 0x51b   : > { %vm7609_vm12 = vcmp.gt.f32.partialorder %v7577_v24, 0.0  ;;  %v7641_v51 = vmul.f32 0.2, %v7577_v24  ;;  %v15591_v7 = vadd.f32 %v18788_v30, %v5917_v20  ;;  %14782 = vmatmul.mubr.msk.f32.gmra.mrb[50].mxu1 %vm4070_vm1, %v18940_v18 }
 0x51c   : > { %v7674_v28 = vsel %vm7610_vm11, %v7578_v31, %v7642_v0  ;;  %v7580_v50 = vadd.f32 %v15590_v47, %v18801_v1  ;;  %v18954_v25 = vld [vmem:[#allocation2 + $0x150] sm:$0xff] }
 0x51d   : > { %7706 = vst.msk [vmem:[#allocation2 + $0x190] sm:$0xff] %vm4070_vm1, %v7674_v28  ;;  %v7673_v34 = vsel %vm7609_vm12, %v7577_v24, %v7641_v51  ;;  %v7579_v44 = vadd.f32 %v15591_v7, %v18801_v1  ;;  %v14515_v57 = vpop.f32.mrb[58].mxu0  ;;  %v18948_v11 = vld [vmem:[#allocation2 + $0x148] sm:$0xff] }
 0x51e   : > { %7705 = vst.msk [vmem:[#allocation2 + $0x188] sm:$0xff] %vm4070_vm1, %v7673_v34  ;;  %vm7612_vm13 = vcmp.gt.f32.partialorder %v7580_v50, 0.0  ;;  %v7644_v62 = vmul.f32 0.2, %v7580_v50  ;;  %v15592_v30 = vadd.f32 %v18790_v37, %v14515_v57  ;;  %v5927_v60 = vpop.f32.mrb[59].mxu0  ;;  %14784 = vmatprep.mubr.msk.f32.mxu1 %vm4070_vm1, %v18948_v11  ;;  %v7715_v57 = vld [vmem:[#allocation2 + $0x7] sm:$0xff] }
 0x51f   : > { %vm7611_vm14 = vcmp.gt.f32.partialorder %v7579_v44, 0.0  ;;  %v7643_v29 = vmul.f32 0.2, %v7579_v44  ;;  %v15593_v12 = vadd.f32 %v18792_v14, %v5927_v60  ;;  %14785 = vmatmul.mubr.msk.f32.gmra.mrb[52].mxu1 %vm4070_vm1, %v18954_v25  ;;  %v12389_v60 = vld [vmem:[%s19911_s5 + $0x58] sm:$0xff] }
 0x520   : > { %v7676_v26 = vsel %vm7612_vm13, %v7580_v50, %v7644_v62  ;;  %v7582_v52 = vadd.f32 %v15592_v30, %v18801_v1  ;;  %v18968_v54 = vld [vmem:[#allocation2 + $0x170] sm:$0xff] }
 0x521   : > { %7708 = vst.msk [vmem:[#allocation2 + $0x1b0] sm:$0xff] %vm4070_vm1, %v7676_v26  ;;  %v7675_v9 = vsel %vm7611_vm14, %v7579_v44, %v7643_v29  ;;  %v7581_v37 = vadd.f32 %v15593_v12, %v18801_v1  ;;  %v14518_v15 = vpop.f32.mrb[60].mxu0  ;;  %v18962_v36 = vld [vmem:[#allocation2 + $0x168] sm:$0xff]  ;;  %v12388_v30 = vld [vmem:[%s19911_s5 + $0x50] sm:$0xff]  ;;  %v12422_v26 = vld [vmem:[%s19911_s5 + $0x60] sm:$0xff] }
 0x522   : > { %7707 = vst.msk [vmem:[#allocation2 + $0x1a8] sm:$0xff] %vm4070_vm1, %v7675_v9  ;;  %vm7614_vm15 = vcmp.gt.f32.partialorder %v7582_v52, 0.0  ;;  %v7646_v35 = vmul.f32 0.2, %v7582_v52  ;;  %v15594_v14 = vadd.f32 %v18794_v13, %v14518_v15  ;;  %v5937_v55 = vpop.f32.mrb[61].mxu0  ;;  %14787 = vmatprep.mubr.msk.f32.mxu1 %vm4070_vm1, %v18962_v36  ;;  %v7716_v29 = vld [vmem:[#allocation2 + $0xf] sm:$0xff]  ;;  %v15506_v12 = vpack.c.bf16 %v12389_v60, %v12388_v30 }
 0x523   : > { %vm7613_vm0 = vcmp.gt.f32.partialorder %v7581_v37, 0.0  ;;  %v7645_v56 = vmul.f32 0.2, %v7581_v37  ;;  %v15595_v59 = vadd.f32 %v18796_v40, %v5937_v55  ;;  %14788 = vmatmul.mubr.msk.f32.gmra.mrb[54].mxu1 %vm4070_vm1, %v18968_v54  ;;  %v19031_v9 = vld [vmem:[#allocation2 + $0x27] sm:$0xff]  ;;  %v19038_v15 = vld [vmem:[#allocation2 + $0x2f] sm:$0xff] }
 0x524   : > { %v7678_v23 = vsel %vm7614_vm15, %v7582_v52, %v7646_v35  ;;  %v7584_v2 = vadd.f32 %v15594_v14, %v18801_v1  ;;  %v18982_v31 = vld [vmem:[#allocation2 + $0x190] sm:$0xff]  ;;  %v12423_v52 = vld [vmem:[%s19911_s5 + $0x68] sm:$0xff] }
 0x525   : > { %7710 = vst.msk [vmem:[#allocation2 + $0x1d0] sm:$0xff] %vm4070_vm1, %v7678_v23  ;;  %v7677_v41 = vsel %vm7613_vm0, %v7581_v37, %v7645_v56  ;;  %v7583_v13 = vadd.f32 %v15595_v59, %v18801_v1  ;;  %v14521_v17 = vpop.f32.mrb[62].mxu0  ;;  %v18976_v58 = vld [vmem:[#allocation2 + $0x188] sm:$0xff]  ;;  %v19036_v37 = vpack.c.bf16 %v12423_v52, %v12422_v26  ;;  %v12424_v26 = vld [vmem:[%s19911_s5 + $0x70] sm:$0xff]  ;;  %v12425_v52 = vld [vmem:[%s19911_s5 + $0x78] sm:$0xff] }
 0x526   : > { %7709 = vst.msk [vmem:[#allocation2 + $0x1c8] sm:$0xff] %vm4070_vm1, %v7677_v41  ;;  %vm7616_vm2 = vcmp.gt.f32.partialorder %v7584_v2, 0.0  ;;  %v7648_v49 = vmul.f32 0.2, %v7584_v2  ;;  %v15596_v40 = vadd.f32 %v18803_v3, %v14521_v17  ;;  %v5947_v22 = vpop.f32.mrb[63].mxu0  ;;  %14790 = vmatprep.mubr.msk.f32.mxu1 %vm4070_vm1, %v18976_v58  ;;  %v19042_v35 = vld [vmem:[#allocation2 + $0x47] sm:$0xff] }
 0x527   : > { %vm7615_vm3 = vcmp.gt.f32.partialorder %v7583_v13, 0.0  ;;  %v7647_v42 = vmul.f32 0.2, %v7583_v13  ;;  %v15597_v24 = vadd.f32 %v18805_v21, %v5947_v22  ;;  %14791 = vmatmul.mubr.msk.f32.gmra.mrb[56].mxu1 %vm4070_vm1, %v18982_v31  ;;  %v19047_v14 = vld [vmem:[#allocation2 + $0x4f] sm:$0xff]  ;;  %v19059_v56 = vld [vmem:[#allocation2 + $0x87] sm:$0xff] }
 0x528   : > { %v7680_v4 = vsel %vm7616_vm2, %v7584_v2, %v7648_v49  ;;  %v7586_v0 = vadd.f32 %v15596_v40, %v18801_v1  ;;  %v18995_v21 = vld [vmem:[#allocation2 + $0x1b0] sm:$0xff]  ;;  %v19067_v23 = vld [vmem:[#allocation2 + $0xa7] sm:$0xff] }
 0x529   : > { %7712 = vst.msk [vmem:[#allocation2 + $0x1f0] sm:$0xff] %vm4070_vm1, %v7680_v4  ;;  %v7679_v47 = vsel %vm7615_vm3, %v7583_v13, %v7647_v42  ;;  %v7585_v3 = vadd.f32 %v15597_v24, %v18801_v1  ;;  %v18990_v20 = vld [vmem:[#allocation2 + $0x1a8] sm:$0xff]  ;;  %20306 = vst [vmem:[#allocation4_spill] sm:$0xff] %v18995_v21 }
 0x52a   : > { %7711 = vst.msk [vmem:[#allocation2 + $0x1e8] sm:$0xff] %vm4070_vm1, %v7679_v47  ;;  %vm7618_vm4 = vcmp.gt.f32.partialorder %v7586_v0, 0.0  ;;  %v7650_v51 = vmul.f32 0.2, %v7586_v0  ;;  %14793 = vmatprep.mubr.msk.f32.mxu1 %vm4070_vm1, %v18990_v20  ;;  %v19055_v55 = vld [vmem:[#allocation2 + $0x6f] sm:$0xff]  ;;  %v19075_v41 = vld [vmem:[#allocation2 + $0xc7] sm:$0xff] }
 0x52b   : > { %vm7617_vm5 = vcmp.gt.f32.partialorder %v7585_v3, 0.0  ;;  %v7649_v7 = vmul.f32 0.2, %v7585_v3  ;;  %14794 = vmatmul.mubr.msk.f32.gmra.mrb[58].mxu1 %vm4070_vm1, %v18995_v21  ;;  %v19063_v59 = vld [vmem:[#allocation2 + $0x8f] sm:$0xff]  ;;  %v19083_v17 = vld [vmem:[#allocation2 + $0xe7] sm:$0xff] }
 0x52c   : > { %v7682_v28 = vsel %vm7618_vm4, %v7586_v0, %v7650_v51  ;;  %v19005_v34 = vld [vmem:[#allocation2 + $0x1d0] sm:$0xff]  ;;  %v19091_v40 = vld [vmem:[#allocation2 + $0x107] sm:$0xff] }
 0x52d   : > { %7714 = vst.msk [vmem:[#allocation2 + $0x210] sm:$0xff] %vm4070_vm1, %v7682_v28  ;;  %v7681_v1 = vsel %vm7617_vm5, %v7585_v3, %v7649_v7  ;;  %v19000_v50 = vld [vmem:[#allocation2 + $0x1c8] sm:$0xff]  ;;  %20308 = vst [vmem:[#allocation36_spill] sm:$0xff] %v19005_v34 }
 0x52e   : > { %20307 = vst [vmem:[#allocation37_spill] sm:$0xff] %v19000_v50  ;;  %7713 = vst.msk [vmem:[#allocation2 + $0x208] sm:$0xff] %vm4070_vm1, %v7681_v1  ;;  %14796 = vmatprep.mubr.msk.f32.mxu1 %vm4070_vm1, %v19000_v50  ;;  %v19071_v2 = vld [vmem:[#allocation2 + $0xaf] sm:$0xff]  ;;  %v19099_v42 = vld [vmem:[#allocation2 + $0x127] sm:$0xff] }
 0x52f   : > { %14797 = vmatmul.mubr.msk.f32.gmra.mrb[60].mxu1 %vm4070_vm1, %v19005_v34  ;;  %v19079_v13 = vld [vmem:[#allocation2 + $0xcf] sm:$0xff]  ;;  %v19107_v4 = vld [vmem:[#allocation2 + $0x147] sm:$0xff] }
 0x530   : > { %v19013_v62 = vld [vmem:[#allocation2 + $0x1f0] sm:$0xff]  ;;  %v19115_v47 = vld [vmem:[#allocation2 + $0x167] sm:$0xff] }
 0x531   : > { %v19009_v44 = vld [vmem:[#allocation2 + $0x1e8] sm:$0xff]  ;;  %20310 = vst [vmem:[#allocation38_spill] sm:$0xff] %v19013_v62  ;;  %v12458_v34 = vld [vmem:[%s19911_s5 + $0x80] sm:$0xff] }
 0x532   : > { %20309 = vst [vmem:[#allocation39_spill] sm:$0xff] %v19009_v44  ;;  %14799 = vmatprep.mubr.msk.f32.mxu1 %vm4070_vm1, %v19009_v44  ;;  %v19087_v49 = vld [vmem:[#allocation2 + $0xef] sm:$0xff]  ;;  %v19123_v51 = vld [vmem:[#allocation2 + $0x187] sm:$0xff]  ;;  %v15514_v44 = vpack.c.bf16 %v12425_v52, %v12424_v26 }
 0x533   : > { %14800 = vmatmul.mubr.msk.f32.gmra.mrb[62].mxu1 %vm4070_vm1, %v19013_v62  ;;  %v19095_v22 = vld [vmem:[#allocation2 + $0x10f] sm:$0xff]  ;;  %v19131_v28 = vld [vmem:[#allocation2 + $0x1a7] sm:$0xff] }
 0x534   : > { %14810 = vmatprep.mubr.msk.f32.mxu1 %vm4070_vm1, %v7715_v57  ;;  %v19103_v24 = vld [vmem:[#allocation2 + $0x12f] sm:$0xff]  ;;  %v19139_v57 = vld [vmem:[#allocation2 + $0x1c7] sm:$0xff] }
 0x535   : > { %v19111_v0 = vld [vmem:[#allocation2 + $0x14f] sm:$0xff]  ;;  %v19147_v60 = vld [vmem:[#allocation2 + $0x1e7] sm:$0xff] }
 0x536   : > { %v19119_v3 = vld [vmem:[#allocation2 + $0x16f] sm:$0xff] }
 0x537   : > { %14811 = vmatmul.mubr.msk.f32.vlgmr.msra.gmra.mrb[32].mxu1 %vm4070_vm1, %v7716_v29  ;;  %v19127_v7 = vld [vmem:[#allocation2 + $0x18f] sm:$0xff] }
 0x538   : > { %14813 = vmatprep.mubr.msk.f32.mxu1 %vm4070_vm1, %v19031_v9  ;;  %15505 = vmatpush3.bf16.msra.mxu1 %v18747_v48  ;;  %v19051_v48 = vld [vmem:[#allocation2 + $0x67] sm:$0xff]  ;;  %v19135_v1 = vld [vmem:[#allocation2 + $0x1af] sm:$0xff] }
 0x539   : > { %15507 = vmatprep.subr.bf16.mxu1 %v15506_v12  ;;  %v19143_v30 = vld [vmem:[#allocation2 + $0x1cf] sm:$0xff] }
 0x53a   : > { %v8430_v29 = vld [vmem:[#allocation2 + $0x9] sm:$0xff]  ;;  %v8431_v62 = vld [vmem:[#allocation2 + $0x11] sm:$0xff] }
 0x53b   : > { %14814 = vmatmul.mubr.msk.f32.gmra.mrb[34].mxu1 %vm4070_vm1, %v19038_v15  ;;  %v12459_v50 = vld [vmem:[%s19911_s5 + $0x88] sm:$0xff]  ;;  %v19176_v26 = vld [vmem:[#allocation2 + $0x31] sm:$0xff] }
 0x53c   : > { %14816 = vmatprep.mubr.msk.f32.mxu1 %vm4070_vm1, %v19042_v35  ;;  %15509 = vmatpush3.bf16.msra.mxu1 %v15506_v12  ;;  %v19151_v12 = vld [vmem:[#allocation2 + $0x1ef] sm:$0xff] }
 0x53d   : > { %15511 = vmatprep.subr.bf16.mxu1 %v19036_v37  ;;  %v19169_v21 = vld [vmem:[#allocation2 + $0x29] sm:$0xff] }
 0x53e   : > { %v19180_v52 = vld [vmem:[#allocation2 + $0x49] sm:$0xff] }
 0x53f   : > { %14817 = vmatmul.mubr.msk.f32.gmra.mrb[36].mxu1 %vm4070_vm1, %v19047_v14  ;;  %20311 = vst [vmem:[#allocation41_spill] sm:$0xff] %v19180_v52 }
 0x540   : > { %14819 = vmatprep.mubr.msk.f32.mxu1 %vm4070_vm1, %v19051_v48 }
 0x543   : > { %14820 = vmatmul.mubr.msk.f32.gmra.mrb[38].mxu1 %vm4070_vm1, %v19055_v55 }
 0x544   : > { %14822 = vmatprep.mubr.msk.f32.mxu1 %vm4070_vm1, %v19059_v56 }
 0x547   : > { %14823 = vmatmul.mubr.msk.f32.gmra.mrb[40].mxu1 %vm4070_vm1, %v19063_v59 }
 0x548   : > { %14825 = vmatprep.mubr.msk.f32.mxu1 %vm4070_vm1, %v19067_v23 }
 0x54b   : > { %14826 = vmatmul.mubr.msk.f32.gmra.mrb[42].mxu1 %vm4070_vm1, %v19071_v2 }
 0x54c   : > { %14828 = vmatprep.mubr.msk.f32.mxu1 %vm4070_vm1, %v19075_v41 }
 0x54f   : > { %14829 = vmatmul.mubr.msk.f32.gmra.mrb[44].mxu1 %vm4070_vm1, %v19079_v13 }
 0x550   : > { %14831 = vmatprep.mubr.msk.f32.mxu1 %vm4070_vm1, %v19083_v17 }
 0x553   : > { %14832 = vmatmul.mubr.msk.f32.gmra.mrb[46].mxu1 %vm4070_vm1, %v19087_v49 }
 0x554   : > { %14834 = vmatprep.mubr.msk.f32.mxu1 %vm4070_vm1, %v19091_v40 }
 0x557   : > { %14835 = vmatmul.mubr.msk.f32.gmra.mrb[48].mxu1 %vm4070_vm1, %v19095_v22 }
 0x558   : > { %14837 = vmatprep.mubr.msk.f32.mxu1 %vm4070_vm1, %v19099_v42 }
 0x55b   : > { %14838 = vmatmul.mubr.msk.f32.gmra.mrb[50].mxu1 %vm4070_vm1, %v19103_v24 }
 0x55c   : > { %14840 = vmatprep.mubr.msk.f32.mxu1 %vm4070_vm1, %v19107_v4 }
 0x55f   : > { %14841 = vmatmul.mubr.msk.f32.gmra.mrb[52].mxu1 %vm4070_vm1, %v19111_v0 }
 0x560   : > { %14843 = vmatprep.mubr.msk.f32.mxu1 %vm4070_vm1, %v19115_v47 }
 0x563   : > { %14844 = vmatmul.mubr.msk.f32.gmra.mrb[54].mxu1 %vm4070_vm1, %v19119_v3 }
 0x564   : > { %14846 = vmatprep.mubr.msk.f32.mxu1 %vm4070_vm1, %v19123_v51 }
 0x567   : > { %14847 = vmatmul.mubr.msk.f32.gmra.mrb[56].mxu1 %vm4070_vm1, %v19127_v7 }
 0x568   : > { %14849 = vmatprep.mubr.msk.f32.mxu1 %vm4070_vm1, %v19131_v28 }
 0x56b   : > { %14850 = vmatmul.mubr.msk.f32.gmra.mrb[58].mxu1 %vm4070_vm1, %v19135_v1 }
 0x56c   : > { %14852 = vmatprep.mubr.msk.f32.mxu1 %vm4070_vm1, %v19139_v57 }
 0x56f   : > { %14853 = vmatmul.mubr.msk.f32.gmra.mrb[60].mxu1 %vm4070_vm1, %v19143_v30 }
 0x570   : > { %14855 = vmatprep.mubr.msk.f32.mxu1 %vm4070_vm1, %v19147_v60 }
 0x573   : > { %14856 = vmatmul.mubr.msk.f32.gmra.mrb[62].mxu1 %vm4070_vm1, %v19151_v12 }
 0x574   : > { %14866 = vmatprep.mubr.msk.f32.mxu1 %vm4070_vm1, %v8430_v29  ;;  %v19174_v29 = vpack.c.bf16 %v12459_v50, %v12458_v34  ;;  %v19189_v50 = vld [vmem:[#allocation2 + $0x69] sm:$0xff]  ;;  %v19193_v34 = vld [vmem:[#allocation2 + $0x71] sm:$0xff] }
 0x575   : > { %20313 = vst [vmem:[#allocation42_spill] sm:$0xff] %v19189_v50  ;;  %20314 = vst [vmem:[#allocation45_spill] sm:$0xff] %v19193_v34 }
 0x577   : > { %14867 = vmatmul.mubr.msk.f32.vlgmr.msra.gmra.mrb[32].mxu1 %vm4070_vm1, %v8431_v62  ;;  %v19185_v62 = vld [vmem:[#allocation2 + $0x51] sm:$0xff] }
 0x578   : > { %14869 = vmatprep.mubr.msk.f32.mxu1 %vm4070_vm1, %v19169_v21  ;;  %15513 = vmatpush3.bf16.msra.mxu1 %v19036_v37  ;;  %20312 = vst [vmem:[#allocation40_spill] sm:$0xff] %v19185_v62  ;;  %v19197_v37 = vld [vmem:[#allocation2 + $0x89] sm:$0xff] }
 0x579   : > { %15515 = vmatprep.subr.bf16.mxu1 %v15514_v44  ;;  %20315 = vst [vmem:[#allocation46_spill] sm:$0xff] %v19197_v37 }
 0x57b   : > { %14870 = vmatmul.mubr.msk.f32.gmra.mrb[34].mxu1 %vm4070_vm1, %v19176_v26 }
 0x57c   : > { %14872 = vmatprep.mubr.msk.f32.mxu1 %vm4070_vm1, %v19180_v52  ;;  %15517 = vmatpush3.bf16.msra.mxu1 %v15514_v44  ;;  %v19201_v44 = vld [vmem:[#allocation2 + $0x91] sm:$0xff]  ;;  %v12495_v52 = vld [vmem:[%s19911_s5 + $0xa8] sm:$0xff] }
 0x57d   : > { %15519 = vmatprep.subr.bf16.mxu1 %v19174_v29  ;;  %20316 = vst [vmem:[#allocation47_spill] sm:$0xff] %v19201_v44 }
 0x57f   : > { %14873 = vmatmul.mubr.msk.f32.gmra.mrb[36].mxu1 %vm4070_vm1, %v19185_v62  ;;  %v19205_v62 = vld [vmem:[#allocation2 + $0xa9] sm:$0xff] }
 0x580   : > { %14875 = vmatprep.mubr.msk.f32.mxu1 %vm4070_vm1, %v19189_v50  ;;  %20317 = vst [vmem:[#allocation48_spill] sm:$0xff] %v19205_v62  ;;  %v19209_v50 = vld [vmem:[#allocation2 + $0xb1] sm:$0xff] }
 0x581   : > { %20318 = vst [vmem:[#allocation49_spill] sm:$0xff] %v19209_v50 }
 0x583   : > { %14876 = vmatmul.mubr.msk.f32.gmra.mrb[38].mxu1 %vm4070_vm1, %v19193_v34  ;;  %v19213_v34 = vld [vmem:[#allocation2 + $0xc9] sm:$0xff] }
 0x584   : > { %14878 = vmatprep.mubr.msk.f32.mxu1 %vm4070_vm1, %v19197_v37  ;;  %20319 = vst [vmem:[#allocation50_spill] sm:$0xff] %v19213_v34  ;;  %v19217_v37 = vld [vmem:[#allocation2 + $0xd1] sm:$0xff] }
 0x585   : > { %20320 = vst [vmem:[#allocation51_spill] sm:$0xff] %v19217_v37 }
 0x587   : > { %14879 = vmatmul.mubr.msk.f32.gmra.mrb[40].mxu1 %vm4070_vm1, %v19201_v44  ;;  %v19221_v44 = vld [vmem:[#allocation2 + $0xe9] sm:$0xff] }
 0x588   : > { %14881 = vmatprep.mubr.msk.f32.mxu1 %vm4070_vm1, %v19205_v62  ;;  %20321 = vst [vmem:[#allocation52_spill] sm:$0xff] %v19221_v44  ;;  %v19225_v62 = vld [vmem:[#allocation2 + $0xf1] sm:$0xff] }
 0x589   : > { %20322 = vst [vmem:[#allocation53_spill] sm:$0xff] %v19225_v62 }
 0x58b   : > { %14882 = vmatmul.mubr.msk.f32.gmra.mrb[42].mxu1 %vm4070_vm1, %v19209_v50  ;;  %v19229_v50 = vld [vmem:[#allocation2 + $0x109] sm:$0xff] }
 0x58c   : > { %14884 = vmatprep.mubr.msk.f32.mxu1 %vm4070_vm1, %v19213_v34  ;;  %20323 = vst [vmem:[#allocation54_spill] sm:$0xff] %v19229_v50  ;;  %v19233_v34 = vld [vmem:[#allocation2 + $0x111] sm:$0xff] }
 0x58d   : > { %20324 = vst [vmem:[#allocation55_spill] sm:$0xff] %v19233_v34 }
 0x58f   : > { %14885 = vmatmul.mubr.msk.f32.gmra.mrb[44].mxu1 %vm4070_vm1, %v19217_v37  ;;  %v19237_v37 = vld [vmem:[#allocation2 + $0x129] sm:$0xff] }
 0x590   : > { %14887 = vmatprep.mubr.msk.f32.mxu1 %vm4070_vm1, %v19221_v44  ;;  %20325 = vst [vmem:[#allocation56_spill] sm:$0xff] %v19237_v37  ;;  %v19241_v44 = vld [vmem:[#allocation2 + $0x131] sm:$0xff] }
 0x591   : > { %20326 = vst [vmem:[#allocation57_spill] sm:$0xff] %v19241_v44 }
 0x593   : > { %14888 = vmatmul.mubr.msk.f32.gmra.mrb[46].mxu1 %vm4070_vm1, %v19225_v62  ;;  %v19245_v62 = vld [vmem:[#allocation2 + $0x149] sm:$0xff] }
 0x594   : > { %14890 = vmatprep.mubr.msk.f32.mxu1 %vm4070_vm1, %v19229_v50  ;;  %20327 = vst [vmem:[#allocation58_spill] sm:$0xff] %v19245_v62  ;;  %v19249_v50 = vld [vmem:[#allocation2 + $0x151] sm:$0xff] }
 0x595   : > { %20328 = vst [vmem:[#allocation59_spill] sm:$0xff] %v19249_v50 }
 0x597   : > { %14891 = vmatmul.mubr.msk.f32.gmra.mrb[48].mxu1 %vm4070_vm1, %v19233_v34  ;;  %v19253_v34 = vld [vmem:[#allocation2 + $0x169] sm:$0xff] }
 0x598   : > { %14893 = vmatprep.mubr.msk.f32.mxu1 %vm4070_vm1, %v19237_v37  ;;  %20329 = vst [vmem:[#allocation60_spill] sm:$0xff] %v19253_v34  ;;  %v19257_v37 = vld [vmem:[#allocation2 + $0x171] sm:$0xff] }
 0x599   : > { %20330 = vst [vmem:[#allocation61_spill] sm:$0xff] %v19257_v37 }
 0x59b   : > { %14894 = vmatmul.mubr.msk.f32.gmra.mrb[50].mxu1 %vm4070_vm1, %v19241_v44  ;;  %v19261_v44 = vld [vmem:[#allocation2 + $0x189] sm:$0xff] }
 0x59c   : > { %14896 = vmatprep.mubr.msk.f32.mxu1 %vm4070_vm1, %v19245_v62  ;;  %20331 = vst [vmem:[#allocation62_spill] sm:$0xff] %v19261_v44  ;;  %v19265_v62 = vld [vmem:[#allocation2 + $0x191] sm:$0xff] }
 0x59d   : > { %20332 = vst [vmem:[#allocation63_spill] sm:$0xff] %v19265_v62 }
 0x59f   : > { %14897 = vmatmul.mubr.msk.f32.gmra.mrb[52].mxu1 %vm4070_vm1, %v19249_v50  ;;  %v19269_v50 = vld [vmem:[#allocation2 + $0x1a9] sm:$0xff] }
 0x5a0   : > { %14899 = vmatprep.mubr.msk.f32.mxu1 %vm4070_vm1, %v19253_v34  ;;  %20333 = vst [vmem:[#allocation64_spill] sm:$0xff] %v19269_v50  ;;  %v19273_v34 = vld [vmem:[#allocation2 + $0x1b1] sm:$0xff] }
 0x5a1   : > { %20334 = vst [vmem:[#allocation65_spill] sm:$0xff] %v19273_v34 }
 0x5a3   : > { %14900 = vmatmul.mubr.msk.f32.gmra.mrb[54].mxu1 %vm4070_vm1, %v19257_v37  ;;  %v19277_v37 = vld [vmem:[#allocation2 + $0x1c9] sm:$0xff] }
 0x5a4   : > { %14902 = vmatprep.mubr.msk.f32.mxu1 %vm4070_vm1, %v19261_v44  ;;  %20335 = vst [vmem:[#allocation66_spill] sm:$0xff] %v19277_v37  ;;  %v19281_v44 = vld [vmem:[#allocation2 + $0x1d1] sm:$0xff] }
 0x5a5   : > { %20336 = vst [vmem:[#allocation67_spill] sm:$0xff] %v19281_v44 }
 0x5a7   : > { %14903 = vmatmul.mubr.msk.f32.gmra.mrb[56].mxu1 %vm4070_vm1, %v19265_v62  ;;  %v19285_v62 = vld [vmem:[#allocation2 + $0x1e9] sm:$0xff] }
 0x5a8   : > { %14905 = vmatprep.mubr.msk.f32.mxu1 %vm4070_vm1, %v19269_v50  ;;  %20337 = vst [vmem:[#allocation68_spill] sm:$0xff] %v19285_v62  ;;  %v19289_v50 = vld [vmem:[#allocation2 + $0x1f1] sm:$0xff] }
 0x5a9   : > { %20338 = vst [vmem:[#allocation69_spill] sm:$0xff] %v19289_v50 }
 0x5ab   : > { %14906 = vmatmul.mubr.msk.f32.gmra.mrb[58].mxu1 %vm4070_vm1, %v19273_v34  ;;  %v12460_v34 = vld [vmem:[%s19911_s5 + $0x90] sm:$0xff] }
 0x5ac   : > { %14908 = vmatprep.mubr.msk.f32.mxu1 %vm4070_vm1, %v19277_v37  ;;  %v12461_v37 = vld [vmem:[%s19911_s5 + $0x98] sm:$0xff] }
 0x5af   : > { %14909 = vmatmul.mubr.msk.f32.gmra.mrb[60].mxu1 %vm4070_vm1, %v19281_v44  ;;  %v15522_v44 = vpack.c.bf16 %v12461_v37, %v12460_v34  ;;  %v12530_v34 = vld [vmem:[%s19911_s5 + $0xc0] sm:$0xff]  ;;  %v12531_v37 = vld [vmem:[%s19911_s5 + $0xc8] sm:$0xff] }
 0x5b0   : > { %14911 = vmatprep.mubr.msk.f32.mxu1 %vm4070_vm1, %v19285_v62  ;;  %v12494_v62 = vld [vmem:[%s19911_s5 + $0xa0] sm:$0xff] }
 0x5b3   : > { %14912 = vmatmul.mubr.msk.f32.gmra.mrb[62].mxu1 %vm4070_vm1, %v19289_v50  ;;  %v15526_v50 = vpack.c.bf16 %v12495_v52, %v12494_v62  ;;  %v12497_v52 = vld [vmem:[%s19911_s5 + $0xb8] sm:$0xff] }
 0x5b4   : > { %14922 = vmatprep.mubr.msk.f32.mxu1 %vm4070_vm1, %v19031_v9  ;;  %v19366_v9 = vld [vmem:[#allocation2 + $0x207] sm:$0xff] }
 0x5b7   : > { %14923 = vmatmul.mubr.msk.f32.vlgmr.msra.gmra.mrb[32].mxu1 %vm4070_vm1, %v19038_v15  ;;  %v19370_v15 = vld [vmem:[#allocation2 + $0x20f] sm:$0xff] }
 0x5b8   : > { %14925 = vmatprep.mubr.msk.f32.mxu1 %vm4070_vm1, %v19042_v35  ;;  %15521 = vmatpush3.bf16.msra.mxu1 %v19174_v29  ;;  %v12496_v29 = vld [vmem:[%s19911_s5 + $0xb0] sm:$0xff] }
 0x5b9   : > { %15523 = vmatprep.subr.bf16.mxu1 %v15522_v44  ;;  %v15530_v62 = vpack.c.bf16 %v12497_v52, %v12496_v29  ;;  %v20356_v29 = vld [vmem:[#allocation54_spill] sm:$0xff]  ;;  %v20357_v52 = vld [vmem:[#allocation55_spill] sm:$0xff] }
 0x5bb   : > { %14926 = vmatmul.mubr.msk.f32.gmra.mrb[34].mxu1 %vm4070_vm1, %v19047_v14 }
 0x5bc   : > { %14928 = vmatprep.mubr.msk.f32.mxu1 %vm4070_vm1, %v19051_v48  ;;  %15525 = vmatpush3.bf16.msra.mxu1 %v15522_v44  ;;  %v15534_v44 = vpack.c.bf16 %v12531_v37, %v12530_v34  ;;  %v20359_v34 = vld [vmem:[#allocation57_spill] sm:$0xff]  ;;  %v20360_v37 = vld [vmem:[#allocation58_spill] sm:$0xff] }
 0x5bd   : > { %15527 = vmatprep.subr.bf16.mxu1 %v15526_v50 }
 0x5bf   : > { %14929 = vmatmul.mubr.msk.f32.gmra.mrb[36].mxu1 %vm4070_vm1, %v19055_v55 }
 0x5c0   : > { %14931 = vmatprep.mubr.msk.f32.mxu1 %vm4070_vm1, %v19059_v56 }
 0x5c3   : > { %14932 = vmatmul.mubr.msk.f32.gmra.mrb[38].mxu1 %vm4070_vm1, %v19063_v59 }
 0x5c4   : > { %14934 = vmatprep.mubr.msk.f32.mxu1 %vm4070_vm1, %v19067_v23 }
 0x5c7   : > { %14935 = vmatmul.mubr.msk.f32.gmra.mrb[40].mxu1 %vm4070_vm1, %v19071_v2 }
 0x5c8   : > { %14937 = vmatprep.mubr.msk.f32.mxu1 %vm4070_vm1, %v19075_v41 }
 0x5cb   : > { %14938 = vmatmul.mubr.msk.f32.gmra.mrb[42].mxu1 %vm4070_vm1, %v19079_v13 }
 0x5cc   : > { %14940 = vmatprep.mubr.msk.f32.mxu1 %vm4070_vm1, %v19083_v17 }
 0x5cf   : > { %14941 = vmatmul.mubr.msk.f32.gmra.mrb[44].mxu1 %vm4070_vm1, %v19087_v49 }
 0x5d0   : > { %14943 = vmatprep.mubr.msk.f32.mxu1 %vm4070_vm1, %v19091_v40 }
 0x5d3   : > { %14944 = vmatmul.mubr.msk.f32.gmra.mrb[46].mxu1 %vm4070_vm1, %v19095_v22 }
 0x5d4   : > { %14946 = vmatprep.mubr.msk.f32.mxu1 %vm4070_vm1, %v19099_v42 }
 0x5d7   : > { %14947 = vmatmul.mubr.msk.f32.gmra.mrb[48].mxu1 %vm4070_vm1, %v19103_v24 }
 0x5d8   : > { %14949 = vmatprep.mubr.msk.f32.mxu1 %vm4070_vm1, %v19107_v4 }
 0x5db   : > { %14950 = vmatmul.mubr.msk.f32.gmra.mrb[50].mxu1 %vm4070_vm1, %v19111_v0 }
 0x5dc   : > { %14952 = vmatprep.mubr.msk.f32.mxu1 %vm4070_vm1, %v19115_v47 }
 0x5df   : > { %14953 = vmatmul.mubr.msk.f32.gmra.mrb[52].mxu1 %vm4070_vm1, %v19119_v3 }
 0x5e0   : > { %14955 = vmatprep.mubr.msk.f32.mxu1 %vm4070_vm1, %v19123_v51 }
 0x5e3   : > { %14956 = vmatmul.mubr.msk.f32.gmra.mrb[54].mxu1 %vm4070_vm1, %v19127_v7 }
 0x5e4   : > { %14958 = vmatprep.mubr.msk.f32.mxu1 %vm4070_vm1, %v19131_v28 }
 0x5e7   : > { %14959 = vmatmul.mubr.msk.f32.gmra.mrb[56].mxu1 %vm4070_vm1, %v19135_v1 }
 0x5e8   : > { %14961 = vmatprep.mubr.msk.f32.mxu1 %vm4070_vm1, %v19139_v57 }
 0x5eb   : > { %14962 = vmatmul.mubr.msk.f32.gmra.mrb[58].mxu1 %vm4070_vm1, %v19143_v30 }
 0x5ec   : > { %14964 = vmatprep.mubr.msk.f32.mxu1 %vm4070_vm1, %v19147_v60 }
 0x5ef   : > { %14965 = vmatmul.mubr.msk.f32.gmra.mrb[60].mxu1 %vm4070_vm1, %v19151_v12 }
 0x5f0   : > { %14967 = vmatprep.mubr.msk.f32.mxu1 %vm4070_vm1, %v19366_v9 }
 0x5f3   : > { %14968 = vmatmul.mubr.msk.f32.gmra.mrb[62].mxu1 %vm4070_vm1, %v19370_v15 }
 0x5f4   : > { %14978 = vmatprep.mubr.msk.f32.mxu1 %vm4070_vm1, %v18822_v45  ;;  %v20339_v45 = vld [vmem:[#allocation4_spill] sm:$0xff] }
 0x5f7   : > { %14979 = vmatmul.mubr.msk.f32.vlgmr.msra.gmra.mrb[32].mxu1 %vm4070_vm1, %v18828_v6  ;;  %v20340_v6 = vld [vmem:[#allocation37_spill] sm:$0xff] }
 0x5f8   : > { %14981 = vmatprep.mubr.msk.f32.mxu1 %vm4070_vm1, %v18836_v39  ;;  %15529 = vmatpush3.bf16.msra.mxu1 %v15526_v50  ;;  %v20341_v39 = vld [vmem:[#allocation36_spill] sm:$0xff]  ;;  %v20355_v50 = vld [vmem:[#allocation53_spill] sm:$0xff] }
 0x5f9   : > { %15531 = vmatprep.subr.bf16.mxu1 %v15530_v62 }
 0x5fb   : > { %14982 = vmatmul.mubr.msk.f32.gmra.mrb[34].mxu1 %vm4070_vm1, %v18842_v32  ;;  %v20342_v32 = vld [vmem:[#allocation39_spill] sm:$0xff] }
 0x5fc   : > { %14984 = vmatprep.mubr.msk.f32.mxu1 %vm4070_vm1, %v18850_v16  ;;  %15533 = vmatpush3.bf16.msra.mxu1 %v15530_v62  ;;  %v20343_v16 = vld [vmem:[#allocation38_spill] sm:$0xff]  ;;  %v20358_v62 = vld [vmem:[#allocation56_spill] sm:$0xff] }
 0x5fd   : > { %15535 = vmatprep.subr.bf16.mxu1 %v15534_v44 }
 0x5ff   : > { %14985 = vmatmul.mubr.msk.f32.gmra.mrb[36].mxu1 %vm4070_vm1, %v18856_v63  ;;  %v19446_v63 = vld [vmem:[#allocation2 + $0x208] sm:$0xff] }
 0x600   : > { %14987 = vmatprep.mubr.msk.f32.mxu1 %vm4070_vm1, %v18864_v61  ;;  %v19450_v61 = vld [vmem:[#allocation2 + $0x210] sm:$0xff] }
 0x603   : > { %14988 = vmatmul.mubr.msk.f32.gmra.mrb[38].mxu1 %vm4070_vm1, %v18870_v5  ;;  %v12532_v5 = vld [vmem:[%s19911_s5 + $0xd0] sm:$0xff] }
 0x604   : > { %14990 = vmatprep.mubr.msk.f32.mxu1 %vm4070_vm1, %v18878_v27  ;;  %v12533_v27 = vld [vmem:[%s19911_s5 + $0xd8] sm:$0xff] }
 0x607   : > { %14991 = vmatmul.mubr.msk.f32.gmra.mrb[40].mxu1 %vm4070_vm1, %v18884_v33  ;;  %v15538_v33 = vpack.c.bf16 %v12533_v27, %v12532_v5  ;;  %v20362_v5 = vld [vmem:[#allocation60_spill] sm:$0xff]  ;;  %v20363_v27 = vld [vmem:[#allocation61_spill] sm:$0xff] }
 0x608   : > { %14993 = vmatprep.mubr.msk.f32.mxu1 %vm4070_vm1, %v18892_v46  ;;  %v12566_v46 = vld [vmem:[%s19911_s5 + $0xe0] sm:$0xff] }
 0x60b   : > { %14994 = vmatmul.mubr.msk.f32.gmra.mrb[42].mxu1 %vm4070_vm1, %v18898_v10  ;;  %v12567_v10 = vld [vmem:[%s19911_s5 + $0xe8] sm:$0xff] }
 0x60c   : > { %14996 = vmatprep.mubr.msk.f32.mxu1 %vm4070_vm1, %v18906_v19  ;;  %v20344_v19 = vld [vmem:[#allocation41_spill] sm:$0xff] }
 0x60f   : > { %14997 = vmatmul.mubr.msk.f32.gmra.mrb[44].mxu1 %vm4070_vm1, %v18912_v8  ;;  %v15542_v8 = vpack.c.bf16 %v12567_v10, %v12566_v46  ;;  %v20365_v46 = vld [vmem:[#allocation63_spill] sm:$0xff]  ;;  %v20366_v10 = vld [vmem:[#allocation64_spill] sm:$0xff] }
 0x610   : > { %14999 = vmatprep.mubr.msk.f32.mxu1 %vm4070_vm1, %v18920_v43  ;;  %v20345_v43 = vld [vmem:[#allocation40_spill] sm:$0xff] }
 0x613   : > { %15000 = vmatmul.mubr.msk.f32.gmra.mrb[46].mxu1 %vm4070_vm1, %v18926_v53  ;;  %v20346_v53 = vld [vmem:[#allocation42_spill] sm:$0xff] }
 0x614   : > { %15002 = vmatprep.mubr.msk.f32.mxu1 %vm4070_vm1, %v18934_v38  ;;  %v20347_v38 = vld [vmem:[#allocation45_spill] sm:$0xff] }
 0x617   : > { %15003 = vmatmul.mubr.msk.f32.gmra.mrb[48].mxu1 %vm4070_vm1, %v18940_v18  ;;  %v20348_v18 = vld [vmem:[#allocation46_spill] sm:$0xff] }
 0x618   : > { %15005 = vmatprep.mubr.msk.f32.mxu1 %vm4070_vm1, %v18948_v11  ;;  %v20349_v11 = vld [vmem:[#allocation47_spill] sm:$0xff] }
 0x61b   : > { %15006 = vmatmul.mubr.msk.f32.gmra.mrb[50].mxu1 %vm4070_vm1, %v18954_v25  ;;  %v20350_v25 = vld [vmem:[#allocation48_spill] sm:$0xff] }
 0x61c   : > { %15008 = vmatprep.mubr.msk.f32.mxu1 %vm4070_vm1, %v18962_v36  ;;  %v20351_v36 = vld [vmem:[#allocation49_spill] sm:$0xff] }
 0x61f   : > { %15009 = vmatmul.mubr.msk.f32.gmra.mrb[52].mxu1 %vm4070_vm1, %v18968_v54  ;;  %v20352_v54 = vld [vmem:[#allocation50_spill] sm:$0xff] }
 0x620   : > { %15011 = vmatprep.mubr.msk.f32.mxu1 %vm4070_vm1, %v18976_v58 }
 0x623   : > { %15012 = vmatmul.mubr.msk.f32.gmra.mrb[54].mxu1 %vm4070_vm1, %v18982_v31 }
 0x624   : > { %15014 = vmatprep.mubr.msk.f32.mxu1 %vm4070_vm1, %v18990_v20 }
 0x627   : > { %15015 = vmatmul.mubr.msk.f32.gmra.mrb[56].mxu1 %vm4070_vm1, %v20339_v45 }
 0x628   : > { %15017 = vmatprep.mubr.msk.f32.mxu1 %vm4070_vm1, %v20340_v6 }
 0x62b   : > { %15018 = vmatmul.mubr.msk.f32.gmra.mrb[58].mxu1 %vm4070_vm1, %v20341_v39 }
 0x62c   : > { %15020 = vmatprep.mubr.msk.f32.mxu1 %vm4070_vm1, %v20342_v32 }
 0x62f   : > { %15021 = vmatmul.mubr.msk.f32.gmra.mrb[60].mxu1 %vm4070_vm1, %v20343_v16 }
 0x630   : > { %15023 = vmatprep.mubr.msk.f32.mxu1 %vm4070_vm1, %v19446_v63 }
 0x633   : > { %15024 = vmatmul.mubr.msk.f32.gmra.mrb[62].mxu1 %vm4070_vm1, %v19450_v61 }
 0x634   : > { %15034 = vmatprep.mubr.msk.f32.mxu1 %vm4070_vm1, %v19169_v21  ;;  %v20353_v21 = vld [vmem:[#allocation51_spill] sm:$0xff] }
 0x637   : > { %15035 = vmatmul.mubr.msk.f32.vlgmr.msra.gmra.mrb[32].mxu1 %vm4070_vm1, %v19176_v26  ;;  %v20354_v26 = vld [vmem:[#allocation52_spill] sm:$0xff] }
 0x638   : > { %15037 = vmatprep.mubr.msk.f32.mxu1 %vm4070_vm1, %v20344_v19  ;;  %15537 = vmatpush3.bf16.msra.mxu1 %v15534_v44  ;;  %v20361_v44 = vld [vmem:[#allocation59_spill] sm:$0xff] }
 0x639   : > { %15539 = vmatprep.subr.bf16.mxu1 %v15538_v33 }
 0x63b   : > { %15038 = vmatmul.mubr.msk.f32.gmra.mrb[34].mxu1 %vm4070_vm1, %v20345_v43 }
 0x63c   : > { %15040 = vmatprep.mubr.msk.f32.mxu1 %vm4070_vm1, %v20346_v53  ;;  %15541 = vmatpush3.bf16.msra.mxu1 %v15538_v33  ;;  %v20364_v33 = vld [vmem:[#allocation62_spill] sm:$0xff] }
 0x63d   : > { %15543 = vmatprep.subr.bf16.mxu1 %v15542_v8 }
 0x63f   : > { %15041 = vmatmul.mubr.msk.f32.gmra.mrb[36].mxu1 %vm4070_vm1, %v20347_v38 }
 0x640   : > { %15043 = vmatprep.mubr.msk.f32.mxu1 %vm4070_vm1, %v20348_v18 }
 0x643   : > { %15044 = vmatmul.mubr.msk.f32.gmra.mrb[38].mxu1 %vm4070_vm1, %v20349_v11 }
 0x644   : > { %15046 = vmatprep.mubr.msk.f32.mxu1 %vm4070_vm1, %v20350_v25 }
 0x647   : > { %15047 = vmatmul.mubr.msk.f32.gmra.mrb[40].mxu1 %vm4070_vm1, %v20351_v36 }
 0x648   : > { %15049 = vmatprep.mubr.msk.f32.mxu1 %vm4070_vm1, %v20352_v54 }
 0x64b   : > { %15050 = vmatmul.mubr.msk.f32.gmra.mrb[42].mxu1 %vm4070_vm1, %v20353_v21 }
 0x64c   : > { %15052 = vmatprep.mubr.msk.f32.mxu1 %vm4070_vm1, %v20354_v26 }
 0x64f   : > { %15053 = vmatmul.mubr.msk.f32.gmra.mrb[44].mxu1 %vm4070_vm1, %v20355_v50 }
 0x650   : > { %15055 = vmatprep.mubr.msk.f32.mxu1 %vm4070_vm1, %v20356_v29 }
 0x653   : > { %15056 = vmatmul.mubr.msk.f32.gmra.mrb[46].mxu1 %vm4070_vm1, %v20357_v52 }
 0x654   : > { %15058 = vmatprep.mubr.msk.f32.mxu1 %vm4070_vm1, %v20358_v62 }
 0x657   : > { %15059 = vmatmul.mubr.msk.f32.gmra.mrb[48].mxu1 %vm4070_vm1, %v20359_v34  ;;  %v20367_v34 = vld [vmem:[#allocation65_spill] sm:$0xff] }
 0x658   : > { %15061 = vmatprep.mubr.msk.f32.mxu1 %vm4070_vm1, %v20360_v37  ;;  %v20368_v37 = vld [vmem:[#allocation66_spill] sm:$0xff] }
 0x65b   : > { %15062 = vmatmul.mubr.msk.f32.gmra.mrb[50].mxu1 %vm4070_vm1, %v20361_v44  ;;  %v20369_v44 = vld [vmem:[#allocation67_spill] sm:$0xff] }
 0x65c   : > { %15064 = vmatprep.mubr.msk.f32.mxu1 %vm4070_vm1, %v20362_v5  ;;  %v20370_v5 = vld [vmem:[#allocation68_spill] sm:$0xff] }
 0x65f   : > { %15065 = vmatmul.mubr.msk.f32.gmra.mrb[52].mxu1 %vm4070_vm1, %v20363_v27  ;;  %v20371_v27 = vld [vmem:[#allocation69_spill] sm:$0xff] }
 0x660   : > { %15067 = vmatprep.mubr.msk.f32.mxu1 %vm4070_vm1, %v20364_v33  ;;  %v19526_v33 = vld [vmem:[#allocation2 + $0x209] sm:$0xff] }
 0x661   : > { %20372 = vst [vmem:[#allocation70_spill] sm:$0xff] %v19526_v33 }
 0x663   : > { %15068 = vmatmul.mubr.msk.f32.gmra.mrb[54].mxu1 %vm4070_vm1, %v20365_v46 }
 0x664   : > { %15070 = vmatprep.mubr.msk.f32.mxu1 %vm4070_vm1, %v20366_v10  ;;  %v19530_v10 = vld [vmem:[#allocation2 + $0x211] sm:$0xff] }
 0x665   : > { %20373 = vst [vmem:[#allocation71_spill] sm:$0xff] %v19530_v10 }
 0x667   : > { %15071 = vmatmul.mubr.msk.f32.gmra.mrb[56].mxu1 %vm4070_vm1, %v20367_v34 }
 0x668   : > { %15073 = vmatprep.mubr.msk.f32.mxu1 %vm4070_vm1, %v20368_v37  ;;  %v12568_v37 = vld [vmem:[%s19911_s5 + $0xf0] sm:$0xff] }
 0x66b   : > { %15074 = vmatmul.mubr.msk.f32.gmra.mrb[58].mxu1 %vm4070_vm1, %v20369_v44  ;;  %v12569_v44 = vld [vmem:[%s19911_s5 + $0xf8] sm:$0xff] }
 0x66c   : > { %15076 = vmatprep.mubr.msk.f32.mxu1 %vm4070_vm1, %v20370_v5  ;;  %v12603_v5 = vld [vmem:[%s19911_s5 + $0x108] sm:$0xff] }
 0x66f   : > { %15077 = vmatmul.mubr.msk.f32.gmra.mrb[60].mxu1 %vm4070_vm1, %v20371_v27  ;;  %v15546_v27 = vpack.c.bf16 %v12569_v44, %v12568_v37  ;;  %v20396_v37 = vld [vmem:[#allocation13_spill] sm:$0xff]  ;;  %v20397_v44 = vld [vmem:[#allocation16_spill] sm:$0xff] }
 0x670   : > { %15079 = vmatprep.mubr.msk.f32.mxu1 %vm4070_vm1, %v19526_v33  ;;  %v12602_v33 = vld [vmem:[%s19911_s5 + $0x100] sm:$0xff] }
 0x673   : > { %15080 = vmatmul.mubr.msk.f32.gmra.mrb[62].mxu1 %vm4070_vm1, %v19530_v10  ;;  %v15550_v10 = vpack.c.bf16 %v12603_v5, %v12602_v33  ;;  %v20398_v5 = vld [vmem:[#allocation15_spill] sm:$0xff]  ;;  %v20400_v33 = vld [vmem:[#allocation17_spill] sm:$0xff] }
 0x674   : > { %15090 = vmatprep.mubr.msk.f32.mxu1 %vm4070_vm1, %v19042_v35  ;;  %v10020_v35 = vld [vmem:[#allocation2 + $0x227] sm:$0xff] }
 0x677   : > { %15091 = vmatmul.mubr.msk.f32.vlgmr.msra.gmra.mrb[32].mxu1 %vm4070_vm1, %v19047_v14  ;;  %v10021_v14 = vld [vmem:[#allocation2 + $0x22f] sm:$0xff] }
 0x678   : > { %15093 = vmatprep.mubr.msk.f32.mxu1 %vm4070_vm1, %v19051_v48  ;;  %15545 = vmatpush3.bf16.msra.mxu1 %v15542_v8  ;;  %v12604_v48 = vld [vmem:[%s19911_s5 + $0x110] sm:$0xff]  ;;  %v20382_v8 = vld [vmem:[#allocation67_spill] sm:$0xff] }
 0x679   : > { %15547 = vmatprep.subr.bf16.mxu1 %v15546_v27 }
 0x67b   : > { %15094 = vmatmul.mubr.msk.f32.gmra.mrb[34].mxu1 %vm4070_vm1, %v19055_v55  ;;  %v12605_v55 = vld [vmem:[%s19911_s5 + $0x118] sm:$0xff] }
 0x67c   : > { %15096 = vmatprep.mubr.msk.f32.mxu1 %vm4070_vm1, %v19059_v56  ;;  %15549 = vmatpush3.bf16.msra.mxu1 %v15546_v27  ;;  %v10380_v56 = vld [vmem:[#allocation2 + $0x48] sm:$0xff]  ;;  %v20399_v27 = vld [vmem:[#allocation18_spill] sm:$0xff] }
 0x67d   : > { %15551 = vmatprep.subr.bf16.mxu1 %v15550_v10 }
 0x67f   : > { %15097 = vmatmul.mubr.msk.f32.gmra.mrb[36].mxu1 %vm4070_vm1, %v19063_v59  ;;  %v15554_v59 = vpack.c.bf16 %v12605_v55, %v12604_v48  ;;  %v20405_v48 = vld [vmem:[#allocation24_spill] sm:$0xff]  ;;  %v20406_v55 = vld [vmem:[#allocation23_spill] sm:$0xff] }
 0x680   : > { %15099 = vmatprep.mubr.msk.f32.mxu1 %vm4070_vm1, %v19067_v23  ;;  %v10381_v23 = vld [vmem:[#allocation2 + $0x50] sm:$0xff] }
 0x683   : > { %15100 = vmatmul.mubr.msk.f32.gmra.mrb[38].mxu1 %vm4070_vm1, %v19071_v2  ;;  %v11199_v2 = vld [vmem:[%s19913_s7] sm:$0xff] }
 0x684   : > { %15102 = vmatprep.mubr.msk.f32.mxu1 %vm4070_vm1, %v19075_v41  ;;  %v11200_v41 = vld [vmem:[%s19913_s7 + $0x8] sm:$0xff] }
 0x687   : > { %15103 = vmatmul.mubr.msk.f32.gmra.mrb[40].mxu1 %vm4070_vm1, %v19079_v13  ;;  %v10382_v13 = vld [vmem:[#allocation2 + $0x68] sm:$0xff] }
 0x688   : > { %15105 = vmatprep.mubr.msk.f32.mxu1 %vm4070_vm1, %v19083_v17  ;;  %v15558_v17 = vpack.c.bf16 %v11200_v41, %v11199_v2  ;;  %v20410_v2 = vld [vmem:[#allocation27_spill] sm:$0xff]  ;;  %v20411_v41 = vld [vmem:[#allocation30_spill] sm:$0xff] }
 0x68b   : > { %15106 = vmatmul.mubr.msk.f32.gmra.mrb[42].mxu1 %vm4070_vm1, %v19087_v49  ;;  %v10383_v49 = vld [vmem:[#allocation2 + $0x70] sm:$0xff] }
 0x68c   : > { %15108 = vmatprep.mubr.msk.f32.mxu1 %vm4070_vm1, %v19091_v40  ;;  %v10384_v40 = vld [vmem:[#allocation2 + $0x88] sm:$0xff] }
 0x68f   : > { %15109 = vmatmul.mubr.msk.f32.gmra.mrb[44].mxu1 %vm4070_vm1, %v19095_v22  ;;  %v10385_v22 = vld [vmem:[#allocation2 + $0x90] sm:$0xff] }
 0x690   : > { %15111 = vmatprep.mubr.msk.f32.mxu1 %vm4070_vm1, %v19099_v42  ;;  %v10386_v42 = vld [vmem:[#allocation2 + $0xa8] sm:$0xff] }
 0x693   : > { %15112 = vmatmul.mubr.msk.f32.gmra.mrb[46].mxu1 %vm4070_vm1, %v19103_v24  ;;  %v10387_v24 = vld [vmem:[#allocation2 + $0xb0] sm:$0xff] }
 0x694   : > { %15114 = vmatprep.mubr.msk.f32.mxu1 %vm4070_vm1, %v19107_v4  ;;  %v10388_v4 = vld [vmem:[#allocation2 + $0xc8] sm:$0xff] }
 0x697   : > { %15115 = vmatmul.mubr.msk.f32.gmra.mrb[48].mxu1 %vm4070_vm1, %v19111_v0  ;;  %v10389_v0 = vld [vmem:[#allocation2 + $0xd0] sm:$0xff] }
 0x698   : > { %15117 = vmatprep.mubr.msk.f32.mxu1 %vm4070_vm1, %v19115_v47  ;;  %v10390_v47 = vld [vmem:[#allocation2 + $0xe8] sm:$0xff] }
 0x69b   : > { %15118 = vmatmul.mubr.msk.f32.gmra.mrb[50].mxu1 %vm4070_vm1, %v19119_v3  ;;  %v10391_v3 = vld [vmem:[#allocation2 + $0xf0] sm:$0xff] }
 0x69c   : > { %15120 = vmatprep.mubr.msk.f32.mxu1 %vm4070_vm1, %v19123_v51  ;;  %v10392_v51 = vld [vmem:[#allocation2 + $0x108] sm:$0xff] }
 0x69f   : > { %15121 = vmatmul.mubr.msk.f32.gmra.mrb[52].mxu1 %vm4070_vm1, %v19127_v7  ;;  %v10393_v7 = vld [vmem:[#allocation2 + $0x110] sm:$0xff] }
 0x6a0   : > { %15123 = vmatprep.mubr.msk.f32.mxu1 %vm4070_vm1, %v19131_v28  ;;  %v10394_v28 = vld [vmem:[#allocation2 + $0x128] sm:$0xff] }
 0x6a3   : > { %15124 = vmatmul.mubr.msk.f32.gmra.mrb[54].mxu1 %vm4070_vm1, %v19135_v1  ;;  %v10395_v1 = vld [vmem:[#allocation2 + $0x130] sm:$0xff] }
 0x6a4   : > { %15126 = vmatprep.mubr.msk.f32.mxu1 %vm4070_vm1, %v19139_v57  ;;  %v10396_v57 = vld [vmem:[#allocation2 + $0x148] sm:$0xff] }
 0x6a7   : > { %15127 = vmatmul.mubr.msk.f32.gmra.mrb[56].mxu1 %vm4070_vm1, %v19143_v30  ;;  %v10397_v30 = vld [vmem:[#allocation2 + $0x150] sm:$0xff] }
 0x6a8   : > { %15129 = vmatprep.mubr.msk.f32.mxu1 %vm4070_vm1, %v19147_v60  ;;  %v10398_v60 = vld [vmem:[#allocation2 + $0x168] sm:$0xff] }
 0x6ab   : > { %15130 = vmatmul.mubr.msk.f32.gmra.mrb[58].mxu1 %vm4070_vm1, %v19151_v12  ;;  %v10399_v12 = vld [vmem:[#allocation2 + $0x170] sm:$0xff] }
 0x6ac   : > { %15132 = vmatprep.mubr.msk.f32.mxu1 %vm4070_vm1, %v19366_v9  ;;  %v11202_v9 = vld [vmem:[%s19913_s7 + $0x18] sm:$0xff] }
 0x6af   : > { %15133 = vmatmul.mubr.msk.f32.gmra.mrb[60].mxu1 %vm4070_vm1, %v19370_v15 }
 0x6b0   : > { %15135 = vmatprep.mubr.msk.f32.mxu1 %vm4070_vm1, %v10020_v35  ;;  %v20403_v35 = vld [vmem:[#allocation22_spill] sm:$0xff] }
 0x6b3   : > { %15136 = vmatmul.mubr.msk.f32.gmra.mrb[62].mxu1 %vm4070_vm1, %v10021_v14  ;;  %v20404_v14 = vld [vmem:[#allocation21_spill] sm:$0xff] }
 0x6b4   : > { %15146 = vmatprep.mubr.msk.f32.mxu1 %vm4070_vm1, %v10380_v56  ;;  %v20407_v56 = vld [vmem:[#allocation26_spill] sm:$0xff] }
 0x6b7   : > { %15147 = vmatmul.mubr.msk.f32.vlgmr.msra.gmra.mrb[32].mxu1 %vm4070_vm1, %v10381_v23  ;;  %v20409_v23 = vld [vmem:[#allocation28_spill] sm:$0xff] }
 0x6b8   : > { %15149 = vmatprep.mubr.msk.f32.mxu1 %vm4070_vm1, %v10382_v13  ;;  %15553 = vmatpush3.bf16.msra.mxu1 %v15550_v10  ;;  %v20402_v10 = vld [vmem:[#allocation19_spill] sm:$0xff]  ;;  %v20412_v13 = vld [vmem:[#allocation29_spill] sm:$0xff] }
 0x6b9   : > { %15555 = vmatprep.subr.bf16.mxu1 %v15554_v59 }
 0x6bb   : > { %15150 = vmatmul.mubr.msk.f32.gmra.mrb[34].mxu1 %vm4070_vm1, %v10383_v49  ;;  %v20414_v49 = vld [vmem:[#allocation31_spill] sm:$0xff] }
 0x6bc   : > { %15152 = vmatprep.mubr.msk.f32.mxu1 %vm4070_vm1, %v10384_v40  ;;  %15557 = vmatpush3.bf16.msra.mxu1 %v15554_v59  ;;  %v20408_v59 = vld [vmem:[#allocation25_spill] sm:$0xff]  ;;  %v20415_v40 = vld [vmem:[#allocation34_spill] sm:$0xff] }
 0x6bd   : > { %15559 = vmatprep.subr.bf16.mxu1 %v15558_v17 }
 0x6bf   : > { %15153 = vmatmul.mubr.msk.f32.gmra.mrb[36].mxu1 %vm4070_vm1, %v10385_v22  ;;  %v20416_v22 = vld [vmem:[#allocation33_spill] sm:$0xff] }
 0x6c0   : > { %15155 = vmatprep.mubr.msk.f32.mxu1 %vm4070_vm1, %v10386_v42  ;;  %v20417_v42 = vld [vmem:[#allocation3_spill] sm:$0xff] }
 0x6c3   : > { %15156 = vmatmul.mubr.msk.f32.gmra.mrb[38].mxu1 %vm4070_vm1, %v10387_v24  ;;  %v20418_v24 = vld [vmem:[#allocation35_spill] sm:$0xff] }
 0x6c4   : > { %15158 = vmatprep.mubr.msk.f32.mxu1 %vm4070_vm1, %v10388_v4  ;;  %v12638_v4 = vld [vmem:[%s19912_s6] ss:$0 sm:$0xff] }
 0x6c7   : > { %15159 = vmatmul.mubr.msk.f32.gmra.mrb[40].mxu1 %vm4070_vm1, %v10389_v0  ;;  %v12639_v0 = vld [vmem:[%s19914_s8] ss:$0 sm:$0xff] }
 0x6c8   : > { %15161 = vmatprep.mubr.msk.f32.mxu1 %vm4070_vm1, %v10390_v47 }
 0x6cb   : > { %15162 = vmatmul.mubr.msk.f32.gmra.mrb[42].mxu1 %vm4070_vm1, %v10391_v3 }
 0x6cc   : > { %15164 = vmatprep.mubr.msk.f32.mxu1 %vm4070_vm1, %v10392_v51  ;;  %v19800_v51 = vadd.f32 %v12639_v0, %v12638_v4 }
 0x6cf   : > { %15165 = vmatmul.mubr.msk.f32.gmra.mrb[44].mxu1 %vm4070_vm1, %v10393_v7 }
 0x6d0   : > { %15167 = vmatprep.mubr.msk.f32.mxu1 %vm4070_vm1, %v10394_v28 }
 0x6d3   : > { %15168 = vmatmul.mubr.msk.f32.gmra.mrb[46].mxu1 %vm4070_vm1, %v10395_v1 }
 0x6d4   : > { %15170 = vmatprep.mubr.msk.f32.mxu1 %vm4070_vm1, %v10396_v57 }
 0x6d7   : > { %15171 = vmatmul.mubr.msk.f32.gmra.mrb[48].mxu1 %vm4070_vm1, %v10397_v30 }
 0x6d8   : > { %15173 = vmatprep.mubr.msk.f32.mxu1 %vm4070_vm1, %v10398_v60 }
 0x6db   : > { %15174 = vmatmul.mubr.msk.f32.gmra.mrb[50].mxu1 %vm4070_vm1, %v10399_v12 }
 0x6dc   : > { %15176 = vmatprep.mubr.msk.f32.mxu1 %vm4070_vm1, %v18976_v58  ;;  %v10410_v58 = vld [vmem:[#allocation2 + $0x228] sm:$0xff] }
 0x6df   : > { %15177 = vmatmul.mubr.msk.f32.gmra.mrb[52].mxu1 %vm4070_vm1, %v18982_v31  ;;  %v10411_v31 = vld [vmem:[#allocation2 + $0x230] sm:$0xff] }
 0x6e0   : > { %15179 = vmatprep.mubr.msk.f32.mxu1 %vm4070_vm1, %v18990_v20  ;;  %v11201_v20 = vld [vmem:[%s19913_s7 + $0x10] sm:$0xff] }
 0x6e1   : > { %v15562_v15 = vpack.c.bf16 %v11202_v9, %v11201_v20 }
 0x6e3   : > { %15180 = vmatmul.mubr.msk.f32.gmra.mrb[54].mxu1 %vm4070_vm1, %v20339_v45  ;;  %v20374_v45 = vld [vmem:[#allocation57_spill] sm:$0xff] }
 0x6e4   : > { %15182 = vmatprep.mubr.msk.f32.mxu1 %vm4070_vm1, %v20340_v6  ;;  %v20375_v6 = vld [vmem:[#allocation58_spill] sm:$0xff] }
 0x6e7   : > { %15183 = vmatmul.mubr.msk.f32.gmra.mrb[56].mxu1 %vm4070_vm1, %v20341_v39  ;;  %v20376_v39 = vld [vmem:[#allocation59_spill] sm:$0xff] }
 0x6e8   : > { %15185 = vmatprep.mubr.msk.f32.mxu1 %vm4070_vm1, %v20342_v32  ;;  %v20377_v32 = vld [vmem:[#allocation60_spill] sm:$0xff] }
 0x6eb   : > { %15186 = vmatmul.mubr.msk.f32.gmra.mrb[58].mxu1 %vm4070_vm1, %v20343_v16  ;;  %v20378_v16 = vld [vmem:[#allocation61_spill] sm:$0xff] }
 0x6ec   : > { %15188 = vmatprep.mubr.msk.f32.mxu1 %vm4070_vm1, %v19446_v63  ;;  %v20379_v63 = vld [vmem:[#allocation62_spill] sm:$0xff] }
 0x6ef   : > { %15189 = vmatmul.mubr.msk.f32.gmra.mrb[60].mxu1 %vm4070_vm1, %v19450_v61  ;;  %v20380_v61 = vld [vmem:[#allocation64_spill] sm:$0xff] }
 0x6f0   : > { %15191 = vmatprep.mubr.msk.f32.mxu1 %vm4070_vm1, %v10410_v58 }
 0x6f3   : > { %15192 = vmatmul.mubr.msk.f32.gmra.mrb[62].mxu1 %vm4070_vm1, %v10411_v31 }
 0x6f4   : > { %15202 = vmatprep.mubr.msk.f32.mxu1 %vm4070_vm1, %v20344_v19  ;;  %v20381_v19 = vld [vmem:[#allocation66_spill] sm:$0xff] }
 0x6f7   : > { %15203 = vmatmul.mubr.msk.f32.vlgmr.msra.gmra.mrb[32].mxu1 %vm4070_vm1, %v20345_v43  ;;  %v20383_v43 = vld [vmem:[#allocation68_spill] sm:$0xff] }
 0x6f8   : > { %15205 = vmatprep.mubr.msk.f32.mxu1 %vm4070_vm1, %v20346_v53  ;;  %15561 = vmatpush3.bf16.msra.mxu1 %v15558_v17  ;;  %v20384_v53 = vld [vmem:[#allocation69_spill] sm:$0xff]  ;;  %v20413_v17 = vld [vmem:[#allocation32_spill] sm:$0xff] }
 0x6f9   : > { %15563 = vmatprep.subr.bf16.mxu1 %v15562_v15 }
 0x6fb   : > { %15206 = vmatmul.mubr.msk.f32.gmra.mrb[34].mxu1 %vm4070_vm1, %v20347_v38  ;;  %v20385_v38 = vld [vmem:[#allocation70_spill] sm:$0xff] }
 0x6fc   : > { %15208 = vmatprep.mubr.msk.f32.mxu1 %vm4070_vm1, %v20348_v18  ;;  %15565 = vmatpush3.bf16.msra.mxu1 %v15562_v15  ;;  %v10800_v18 = vld [vmem:[#allocation2 + $0x229] sm:$0xff] }
 0x6ff   : > { %15209 = vmatmul.mubr.msk.f32.gmra.mrb[36].mxu1 %vm4070_vm1, %v20349_v11  ;;  %v20386_v11 = vld [vmem:[#allocation71_spill] sm:$0xff] }
 0x700   : > { %15211 = vmatprep.mubr.msk.f32.mxu1 %vm4070_vm1, %v20350_v25  ;;  %v10801_v25 = vld [vmem:[#allocation2 + $0x231] sm:$0xff] }
 0x703   : > { %15212 = vmatmul.mubr.msk.f32.gmra.mrb[38].mxu1 %vm4070_vm1, %v20351_v36  ;;  %v20387_v36 = vld [vmem:[#allocation6_spill] sm:$0xff] }
 0x704   : > { %15214 = vmatprep.mubr.msk.f32.mxu1 %vm4070_vm1, %v20352_v54  ;;  %v20388_v54 = vld [vmem:[#allocation5_spill] sm:$0xff] }
 0x707   : > { %15215 = vmatmul.mubr.msk.f32.gmra.mrb[40].mxu1 %vm4070_vm1, %v20353_v21  ;;  %v20389_v21 = vld [vmem:[#allocation8_spill] sm:$0xff] }
 0x708   : > { %15217 = vmatprep.mubr.msk.f32.mxu1 %vm4070_vm1, %v20354_v26  ;;  %v20390_v26 = vld [vmem:[#allocation7_spill] sm:$0xff] }
 0x70b   : > { %15218 = vmatmul.mubr.msk.f32.gmra.mrb[42].mxu1 %vm4070_vm1, %v20355_v50  ;;  %v20391_v50 = vld [vmem:[#allocation10_spill] sm:$0xff] }
 0x70c   : > { %15220 = vmatprep.mubr.msk.f32.mxu1 %vm4070_vm1, %v20356_v29  ;;  %v20392_v29 = vld [vmem:[#allocation9_spill] sm:$0xff] }
 0x70f   : > { %15221 = vmatmul.mubr.msk.f32.gmra.mrb[44].mxu1 %vm4070_vm1, %v20357_v52  ;;  %v20393_v52 = vld [vmem:[#allocation12_spill] sm:$0xff] }
 0x710   : > { %15223 = vmatprep.mubr.msk.f32.mxu1 %vm4070_vm1, %v20358_v62  ;;  %v20394_v62 = vld [vmem:[#allocation11_spill] sm:$0xff] }
 0x713   : > { %15224 = vmatmul.mubr.msk.f32.gmra.mrb[46].mxu1 %vm4070_vm1, %v20374_v45 }
 0x714   : > { %15226 = vmatprep.mubr.msk.f32.mxu1 %vm4070_vm1, %v20375_v6 }
 0x717   : > { %15227 = vmatmul.mubr.msk.f32.gmra.mrb[48].mxu1 %vm4070_vm1, %v20376_v39 }
 0x718   : > { %15229 = vmatprep.mubr.msk.f32.mxu1 %vm4070_vm1, %v20377_v32 }
 0x71b   : > { %15230 = vmatmul.mubr.msk.f32.gmra.mrb[50].mxu1 %vm4070_vm1, %v20378_v16 }
 0x71c   : > { %15232 = vmatprep.mubr.msk.f32.mxu1 %vm4070_vm1, %v20379_v63 }
 0x71f   : > { %15233 = vmatmul.mubr.msk.f32.gmra.mrb[52].mxu1 %vm4070_vm1, %v20365_v46  ;;  %v20401_v46 = vld [vmem:[#allocation20_spill] sm:$0xff] }
 0x720   : > { %15235 = vmatprep.mubr.msk.f32.mxu1 %vm4070_vm1, %v20380_v61 }
 0x723   : > { %15236 = vmatmul.mubr.msk.f32.gmra.mrb[54].mxu1 %vm4070_vm1, %v20367_v34  ;;  %v20395_v34 = vld [vmem:[#allocation14_spill] sm:$0xff] }
 0x724   : > { %15238 = vmatprep.mubr.msk.f32.mxu1 %vm4070_vm1, %v20381_v19 }
 0x727   : > { %15239 = vmatmul.mubr.msk.f32.gmra.mrb[56].mxu1 %vm4070_vm1, %v20382_v8 }
 0x728   : > { %15241 = vmatprep.mubr.msk.f32.mxu1 %vm4070_vm1, %v20383_v43 }
 0x72b   : > { %15242 = vmatmul.mubr.msk.f32.gmra.mrb[58].mxu1 %vm4070_vm1, %v20384_v53 }
 0x72c   : > { %15244 = vmatprep.mubr.msk.f32.mxu1 %vm4070_vm1, %v20385_v38 }
 0x72f   : > { %15245 = vmatmul.mubr.msk.f32.gmra.mrb[60].mxu1 %vm4070_vm1, %v20386_v11 }
 0x730   : > { %15247 = vmatprep.mubr.msk.f32.mxu1 %vm4070_vm1, %v10800_v18 }
 0x733   : > { %15248 = vmatmul.mubr.msk.f32.gmra.mrb[62].mxu1 %vm4070_vm1, %v10801_v25 }
 0x734   : > { %15258 = vmatprep.mubr.msk.f32.mxu1 %vm4070_vm1, %v20387_v36 }
 0x737   : > { %15259 = vmatmul.mubr.msk.f32.vlgmr.msra.gmra.mrb[32].mxu1 %vm4070_vm1, %v20388_v54 }
 0x738   : > { %15261 = vmatprep.mubr.msk.f32.mxu1 %vm4070_vm1, %v20389_v21 }
 0x73b   : > { %15262 = vmatmul.mubr.msk.f32.gmra.mrb[34].mxu1 %vm4070_vm1, %v20390_v26 }
 0x73c   : > { %15264 = vmatprep.mubr.msk.f32.mxu1 %vm4070_vm1, %v20391_v50 }
 0x73f   : > { %15265 = vmatmul.mubr.msk.f32.gmra.mrb[36].mxu1 %vm4070_vm1, %v20392_v29 }
 0x740   : > { %15267 = vmatprep.mubr.msk.f32.mxu1 %vm4070_vm1, %v20393_v52 }
 0x743   : > { %15268 = vmatmul.mubr.msk.f32.gmra.mrb[38].mxu1 %vm4070_vm1, %v20394_v62 }
 0x744   : > { %15270 = vmatprep.mubr.msk.f32.mxu1 %vm4070_vm1, %v20395_v34 }
 0x747   : > { %15271 = vmatmul.mubr.msk.f32.gmra.mrb[40].mxu1 %vm4070_vm1, %v20396_v37 }
 0x748   : > { %15273 = vmatprep.mubr.msk.f32.mxu1 %vm4070_vm1, %v20397_v44 }
 0x74b   : > { %15274 = vmatmul.mubr.msk.f32.gmra.mrb[42].mxu1 %vm4070_vm1, %v20398_v5 }
 0x74c   : > { %15276 = vmatprep.mubr.msk.f32.mxu1 %vm4070_vm1, %v20399_v27 }
 0x74f   : > { %15277 = vmatmul.mubr.msk.f32.gmra.mrb[44].mxu1 %vm4070_vm1, %v20400_v33 }
 0x750   : > { %15279 = vmatprep.mubr.msk.f32.mxu1 %vm4070_vm1, %v20401_v46 }
 0x753   : > { %15280 = vmatmul.mubr.msk.f32.gmra.mrb[46].mxu1 %vm4070_vm1, %v20402_v10 }
 0x754   : > { %15282 = vmatprep.mubr.msk.f32.mxu1 %vm4070_vm1, %v20403_v35 }
 0x757   : > { %15283 = vmatmul.mubr.msk.f32.gmra.mrb[48].mxu1 %vm4070_vm1, %v20404_v14 }
 0x758   : > { %15285 = vmatprep.mubr.msk.f32.mxu1 %vm4070_vm1, %v20405_v48 }
 0x75b   : > { %15286 = vmatmul.mubr.msk.f32.gmra.mrb[50].mxu1 %vm4070_vm1, %v20406_v55 }
 0x75c   : > { %15288 = vmatprep.mubr.msk.f32.mxu1 %vm4070_vm1, %v20407_v56 }
 0x75f   : > { %15289 = vmatmul.mubr.msk.f32.gmra.mrb[52].mxu1 %vm4070_vm1, %v20408_v59 }
 0x760   : > { %15291 = vmatprep.mubr.msk.f32.mxu1 %vm4070_vm1, %v20409_v23 }
 0x763   : > { %15292 = vmatmul.mubr.msk.f32.gmra.mrb[54].mxu1 %vm4070_vm1, %v20410_v2 }
 0x764   : > { %15294 = vmatprep.mubr.msk.f32.mxu1 %vm4070_vm1, %v20411_v41 }
 0x767   : > { %15295 = vmatmul.mubr.msk.f32.gmra.mrb[56].mxu1 %vm4070_vm1, %v20412_v13 }
 0x768   : > { %15297 = vmatprep.mubr.msk.f32.mxu1 %vm4070_vm1, %v20413_v17 }
 0x76b   : > { %15298 = vmatmul.mubr.msk.f32.gmra.mrb[58].mxu1 %vm4070_vm1, %v20414_v49 }
 0x76c   : > { %15300 = vmatprep.mubr.msk.f32.mxu1 %vm4070_vm1, %v20415_v40 }
 0x76f   : > { %15301 = vmatmul.mubr.msk.f32.gmra.mrb[60].mxu1 %vm4070_vm1, %v20416_v22 }
 0x770   : > { %15303 = vmatprep.mubr.msk.f32.mxu1 %vm4070_vm1, %v20417_v42 }
 0x773   : > { %15304 = vmatmul.mubr.msk.f32.gmra.mrb[62].mxu1 %vm4070_vm1, %v20418_v24  ;;  %vm11563_vm1 = vcmask 130048  }
 0x80a   : > { %v15260_v47 = vpop.f32.mrb[32].mxu1 }
 0x80b   : > { %v15598_v3 = vadd.f32 %v15260_v47, %v12638_v4  ;;  %v11372_v7 = vpop.f32.mrb[33].mxu1 }
 0x80c   : > { %v15600_v28 = vadd.f32 %v12638_v4, %v11372_v7 }
 0x80d   : > { %v15599_v1 = vadd.f32 %v15598_v3, %v12639_v0 }
 0x80e   : > { %v15601_v57 = vadd.f32 %v15600_v28, %v12639_v0  ;;  %v15263_v30 = vpop.f32.mrb[34].mxu1 }
 0x80f   : > { %11565 = vst.msk [vmem:[%s19807_s16 + $0x8] sm:$0xff] %vm11563_vm1, %v15599_v1  ;;  %v15603_v60 = vadd.f32 %v19800_v51, %v15263_v30  ;;  %v11382_v12 = vpop.f32.mrb[35].mxu1 }
 0x810   : > { %11564 = vst.msk [vmem:[%s19807_s16] sm:$0xff] %vm11563_vm1, %v15601_v57  ;;  %v15605_v58 = vadd.f32 %v19800_v51, %v11382_v12 }
 0x811   : > { %11567 = vst.msk [vmem:[%s19807_s16 + $0x18] sm:$0xff] %vm11563_vm1, %v15603_v60 }
 0x812   : > { %11566 = vst.msk [vmem:[%s19807_s16 + $0x10] sm:$0xff] %vm11563_vm1, %v15605_v58  ;;  %v15266_v31 = vpop.f32.mrb[36].mxu1 }
 0x813   : > { %v15607_v20 = vadd.f32 %v19800_v51, %v15266_v31  ;;  %v11392_v9 = vpop.f32.mrb[37].mxu1 }
 0x814   : > { %v15609_v15 = vadd.f32 %v19800_v51, %v11392_v9 }
 0x815   : > { %11569 = vst.msk [vmem:[%s19807_s16 + $0x28] sm:$0xff] %vm11563_vm1, %v15607_v20 }
 0x816   : > { %11568 = vst.msk [vmem:[%s19807_s16 + $0x20] sm:$0xff] %vm11563_vm1, %v15609_v15  ;;  %v15269_v45 = vpop.f32.mrb[38].mxu1 }
 0x817   : > { %v15611_v6 = vadd.f32 %v19800_v51, %v15269_v45  ;;  %v11402_v39 = vpop.f32.mrb[39].mxu1 }
 0x818   : > { %v15613_v32 = vadd.f32 %v19800_v51, %v11402_v39 }
 0x819   : > { %11571 = vst.msk [vmem:[%s19807_s16 + $0x38] sm:$0xff] %vm11563_vm1, %v15611_v6 }
 0x81a   : > { %11570 = vst.msk [vmem:[%s19807_s16 + $0x30] sm:$0xff] %vm11563_vm1, %v15613_v32  ;;  %v15272_v16 = vpop.f32.mrb[40].mxu1 }
 0x81b   : > { %v15615_v63 = vadd.f32 %v19800_v51, %v15272_v16  ;;  %v11412_v61 = vpop.f32.mrb[41].mxu1 }
 0x81c   : > { %v15617_v19 = vadd.f32 %v19800_v51, %v11412_v61 }
 0x81d   : > { %11573 = vst.msk [vmem:[%s19807_s16 + $0x48] sm:$0xff] %vm11563_vm1, %v15615_v63 }
 0x81e   : > { %11572 = vst.msk [vmem:[%s19807_s16 + $0x40] sm:$0xff] %vm11563_vm1, %v15617_v19  ;;  %v15275_v8 = vpop.f32.mrb[42].mxu1 }
 0x81f   : > { %v15619_v43 = vadd.f32 %v19800_v51, %v15275_v8  ;;  %v11422_v53 = vpop.f32.mrb[43].mxu1 }
 0x820   : > { %v15621_v38 = vadd.f32 %v19800_v51, %v11422_v53 }
 0x821   : > { %11575 = vst.msk [vmem:[%s19807_s16 + $0x58] sm:$0xff] %vm11563_vm1, %v15619_v43 }
 0x822   : > { %11574 = vst.msk [vmem:[%s19807_s16 + $0x50] sm:$0xff] %vm11563_vm1, %v15621_v38  ;;  %v15278_v18 = vpop.f32.mrb[44].mxu1 }
 0x823   : > { %v15623_v11 = vadd.f32 %v19800_v51, %v15278_v18  ;;  %v11432_v25 = vpop.f32.mrb[45].mxu1 }
 0x824   : > { %v15625_v36 = vadd.f32 %v19800_v51, %v11432_v25 }
 0x825   : > { %11577 = vst.msk [vmem:[%s19807_s16 + $0x68] sm:$0xff] %vm11563_vm1, %v15623_v11 }
 0x826   : > { %11576 = vst.msk [vmem:[%s19807_s16 + $0x60] sm:$0xff] %vm11563_vm1, %v15625_v36  ;;  %v15281_v54 = vpop.f32.mrb[46].mxu1 }
 0x827   : > { %v15627_v21 = vadd.f32 %v19800_v51, %v15281_v54  ;;  %v11442_v26 = vpop.f32.mrb[47].mxu1 }
 0x828   : > { %v15629_v50 = vadd.f32 %v19800_v51, %v11442_v26 }
 0x829   : > { %11579 = vst.msk [vmem:[%s19807_s16 + $0x78] sm:$0xff] %vm11563_vm1, %v15627_v21 }
 0x82a   : > { %11578 = vst.msk [vmem:[%s19807_s16 + $0x70] sm:$0xff] %vm11563_vm1, %v15629_v50  ;;  %v15284_v29 = vpop.f32.mrb[48].mxu1 }
 0x82b   : > { %v15631_v52 = vadd.f32 %v19800_v51, %v15284_v29  ;;  %v11452_v62 = vpop.f32.mrb[49].mxu1 }
 0x82c   : > { %v15633_v34 = vadd.f32 %v19800_v51, %v11452_v62 }
 0x82d   : > { %11581 = vst.msk [vmem:[%s19807_s16 + $0x88] sm:$0xff] %vm11563_vm1, %v15631_v52 }
 0x82e   : > { %11580 = vst.msk [vmem:[%s19807_s16 + $0x80] sm:$0xff] %vm11563_vm1, %v15633_v34  ;;  %v15287_v37 = vpop.f32.mrb[50].mxu1 }
 0x82f   : > { %v15635_v44 = vadd.f32 %v19800_v51, %v15287_v37  ;;  %v11462_v5 = vpop.f32.mrb[51].mxu1 }
 0x830   : > { %v15637_v27 = vadd.f32 %v19800_v51, %v11462_v5 }
 0x831   : > { %11583 = vst.msk [vmem:[%s19807_s16 + $0x98] sm:$0xff] %vm11563_vm1, %v15635_v44 }
 0x832   : > { %11582 = vst.msk [vmem:[%s19807_s16 + $0x90] sm:$0xff] %vm11563_vm1, %v15637_v27  ;;  %v15290_v33 = vpop.f32.mrb[52].mxu1 }
 0x833   : > { %v15639_v46 = vadd.f32 %v19800_v51, %v15290_v33  ;;  %v11472_v10 = vpop.f32.mrb[53].mxu1 }
 0x834   : > { %v15641_v35 = vadd.f32 %v19800_v51, %v11472_v10 }
 0x835   : > { %11585 = vst.msk [vmem:[%s19807_s16 + $0xa8] sm:$0xff] %vm11563_vm1, %v15639_v46 }
 0x836   : > { %11584 = vst.msk [vmem:[%s19807_s16 + $0xa0] sm:$0xff] %vm11563_vm1, %v15641_v35  ;;  %v15293_v14 = vpop.f32.mrb[54].mxu1 }
 0x837   : > { %v15643_v48 = vadd.f32 %v19800_v51, %v15293_v14  ;;  %v11482_v55 = vpop.f32.mrb[55].mxu1 }
 0x838   : > { %v15645_v56 = vadd.f32 %v19800_v51, %v11482_v55 }
 0x839   : > { %11587 = vst.msk [vmem:[%s19807_s16 + $0xb8] sm:$0xff] %vm11563_vm1, %v15643_v48 }
 0x83a   : > { %11586 = vst.msk [vmem:[%s19807_s16 + $0xb0] sm:$0xff] %vm11563_vm1, %v15645_v56  ;;  %v15296_v59 = vpop.f32.mrb[56].mxu1 }
 0x83b   : > { %v15647_v23 = vadd.f32 %v19800_v51, %v15296_v59  ;;  %v11492_v2 = vpop.f32.mrb[57].mxu1 }
 0x83c   : > { %v15649_v41 = vadd.f32 %v19800_v51, %v11492_v2 }
 0x83d   : > { %11589 = vst.msk [vmem:[%s19807_s16 + $0xc8] sm:$0xff] %vm11563_vm1, %v15647_v23 }
 0x83e   : > { %11588 = vst.msk [vmem:[%s19807_s16 + $0xc0] sm:$0xff] %vm11563_vm1, %v15649_v41  ;;  %v15299_v13 = vpop.f32.mrb[58].mxu1 }
 0x83f   : > { %v15651_v17 = vadd.f32 %v19800_v51, %v15299_v13  ;;  %v11502_v49 = vpop.f32.mrb[59].mxu1 }
 0x840   : > { %v15653_v40 = vadd.f32 %v19800_v51, %v11502_v49 }
 0x841   : > { %11591 = vst.msk [vmem:[%s19807_s16 + $0xd8] sm:$0xff] %vm11563_vm1, %v15651_v17 }
 0x842   : > { %11590 = vst.msk [vmem:[%s19807_s16 + $0xd0] sm:$0xff] %vm11563_vm1, %v15653_v40  ;;  %v15302_v22 = vpop.f32.mrb[60].mxu1 }
 0x843   : > { %v15655_v42 = vadd.f32 %v19800_v51, %v15302_v22  ;;  %v11512_v24 = vpop.f32.mrb[61].mxu1 }
 0x844   : > { %v15657_v4 = vadd.f32 %v19800_v51, %v11512_v24 }
 0x845   : > { %11593 = vst.msk [vmem:[%s19807_s16 + $0xe8] sm:$0xff] %vm11563_vm1, %v15655_v42 }
 0x846   : > { %11592 = vst.msk [vmem:[%s19807_s16 + $0xe0] sm:$0xff] %vm11563_vm1, %v15657_v4  ;;  %v15305_v0 = vpop.f32.mrb[62].mxu1 }
 0x847   : > { %v15659_v47 = vadd.f32 %v19800_v51, %v15305_v0  ;;  %v11522_v3 = vpop.f32.mrb[63].mxu1 }
 0x848   : > { %v15661_v7 = vadd.f32 %v19800_v51, %v11522_v3 }
 0x849   : > { %11595 = vst.msk [vmem:[%s19807_s16 + $0xf8] sm:$0xff] %vm11563_vm1, %v15659_v47 }
 0x84a   : > { %11594 = vst.msk [vmem:[%s19807_s16 + $0xf0] sm:$0xff] %vm11563_vm1, %v15661_v7 }
 0x84b PF: > { %s19_s30 = sadd.s32 1, %s16445_s30  }
 0x84c   : > { %p16_p4 = scmp.ge.s32.totalorder %s19_s30, 4  }
 0x84e   :  { %18 = sbr.rel (!%p16_p4) target bundleno = 1 (0x1), region = 112 }

// kernel: encoder_wae_forward.3
= control target key start
LH: loop header
LB: loop body
LE: loop exit
PB: predicated region body
PF: predicated region fallthrough
CT: control target
= control target key end

     0   :  { %s5220_s11 = smov 0   ;;  %s6269_s0 = inlined_call_operand.vmem [shape: f32[2,8,8,64], index: 0, kind: input, shape index: {}]   ;;  %s6270_s1 = inlined_call_operand.vmem [shape: f32[9,64,64], index: 1, kind: input, shape index: {}]   ;;  %s6271_s2 = inlined_call_operand.vmem [shape: f32[1,64], index: 2, kind: input, shape index: {}]   ;;  %s6272_s3 = inlined_call_operand.vmem [shape: f32[9,64,24], index: 3, kind: input, shape index: {}]   ;;  %s6273_s4 = inlined_call_operand.vmem [shape: f32[1,24], index: 4, kind: input, shape index: {}]   ;;  %s6274_s5 = inlined_call_operand.vmem [shape: f32[64,24], index: 5, kind: input, shape index: {}]   ;;  %s6275_s6 = inlined_call_operand.vmem [shape: f32[1,24], index: 6, kind: input, shape index: {}]   ;;  %s6276_s7 = inlined_call_operand.vmem [shape: f32[24,1], index: 7, kind: input, shape index: {}]   ;;  %s6277_s8 = inlined_call_operand.<no memory space> [shape: f32[1,1], index: 8, kind: input, shape index: {}]   ;;  %s6278_s9 = inlined_call_operand.vmem [shape: f32[2,1,1], index: 9, kind: output, shape index: {}]  }
   0x1   :  { %v14_v0 = vstv %s6277_s8 }
   0x2   :  { %15 = vst [vmem:[#allocation3] sm:$0x1] %v14_v0 }
   0x3 LB: > { %s3529_s12 = sadd.s32 4294967295, %s5162_s11   ;;  %p3533_p0 = scmp.ge.s32.totalorder %s5162_s11, 1  ;;  %s5162_s11 = sphi %s5220_s11, %s21_s11  }
   0x4   : > { %p289_p1 = scmp.lt.s32.totalorder %s5162_s11, 3 }
   0x6   : > { %p290_p2 = pnand %p3533_p0, %p289_p1 }
   0x7   : > { %v3536_v1 = vld [vmem:[%s6270_s1 + $0x40] sm:$0xff] (!%p290_p2)  ;;  %v3537_v2 = vld [vmem:[%s6270_s1 + $0x48] sm:$0xff] (!%p290_p2)  ;;  %v3538_v3 = vld [vmem:[%s6270_s1 + $0x50] sm:$0xff] (!%p290_p2)  ;;  %vm331_vm0 = vcmask (!%p290_p2), 523264   ;;  %p5239_p3 = scmp.lt.s32.totalorder (!%p290_p2), %s3529_s12, 1  ;;  %v5164_v6 = vmov (!%p290_p2), 0.0  }
   0x8   : > { %293 = sbr.rel (%p290_p2) target bundleno = 989 (0x3dd), region = 56  ;;  %v4672_v4 = vpack.c.bf16 (!%p290_p2), %v3537_v2, %v3536_v1  ;;  %v3539_v5 = vld [vmem:[%s6270_s1 + $0x58] sm:$0xff] (!%p290_p2)  ;;  %333 = vst.msk [vmem:[#allocation2 + $0x8] sm:$0xff] (!%p290_p2), %vm331_vm0, %v5164_v6  ;;  %332 = vst.msk [vmem:[#allocation2] sm:$0xff] (!%p290_p2), %vm331_vm0, %v5164_v6  ;;  %v3540_v8 = vld [vmem:[%s6270_s1 + $0x60] sm:$0xff] (!%p290_p2) }
   0x9   : > { %334 = vst.msk [vmem:[#allocation2 + $0x10] sm:$0xff] (!%p290_p2), %vm331_vm0, %v5164_v6  ;;  %335 = vst.msk [vmem:[#allocation2 + $0x18] sm:$0xff] (!%p290_p2), %vm331_vm0, %v5164_v6  ;;  %v4676_v7 = vpack.c.bf16 (!%p290_p2), %v3539_v5, %v3538_v3  ;;  %v3541_v9 = vld [vmem:[%s6270_s1 + $0x68] sm:$0xff] (!%p290_p2)  ;;  %v3542_v11 = vld [vmem:[%s6270_s1 + $0x70] sm:$0xff] (!%p290_p2) }
   0xa   : > { %336 = vst.msk [vmem:[#allocation2 + $0x20] sm:$0xff] (!%p290_p2), %vm331_vm0, %v5164_v6  ;;  %337 = vst.msk [vmem:[#allocation2 + $0x28] sm:$0xff] (!%p290_p2), %vm331_vm0, %v5164_v6  ;;  %4673 = vmatprep.subr.bf16.mxu0 (!%p290_p2), %v4672_v4  ;;  %v4680_v10 = vpack.c.bf16 (!%p290_p2), %v3541_v9, %v3540_v8  ;;  %v3543_v12 = vld [vmem:[%s6270_s1 + $0x78] sm:$0xff] (!%p290_p2)  ;;  %v411_v28 = vld [vmem:[%s6270_s1] sm:$0xff] (!%p290_p2) }
   0xb   : > { %338 = vst.msk [vmem:[#allocation2 + $0x30] sm:$0xff] (!%p290_p2), %vm331_vm0, %v5164_v6  ;;  %339 = vst.msk [vmem:[#allocation2 + $0x38] sm:$0xff] (!%p290_p2), %vm331_vm0, %v5164_v6  ;;  %4675 = vmatpush3.bf16.msra.mxu0 (!%p290_p2), %v4672_v4  ;;  %v4684_v18 = vpack.c.bf16 (!%p290_p2), %v3543_v12, %v3542_v11  ;;  %v412_v29 = vld [vmem:[%s6270_s1 + $0x8] sm:$0xff] (!%p290_p2)  ;;  %v413_v39 = vld [vmem:[%s6270_s1 + $0x10] sm:$0xff] (!%p290_p2) }
   0xc   : > { %340 = vst.msk [vmem:[#allocation2 + $0x40] sm:$0xff] (!%p290_p2), %vm331_vm0, %v5164_v6  ;;  %341 = vst.msk [vmem:[#allocation2 + $0x48] sm:$0xff] (!%p290_p2), %vm331_vm0, %v5164_v6  ;;  %4677 = vmatprep.subr.bf16.mxu0 (!%p290_p2), %v4676_v7  ;;  %v4688_v36 = vpack.c.bf16 (!%p290_p2), %v412_v29, %v411_v28  ;;  %v414_v40 = vld [vmem:[%s6270_s1 + $0x18] sm:$0xff] (!%p290_p2)  ;;  %v415_v44 = vld [vmem:[%s6270_s1 + $0x20] sm:$0xff] (!%p290_p2) }
   0xd   : > { %342 = vst.msk [vmem:[#allocation2 + $0x50] sm:$0xff] (!%p290_p2), %vm331_vm0, %v5164_v6  ;;  %343 = vst.msk [vmem:[#allocation2 + $0x58] sm:$0xff] (!%p290_p2), %vm331_vm0, %v5164_v6  ;;  %v4692_v43 = vpack.c.bf16 (!%p290_p2), %v414_v40, %v413_v39  ;;  %v416_v45 = vld [vmem:[%s6270_s1 + $0x28] sm:$0xff] (!%p290_p2)  ;;  %v417_v49 = vld [vmem:[%s6270_s1 + $0x30] sm:$0xff] (!%p290_p2) }
   0xe   : > { %344 = vst.msk [vmem:[#allocation2 + $0x60] sm:$0xff] (!%p290_p2), %vm331_vm0, %v5164_v6  ;;  %345 = vst.msk [vmem:[#allocation2 + $0x68] sm:$0xff] (!%p290_p2), %vm331_vm0, %v5164_v6  ;;  %v4696_v48 = vpack.c.bf16 (!%p290_p2), %v416_v45, %v415_v44  ;;  %v418_v50 = vld [vmem:[%s6270_s1 + $0x38] sm:$0xff] (!%p290_p2)  ;;  %v3560_v55 = vld [vmem:[%s6270_s1 + $0x80] sm:$0xff] (!%p290_p2) }
   0xf   : > { %346 = vst.msk [vmem:[#allocation2 + $0x70] sm:$0xff] %vm331_vm0, %v5164_v6  ;;  %347 = vst.msk [vmem:[#allocation2 + $0x78] sm:$0xff] %vm331_vm0, %v5164_v6  ;;  %s6281_s12 = smov (!%p5239_p3, %s3529_s12), 1  ;;  %4679 = vmatpush3.bf16.msra.mxu0 %v4676_v7  ;;  %v419_v19 = vld [vmem:[#allocation2 + $0x8] sm:$0xff]  ;;  %v4700_v53 = vpack.c.bf16 %v418_v50, %v417_v49  ;;  %v3562_v62 = vld [vmem:[%s6270_s1 + $0x90] sm:$0xff] }
  0x10   : > { %348 = vst.msk [vmem:[#allocation2 + $0x80] sm:$0xff] %vm331_vm0, %v5164_v6  ;;  %349 = vst.msk [vmem:[#allocation2 + $0x88] sm:$0xff] %vm331_vm0, %v5164_v6  ;;  %s3822_s25 = sshll.u32 %s6281_s12, 6  ;;  %4681 = vmatprep.subr.bf16.mxu0 %v4680_v10  ;;  %4147 = vmatprep.mubr.msk.f32.mxu0 %vm331_vm0, %v419_v19  ;;  %v3561_v56 = vld [vmem:[%s6270_s1 + $0x88] sm:$0xff]  ;;  %v3563_v63 = vld [vmem:[%s6270_s1 + $0x98] sm:$0xff]  ;;  %s330_s29 = scalar_lea.vmem %s6278_s9, %s6281_s12 }
  0x11   : > { %350 = vst.msk [vmem:[#allocation2 + $0x90] sm:$0xff] %vm331_vm0, %v5164_v6  ;;  %351 = vst.msk [vmem:[#allocation2 + $0x98] sm:$0xff] %vm331_vm0, %v5164_v6  ;;  %s5328_s13 = scalar_lea.vmem %s6269_s0, %s3822_s25  ;;  %4399 = vmatprep.mubr.msk.f32.mxu1 %vm331_vm0, %v419_v19  ;;  %v5414_v60 = vld [vmem:[#allocation2 + $0x7] sm:$0xff]  ;;  %v4704_v61 = vpack.c.bf16 %v3561_v56, %v3560_v55  ;;  %v4708_v2 = vpack.c.bf16 %v3563_v63, %v3562_v62  ;;  %v3566_v9 = vld [vmem:[%s6270_s1 + $0xb0] sm:$0xff] }
  0x12   : > { %352 = vst.msk [vmem:[#allocation2 + $0xa0] sm:$0xff] %vm331_vm0, %v5164_v6  ;;  %353 = vst.msk [vmem:[#allocation2 + $0xa8] sm:$0xff] %vm331_vm0, %v5164_v6  ;;  %v5331_v13 = vld [vmem:[%s5328_s13] sm:$0xff]  ;;  %v5334_v14 = vld [vmem:[%s5328_s13 + $0x8] sm:$0xff] }
  0x13   : > { %354 = vst.msk [vmem:[#allocation2 + $0xb0] sm:$0xff] %vm331_vm0, %v5164_v6  ;;  %355 = vst.msk [vmem:[#allocation2 + $0xb8] sm:$0xff] %vm331_vm0, %v5164_v6  ;;  %v364_v15 = vld [vmem:[%s5328_s13 + $0x10] sm:$0xff]  ;;  %vm370_vm1 = vcmp.gt.f32.partialorder %v5331_v13, 0.0  ;;  %v378_v16 = vmul.f32 0.2, %v5331_v13  ;;  %4683 = vmatpush3.bf16.msra.mxu0 %v4680_v10 }
  0x14   : > { %356 = vst.msk [vmem:[#allocation2 + $0xc0] sm:$0xff] %vm331_vm0, %v5164_v6  ;;  %357 = vst.msk [vmem:[#allocation2 + $0xc8] sm:$0xff] %vm331_vm0, %v5164_v6  ;;  %vm371_vm2 = vcmp.gt.f32.partialorder %v5334_v14, 0.0  ;;  %v379_v17 = vmul.f32 0.2, %v5334_v14  ;;  %vm372_vm3 = vcmp.gt.f32.partialorder %v364_v15, 0.0  ;;  %4685 = vmatprep.subr.bf16.mxu0 %v4684_v18 }
  0x15   : > { %358 = vst.msk [vmem:[#allocation2 + $0xd0] sm:$0xff] %vm331_vm0, %v5164_v6  ;;  %359 = vst.msk [vmem:[#allocation2 + $0xd8] sm:$0xff] %vm331_vm0, %v5164_v6  ;;  %v380_v20 = vmul.f32 0.2, %v364_v15  ;;  %v365_v21 = vld [vmem:[%s5328_s13 + $0x18] sm:$0xff]  ;;  %v366_v22 = vld [vmem:[%s5328_s13 + $0x20] sm:$0xff]  ;;  %v386_v23 = vsel %vm370_vm1, %v5331_v13, %v378_v16 }
  0x16   : > { %360 = vst.msk [vmem:[#allocation2 + $0xe0] sm:$0xff] %vm331_vm0, %v5164_v6  ;;  %361 = vst.msk [vmem:[#allocation2 + $0xe8] sm:$0xff] %vm331_vm0, %v5164_v6  ;;  %v387_v24 = vsel %vm371_vm2, %v5334_v14, %v379_v17  ;;  %vm373_vm4 = vcmp.gt.f32.partialorder %v365_v21, 0.0  ;;  %v381_v25 = vmul.f32 0.2, %v365_v21  ;;  %v367_v26 = vld [vmem:[%s5328_s13 + $0x28] sm:$0xff] }
  0x17   : > { %v368_v27 = vld [vmem:[%s5328_s13 + $0x30] sm:$0xff]  ;;  %395 = vst.msk [vmem:[#allocation2 + $0x20] sm:$0xff] %vm331_vm0, %v386_v23  ;;  %396 = vst.msk [vmem:[#allocation2 + $0x38] sm:$0xff] %vm331_vm0, %v387_v24  ;;  %v388_v30 = vsel %vm372_vm3, %v364_v15, %v380_v20  ;;  %vm374_vm5 = vcmp.gt.f32.partialorder %v366_v22, 0.0  ;;  %v382_v31 = vmul.f32 0.2, %v366_v22  ;;  %4687 = vmatpush3.bf16.msra.mxu0 %v4684_v18 }
  0x18   : > { %vm375_vm6 = vcmp.gt.f32.partialorder %v367_v26, 0.0  ;;  %397 = vst.msk [vmem:[#allocation2 + $0x50] sm:$0xff] %vm331_vm0, %v388_v30  ;;  %v389_v32 = vsel %vm373_vm4, %v365_v21, %v381_v25  ;;  %v383_v33 = vmul.f32 0.2, %v367_v26  ;;  %vm376_vm7 = vcmp.gt.f32.partialorder %v368_v27, 0.0  ;;  %4689 = vmatprep.subr.bf16.mxu0 %v4688_v36  ;;  %v369_v54 = vld [vmem:[%s5328_s13 + $0x38] sm:$0xff] }
  0x19   : > { %v384_v34 = vmul.f32 0.2, %v368_v27  ;;  %398 = vst.msk [vmem:[#allocation2 + $0x68] sm:$0xff] %vm331_vm0, %v389_v32  ;;  %v390_v35 = vsel %vm374_vm5, %v366_v22, %v382_v31  ;;  %vm377_vm8 = vcmp.gt.f32.partialorder %v369_v54, 0.0  ;;  %v385_v57 = vmul.f32 0.2, %v369_v54 }
  0x1a   : > { %399 = vst.msk [vmem:[#allocation2 + $0x80] sm:$0xff] %vm331_vm0, %v390_v35  ;;  %v391_v37 = vsel %vm375_vm6, %v367_v26, %v383_v33  ;;  %v3564_v3 = vld [vmem:[%s6270_s1 + $0xa0] sm:$0xff]  ;;  %v3565_v4 = vld [vmem:[%s6270_s1 + $0xa8] sm:$0xff]  ;;  %v3567_v10 = vld [vmem:[%s6270_s1 + $0xb8] sm:$0xff]  ;;  %vm5166_vm2 = vmmov 0   ;;  %vm3380_vm3 = vcmask 195584  }
  0x1b   : > { %v392_v38 = vsel %vm376_vm7, %v368_v27, %v384_v34  ;;  %400 = vst.msk [vmem:[#allocation2 + $0x98] sm:$0xff] %vm331_vm0, %v391_v37  ;;  %v393_v59 = vsel %vm377_vm8, %v369_v54, %v385_v57  ;;  %v4712_v8 = vpack.c.bf16 %v3565_v4, %v3564_v3  ;;  %v3673_v11 = vld [vmem:[%s6272_s3 + $0x40] sm:$0xff]  ;;  %v3674_v12 = vld [vmem:[%s6272_s3 + $0x48] sm:$0xff]  ;;  %v4716_v18 = vpack.c.bf16 %v3567_v10, %v3566_v9  ;;  %v3578_v24 = vld [vmem:[%s6270_s1 + $0xd0] sm:$0xff] }
  0x1c   : > { %401 = vst.msk [vmem:[#allocation2 + $0xb0] sm:$0xff] %vm331_vm0, %v392_v38  ;;  %402 = vst.msk [vmem:[#allocation2 + $0xc8] sm:$0xff] %vm331_vm0, %v393_v59  ;;  %v4816_v16 = vpack.c.bf16 %v3674_v12, %v3673_v11  ;;  %v3576_v19 = vld [vmem:[%s6270_s1 + $0xc0] sm:$0xff]  ;;  %v3577_v20 = vld [vmem:[%s6270_s1 + $0xc8] sm:$0xff] }
  0x1d   : > { %v5477_v22 = vld [vmem:[#allocation2 + $0x9] sm:$0xff]  ;;  %v4720_v23 = vpack.c.bf16 %v3577_v20, %v3576_v19  ;;  %v3579_v25 = vld [vmem:[%s6270_s1 + $0xd8] sm:$0xff]  ;;  %v3580_v29 = vld [vmem:[%s6270_s1 + $0xe0] sm:$0xff] }
  0x1e   : > { %v5369_v41 = vld [vmem:[#allocation2 + $0x20] sm:$0xff]  ;;  %v5371_v42 = vld [vmem:[#allocation2 + $0x38] sm:$0xff]  ;;  %4817 = vmatprep.subr.bf16.mxu1 %v4816_v16  ;;  %v4724_v28 = vpack.c.bf16 %v3579_v25, %v3578_v24  ;;  %v3581_v30 = vld [vmem:[%s6270_s1 + $0xe8] sm:$0xff] }
  0x1f   : > { %4148 = vmatmul.mubr.msk.f32.vlgmr.msra.gmra.mrb[0].mxu0 %vm331_vm0, %v5369_v41  ;;  %v5383_v46 = vld [vmem:[#allocation2 + $0x50] sm:$0xff]  ;;  %v5427_v0 = vld [vmem:[#allocation2 + $0x1f] sm:$0xff]  ;;  %4819 = vmatpush3.bf16.msra.mxu1 %v4816_v16  ;;  %v4728_v33 = vpack.c.bf16 %v3581_v30, %v3580_v29  ;;  %v3593_v40 = vld [vmem:[%s6270_s1 + $0x108] sm:$0xff] }
  0x20   : > { %4691 = vmatpush3.bf16.msra.mxu0 %v4688_v36  ;;  %4150 = vmatprep.mubr.msk.f32.mxu0 %vm331_vm0, %v5371_v42  ;;  %v5385_v47 = vld [vmem:[#allocation2 + $0x68] sm:$0xff]  ;;  %v5429_v1 = vld [vmem:[#allocation2 + $0x37] sm:$0xff]  ;;  %v3592_v39 = vld [vmem:[%s6270_s1 + $0x100] sm:$0xff] }
  0x21   : > { %4693 = vmatprep.subr.bf16.mxu0 %v4692_v43  ;;  %v5397_v51 = vld [vmem:[#allocation2 + $0x80] sm:$0xff]  ;;  %v5441_v5 = vld [vmem:[#allocation2 + $0x4f] sm:$0xff]  ;;  %v3583_v35 = vld [vmem:[%s6270_s1 + $0xf8] sm:$0xff]  ;;  %v4736_v44 = vpack.c.bf16 %v3593_v40, %v3592_v39 }
  0x22   : > { %v5399_v52 = vld [vmem:[#allocation2 + $0x98] sm:$0xff]  ;;  %v5443_v7 = vld [vmem:[#allocation2 + $0x67] sm:$0xff]  ;;  %v3582_v34 = vld [vmem:[%s6270_s1 + $0xf0] sm:$0xff] }
  0x23   : > { %4151 = vmatmul.mubr.msk.f32.gmra.mrb[2].mxu0 %vm331_vm0, %v5383_v46  ;;  %v5412_v58 = vld [vmem:[#allocation2 + $0xb0] sm:$0xff]  ;;  %v5461_v15 = vld [vmem:[#allocation2 + $0x7f] sm:$0xff]  ;;  %v4732_v38 = vpack.c.bf16 %v3583_v35, %v3582_v34  ;;  %v5573_v62 = vld [vmem:[#allocation2 + $0xc7] sm:$0xff] }
  0x24   : > { %4695 = vmatpush3.bf16.msra.mxu0 %v4692_v43  ;;  %4153 = vmatprep.mubr.msk.f32.mxu0 %vm331_vm0, %v5385_v47  ;;  %v5463_v17 = vld [vmem:[#allocation2 + $0x97] sm:$0xff]  ;;  %v5475_v21 = vld [vmem:[#allocation2 + $0xaf] sm:$0xff]  ;;  %v5489_v26 = vld [vmem:[#allocation2 + $0x21] sm:$0xff] }
  0x25   : > { %4697 = vmatprep.subr.bf16.mxu0 %v4696_v48  ;;  %v5491_v27 = vld [vmem:[#allocation2 + $0x39] sm:$0xff]  ;;  %v5503_v31 = vld [vmem:[#allocation2 + $0x51] sm:$0xff]  ;;  %v5505_v32 = vld [vmem:[#allocation2 + $0x69] sm:$0xff] }
  0x26   : > { %v5517_v36 = vld [vmem:[#allocation2 + $0x81] sm:$0xff]  ;;  %v5519_v37 = vld [vmem:[#allocation2 + $0x99] sm:$0xff]  ;;  %v5531_v43 = vld [vmem:[#allocation2 + $0xb1] sm:$0xff] }
  0x27   : > { %4154 = vmatmul.mubr.msk.f32.gmra.mrb[4].mxu0 %vm331_vm0, %v5397_v51  ;;  %v3594_v45 = vld [vmem:[%s6270_s1 + $0x110] sm:$0xff]  ;;  %v3596_v50 = vld [vmem:[%s6270_s1 + $0x120] sm:$0xff]  ;;  %v3599_v56 = vld [vmem:[%s6270_s1 + $0x138] sm:$0xff] }
  0x28   : > { %4699 = vmatpush3.bf16.msra.mxu0 %v4696_v48  ;;  %4156 = vmatprep.mubr.msk.f32.mxu0 %vm331_vm0, %v5399_v52  ;;  %v3595_v48 = vld [vmem:[%s6270_s1 + $0x118] sm:$0xff]  ;;  %v3598_v55 = vld [vmem:[%s6270_s1 + $0x130] sm:$0xff]  ;;  %v3608_v59 = vld [vmem:[%s6270_s1 + $0x140] sm:$0xff] }
  0x29   : > { %4701 = vmatprep.subr.bf16.mxu0 %v4700_v53  ;;  %v4740_v49 = vpack.c.bf16 %v3595_v48, %v3594_v45  ;;  %v4748_v57 = vpack.c.bf16 %v3599_v56, %v3598_v55  ;;  %v3612_v4 = vld [vmem:[%s6270_s1 + $0x160] sm:$0xff]  ;;  %v3615_v10 = vld [vmem:[%s6270_s1 + $0x178] sm:$0xff]  ;;  %v3625_v16 = vld [vmem:[%s6270_s1 + $0x188] sm:$0xff] }
  0x2a   : > { %v3624_v12 = vld [vmem:[%s6270_s1 + $0x180] sm:$0xff]  ;;  %v3626_v20 = vld [vmem:[%s6270_s1 + $0x190] sm:$0xff]  ;;  %v3631_v30 = vld [vmem:[%s6270_s1 + $0x1b8] sm:$0xff] }
  0x2b   : > { %4157 = vmatmul.mubr.msk.f32.gmra.mrb[6].mxu0 %vm331_vm0, %v5412_v58  ;;  %v4768_v19 = vpack.c.bf16 %v3625_v16, %v3624_v12  ;;  %v3628_v25 = vld [vmem:[%s6270_s1 + $0x1a0] sm:$0xff]  ;;  %v3641_v35 = vld [vmem:[%s6270_s1 + $0x1c8] sm:$0xff]  ;;  %v3642_v40 = vld [vmem:[%s6270_s1 + $0x1d0] sm:$0xff] }
  0x2c   : > { %4703 = vmatpush3.bf16.msra.mxu0 %v4700_v53  ;;  %4175 = vmatprep.mubr.msk.f32.mxu0 %vm331_vm0, %v5414_v60  ;;  %v3597_v53 = vld [vmem:[%s6270_s1 + $0x128] sm:$0xff]  ;;  %v3640_v34 = vld [vmem:[%s6270_s1 + $0x1c0] sm:$0xff]  ;;  %v3658_v55 = vld [vmem:[%s6270_s1 + $0x210] sm:$0xff] }
  0x2d   : > { %4705 = vmatprep.subr.bf16.mxu0 %v4704_v61  ;;  %v4744_v54 = vpack.c.bf16 %v3597_v53, %v3596_v50  ;;  %v4784_v39 = vpack.c.bf16 %v3641_v35, %v3640_v34  ;;  %v3644_v48 = vld [vmem:[%s6270_s1 + $0x1e0] sm:$0xff]  ;;  %v3647_v53 = vld [vmem:[%s6270_s1 + $0x1f8] sm:$0xff]  ;;  %v3206_v16 = vld [vmem:[%s6274_s5 + $0x10] sm:$0xff] }
  0x2e   : > { %v3659_v56 = vld [vmem:[%s6270_s1 + $0x218] sm:$0xff]  ;;  %v3209_v34 = vld [vmem:[%s6274_s5 + $0x28] sm:$0xff] }
  0x2f   : > { %4176 = vmatmul.mubr.msk.f32.vlgmr.msra.gmra.mrb[0].mxu0 %vm331_vm0, %v5427_v0 }
  0x30   : > { %4707 = vmatpush3.bf16.msra.mxu0 %v4704_v61  ;;  %4178 = vmatprep.mubr.msk.f32.mxu0 %vm331_vm0, %v5429_v1  ;;  %v3609_v61 = vld [vmem:[%s6270_s1 + $0x148] sm:$0xff] }
  0x31   : > { %4709 = vmatprep.subr.bf16.mxu0 %v4708_v2  ;;  %v4752_v63 = vpack.c.bf16 %v3609_v61, %v3608_v59  ;;  %v3661_v59 = vld [vmem:[%s6270_s1 + $0x228] sm:$0xff] }
  0x33   : > { %4179 = vmatmul.mubr.msk.f32.gmra.mrb[2].mxu0 %vm331_vm0, %v5441_v5 }
  0x34   : > { %4711 = vmatpush3.bf16.msra.mxu0 %v4708_v2  ;;  %4181 = vmatprep.mubr.msk.f32.mxu0 %vm331_vm0, %v5443_v7  ;;  %v3611_v2 = vld [vmem:[%s6270_s1 + $0x158] sm:$0xff] }
  0x35   : > { %4713 = vmatprep.subr.bf16.mxu0 %v4712_v8 }
  0x37   : > { %4182 = vmatmul.mubr.msk.f32.gmra.mrb[4].mxu0 %vm331_vm0, %v5461_v15 }
  0x38   : > { %4715 = vmatpush3.bf16.msra.mxu0 %v4712_v8  ;;  %4184 = vmatprep.mubr.msk.f32.mxu0 %vm331_vm0, %v5463_v17  ;;  %v3613_v8 = vld [vmem:[%s6270_s1 + $0x168] sm:$0xff] }
  0x39   : > { %4717 = vmatprep.subr.bf16.mxu0 %v4716_v18  ;;  %v4760_v9 = vpack.c.bf16 %v3613_v8, %v3612_v4  ;;  %v3204_v4 = vld [vmem:[%s6274_s5] sm:$0xff]  ;;  %v3205_v8 = vld [vmem:[%s6274_s5 + $0x8] sm:$0xff] }
  0x3b   : > { %4185 = vmatmul.mubr.msk.f32.gmra.mrb[6].mxu0 %vm331_vm0, %v5475_v21 }
  0x3c   : > { %4719 = vmatpush3.bf16.msra.mxu0 %v4716_v18  ;;  %4203 = vmatprep.mubr.msk.f32.mxu0 %vm331_vm0, %v5477_v22  ;;  %v5615_v18 = vld [vmem:[#allocation2 + $0xc8] sm:$0xff] }
  0x3d   : > { %4721 = vmatprep.subr.bf16.mxu0 %v4720_v23 }
  0x3f   : > { %4204 = vmatmul.mubr.msk.f32.vlgmr.msra.gmra.mrb[0].mxu0 %vm331_vm0, %v5489_v26 }
  0x40   : > { %4723 = vmatpush3.bf16.msra.mxu0 %v4720_v23  ;;  %4206 = vmatprep.mubr.msk.f32.mxu0 %vm331_vm0, %v5491_v27  ;;  %v3627_v23 = vld [vmem:[%s6270_s1 + $0x198] sm:$0xff] }
  0x41   : > { %4725 = vmatprep.subr.bf16.mxu0 %v4724_v28  ;;  %v4772_v24 = vpack.c.bf16 %v3627_v23, %v3626_v20 }
  0x43   : > { %4207 = vmatmul.mubr.msk.f32.gmra.mrb[2].mxu0 %vm331_vm0, %v5503_v31 }
  0x44   : > { %4727 = vmatpush3.bf16.msra.mxu0 %v4724_v28  ;;  %4209 = vmatprep.mubr.msk.f32.mxu0 %vm331_vm0, %v5505_v32  ;;  %v3629_v28 = vld [vmem:[%s6270_s1 + $0x1a8] sm:$0xff] }
  0x45   : > { %4729 = vmatprep.subr.bf16.mxu0 %v4728_v33  ;;  %v4776_v29 = vpack.c.bf16 %v3629_v28, %v3628_v25 }
  0x47   : > { %4210 = vmatmul.mubr.msk.f32.gmra.mrb[4].mxu0 %vm331_vm0, %v5517_v36 }
  0x48   : > { %4731 = vmatpush3.bf16.msra.mxu0 %v4728_v33  ;;  %4212 = vmatprep.mubr.msk.f32.mxu0 %vm331_vm0, %v5519_v37 }
  0x49   : > { %4733 = vmatprep.subr.bf16.mxu0 %v4732_v38 }
  0x4b   : > { %4213 = vmatmul.mubr.msk.f32.gmra.mrb[6].mxu0 %vm331_vm0, %v5531_v43 }
  0x4c   : > { %4735 = vmatpush3.bf16.msra.mxu0 %v4732_v38  ;;  %4231 = vmatprep.mubr.msk.f32.mxu0 %vm331_vm0, %v5427_v0  ;;  %v3610_v0 = vld [vmem:[%s6270_s1 + $0x150] sm:$0xff] }
  0x4d   : > { %4737 = vmatprep.subr.bf16.mxu0 %v4736_v44  ;;  %v4756_v3 = vpack.c.bf16 %v3611_v2, %v3610_v0  ;;  %v5657_v38 = vld [vmem:[#allocation2 + $0xc9] sm:$0xff] }
  0x4e   : > { %v1829_v0 = vld [vmem:[%s6272_s3 + $0x8] sm:$0xff] }
  0x4f   : > { %4232 = vmatmul.mubr.msk.f32.vlgmr.msra.gmra.mrb[0].mxu0 %vm331_vm0, %v5429_v1 }
  0x50   : > { %4739 = vmatpush3.bf16.msra.mxu0 %v4736_v44  ;;  %4234 = vmatprep.mubr.msk.f32.mxu0 %vm331_vm0, %v5441_v5  ;;  %v3643_v44 = vld [vmem:[%s6270_s1 + $0x1d8] sm:$0xff] }
  0x51   : > { %4741 = vmatprep.subr.bf16.mxu0 %v4740_v49  ;;  %v4788_v45 = vpack.c.bf16 %v3643_v44, %v3642_v40 }
  0x53   : > { %4235 = vmatmul.mubr.msk.f32.gmra.mrb[2].mxu0 %vm331_vm0, %v5443_v7 }
  0x54   : > { %4743 = vmatpush3.bf16.msra.mxu0 %v4740_v49  ;;  %4237 = vmatprep.mubr.msk.f32.mxu0 %vm331_vm0, %v5461_v15  ;;  %v3645_v49 = vld [vmem:[%s6270_s1 + $0x1e8] sm:$0xff] }
  0x55   : > { %4745 = vmatprep.subr.bf16.mxu0 %v4744_v54  ;;  %v4792_v50 = vpack.c.bf16 %v3645_v49, %v3644_v48  ;;  %v1830_v49 = vld [vmem:[%s6272_s3 + $0x10] sm:$0xff] }
  0x57   : > { %4238 = vmatmul.mubr.msk.f32.gmra.mrb[4].mxu0 %vm331_vm0, %v5463_v17 }
  0x58   : > { %4747 = vmatpush3.bf16.msra.mxu0 %v4744_v54  ;;  %4240 = vmatprep.mubr.msk.f32.mxu0 %vm331_vm0, %v5475_v21  ;;  %v3657_v54 = vld [vmem:[%s6270_s1 + $0x208] sm:$0xff] }
  0x59   : > { %4749 = vmatprep.subr.bf16.mxu0 %v4748_v57 }
  0x5b   : > { %4241 = vmatmul.mubr.msk.f32.gmra.mrb[6].mxu0 %vm331_vm0, %v5573_v62 }
  0x5c   : > { %4751 = vmatpush3.bf16.msra.mxu0 %v4748_v57  ;;  %4259 = vmatprep.mubr.msk.f32.mxu0 %vm331_vm0, %v5369_v41  ;;  %v3614_v41 = vld [vmem:[%s6270_s1 + $0x170] sm:$0xff]  ;;  %v3660_v57 = vld [vmem:[%s6270_s1 + $0x220] sm:$0xff] }
  0x5d   : > { %4753 = vmatprep.subr.bf16.mxu0 %v4752_v63  ;;  %v4764_v11 = vpack.c.bf16 %v3615_v10, %v3614_v41  ;;  %v4808_v61 = vpack.c.bf16 %v3661_v59, %v3660_v57 }
  0x5f   : > { %4260 = vmatmul.mubr.msk.f32.vlgmr.msra.gmra.mrb[0].mxu0 %vm331_vm0, %v5371_v42 }
  0x60   : > { %4755 = vmatpush3.bf16.msra.mxu0 %v4752_v63  ;;  %4262 = vmatprep.mubr.msk.f32.mxu0 %vm331_vm0, %v5383_v46  ;;  %v1828_v63 = vld [vmem:[%s6272_s3] sm:$0xff] }
  0x61   : > { %4757 = vmatprep.subr.bf16.mxu0 %v4756_v3  ;;  %v5783_v2 = vpack.c.bf16 %v1829_v0, %v1828_v63  ;;  %v1834_v63 = vld [vmem:[%s6272_s3 + $0x30] sm:$0xff]  ;;  %v1835_v0 = vld [vmem:[%s6272_s3 + $0x38] sm:$0xff] }
  0x63   : > { %4263 = vmatmul.mubr.msk.f32.gmra.mrb[2].mxu0 %vm331_vm0, %v5385_v47 }
  0x64   : > { %4759 = vmatpush3.bf16.msra.mxu0 %v4756_v3  ;;  %4265 = vmatprep.mubr.msk.f32.mxu0 %vm331_vm0, %v5397_v51  ;;  %v3672_v3 = vld [vmem:[%s6271_s2] ss:$0 sm:$0xff] }
  0x65   : > { %4761 = vmatprep.subr.bf16.mxu0 %v4760_v9 }
  0x67   : > { %4266 = vmatmul.mubr.msk.f32.gmra.mrb[4].mxu0 %vm331_vm0, %v5399_v52 }
  0x68   : > { %4763 = vmatpush3.bf16.msra.mxu0 %v4760_v9  ;;  %4268 = vmatprep.mubr.msk.f32.mxu0 %vm331_vm0, %v5412_v58  ;;  %v5795_v9 = vpack.c.bf16 %v3205_v8, %v3204_v4  ;;  %v3697_v4 = vld [vmem:[%s6272_s3 + $0x80] sm:$0xff]  ;;  %v3698_v8 = vld [vmem:[%s6272_s3 + $0x88] sm:$0xff] }
  0x69   : > { %4765 = vmatprep.subr.bf16.mxu0 %v4764_v11 }
  0x6b   : > { %4269 = vmatmul.mubr.msk.f32.gmra.mrb[6].mxu0 %vm331_vm0, %v5615_v18 }
  0x6c   : > { %4767 = vmatpush3.bf16.msra.mxu0 %v4764_v11  ;;  %4287 = vmatprep.mubr.msk.f32.mxu0 %vm331_vm0, %v5489_v26  ;;  %v3630_v26 = vld [vmem:[%s6270_s1 + $0x1b0] sm:$0xff] }
  0x6d   : > { %4769 = vmatprep.subr.bf16.mxu0 %v4768_v19  ;;  %v4780_v33 = vpack.c.bf16 %v3631_v30, %v3630_v26 }
  0x6f   : > { %4288 = vmatmul.mubr.msk.f32.vlgmr.msra.gmra.mrb[0].mxu0 %vm331_vm0, %v5491_v27 }
  0x70   : > { %4771 = vmatpush3.bf16.msra.mxu0 %v4768_v19  ;;  %4290 = vmatprep.mubr.msk.f32.mxu0 %vm331_vm0, %v5503_v31 }
  0x71   : > { %4773 = vmatprep.subr.bf16.mxu0 %v4772_v24 }
  0x73   : > { %4291 = vmatmul.mubr.msk.f32.gmra.mrb[2].mxu0 %vm331_vm0, %v5505_v32 }
  0x74   : > { %4775 = vmatpush3.bf16.msra.mxu0 %v4772_v24  ;;  %4293 = vmatprep.mubr.msk.f32.mxu0 %vm331_vm0, %v5517_v36 }
  0x75   : > { %4777 = vmatprep.subr.bf16.mxu0 %v4776_v29 }
  0x77   : > { %4294 = vmatmul.mubr.msk.f32.gmra.mrb[4].mxu0 %vm331_vm0, %v5519_v37 }
  0x78   : > { %4779 = vmatpush3.bf16.msra.mxu0 %v4776_v29  ;;  %4296 = vmatprep.mubr.msk.f32.mxu0 %vm331_vm0, %v5531_v43 }
  0x79   : > { %4781 = vmatprep.subr.bf16.mxu0 %v4780_v33 }
  0x7b   : > { %4297 = vmatmul.mubr.msk.f32.gmra.mrb[6].mxu0 %vm331_vm0, %v5657_v38 }
  0x7c   : > { %4783 = vmatpush3.bf16.msra.mxu0 %v4780_v33  ;;  %4315 = vmatprep.mubr.msk.f32.mxu0 %vm331_vm0, %v5429_v1  ;;  %v3646_v1 = vld [vmem:[%s6270_s1 + $0x1f0] sm:$0xff]  ;;  %v3208_v33 = vld [vmem:[%s6274_s5 + $0x20] sm:$0xff] }
  0x7d   : > { %4785 = vmatprep.subr.bf16.mxu0 %v4784_v39 }
  0x7f   : > { %4316 = vmatmul.mubr.msk.f32.vlgmr.msra.gmra.mrb[0].mxu0 %vm331_vm0, %v5441_v5  ;;  %v4796_v5 = vpack.c.bf16 %v3647_v53, %v3646_v1  ;;  %v1831_v53 = vld [vmem:[%s6272_s3 + $0x18] sm:$0xff] }
  0x80   : > { %4787 = vmatpush3.bf16.msra.mxu0 %v4784_v39  ;;  %4318 = vmatprep.mubr.msk.f32.mxu0 %vm331_vm0, %v5443_v7  ;;  %v3656_v7 = vld [vmem:[%s6270_s1 + $0x200] sm:$0xff] }
  0x81   : > { %4789 = vmatprep.subr.bf16.mxu0 %v4788_v45 }
  0x83   : > { %4319 = vmatmul.mubr.msk.f32.gmra.mrb[2].mxu0 %vm331_vm0, %v5461_v15  ;;  %v5699_v15 = vld [vmem:[#allocation2 + $0xdf] sm:$0xff] }
  0x84   : > { %4791 = vmatpush3.bf16.msra.mxu0 %v4788_v45  ;;  %4321 = vmatprep.mubr.msk.f32.mxu0 %vm331_vm0, %v5463_v17  ;;  %v4800_v17 = vpack.c.bf16 %v3657_v54, %v3656_v7  ;;  %v3211_v7 = vld [vmem:[%s6274_s5 + $0x38] sm:$0xff] }
  0x85   : > { %4793 = vmatprep.subr.bf16.mxu0 %v4792_v50 }
  0x87   : > { %4322 = vmatmul.mubr.msk.f32.gmra.mrb[4].mxu0 %vm331_vm0, %v5475_v21  ;;  %v4804_v21 = vpack.c.bf16 %v3659_v56, %v3658_v55 }
  0x88   : > { %4795 = vmatpush3.bf16.msra.mxu0 %v4792_v50  ;;  %4324 = vmatprep.mubr.msk.f32.mxu0 %vm331_vm0, %v5573_v62  ;;  %v3663_v62 = vld [vmem:[%s6270_s1 + $0x238] sm:$0xff] }
  0x89   : > { %4797 = vmatprep.subr.bf16.mxu0 %v4796_v5 }
  0x8b   : > { %4325 = vmatmul.mubr.msk.f32.gmra.mrb[6].mxu0 %vm331_vm0, %v5699_v15 }
  0x8c   : > { %4799 = vmatpush3.bf16.msra.mxu0 %v4796_v5  ;;  %4343 = vmatprep.mubr.msk.f32.mxu0 %vm331_vm0, %v5371_v42  ;;  %v3662_v42 = vld [vmem:[%s6270_s1 + $0x230] sm:$0xff] }
  0x8d   : > { %4801 = vmatprep.subr.bf16.mxu0 %v4800_v17  ;;  %v3210_v5 = vld [vmem:[%s6274_s5 + $0x30] sm:$0xff] }
  0x8f   : > { %4344 = vmatmul.mubr.msk.f32.vlgmr.msra.gmra.mrb[0].mxu0 %vm331_vm0, %v5383_v46  ;;  %v4812_v46 = vpack.c.bf16 %v3663_v62, %v3662_v42 }
  0x90   : > { %4803 = vmatpush3.bf16.msra.mxu0 %v4800_v17  ;;  %4346 = vmatprep.mubr.msk.f32.mxu0 %vm331_vm0, %v5385_v47  ;;  %v5735_v47 = vld [vmem:[#allocation2 + $0xe0] sm:$0xff]  ;;  %v5835_v17 = vpack.c.bf16 %v3211_v7, %v3210_v5  ;;  %v3718_v5 = vld [vmem:[%s6272_s3 + $0xe8] sm:$0xff] }
  0x91   : > { %4805 = vmatprep.subr.bf16.mxu0 %v4804_v21 }
  0x93   : > { %4347 = vmatmul.mubr.msk.f32.gmra.mrb[2].mxu0 %vm331_vm0, %v5397_v51  ;;  %v5753_v51 = vld [vmem:[#allocation2 + $0xe1] sm:$0xff] }
  0x94   : > { %4807 = vmatpush3.bf16.msra.mxu0 %v4804_v21  ;;  %4349 = vmatprep.mubr.msk.f32.mxu0 %vm331_vm0, %v5399_v52  ;;  %v3675_v52 = vld [vmem:[%s6272_s3 + $0x50] sm:$0xff] }
  0x95   : > { %4809 = vmatprep.subr.bf16.mxu0 %v4808_v61 }
  0x97   : > { %4350 = vmatmul.mubr.msk.f32.gmra.mrb[4].mxu0 %vm331_vm0, %v5412_v58  ;;  %v3676_v58 = vld [vmem:[%s6272_s3 + $0x58] sm:$0xff] }
  0x98   : > { %4811 = vmatpush3.bf16.msra.mxu0 %v4808_v61  ;;  %4352 = vmatprep.mubr.msk.f32.mxu0 %vm331_vm0, %v5615_v18  ;;  %v3207_v18 = vld [vmem:[%s6274_s5 + $0x18] sm:$0xff]  ;;  %v4836_v61 = vpack.c.bf16 %v1831_v53, %v1830_v49  ;;  %v3717_v53 = vld [vmem:[%s6272_s3 + $0xe0] sm:$0xff] }
  0x99   : > { %4813 = vmatprep.subr.bf16.mxu0 %v4812_v46  ;;  %v5805_v20 = vpack.c.bf16 %v3207_v18, %v3206_v16  ;;  %v3700_v16 = vld [vmem:[%s6272_s3 + $0x98] sm:$0xff] }
  0x9a   : > { %v3716_v49 = vld [vmem:[%s6272_s3 + $0xd8] sm:$0xff] }
  0x9b   : > { %4353 = vmatmul.mubr.msk.f32.gmra.mrb[6].mxu0 %vm331_vm0, %v5735_v47 }
  0x9c   : > { %4815 = vmatpush3.bf16.msra.mxu0 %v4812_v46  ;;  %4371 = vmatprep.mubr.msk.f32.mxu0 %vm331_vm0, %v5491_v27  ;;  %v4820_v27 = vpack.c.bf16 %v3676_v58, %v3675_v52  ;;  %v1832_v52 = vld [vmem:[%s6272_s3 + $0x20] sm:$0xff]  ;;  %v1833_v58 = vld [vmem:[%s6272_s3 + $0x28] sm:$0xff] }
  0x9d   : > { %4961 = vmatprep.subr.bf16.mxu0 %v5795_v9 }
  0x9e   : > { %4821 = vmatprep.subr.bf16.mxu1 %v4820_v27 }
  0x9f   : > { %4372 = vmatmul.mubr.msk.f32.vlgmr.msra.gmra.mrb[0].mxu0 %vm331_vm0, %v5503_v31  ;;  %4823 = vmatpush3.bf16.msra.mxu1 %v4820_v27  ;;  %v3677_v31 = vld [vmem:[%s6272_s3 + $0x60] sm:$0xff] }
  0xa0   : > { %4374 = vmatprep.mubr.msk.f32.mxu0 %vm331_vm0, %v5505_v32  ;;  %v3678_v32 = vld [vmem:[%s6272_s3 + $0x68] sm:$0xff]  ;;  %4963 = vmatpush3.bf16.msra.mxu0 %v5795_v9 }
  0xa1   : > { %4965 = vmatprep.subr.bf16.mxu0 %v5805_v20 }
  0xa3   : > { %4375 = vmatmul.mubr.msk.f32.gmra.mrb[2].mxu0 %vm331_vm0, %v5517_v36  ;;  %v3679_v36 = vld [vmem:[%s6272_s3 + $0x70] sm:$0xff] }
  0xa4   : > { %4377 = vmatprep.mubr.msk.f32.mxu0 %vm331_vm0, %v5519_v37  ;;  %v3680_v37 = vld [vmem:[%s6272_s3 + $0x78] sm:$0xff]  ;;  %4967 = vmatpush3.bf16.msra.mxu0 %v5805_v20 }
  0xa7   : > { %4378 = vmatmul.mubr.msk.f32.gmra.mrb[4].mxu0 %vm331_vm0, %v5531_v43  ;;  %v4828_v43 = vpack.c.bf16 %v3680_v37, %v3679_v36  ;;  %v4840_v36 = vpack.c.bf16 %v1833_v58, %v1832_v52 }
  0xa8   : > { %4380 = vmatprep.mubr.msk.f32.mxu0 %vm331_vm0, %v5657_v38  ;;  %v5817_v38 = vpack.c.bf16 %v3209_v34, %v3208_v33 }
  0xaa   : > { %4969 = vmatprep.subr.bf16.mxu0 %v5817_v38 }
  0xab   : > { %4381 = vmatmul.mubr.msk.f32.gmra.mrb[6].mxu0 %vm331_vm0, %v5753_v51 }
  0xac   : > { %4651 = vmatprep.mubr.msk.f32.mxu0 %vm331_vm0, %v5331_v13  ;;  %v4824_v13 = vpack.c.bf16 %v3678_v32, %v3677_v31  ;;  %4971 = vmatpush3.bf16.msra.mxu0 %v5817_v38 }
  0xad   : > { %4973 = vmatprep.subr.bf16.mxu0 %v5835_v17 }
  0xae   : > { %4825 = vmatprep.subr.bf16.mxu1 %v4824_v13 }
  0xaf   : > { %4827 = vmatpush3.bf16.msra.mxu1 %v4824_v13 }
  0xb0   : > { %4829 = vmatprep.subr.bf16.mxu1 %v4828_v43  ;;  %4975 = vmatpush3.bf16.msra.mxu0 %v5835_v17 }
  0xb3   : > { %4831 = vmatpush3.bf16.msra.mxu1 %v4828_v43  ;;  %4652 = vmatmul.mubr.msk.f32.vlgmr.msra.gmra.mrb[8].mxu0 %vm331_vm0, %v5334_v14  ;;  %v4844_v14 = vpack.c.bf16 %v1835_v0, %v1834_v63  ;;  %v3735_v0 = vld [vmem:[%s6272_s3 + $0x130] sm:$0xff] }
  0xb4   : > { %4833 = vmatprep.subr.bf16.mxu1 %v5783_v2  ;;  %4669 = vmatprep.mubr.msk.f32.mxu0 %vm5166_vm2, %v5164_v6 }
 0x172   : > { %v4373_v41 = vpop.f32.mrb[0].mxu0 }
 0x173   : > { %v1781_v10 = vadd.f32 %v4373_v41, %v3672_v3  ;;  %v1726_v11 = vpop.f32.mrb[1].mxu0 }
 0x174   : > { %v1780_v12 = vadd.f32 %v3672_v3, %v1726_v11 }
 0x175   : > { %vm1789_vm9 = vcmp.gt.f32.partialorder %v1781_v10, 0.0  ;;  %v1797_v19 = vmul.f32 0.2, %v1781_v10 }
 0x176   : > { %vm1788_vm10 = vcmp.gt.f32.partialorder %v1780_v12, 0.0  ;;  %v1796_v23 = vmul.f32 0.2, %v1780_v12  ;;  %v4376_v24 = vpop.f32.mrb[2].mxu0 }
 0x177   : > { %v1805_v25 = vsel %vm1789_vm9, %v1781_v10, %v1797_v19  ;;  %v1783_v28 = vadd.f32 %v4376_v24, %v3672_v3  ;;  %v1736_v29 = vpop.f32.mrb[3].mxu0  ;;  %v4848_v10 = vpack.c.bf16 %v3698_v8, %v3697_v4  ;;  %v3702_v24 = vld [vmem:[%s6272_s3 + $0xa8] sm:$0xff]  ;;  %v3745_v8 = vld [vmem:[%s6272_s3 + $0x140] sm:$0xff] }
 0x178   : > { %1813 = vst.msk [vmem:[#allocation2 + $0x38] sm:$0xff] %vm331_vm0, %v1805_v25  ;;  %v1804_v26 = vsel %vm1788_vm10, %v1780_v12, %v1796_v23  ;;  %v1782_v30 = vadd.f32 %v3672_v3, %v1736_v29  ;;  %v3699_v12 = vld [vmem:[%s6272_s3 + $0x90] sm:$0xff]  ;;  %v3701_v23 = vld [vmem:[%s6272_s3 + $0xa0] sm:$0xff] }
 0x179   : > { %1812 = vst.msk [vmem:[#allocation2 + $0x20] sm:$0xff] %vm331_vm0, %v1804_v26  ;;  %vm1791_vm11 = vcmp.gt.f32.partialorder %v1783_v28, 0.0  ;;  %v1799_v35 = vmul.f32 0.2, %v1783_v28  ;;  %v4852_v18 = vpack.c.bf16 %v3700_v16, %v3699_v12  ;;  %v3703_v29 = vld [vmem:[%s6272_s3 + $0xb0] sm:$0xff]  ;;  %v3704_v26 = vld [vmem:[%s6272_s3 + $0xb8] sm:$0xff] }
 0x17a   : > { %vm1790_vm12 = vcmp.gt.f32.partialorder %v1782_v30, 0.0  ;;  %v1798_v39 = vmul.f32 0.2, %v1782_v30  ;;  %v4379_v40 = vpop.f32.mrb[4].mxu0  ;;  %v4860_v33 = vpack.c.bf16 %v3704_v26, %v3703_v29  ;;  %v3752_v26 = vld [vmem:[%s6272_s3 + $0x178] sm:$0xff] }
 0x17b   : > { %v1807_v44 = vsel %vm1791_vm11, %v1783_v28, %v1799_v35  ;;  %v1785_v45 = vadd.f32 %v4379_v40, %v3672_v3  ;;  %v1746_v48 = vpop.f32.mrb[5].mxu0  ;;  %v3713_v35 = vld [vmem:[%s6272_s3 + $0xc0] sm:$0xff]  ;;  %vm3480_vm11 = vcmask 0  }
 0x17c   : > { %1815 = vst.msk [vmem:[#allocation2 + $0x68] sm:$0xff] %vm331_vm0, %v1807_v44  ;;  %v1806_v50 = vsel %vm1790_vm12, %v1782_v30, %v1798_v39  ;;  %v1784_v1 = vadd.f32 %v3672_v3, %v1746_v48  ;;  %v3714_v39 = vld [vmem:[%s6272_s3 + $0xc8] sm:$0xff]  ;;  %v3715_v48 = vld [vmem:[%s6272_s3 + $0xd0] sm:$0xff] }
 0x17d   : > { %1814 = vst.msk [vmem:[#allocation2 + $0x50] sm:$0xff] %vm331_vm0, %v1806_v50  ;;  %vm1793_vm13 = vcmp.gt.f32.partialorder %v1785_v45, 0.0  ;;  %v1801_v54 = vmul.f32 0.2, %v1785_v45  ;;  %v4864_v44 = vpack.c.bf16 %v3714_v39, %v3713_v35  ;;  %v4868_v50 = vpack.c.bf16 %v3716_v49, %v3715_v48  ;;  %v3761_v35 = vld [vmem:[%s6272_s3 + $0x180] sm:$0xff]  ;;  %v3762_v39 = vld [vmem:[%s6272_s3 + $0x188] sm:$0xff] }
 0x17e   : > { %vm1792_vm14 = vcmp.gt.f32.partialorder %v1784_v1, 0.0  ;;  %v1800_v55 = vmul.f32 0.2, %v1784_v1  ;;  %v4382_v56 = vpop.f32.mrb[6].mxu0  ;;  %v3763_v49 = vld [vmem:[%s6272_s3 + $0x190] sm:$0xff] }
 0x17f   : > { %v1809_v21 = vsel %vm1793_vm13, %v1785_v45, %v1801_v54  ;;  %v1787_v57 = vadd.f32 %v4382_v56, %v3672_v3  ;;  %v1756_v59 = vpop.f32.mrb[7].mxu0  ;;  %v5851_v31 = vld [vmem:[#allocation2 + $0x38] sm:$0xff] }
 0x180   : > { %1817 = vst.msk [vmem:[#allocation2 + $0x98] sm:$0xff] %vm331_vm0, %v1809_v21  ;;  %v1808_v42 = vsel %vm1792_vm14, %v1784_v1, %v1800_v55  ;;  %v1786_v62 = vadd.f32 %v3672_v3, %v1756_v59  ;;  %v5839_v46 = vld [vmem:[#allocation2 + $0x20] sm:$0xff]  ;;  %v5910_v25 = vld [vmem:[#allocation2 + $0x37] sm:$0xff] }
 0x181   : > { %1816 = vst.msk [vmem:[#allocation2 + $0x80] sm:$0xff] %vm331_vm0, %v1808_v42  ;;  %vm1795_vm15 = vcmp.gt.f32.partialorder %v1787_v57, 0.0  ;;  %v1803_v27 = vmul.f32 0.2, %v1787_v57  ;;  %4400 = vmatmul.mubr.msk.f32.vlgmr.msra.gmra.mrb[0].mxu1 %vm331_vm0, %v5839_v46  ;;  %v5900_v19 = vld [vmem:[#allocation2 + $0x1f] sm:$0xff]  ;;  %v3719_v55 = vld [vmem:[%s6272_s3 + $0xf0] sm:$0xff] }
 0x182   : > { %vm1794_vm1 = vcmp.gt.f32.partialorder %v1786_v62, 0.0  ;;  %v1802_v32 = vmul.f32 0.2, %v1786_v62  ;;  %4402 = vmatprep.mubr.msk.f32.mxu1 %vm331_vm0, %v5851_v31  ;;  %4835 = vmatpush3.bf16.msra.mxu1 %v5783_v2  ;;  %v5954_v1 = vld [vmem:[#allocation2 + $0x21] sm:$0xff]  ;;  %v5964_v7 = vld [vmem:[#allocation2 + $0x39] sm:$0xff] }
 0x183   : > { %v1811_v13 = vsel %vm1795_vm15, %v1787_v57, %v1803_v27  ;;  %4837 = vmatprep.subr.bf16.mxu1 %v4836_v61  ;;  %v5870_v2 = vld [vmem:[#allocation2 + $0x68] sm:$0xff]  ;;  %v3720_v56 = vld [vmem:[%s6272_s3 + $0xf8] sm:$0xff]  ;;  %v3731_v27 = vld [vmem:[%s6272_s3 + $0x110] sm:$0xff] }
 0x184   : > { %1819 = vst.msk [vmem:[#allocation2 + $0xc8] sm:$0xff] %vm331_vm0, %v1811_v13  ;;  %v1810_v37 = vsel %vm1794_vm1, %v1786_v62, %v1802_v32  ;;  %v5859_v43 = vld [vmem:[#allocation2 + $0x50] sm:$0xff]  ;;  %v5924_v30 = vld [vmem:[#allocation2 + $0x67] sm:$0xff]  ;;  %v4876_v57 = vpack.c.bf16 %v3720_v56, %v3719_v55  ;;  %v3732_v32 = vld [vmem:[%s6272_s3 + $0x118] sm:$0xff] }
 0x185   : > { %1818 = vst.msk [vmem:[#allocation2 + $0xb0] sm:$0xff] %vm331_vm0, %v1810_v37  ;;  %4403 = vmatmul.mubr.msk.f32.gmra.mrb[2].mxu1 %vm331_vm0, %v5859_v43  ;;  %v5914_v28 = vld [vmem:[#allocation2 + $0x4f] sm:$0xff]  ;;  %v4884_v13 = vpack.c.bf16 %v3732_v32, %v3731_v27  ;;  %v3768_v56 = vld [vmem:[%s6272_s3 + $0x1b8] sm:$0xff] }
 0x186   : > { %4405 = vmatprep.mubr.msk.f32.mxu1 %vm331_vm0, %v5870_v2  ;;  %4839 = vmatpush3.bf16.msra.mxu1 %v4836_v61  ;;  %v5968_v54 = vld [vmem:[#allocation2 + $0x51] sm:$0xff]  ;;  %v5978_v21 = vld [vmem:[#allocation2 + $0x69] sm:$0xff]  ;;  %v3729_v61 = vld [vmem:[%s6272_s3 + $0x100] sm:$0xff] }
 0x187   : > { %4841 = vmatprep.subr.bf16.mxu1 %v4840_v36  ;;  %v5884_v41 = vld [vmem:[#allocation2 + $0x98] sm:$0xff]  ;;  %v3730_v42 = vld [vmem:[%s6272_s3 + $0x108] sm:$0xff]  ;;  %v3779_v32 = vld [vmem:[%s6272_s3 + $0x1d0] sm:$0xff] }
 0x188   : > { %v5874_v3 = vld [vmem:[#allocation2 + $0x80] sm:$0xff]  ;;  %v5938_v40 = vld [vmem:[#allocation2 + $0x97] sm:$0xff]  ;;  %v4880_v52 = vpack.c.bf16 %v3730_v42, %v3729_v61  ;;  %v3734_v37 = vld [vmem:[%s6272_s3 + $0x128] sm:$0xff] }
 0x189   : > { %4406 = vmatmul.mubr.msk.f32.gmra.mrb[4].mxu1 %vm331_vm0, %v5874_v3  ;;  %v5928_v34 = vld [vmem:[#allocation2 + $0x7f] sm:$0xff]  ;;  %v3778_v42 = vld [vmem:[%s6272_s3 + $0x1c8] sm:$0xff] }
 0x18a   : > { %4408 = vmatprep.mubr.msk.f32.mxu1 %vm331_vm0, %v5884_v41  ;;  %4843 = vmatpush3.bf16.msra.mxu1 %v4840_v36  ;;  %v5982_v59 = vld [vmem:[#allocation2 + $0x81] sm:$0xff]  ;;  %v5992_v62 = vld [vmem:[#allocation2 + $0x99] sm:$0xff] }
 0x18b   : > { %4845 = vmatprep.subr.bf16.mxu1 %v4844_v14  ;;  %v3733_v36 = vld [vmem:[%s6272_s3 + $0x120] sm:$0xff]  ;;  %v6080_v48 = vld [vmem:[#allocation2 + $0xc8] sm:$0xff] }
 0x18c   : > { %v5888_v11 = vld [vmem:[#allocation2 + $0xb0] sm:$0xff]  ;;  %v4888_v63 = vpack.c.bf16 %v3734_v37, %v3733_v36  ;;  %v6038_v16 = vld [vmem:[#allocation2 + $0xc7] sm:$0xff] }
 0x18d   : > { %4409 = vmatmul.mubr.msk.f32.gmra.mrb[6].mxu1 %vm331_vm0, %v5888_v11  ;;  %v5942_v45 = vld [vmem:[#allocation2 + $0xaf] sm:$0xff]  ;;  %v3777_v61 = vld [vmem:[%s6272_s3 + $0x1c0] sm:$0xff] }
 0x18e   : > { %4847 = vmatpush3.bf16.msra.mxu1 %v4844_v14  ;;  %4427 = vmatprep.mubr.msk.f32.mxu1 %vm331_vm0, %v5414_v60  ;;  %v4856_v60 = vpack.c.bf16 %v3702_v24, %v3701_v23  ;;  %v5996_v58 = vld [vmem:[#allocation2 + $0xb1] sm:$0xff]  ;;  %v3749_v24 = vld [vmem:[%s6272_s3 + $0x160] sm:$0xff]  ;;  %v6122_v27 = vld [vmem:[#allocation2 + $0xc9] sm:$0xff] }
 0x18f   : > { %4849 = vmatprep.subr.bf16.mxu1 %v4848_v10  ;;  %v3736_v14 = vld [vmem:[%s6272_s3 + $0x138] sm:$0xff]  ;;  %v3781_v37 = vld [vmem:[%s6272_s3 + $0x1e0] sm:$0xff] }
 0x190   : > { %v4892_v4 = vpack.c.bf16 %v3736_v14, %v3735_v0  ;;  %v3784_v14 = vld [vmem:[%s6272_s3 + $0x1f8] sm:$0xff] }
 0x191   : > { %4428 = vmatmul.mubr.msk.f32.vlgmr.msra.gmra.mrb[0].mxu1 %vm331_vm0, %v5900_v19 }
 0x192   : > { %4430 = vmatprep.mubr.msk.f32.mxu1 %vm331_vm0, %v5910_v25  ;;  %4851 = vmatpush3.bf16.msra.mxu1 %v4848_v10  ;;  %v3746_v10 = vld [vmem:[%s6272_s3 + $0x148] sm:$0xff] }
 0x193   : > { %4853 = vmatprep.subr.bf16.mxu1 %v4852_v18  ;;  %v4896_v12 = vpack.c.bf16 %v3746_v10, %v3745_v8  ;;  %v3796_v8 = vld [vmem:[%s6272_s3 + $0x218] sm:$0xff]  ;;  %v3797_v10 = vld [vmem:[%s6272_s3 + $0x220] sm:$0xff] }
 0x195   : > { %4431 = vmatmul.mubr.msk.f32.gmra.mrb[2].mxu1 %vm331_vm0, %v5914_v28 }
 0x196   : > { %4433 = vmatprep.mubr.msk.f32.mxu1 %vm331_vm0, %v5924_v30  ;;  %4855 = vmatpush3.bf16.msra.mxu1 %v4852_v18  ;;  %v3747_v18 = vld [vmem:[%s6272_s3 + $0x150] sm:$0xff] }
 0x197   : > { %4857 = vmatprep.subr.bf16.mxu1 %v4856_v60 }
 0x199   : > { %4434 = vmatmul.mubr.msk.f32.gmra.mrb[4].mxu1 %vm331_vm0, %v5928_v34 }
 0x19a   : > { %4436 = vmatprep.mubr.msk.f32.mxu1 %vm331_vm0, %v5938_v40  ;;  %4859 = vmatpush3.bf16.msra.mxu1 %v4856_v60  ;;  %v3750_v60 = vld [vmem:[%s6272_s3 + $0x168] sm:$0xff] }
 0x19b   : > { %4861 = vmatprep.subr.bf16.mxu1 %v4860_v33  ;;  %v4904_v29 = vpack.c.bf16 %v3750_v60, %v3749_v24 }
 0x19d   : > { %4437 = vmatmul.mubr.msk.f32.gmra.mrb[6].mxu1 %vm331_vm0, %v5942_v45 }
 0x19e   : > { %4863 = vmatpush3.bf16.msra.mxu1 %v4860_v33  ;;  %4455 = vmatprep.mubr.msk.f32.mxu1 %vm331_vm0, %v5477_v22  ;;  %v4872_v22 = vpack.c.bf16 %v3718_v5, %v3717_v53  ;;  %v3765_v5 = vld [vmem:[%s6272_s3 + $0x1a0] sm:$0xff] }
 0x19f   : > { %4865 = vmatprep.subr.bf16.mxu1 %v4864_v44 }
 0x1a1   : > { %4456 = vmatmul.mubr.msk.f32.vlgmr.msra.gmra.mrb[0].mxu1 %vm331_vm0, %v5954_v1 }
 0x1a2   : > { %4458 = vmatprep.mubr.msk.f32.mxu1 %vm331_vm0, %v5964_v7  ;;  %4867 = vmatpush3.bf16.msra.mxu1 %v4864_v44  ;;  %v4912_v44 = vpack.c.bf16 %v3762_v39, %v3761_v35 }
 0x1a3   : > { %4869 = vmatprep.subr.bf16.mxu1 %v4868_v50 }
 0x1a5   : > { %4459 = vmatmul.mubr.msk.f32.gmra.mrb[2].mxu1 %vm331_vm0, %v5968_v54 }
 0x1a6   : > { %4461 = vmatprep.mubr.msk.f32.mxu1 %vm331_vm0, %v5978_v21  ;;  %4871 = vmatpush3.bf16.msra.mxu1 %v4868_v50  ;;  %v3764_v50 = vld [vmem:[%s6272_s3 + $0x198] sm:$0xff] }
 0x1a7   : > { %4873 = vmatprep.subr.bf16.mxu1 %v4872_v22  ;;  %v4916_v53 = vpack.c.bf16 %v3764_v50, %v3763_v49 }
 0x1a9   : > { %4462 = vmatmul.mubr.msk.f32.gmra.mrb[4].mxu1 %vm331_vm0, %v5982_v59 }
 0x1aa   : > { %4464 = vmatprep.mubr.msk.f32.mxu1 %vm331_vm0, %v5992_v62  ;;  %4875 = vmatpush3.bf16.msra.mxu1 %v4872_v22  ;;  %v3766_v22 = vld [vmem:[%s6272_s3 + $0x1a8] sm:$0xff] }
 0x1ab   : > { %4877 = vmatprep.subr.bf16.mxu1 %v4876_v57  ;;  %v4920_v55 = vpack.c.bf16 %v3766_v22, %v3765_v5 }
 0x1ad   : > { %4465 = vmatmul.mubr.msk.f32.gmra.mrb[6].mxu1 %vm331_vm0, %v5996_v58 }
 0x1ae   : > { %4879 = vmatpush3.bf16.msra.mxu1 %v4876_v57  ;;  %4483 = vmatprep.mubr.msk.f32.mxu1 %vm331_vm0, %v5900_v19  ;;  %v3748_v19 = vld [vmem:[%s6272_s3 + $0x158] sm:$0xff] }
 0x1af   : > { %4881 = vmatprep.subr.bf16.mxu1 %v4880_v52  ;;  %v4900_v23 = vpack.c.bf16 %v3748_v19, %v3747_v18 }
 0x1b1   : > { %4484 = vmatmul.mubr.msk.f32.vlgmr.msra.gmra.mrb[0].mxu1 %vm331_vm0, %v5910_v25 }
 0x1b2   : > { %4486 = vmatprep.mubr.msk.f32.mxu1 %vm331_vm0, %v5914_v28  ;;  %4883 = vmatpush3.bf16.msra.mxu1 %v4880_v52  ;;  %v4928_v52 = vpack.c.bf16 %v3778_v42, %v3777_v61 }
 0x1b3   : > { %4885 = vmatprep.subr.bf16.mxu1 %v4884_v13 }
 0x1b5   : > { %4487 = vmatmul.mubr.msk.f32.gmra.mrb[2].mxu1 %vm331_vm0, %v5924_v30 }
 0x1b6   : > { %4489 = vmatprep.mubr.msk.f32.mxu1 %vm331_vm0, %v5928_v34  ;;  %4887 = vmatpush3.bf16.msra.mxu1 %v4884_v13  ;;  %v3780_v13 = vld [vmem:[%s6272_s3 + $0x1d8] sm:$0xff] }
 0x1b7   : > { %4889 = vmatprep.subr.bf16.mxu1 %v4888_v63  ;;  %v4932_v36 = vpack.c.bf16 %v3780_v13, %v3779_v32 }
 0x1b9   : > { %4490 = vmatmul.mubr.msk.f32.gmra.mrb[4].mxu1 %vm331_vm0, %v5938_v40 }
 0x1ba   : > { %4492 = vmatprep.mubr.msk.f32.mxu1 %vm331_vm0, %v5942_v45  ;;  %4891 = vmatpush3.bf16.msra.mxu1 %v4888_v63  ;;  %v3782_v63 = vld [vmem:[%s6272_s3 + $0x1e8] sm:$0xff] }
 0x1bb   : > { %4893 = vmatprep.subr.bf16.mxu1 %v4892_v4  ;;  %v4936_v0 = vpack.c.bf16 %v3782_v63, %v3781_v37 }
 0x1bd   : > { %4493 = vmatmul.mubr.msk.f32.gmra.mrb[6].mxu1 %vm331_vm0, %v6038_v16 }
 0x1be   : > { %4895 = vmatpush3.bf16.msra.mxu1 %v4892_v4  ;;  %4511 = vmatprep.mubr.msk.f32.mxu1 %vm331_vm0, %v5839_v46  ;;  %v3751_v46 = vld [vmem:[%s6272_s3 + $0x170] sm:$0xff]  ;;  %v3794_v4 = vld [vmem:[%s6272_s3 + $0x208] sm:$0xff] }
 0x1bf   : > { %4897 = vmatprep.subr.bf16.mxu1 %v4896_v12  ;;  %v4908_v33 = vpack.c.bf16 %v3752_v26, %v3751_v46 }
 0x1c1   : > { %4512 = vmatmul.mubr.msk.f32.vlgmr.msra.gmra.mrb[0].mxu1 %vm331_vm0, %v5851_v31 }
 0x1c2   : > { %4514 = vmatprep.mubr.msk.f32.mxu1 %vm331_vm0, %v5859_v43  ;;  %4899 = vmatpush3.bf16.msra.mxu1 %v4896_v12  ;;  %v3798_v12 = vld [vmem:[%s6272_s3 + $0x228] sm:$0xff] }
 0x1c3   : > { %4901 = vmatprep.subr.bf16.mxu1 %v4900_v23 }
 0x1c5   : > { %4515 = vmatmul.mubr.msk.f32.gmra.mrb[2].mxu1 %vm331_vm0, %v5870_v2 }
 0x1c6   : > { %4517 = vmatprep.mubr.msk.f32.mxu1 %vm331_vm0, %v5874_v3  ;;  %4903 = vmatpush3.bf16.msra.mxu1 %v4900_v23  ;;  %v3810_v23 = vld [vmem:[%s6275_s6] ss:$0 sm:$0xff] }
 0x1c7   : > { %4905 = vmatprep.subr.bf16.mxu1 %v4904_v29 }
 0x1c9   : > { %4518 = vmatmul.mubr.msk.f32.gmra.mrb[4].mxu1 %vm331_vm0, %v5884_v41 }
 0x1ca   : > { %4520 = vmatprep.mubr.msk.f32.mxu1 %vm331_vm0, %v5888_v11  ;;  %4907 = vmatpush3.bf16.msra.mxu1 %v4904_v29 }
 0x1cb   : > { %4909 = vmatprep.subr.bf16.mxu1 %v4908_v33 }
 0x1cd   : > { %4521 = vmatmul.mubr.msk.f32.gmra.mrb[6].mxu1 %vm331_vm0, %v6080_v48 }
 0x1ce   : > { %4911 = vmatpush3.bf16.msra.mxu1 %v4908_v33  ;;  %4539 = vmatprep.mubr.msk.f32.mxu1 %vm331_vm0, %v5954_v1  ;;  %v3767_v1 = vld [vmem:[%s6272_s3 + $0x1b0] sm:$0xff] }
 0x1cf   : > { %4913 = vmatprep.subr.bf16.mxu1 %v4912_v44  ;;  %v4924_v57 = vpack.c.bf16 %v3768_v56, %v3767_v1 }
 0x1d1   : > { %4540 = vmatmul.mubr.msk.f32.vlgmr.msra.gmra.mrb[0].mxu1 %vm331_vm0, %v5964_v7 }
 0x1d2   : > { %4542 = vmatprep.mubr.msk.f32.mxu1 %vm331_vm0, %v5968_v54  ;;  %4915 = vmatpush3.bf16.msra.mxu1 %v4912_v44 }
 0x1d3   : > { %4917 = vmatprep.subr.bf16.mxu1 %v4916_v53 }
 0x1d5   : > { %4543 = vmatmul.mubr.msk.f32.gmra.mrb[2].mxu1 %vm331_vm0, %v5978_v21 }
 0x1d6   : > { %4545 = vmatprep.mubr.msk.f32.mxu1 %vm331_vm0, %v5982_v59  ;;  %4919 = vmatpush3.bf16.msra.mxu1 %v4916_v53 }
 0x1d7   : > { %4921 = vmatprep.subr.bf16.mxu1 %v4920_v55 }
 0x1d9   : > { %4546 = vmatmul.mubr.msk.f32.gmra.mrb[4].mxu1 %vm331_vm0, %v5992_v62 }
 0x1da   : > { %4548 = vmatprep.mubr.msk.f32.mxu1 %vm331_vm0, %v5996_v58  ;;  %4923 = vmatpush3.bf16.msra.mxu1 %v4920_v55 }
 0x1db   : > { %4925 = vmatprep.subr.bf16.mxu1 %v4924_v57 }
 0x1dd   : > { %4549 = vmatmul.mubr.msk.f32.gmra.mrb[6].mxu1 %vm331_vm0, %v6122_v27 }
 0x1de   : > { %4927 = vmatpush3.bf16.msra.mxu1 %v4924_v57  ;;  %4567 = vmatprep.mubr.msk.f32.mxu1 %vm331_vm0, %v5910_v25  ;;  %v3783_v25 = vld [vmem:[%s6272_s3 + $0x1f0] sm:$0xff] }
 0x1df   : > { %4929 = vmatprep.subr.bf16.mxu1 %v4928_v52 }
 0x1e1   : > { %4568 = vmatmul.mubr.msk.f32.vlgmr.msra.gmra.mrb[0].mxu1 %vm331_vm0, %v5914_v28  ;;  %v4940_v28 = vpack.c.bf16 %v3784_v14, %v3783_v25 }
 0x1e2   : > { %4570 = vmatprep.mubr.msk.f32.mxu1 %vm331_vm0, %v5924_v30  ;;  %4931 = vmatpush3.bf16.msra.mxu1 %v4928_v52  ;;  %v3793_v30 = vld [vmem:[%s6272_s3 + $0x200] sm:$0xff] }
 0x1e3   : > { %4933 = vmatprep.subr.bf16.mxu1 %v4932_v36 }
 0x1e5   : > { %4571 = vmatmul.mubr.msk.f32.gmra.mrb[2].mxu1 %vm331_vm0, %v5928_v34  ;;  %v4944_v34 = vpack.c.bf16 %v3794_v4, %v3793_v30 }
 0x1e6   : > { %4573 = vmatprep.mubr.msk.f32.mxu1 %vm331_vm0, %v5938_v40  ;;  %4935 = vmatpush3.bf16.msra.mxu1 %v4932_v36  ;;  %v3795_v40 = vld [vmem:[%s6272_s3 + $0x210] sm:$0xff] }
 0x1e7   : > { %4937 = vmatprep.subr.bf16.mxu1 %v4936_v0 }
 0x1e9   : > { %4574 = vmatmul.mubr.msk.f32.gmra.mrb[4].mxu1 %vm331_vm0, %v5942_v45  ;;  %v4948_v45 = vpack.c.bf16 %v3796_v8, %v3795_v40 }
 0x1ea   : > { %4576 = vmatprep.mubr.msk.f32.mxu1 %vm331_vm0, %v6038_v16  ;;  %4939 = vmatpush3.bf16.msra.mxu1 %v4936_v0  ;;  %v3800_v16 = vld [vmem:[%s6272_s3 + $0x238] sm:$0xff] }
 0x1eb   : > { %4941 = vmatprep.subr.bf16.mxu1 %v4940_v28 }
 0x1ed   : > { %4577 = vmatmul.mubr.msk.f32.gmra.mrb[6].mxu1 %vm331_vm0, %v5699_v15  ;;  %v4952_v15 = vpack.c.bf16 %v3798_v12, %v3797_v10 }
 0x1ee   : > { %4943 = vmatpush3.bf16.msra.mxu1 %v4940_v28  ;;  %4595 = vmatprep.mubr.msk.f32.mxu1 %vm331_vm0, %v5851_v31  ;;  %v3799_v31 = vld [vmem:[%s6272_s3 + $0x230] sm:$0xff] }
 0x1ef   : > { %4945 = vmatprep.subr.bf16.mxu1 %v4944_v34 }
 0x1f1   : > { %4596 = vmatmul.mubr.msk.f32.vlgmr.msra.gmra.mrb[0].mxu1 %vm331_vm0, %v5859_v43  ;;  %v4956_v43 = vpack.c.bf16 %v3800_v16, %v3799_v31 }
 0x1f2   : > { %4598 = vmatprep.mubr.msk.f32.mxu1 %vm331_vm0, %v5870_v2  ;;  %4947 = vmatpush3.bf16.msra.mxu1 %v4944_v34  ;;  %v5153_v2 = vld [vmem:[%s5328_s13 + $0x28] sm:$0xff] }
 0x1f3   : > { %4949 = vmatprep.subr.bf16.mxu1 %v4948_v45 }
 0x1f5   : > { %4599 = vmatmul.mubr.msk.f32.gmra.mrb[2].mxu1 %vm331_vm0, %v5874_v3  ;;  %v5155_v3 = vld [vmem:[%s5328_s13 + $0x38] sm:$0xff] }
 0x1f6   : > { %4601 = vmatprep.mubr.msk.f32.mxu1 %vm331_vm0, %v5884_v41  ;;  %4951 = vmatpush3.bf16.msra.mxu1 %v4948_v45  ;;  %v3403_v41 = vld [vmem:[%s6276_s7] sm:$0xff] }
 0x1f7   : > { %4953 = vmatprep.subr.bf16.mxu1 %v4952_v15 }
 0x1f9   : > { %4602 = vmatmul.mubr.msk.f32.gmra.mrb[4].mxu1 %vm331_vm0, %v5888_v11  ;;  %v3404_v11 = vld [vmem:[%s6276_s7 + $0x8] sm:$0xff] }
 0x1fa   : > { %4604 = vmatprep.mubr.msk.f32.mxu1 %vm331_vm0, %v6080_v48  ;;  %4955 = vmatpush3.bf16.msra.mxu1 %v4952_v15 }
 0x1fb   : > { %4957 = vmatprep.subr.bf16.mxu1 %v4956_v43 }
 0x1fd   : > { %4605 = vmatmul.mubr.msk.f32.gmra.mrb[6].mxu1 %vm331_vm0, %v5735_v47  ;;  %v5150_v47 = vld [vmem:[%s5328_s13 + $0x10] sm:$0xff] }
 0x1fe   : > { %4959 = vmatpush3.bf16.msra.mxu1 %v4956_v43  ;;  %4623 = vmatprep.mubr.msk.f32.mxu1 %vm331_vm0, %v5964_v7  ;;  %v5165_v7 = vmov 0.0|0.0  }
 0x1ff   : > { %4979 = vmatprep.subr.bf16.mxu1 %v5795_v9  ;;  %4976 = vmatprep.subr.bf16.mxu0 %v5165_v7  ;;  %v3406_v7 = vld [vmem:[#allocation3] sm:$0x1] }
 0x201   : > { %4624 = vmatmul.mubr.msk.f32.vlgmr.msra.gmra.mrb[0].mxu1 %vm331_vm0, %v5968_v54  ;;  %v4977_v54 = vpack.c.bf16 %v3404_v11, %v3403_v41 }
 0x202   : > { %4626 = vmatprep.mubr.msk.f32.mxu1 %vm331_vm0, %v5978_v21  ;;  %4983 = vmatpush3.bf16.msra.mxu1 %v5795_v9  ;;  %v5151_v9 = vld [vmem:[%s5328_s13 + $0x18] sm:$0xff]  ;;  %v3405_v21 = vld [vmem:[%s6276_s7 + $0x10] sm:$0xff] }
 0x203   : > { %4980 = vmatprep.subr.bf16.mxu1 %v5805_v20  ;;  %4978 = vmatpush3.bf16.msra.mxu0 %v4977_v54 }
 0x204   : > { %4667 = vmatprep.subr.mxu0 %v5164_v6 }
 0x205   : > { %4627 = vmatmul.mubr.msk.f32.gmra.mrb[2].mxu1 %vm331_vm0, %v5982_v59  ;;  %v3809_v59 = vld [vmem:[%s6273_s4] ss:$0 sm:$0xff] }
 0x206   : > { %4629 = vmatprep.mubr.msk.f32.mxu1 %vm331_vm0, %v5992_v62  ;;  %4984 = vmatpush3.bf16.msra.mxu1 %v5805_v20  ;;  %v5152_v20 = vld [vmem:[%s5328_s13 + $0x20] sm:$0xff]  ;;  %v4995_v49 = vadd.f32 %v3810_v23, %v3809_v59 }
 0x207   : > { %4981 = vmatprep.subr.bf16.mxu1 %v5817_v38  ;;  %4668 = vmatpush3.msra.mxu0 %v3405_v21 }
 0x209   : > { %4630 = vmatmul.mubr.msk.f32.gmra.mrb[4].mxu1 %vm331_vm0, %v5996_v58 }
 0x20a   : > { %4632 = vmatprep.mubr.msk.f32.mxu1 %vm331_vm0, %v6122_v27  ;;  %4985 = vmatpush3.bf16.msra.mxu1 %v5817_v38  ;;  %v5154_v38 = vld [vmem:[%s5328_s13 + $0x30] sm:$0xff] }
 0x20b   : > { %4982 = vmatprep.subr.bf16.mxu1 %v5835_v17 }
 0x20d   : > { %4633 = vmatmul.mubr.msk.f32.gmra.mrb[6].mxu1 %vm331_vm0, %v5753_v51  ;;  %v4653_v51 = vpop.f32.mrb[8].mxu0 }
 0x20e   : > { %4986 = vmatpush3.bf16.msra.mxu1 %v5835_v17  ;;  %4654 = vmatprep.mubr.msk.f32.mxu1 %vm331_vm0, %v5150_v47  ;;  %v3309_v17 = vpop.f32.mrb[9].mxu0 }
 0x211   : > { %4655 = vmatmul.mubr.msk.f32.vlgmr.msra.gmra.mrb[2].mxu1 %vm331_vm0, %v5151_v9 }
 0x212   : > { %4657 = vmatprep.mubr.msk.f32.mxu1 %vm331_vm0, %v5152_v20 }
 0x215   : > { %4658 = vmatmul.mubr.msk.f32.gmra.mrb[4].mxu1 %vm331_vm0, %v5153_v2 }
 0x216   : > { %4660 = vmatprep.mubr.msk.f32.mxu1 %vm331_vm0, %v5154_v38 }
 0x219   : > { %4661 = vmatmul.mubr.msk.f32.gmra.mrb[6].mxu1 %vm331_vm0, %v5155_v3 }
 0x2d4   : > { %v4625_v62 = vpop.f32.mrb[0].mxu1 }
 0x2d5   : > { %v4987_v58 = vadd.f32 %v4625_v62, %v3809_v59  ;;  %v3142_v18 = vpop.f32.mrb[1].mxu1 }
 0x2d6   : > { %v4990_v19 = vadd.f32 %v3809_v59, %v3142_v18 }
 0x2d7   : > { %v4988_v24 = vadd.f32 %v4987_v58, %v4653_v51 }
 0x2d8   : > { %v4991_v60 = vadd.f32 %v4990_v19, %v3309_v17 }
 0x2d9   : > { %v4989_v6 = vadd.f32 %v4988_v24, %v3810_v23 }
 0x2da   : > { %v4992_v29 = vadd.f32 %v4991_v60, %v3810_v23 }
 0x2db   : > { %vm3357_vm0 = vcmp.gt.f32.partialorder %v4989_v6, 0.0  ;;  %v3365_v46 = vmul.f32 0.2, %v4989_v6 }
 0x2dc   : > { %vm3356_vm4 = vcmp.gt.f32.partialorder %v4992_v29, 0.0  ;;  %v3364_v26 = vmul.f32 0.2, %v4992_v29 }
 0x2dd   : > { %v3373_v33 = vsel %vm3357_vm0, %v4989_v6, %v3365_v46 }
 0x2de   : > { %v3382_v35 = vsel %vm3380_vm3, %v3373_v33, 0.0  ;;  %v3372_v39 = vsel %vm3356_vm4, %v4992_v29, %v3364_v26 }
 0x2df   : > { %v3381_v44 = vsel %vm3380_vm3, %v3372_v39, 0.0 }
 0x2e0   : > { %v3383_v48 = vadd.f32 %v3382_v35, %v3381_v44 }
 0x2e4   : > { %v4656_v50 = vpop.f32.mrb[2].mxu1 }
 0x2e5   : > { %v4994_v53 = vadd.f32 %v4995_v49, %v4656_v50  ;;  %v3319_v5 = vpop.f32.mrb[3].mxu1 }
 0x2e6   : > { %v4996_v22 = vadd.f32 %v4995_v49, %v3319_v5 }
 0x2e7   : > { %vm3359_vm5 = vcmp.gt.f32.partialorder %v4994_v53, 0.0  ;;  %v3367_v55 = vmul.f32 0.2, %v4994_v53 }
 0x2e8   : > { %vm3358_vm6 = vcmp.gt.f32.partialorder %v4996_v22, 0.0  ;;  %v3366_v1 = vmul.f32 0.2, %v4996_v22  ;;  %v4659_v56 = vpop.f32.mrb[4].mxu1 }
 0x2e9   : > { %v4998_v57 = vadd.f32 %v4995_v49, %v4659_v56  ;;  %v3329_v61 = vpop.f32.mrb[5].mxu1  ;;  %v3375_v42 = vsel %vm3359_vm5, %v4994_v53, %v3367_v55 }
 0x2ea   : > { %v3374_v52 = vsel %vm3358_vm6, %v4996_v22, %v3366_v1  ;;  %v5000_v27 = vadd.f32 %v4995_v49, %v3329_v61  ;;  %v3386_v0 = vsel %vm3380_vm3, %v3375_v42, 0.0 }
 0x2eb   : > { %v3384_v32 = vsel %vm3380_vm3, %v3374_v52, 0.0  ;;  %vm3361_vm7 = vcmp.gt.f32.partialorder %v4998_v57, 0.0  ;;  %v3369_v13 = vmul.f32 0.2, %v4998_v57 }
 0x2ec   : > { %v3385_v36 = vadd.f32 %v3384_v32, %v3383_v48  ;;  %vm3360_vm8 = vcmp.gt.f32.partialorder %v5000_v27, 0.0  ;;  %v3368_v37 = vmul.f32 0.2, %v5000_v27  ;;  %v4662_v63 = vpop.f32.mrb[6].mxu1 }
 0x2ed   : > { %v5002_v25 = vadd.f32 %v4995_v49, %v4662_v63  ;;  %v3339_v14 = vpop.f32.mrb[7].mxu1  ;;  %v3377_v28 = vsel %vm3361_vm7, %v4998_v57, %v3369_v13 }
 0x2ee   : > { %v3376_v30 = vsel %vm3360_vm8, %v5000_v27, %v3368_v37  ;;  %v3387_v4 = vadd.f32 %v3386_v0, %v3385_v36  ;;  %v5004_v34 = vadd.f32 %v4995_v49, %v3339_v14  ;;  %v3390_v12 = vsel %vm3380_vm3, %v3377_v28, 0.0 }
 0x2ef   : > { %v3388_v40 = vsel %vm3380_vm3, %v3376_v30, 0.0  ;;  %vm3363_vm9 = vcmp.gt.f32.partialorder %v5002_v25, 0.0  ;;  %v3371_v8 = vmul.f32 0.2, %v5002_v25 }
 0x2f0   : > { %v3389_v45 = vadd.f32 %v3388_v40, %v3387_v4  ;;  %vm3362_vm10 = vcmp.gt.f32.partialorder %v5004_v34, 0.0  ;;  %v3370_v10 = vmul.f32 0.2, %v5004_v34 }
 0x2f1   : > { %v3379_v15 = vsel %vm3363_vm9, %v5002_v25, %v3371_v8 }
 0x2f2   : > { %v3378_v31 = vsel %vm3362_vm10, %v5004_v34, %v3370_v10  ;;  %v3391_v16 = vadd.f32 %v3390_v12, %v3389_v45  ;;  %v3394_v9 = vsel %vm3380_vm3, %v3379_v15, 0.0 }
 0x2f3   : > { %v3392_v43 = vsel %vm3380_vm3, %v3378_v31, 0.0 }
 0x2f4   : > { %v3393_v47 = vadd.f32 %v3392_v43, %v3391_v16 }
 0x2f6   : > { %v3395_v20 = vadd.f32 %v3394_v9, %v3393_v47 }
 0x2f8   : > { %v3396_v2 = vrot.slane %v3395_v20, 4 }
 0x2fa   : > { %v3397_v38 = vadd.f32 %v3396_v2, %v3395_v20 }
 0x2fc   : > { %v3398_v3 = vrot.slane %v3397_v38, 2 }
 0x2fe   : > { %v3399_v51 = vadd.f32 %v3398_v3, %v3397_v38 }
 0x300   : > { %v3400_v17 = vrot.slane %v3399_v51, 1 }
 0x302   : > { %v3401_v41 = vadd.f32 %v3400_v17, %v3399_v51 }
 0x304   : > { %v3402_v11 = vmul.f32 0.015625, %v3401_v41 }
 0x306   : > { %4670 = vmatmul.mubr.msk.f32.vlgmr.msra.gmra.mrb[10].mxu0 %vm3380_vm3, %v3402_v11 }
 0x3d9   : > { %v3476_v54 = vpop.f32.mrb[10].mxu0 }
 0x3da   : > { %v3477_v21 = vadd.f32 %v3476_v54, %v3406_v7  ;;  %v4671_v59 = vpop.f32.mrb[11].mxu0 }
 0x3dc   : > { %3481 = vst.msk [vmem:[%s330_s29] sm:$0x1] %vm3480_vm11, %v3477_v21 }
 0x3dd PF: > { %s21_s11 = sadd.s32 1, %s5162_s11  }
 0x3de   : > { %p18_p4 = scmp.ge.s32.totalorder %s21_s11, 4  }
 0x3e0   :  { %20 = sbr.rel (!%p18_p4) target bundleno = 3 (0x3), region = 104 }

</bundles_post_ra>
